<compile_context>
chip_gen: v7x
topology: tpu7x:2x2x1
jax: 0.10.0
libtpu: 0.0.40
codegen_flags: <defaults>
</compile_context>

<pallas_src>
import functools

import jax
import jax.numpy as jnp
import numpy as np
from jax.experimental import pallas as pl
from jax.experimental.pallas import tpu as pltpu

EPS = 1e-5
_STAT_ROWS = 8  # sublane-aligned rows for the per-image partial-stat outputs


# --------------------------------------------------------------------------- #
# Pass A: 3x3 conv (as one K=9C GEMM) + per-image BN partial statistics.       #
# --------------------------------------------------------------------------- #
def conv3x3_stats_kernel(xpad_ref, w_ref, out_ref, sum_ref, sq_ref, *, fold_taps):
    """One padded image -> conv output + per-channel sum / sumsq partials.

    xpad_ref: (H+2, W+2, C)  zero-padded NHWC activation of image i (batch squeezed)
    w_ref:    (9*C, C)       tap-major weights (rows: tap t = ky*3+kx, then Cin)
    out_ref:  (H*W, C)       conv output for image i (flattened spatial)
    sum_ref:  (8, C)         all rows equal per-channel sum over this image
    sq_ref:   (8, C)         all rows equal per-channel sum of squares
    """
    Hp2, Wp2, C = xpad_ref.shape
    H, W = Hp2 - 2, Wp2 - 2
    M = H * W

    # In-VMEM im2col: 9 shifted (H, W, C) windows of the padded tile.
    cols = []
    for ky in range(3):
        for kx in range(3):
            cols.append(xpad_ref[ky:ky + H, kx:kx + W, :].reshape(M, C))

    if fold_taps:
        # Single MXU GEMM with contraction depth 9*C.
        patches = jnp.concatenate(cols, axis=-1)            # (M, 9*C)
        acc = jnp.dot(patches, w_ref[...], preferred_element_type=jnp.float32)
    else:
        # Fallback: nine accumulated K=C dots (same math, lower MXU efficiency).
        acc = jnp.zeros((M, C), jnp.float32)
        for t in range(9):
            acc = acc + jnp.dot(cols[t], w_ref[t * C:(t + 1) * C, :],
                                preferred_element_type=jnp.float32)

    # NOTE: the conv bias is intentionally omitted -- training-mode BN subtracts the
    # batch mean, which cancels any per-channel constant exactly.
    out_ref[...] = acc

    s = jnp.sum(acc, axis=0, keepdims=True)                  # (1, C)
    ss = jnp.sum(acc * acc, axis=0, keepdims=True)           # (1, C)
    sum_ref[...] = jnp.broadcast_to(s, sum_ref.shape)
    sq_ref[...] = jnp.broadcast_to(ss, sq_ref.shape)


def _conv3x3_and_stats(x_nhwc, w_mat, fold_taps):
    """Returns (conv_out (M, C), mean (C,), biased var (C,)) for a 3x3 SAME conv."""
    N, H, W, C = x_nhwc.shape
    M = N * H * W
    xpad = jnp.pad(x_nhwc, ((0, 0), (1, 1), (1, 1), (0, 0)))

    kern = functools.partial(conv3x3_stats_kernel, fold_taps=fold_taps)
    conv_out, psum, psq = pl.pallas_call(
        kern,
        out_shape=(
            jax.ShapeDtypeStruct((M, C), jnp.float32),
            jax.ShapeDtypeStruct((N * _STAT_ROWS, C), jnp.float32),
            jax.ShapeDtypeStruct((N * _STAT_ROWS, C), jnp.float32),
        ),
        grid=(N,),  # one padded image per grid step (double-buffered pipeline)
        in_specs=[
            pl.BlockSpec((None, H + 2, W + 2, C), lambda i: (i, 0, 0, 0)),
            pl.BlockSpec((9 * C, C), lambda i: (0, 0)),
        ],
        out_specs=(
            pl.BlockSpec((H * W, C), lambda i: (i, 0)),
            pl.BlockSpec((_STAT_ROWS, C), lambda i: (i, 0)),
            pl.BlockSpec((_STAT_ROWS, C), lambda i: (i, 0)),
        ),
        compiler_params=pltpu.CompilerParams(
            dimension_semantics=("parallel",)),
    )(xpad, w_mat)

    # Tiny cross-image reduction of the partial statistics (plain JAX).
    s = jnp.sum(psum.reshape(N, _STAT_ROWS, C)[:, 0, :], axis=0)
    ss = jnp.sum(psq.reshape(N, _STAT_ROWS, C)[:, 0, :], axis=0)
    mean = s / M
    var = ss / M - mean * mean          # biased variance (BN training mode)
    return conv_out, mean, var


# --------------------------------------------------------------------------- #
# Pass B: normalize (+ optional residual) + ReLU, tiled over rows.             #
# --------------------------------------------------------------------------- #
def bn_relu_kernel(y_ref, scale_ref, shift_ref, o_ref):
    o_ref[...] = jnp.maximum(y_ref[...] * scale_ref[...] + shift_ref[...],
                             jnp.float32(0.0))


def bn_residual_relu_kernel(y_ref, res_ref, scale_ref, shift_ref, o_ref):
    o_ref[...] = jnp.maximum(
        y_ref[...] * scale_ref[...] + shift_ref[...] + res_ref[...],
        jnp.float32(0.0))


def _largest_row_tile(m, cap=1024):
    """Largest multiple-of-8 divisor of m that is <= cap (else m itself)."""
    if m <= cap:
        return m
    t = cap - cap % 8
    while t >= 8:
        if m % t == 0:
            return t
        t -= 8
    return m


def _bn_act(conv_out, mean, var, gamma, beta, residual=None):
    M, C = conv_out.shape
    rstd = jax.lax.rsqrt(var + jnp.float32(EPS))
    g = gamma.reshape(-1)
    scale = (g * rstd).reshape(1, C)
    shift = (beta.reshape(-1) - mean * g * rstd).reshape(1, C)

    tm = _largest_row_tile(M)
    data_spec = pl.BlockSpec((tm, C), lambda i: (i, 0))
    par_spec = pl.BlockSpec((1, C), lambda i: (0, 0))

    if residual is None:
        kern = bn_relu_kernel
        in_specs = [data_spec, par_spec, par_spec]
        args = (conv_out, scale, shift)
    else:
        kern = bn_residual_relu_kernel
        in_specs = [data_spec, data_spec, par_spec, par_spec]
        args = (conv_out, residual, scale, shift)

    return pl.pallas_call(
        kern,
        out_shape=jax.ShapeDtypeStruct((M, C), jnp.float32),
        grid=(M // tm,),
        in_specs=in_specs,
        out_specs=data_spec,
        compiler_params=pltpu.CompilerParams(
            dimension_semantics=("parallel",)),
    )(*args)


# --------------------------------------------------------------------------- #
# Unit.forward                                                                 #
# --------------------------------------------------------------------------- #
def unit_forward(x_nchw, params, *, fold_taps=True):
    """Pallas implementation of Unit.forward. Input/output are NCHW like PyTorch."""
    x = jnp.transpose(x_nchw, (0, 2, 3, 1)).astype(jnp.float32)   # NCHW -> NHWC
    N, H, W, C = x.shape
    M = N * H * W
    x_flat = x.reshape(M, C)

    # layer 1: conv3x3 -> BN(train) -> ReLU
    c1, m1, v1 = _conv3x3_and_stats(x, params["w1"], fold_taps)
    y1 = _bn_act(c1, m1, v1, params["g1"], params["be1"])

    # layer 2: conv3x3 -> BN(train) -> +x -> ReLU
    c2, m2, v2 = _conv3x3_and_stats(y1.reshape(N, H, W, C), params["w2"], fold_taps)
    y2 = _bn_act(c2, m2, v2, params["g2"], params["be2"], residual=x_flat)

    return jnp.transpose(y2.reshape(N, H, W, C), (0, 3, 1, 2))    # NHWC -> NCHW


# --------------------------------------------------------------------------- #
# Parameters / pure-JAX reference                                              #
# --------------------------------------------------------------------------- #
def _torch_weight_to_mat(w_oihw):
    """PyTorch conv weight (Cout,Cin,3,3) -> (9*Cin, Cout); row block t = ky*3+kx."""
    c_in, c_out = w_oihw.shape[1], w_oihw.shape[0]
    w = jnp.transpose(w_oihw, (2, 3, 1, 0))          # (ky, kx, Cin, Cout)
    return w.reshape(9 * c_in, c_out)


def make_params(key, hidden):
    ks = jax.random.split(key, 8)
    w1 = jax.random.normal(ks[0], (hidden, hidden, 3, 3), jnp.float32) * 0.1
    w2 = jax.random.normal(ks[1], (hidden, hidden, 3, 3), jnp.float32) * 0.1
    return {
        "w1": _torch_weight_to_mat(w1),
        "b1": jax.random.normal(ks[2], (1, hidden), jnp.float32) * 0.05,  # ref only
        "g1": 1.0 + jax.random.normal(ks[3], (1, hidden), jnp.float32) * 0.05,
        "be1": jax.random.normal(ks[4], (1, hidden), jnp.float32) * 0.05,
        "w2": _torch_weight_to_mat(w2),
        "b2": jax.random.normal(ks[5], (1, hidden), jnp.float32) * 0.05,  # ref only
        "g2": 1.0 + jax.random.normal(ks[6], (1, hidden), jnp.float32) * 0.05,
        "be2": jax.random.normal(ks[7], (1, hidden), jnp.float32) * 0.05,
    }


def unit_forward_ref(x_nchw, params):
    """Pure-JAX reference (lax.conv, with bias, two-pass BN) for correctness."""
    def conv(x, w_mat, b):  # x NHWC
        N, H, W, C = x.shape
        w = w_mat.reshape(3, 3, C, C)  # HWIO
        y = jax.lax.conv_general_dilated(
            x, w, window_strides=(1, 1), padding="SAME",
            dimension_numbers=("NHWC", "HWIO", "NHWC"))
        return y + b.reshape(1, 1, 1, C)

    def bn(y, g, be):
        mean = jnp.mean(y, axis=(0, 1, 2), keepdims=True)
        var = jnp.mean((y - mean) ** 2, axis=(0, 1, 2), keepdims=True)
        return (y - mean) * jax.lax.rsqrt(var + EPS) * g.reshape(1, 1, 1, -1) \
               + be.reshape(1, 1, 1, -1)

    x = jnp.transpose(x_nchw, (0, 2, 3, 1)).astype(jnp.float32)
    y = jnp.maximum(bn(conv(x, params["w1"], params["b1"]),
                       params["g1"], params["be1"]), 0.0)
    y = bn(conv(y, params["w2"], params["b2"]), params["g2"], params["be2"])
    y = jnp.maximum(y + x, 0.0)
    return jnp.transpose(y, (0, 3, 1, 2))


if __name__ == "__main__":
    key = jax.random.PRNGKey(0)
    k_x, k_p = jax.random.split(key)

    batch, hidden, spatial = 2, 32, 16
    x = jax.random.normal(k_x, (batch, hidden, spatial, spatial), jnp.float32)  # NCHW
    params = make_params(k_p, hidden)

    try:
        fwd = jax.jit(functools.partial(unit_forward, fold_taps=True))
        out = jax.block_until_ready(fwd(x, params))
    except Exception:
        # TODO(synk): this Mosaic build rejected the minor-axis concatenate used to
        # fold the 9 taps into one K=9C GEMM; fall back to 9 accumulated dots.
        fwd = jax.jit(functools.partial(unit_forward, fold_taps=False))
        out = jax.block_until_ready(fwd(x, params))

    ref = jax.block_until_ready(unit_forward_ref(x, params))

    np.testing.assert_allclose(np.asarray(out), np.asarray(ref), atol=1e-3, rtol=1e-3)
    assert out.shape == x.shape and out.dtype == jnp.float32

    print("KERNEL_OK")
</pallas_src>

<mosaic_0001>
module attributes {stable_mosaic.version = 11 : i64} {
  func.func @conv3x3_stats_kernel(%arg0: i32, %arg1: memref<1x18x18x32xf32, #tpu.memory_space<vmem>>, %arg2: memref<288x32xf32, #tpu.memory_space<vmem>>, %arg3: memref<256x32xf32, #tpu.memory_space<vmem>>, %arg4: memref<8x32xf32, #tpu.memory_space<vmem>>, %arg5: memref<8x32xf32, #tpu.memory_space<vmem>>) attributes {dimension_semantics = [#tpu.dimension_semantics<parallel>], iteration_bounds = array<i64: 2>, scalar_prefetch = 0 : i64, scratch_operands = 0 : i64, tpu.core_type = #tpu.core_type<tc>, window_params = [{transform_indices = @transform_0, window_bounds = array<i64: 1, 18, 18, 32>}, {pipeline_mode = #tpu.pipeline_mode<synchronous>, transform_indices = @transform_1, window_bounds = array<i64: 288, 32>}, {transform_indices = @transform_2, window_bounds = array<i64: 256, 32>}, {transform_indices = @transform_3, window_bounds = array<i64: 8, 32>}, {transform_indices = @transform_4, window_bounds = array<i64: 8, 32>}]} {
    %c0 = arith.constant 0 : index
    %c0_0 = arith.constant 0 : index
    %c0_1 = arith.constant 0 : index
    %c0_2 = arith.constant 0 : index
    %0 = vector.load %arg1[%c0, %c0_0, %c0_1, %c0_2] : memref<1x18x18x32xf32, #tpu.memory_space<vmem>>, vector<1x16x16x32xf32>
    %1 = vector.shape_cast %0 : vector<1x16x16x32xf32> to vector<16x16x32xf32>
    %2 = vector.shape_cast %1 : vector<16x16x32xf32> to vector<256x32xf32>
    %c0_3 = arith.constant 0 : index
    %c0_4 = arith.constant 0 : index
    %c1 = arith.constant 1 : index
    %c0_5 = arith.constant 0 : index
    %3 = vector.load %arg1[%c0_3, %c0_4, %c1, %c0_5] : memref<1x18x18x32xf32, #tpu.memory_space<vmem>>, vector<1x16x16x32xf32>
    %4 = vector.shape_cast %3 : vector<1x16x16x32xf32> to vector<16x16x32xf32>
    %5 = vector.shape_cast %4 : vector<16x16x32xf32> to vector<256x32xf32>
    %c0_6 = arith.constant 0 : index
    %c0_7 = arith.constant 0 : index
    %c2 = arith.constant 2 : index
    %c0_8 = arith.constant 0 : index
    %6 = vector.load %arg1[%c0_6, %c0_7, %c2, %c0_8] : memref<1x18x18x32xf32, #tpu.memory_space<vmem>>, vector<1x16x16x32xf32>
    %7 = vector.shape_cast %6 : vector<1x16x16x32xf32> to vector<16x16x32xf32>
    %8 = vector.shape_cast %7 : vector<16x16x32xf32> to vector<256x32xf32>
    %c0_9 = arith.constant 0 : index
    %c1_10 = arith.constant 1 : index
    %c0_11 = arith.constant 0 : index
    %c0_12 = arith.constant 0 : index
    %9 = vector.load %arg1[%c0_9, %c1_10, %c0_11, %c0_12] : memref<1x18x18x32xf32, #tpu.memory_space<vmem>>, vector<1x16x16x32xf32>
    %10 = vector.shape_cast %9 : vector<1x16x16x32xf32> to vector<16x16x32xf32>
    %11 = vector.shape_cast %10 : vector<16x16x32xf32> to vector<256x32xf32>
    %c0_13 = arith.constant 0 : index
    %c1_14 = arith.constant 1 : index
    %c1_15 = arith.constant 1 : index
    %c0_16 = arith.constant 0 : index
    %12 = vector.load %arg1[%c0_13, %c1_14, %c1_15, %c0_16] : memref<1x18x18x32xf32, #tpu.memory_space<vmem>>, vector<1x16x16x32xf32>
    %13 = vector.shape_cast %12 : vector<1x16x16x32xf32> to vector<16x16x32xf32>
    %14 = vector.shape_cast %13 : vector<16x16x32xf32> to vector<256x32xf32>
    %c0_17 = arith.constant 0 : index
    %c1_18 = arith.constant 1 : index
    %c2_19 = arith.constant 2 : index
    %c0_20 = arith.constant 0 : index
    %15 = vector.load %arg1[%c0_17, %c1_18, %c2_19, %c0_20] : memref<1x18x18x32xf32, #tpu.memory_space<vmem>>, vector<1x16x16x32xf32>
    %16 = vector.shape_cast %15 : vector<1x16x16x32xf32> to vector<16x16x32xf32>
    %17 = vector.shape_cast %16 : vector<16x16x32xf32> to vector<256x32xf32>
    %c0_21 = arith.constant 0 : index
    %c2_22 = arith.constant 2 : index
    %c0_23 = arith.constant 0 : index
    %c0_24 = arith.constant 0 : index
    %18 = vector.load %arg1[%c0_21, %c2_22, %c0_23, %c0_24] : memref<1x18x18x32xf32, #tpu.memory_space<vmem>>, vector<1x16x16x32xf32>
    %19 = vector.shape_cast %18 : vector<1x16x16x32xf32> to vector<16x16x32xf32>
    %20 = vector.shape_cast %19 : vector<16x16x32xf32> to vector<256x32xf32>
    %c0_25 = arith.constant 0 : index
    %c2_26 = arith.constant 2 : index
    %c1_27 = arith.constant 1 : index
    %c0_28 = arith.constant 0 : index
    %21 = vector.load %arg1[%c0_25, %c2_26, %c1_27, %c0_28] : memref<1x18x18x32xf32, #tpu.memory_space<vmem>>, vector<1x16x16x32xf32>
    %22 = vector.shape_cast %21 : vector<1x16x16x32xf32> to vector<16x16x32xf32>
    %23 = vector.shape_cast %22 : vector<16x16x32xf32> to vector<256x32xf32>
    %c0_29 = arith.constant 0 : index
    %c2_30 = arith.constant 2 : index
    %c2_31 = arith.constant 2 : index
    %c0_32 = arith.constant 0 : index
    %24 = vector.load %arg1[%c0_29, %c2_30, %c2_31, %c0_32] : memref<1x18x18x32xf32, #tpu.memory_space<vmem>>, vector<1x16x16x32xf32>
    %25 = vector.shape_cast %24 : vector<1x16x16x32xf32> to vector<16x16x32xf32>
    %26 = vector.shape_cast %25 : vector<16x16x32xf32> to vector<256x32xf32>
    %27 = tpu.concatenate %2, %5, %8, %11, %14, %17, %20, %23, %26 in 1 : vector<256x32xf32>, vector<256x32xf32>, vector<256x32xf32>, vector<256x32xf32>, vector<256x32xf32>, vector<256x32xf32>, vector<256x32xf32>, vector<256x32xf32>, vector<256x32xf32> -> vector<256x288xf32>
    %c0_33 = arith.constant 0 : index
    %c0_34 = arith.constant 0 : index
    %28 = vector.load %arg2[%c0_33, %c0_34] : memref<288x32xf32, #tpu.memory_space<vmem>>, vector<288x32xf32>
    %cst = arith.constant dense<0.000000e+00> : vector<256x32xf32>
    %29 = tpu.matmul %27, %28, %cst {dimension_numbers = #tpu.dot_dimension_numbers<[1], [0], [0], [1], [0, 0, 1, 1], [], []>} : vector<256x288xf32>, vector<288x32xf32>, vector<256x32xf32> -> vector<256x32xf32>
    %c0_35 = arith.constant 0 : index
    %c0_36 = arith.constant 0 : index
    %30 = vector.load %arg3[%c0_35, %c0_36] : memref<256x32xf32, #tpu.memory_space<vmem>>, vector<256x32xf32>
    tpu.vector_store %arg3[%c0_35, %c0_36], %29 {strides = array<i32>} : memref<256x32xf32, #tpu.memory_space<vmem>>, vector<256x32xf32>,
    %cst_37 = arith.constant dense<0.000000e+00> : vector<32xf32>
    %31 = vector.multi_reduction <add>, %29, %cst_37 [0] : vector<256x32xf32> to vector<32xf32>
    %32 = vector.shape_cast %31 : vector<32xf32> to vector<1x32xf32>
    %33 = arith.mulf %29, %29 : vector<256x32xf32>
    %cst_38 = arith.constant dense<0.000000e+00> : vector<32xf32>
    %34 = vector.multi_reduction <add>, %33, %cst_38 [0] : vector<256x32xf32> to vector<32xf32>
    %35 = vector.shape_cast %34 : vector<32xf32> to vector<1x32xf32>
    %36 = vector.shape_cast %32 : vector<1x32xf32> to vector<1x32xf32>
    %37 = vector.broadcast %36 : vector<1x32xf32> to vector<8x32xf32>
    %c0_39 = arith.constant 0 : index
    %c0_40 = arith.constant 0 : index
    %38 = vector.load %arg4[%c0_39, %c0_40] : memref<8x32xf32, #tpu.memory_space<vmem>>, vector<8x32xf32>
    tpu.vector_store %arg4[%c0_39, %c0_40], %37 {strides = array<i32>} : memref<8x32xf32, #tpu.memory_space<vmem>>, vector<8x32xf32>,
    %39 = vector.shape_cast %35 : vector<1x32xf32> to vector<1x32xf32>
    %40 = vector.broadcast %39 : vector<1x32xf32> to vector<8x32xf32>
    %c0_41 = arith.constant 0 : index
    %c0_42 = arith.constant 0 : index
    %41 = vector.load %arg5[%c0_41, %c0_42] : memref<8x32xf32, #tpu.memory_space<vmem>>, vector<8x32xf32>
    tpu.vector_store %arg5[%c0_41, %c0_42], %40 {strides = array<i32>} : memref<8x32xf32, #tpu.memory_space<vmem>>, vector<8x32xf32>,
    return
  }
  func.func @transform_0(%arg0: i32) -> (i32, i32, i32, i32) {
    %c0_i32 = arith.constant 0 : i32
    %c0_i32_0 = arith.constant 0 : i32
    %c0_i32_1 = arith.constant 0 : i32
    %c0_i32_2 = arith.constant 0 : i32
    return %arg0, %c0_i32, %c0_i32_0, %c0_i32_1 : i32, i32, i32, i32
  }
  func.func @transform_1(%arg0: i32) -> (i32, i32) {
    %c0_i32 = arith.constant 0 : i32
    %c0_i32_0 = arith.constant 0 : i32
    %c0_i32_1 = arith.constant 0 : i32
    return %c0_i32, %c0_i32_0 : i32, i32
  }
  func.func @transform_2(%arg0: i32) -> (i32, i32) {
    %c0_i32 = arith.constant 0 : i32
    %c0_i32_0 = arith.constant 0 : i32
    return %arg0, %c0_i32 : i32, i32
  }
  func.func @transform_3(%arg0: i32) -> (i32, i32) {
    %c0_i32 = arith.constant 0 : i32
    %c0_i32_0 = arith.constant 0 : i32
    return %arg0, %c0_i32 : i32, i32
  }
  func.func @transform_4(%arg0: i32) -> (i32, i32) {
    %c0_i32 = arith.constant 0 : i32
    %c0_i32_0 = arith.constant 0 : i32
    return %arg0, %c0_i32 : i32, i32
  }
}

module attributes {stable_mosaic.version = 11 : i64} {
  func.func @bn_relu_kernel(%arg0: i32, %arg1: memref<512x32xf32, #tpu.memory_space<vmem>>, %arg2: memref<1x32xf32, #tpu.memory_space<vmem>>, %arg3: memref<1x32xf32, #tpu.memory_space<vmem>>, %arg4: memref<512x32xf32, #tpu.memory_space<vmem>>) attributes {dimension_semantics = [#tpu.dimension_semantics<parallel>], iteration_bounds = array<i64: 1>, scalar_prefetch = 0 : i64, scratch_operands = 0 : i64, tpu.core_type = #tpu.core_type<tc>, window_params = [{transform_indices = @transform_0, window_bounds = array<i64: 512, 32>}, {pipeline_mode = #tpu.pipeline_mode<synchronous>, transform_indices = @transform_1, window_bounds = array<i64: 1, 32>}, {pipeline_mode = #tpu.pipeline_mode<synchronous>, transform_indices = @transform_2, window_bounds = array<i64: 1, 32>}, {transform_indices = @transform_3, window_bounds = array<i64: 512, 32>}]} {
    %c0 = arith.constant 0 : index
    %c0_0 = arith.constant 0 : index
    %0 = vector.load %arg1[%c0, %c0_0] : memref<512x32xf32, #tpu.memory_space<vmem>>, vector<512x32xf32>
    %c0_1 = arith.constant 0 : index
    %c0_2 = arith.constant 0 : index
    %1 = vector.load %arg2[%c0_1, %c0_2] : memref<1x32xf32, #tpu.memory_space<vmem>>, vector<1x32xf32>
    %2 = vector.broadcast %1 : vector<1x32xf32> to vector<512x32xf32>
    %3 = arith.mulf %0, %2 : vector<512x32xf32>
    %c0_3 = arith.constant 0 : index
    %c0_4 = arith.constant 0 : index
    %4 = vector.load %arg3[%c0_3, %c0_4] : memref<1x32xf32, #tpu.memory_space<vmem>>, vector<1x32xf32>
    %5 = vector.broadcast %4 : vector<1x32xf32> to vector<512x32xf32>
    %6 = arith.addf %3, %5 : vector<512x32xf32>
    %cst = arith.constant 0.000000e+00 : f32
    %7 = vector.broadcast %cst : f32 to vector<512x32xf32>
    %8 = arith.maximumf %6, %7 : vector<512x32xf32>
    %c0_5 = arith.constant 0 : index
    %c0_6 = arith.constant 0 : index
    %9 = vector.load %arg4[%c0_5, %c0_6] : memref<512x32xf32, #tpu.memory_space<vmem>>, vector<512x32xf32>
    tpu.vector_store %arg4[%c0_5, %c0_6], %8 {strides = array<i32>} : memref<512x32xf32, #tpu.memory_space<vmem>>, vector<512x32xf32>,
    return
  }
  func.func @transform_0(%arg0: i32) -> (i32, i32) {
    %c0_i32 = arith.constant 0 : i32
    %c0_i32_0 = arith.constant 0 : i32
    return %arg0, %c0_i32 : i32, i32
  }
  func.func @transform_1(%arg0: i32) -> (i32, i32) {
    %c0_i32 = arith.constant 0 : i32
    %c0_i32_0 = arith.constant 0 : i32
    %c0_i32_1 = arith.constant 0 : i32
    return %c0_i32, %c0_i32_0 : i32, i32
  }
  func.func @transform_2(%arg0: i32) -> (i32, i32) {
    %c0_i32 = arith.constant 0 : i32
    %c0_i32_0 = arith.constant 0 : i32
    %c0_i32_1 = arith.constant 0 : i32
    return %c0_i32, %c0_i32_0 : i32, i32
  }
  func.func @transform_3(%arg0: i32) -> (i32, i32) {
    %c0_i32 = arith.constant 0 : i32
    %c0_i32_0 = arith.constant 0 : i32
    return %arg0, %c0_i32 : i32, i32
  }
}

module attributes {stable_mosaic.version = 11 : i64} {
  func.func @bn_residual_relu_kernel(%arg0: i32, %arg1: memref<512x32xf32, #tpu.memory_space<vmem>>, %arg2: memref<512x32xf32, #tpu.memory_space<vmem>>, %arg3: memref<1x32xf32, #tpu.memory_space<vmem>>, %arg4: memref<1x32xf32, #tpu.memory_space<vmem>>, %arg5: memref<512x32xf32, #tpu.memory_space<vmem>>) attributes {dimension_semantics = [#tpu.dimension_semantics<parallel>], iteration_bounds = array<i64: 1>, scalar_prefetch = 0 : i64, scratch_operands = 0 : i64, tpu.core_type = #tpu.core_type<tc>, window_params = [{transform_indices = @transform_0, window_bounds = array<i64: 512, 32>}, {transform_indices = @transform_1, window_bounds = array<i64: 512, 32>}, {pipeline_mode = #tpu.pipeline_mode<synchronous>, transform_indices = @transform_2, window_bounds = array<i64: 1, 32>}, {pipeline_mode = #tpu.pipeline_mode<synchronous>, transform_indices = @transform_3, window_bounds = array<i64: 1, 32>}, {transform_indices = @transform_4, window_bounds = array<i64: 512, 32>}]} {
    %c0 = arith.constant 0 : index
    %c0_0 = arith.constant 0 : index
    %0 = vector.load %arg1[%c0, %c0_0] : memref<512x32xf32, #tpu.memory_space<vmem>>, vector<512x32xf32>
    %c0_1 = arith.constant 0 : index
    %c0_2 = arith.constant 0 : index
    %1 = vector.load %arg3[%c0_1, %c0_2] : memref<1x32xf32, #tpu.memory_space<vmem>>, vector<1x32xf32>
    %2 = vector.broadcast %1 : vector<1x32xf32> to vector<512x32xf32>
    %3 = arith.mulf %0, %2 : vector<512x32xf32>
    %c0_3 = arith.constant 0 : index
    %c0_4 = arith.constant 0 : index
    %4 = vector.load %arg4[%c0_3, %c0_4] : memref<1x32xf32, #tpu.memory_space<vmem>>, vector<1x32xf32>
    %5 = vector.broadcast %4 : vector<1x32xf32> to vector<512x32xf32>
    %6 = arith.addf %3, %5 : vector<512x32xf32>
    %c0_5 = arith.constant 0 : index
    %c0_6 = arith.constant 0 : index
    %7 = vector.load %arg2[%c0_5, %c0_6] : memref<512x32xf32, #tpu.memory_space<vmem>>, vector<512x32xf32>
    %8 = arith.addf %6, %7 : vector<512x32xf32>
    %cst = arith.constant 0.000000e+00 : f32
    %9 = vector.broadcast %cst : f32 to vector<512x32xf32>
    %10 = arith.maximumf %8, %9 : vector<512x32xf32>
    %c0_7 = arith.constant 0 : index
    %c0_8 = arith.constant 0 : index
    %11 = vector.load %arg5[%c0_7, %c0_8] : memref<512x32xf32, #tpu.memory_space<vmem>>, vector<512x32xf32>
    tpu.vector_store %arg5[%c0_7, %c0_8], %10 {strides = array<i32>} : memref<512x32xf32, #tpu.memory_space<vmem>>, vector<512x32xf32>,
    return
  }
  func.func @transform_0(%arg0: i32) -> (i32, i32) {
    %c0_i32 = arith.constant 0 : i32
    %c0_i32_0 = arith.constant 0 : i32
    return %arg0, %c0_i32 : i32, i32
  }
  func.func @transform_1(%arg0: i32) -> (i32, i32) {
    %c0_i32 = arith.constant 0 : i32
    %c0_i32_0 = arith.constant 0 : i32
    return %arg0, %c0_i32 : i32, i32
  }
  func.func @transform_2(%arg0: i32) -> (i32, i32) {
    %c0_i32 = arith.constant 0 : i32
    %c0_i32_0 = arith.constant 0 : i32
    %c0_i32_1 = arith.constant 0 : i32
    return %c0_i32, %c0_i32_0 : i32, i32
  }
  func.func @transform_3(%arg0: i32) -> (i32, i32) {
    %c0_i32 = arith.constant 0 : i32
    %c0_i32_0 = arith.constant 0 : i32
    %c0_i32_1 = arith.constant 0 : i32
    return %c0_i32, %c0_i32_0 : i32, i32
  }
  func.func @transform_4(%arg0: i32) -> (i32, i32) {
    %c0_i32 = arith.constant 0 : i32
    %c0_i32_0 = arith.constant 0 : i32
    return %arg0, %c0_i32 : i32, i32
  }
}

module attributes {stable_mosaic.version = 11 : i64} {
  func.func @conv3x3_stats_kernel(%arg0: i32, %arg1: memref<1x18x18x32xf32, #tpu.memory_space<vmem>>, %arg2: memref<288x32xf32, #tpu.memory_space<vmem>>, %arg3: memref<256x32xf32, #tpu.memory_space<vmem>>, %arg4: memref<8x32xf32, #tpu.memory_space<vmem>>, %arg5: memref<8x32xf32, #tpu.memory_space<vmem>>) attributes {dimension_semantics = [#tpu.dimension_semantics<parallel>], iteration_bounds = array<i64: 2>, scalar_prefetch = 0 : i64, scratch_operands = 0 : i64, tpu.core_type = #tpu.core_type<tc>, window_params = [{transform_indices = @transform_0, window_bounds = array<i64: 1, 18, 18, 32>}, {pipeline_mode = #tpu.pipeline_mode<synchronous>, transform_indices = @transform_1, window_bounds = array<i64: 288, 32>}, {transform_indices = @transform_2, window_bounds = array<i64: 256, 32>}, {transform_indices = @transform_3, window_bounds = array<i64: 8, 32>}, {transform_indices = @transform_4, window_bounds = array<i64: 8, 32>}]} {
    %c0 = arith.constant 0 : index
    %c0_0 = arith.constant 0 : index
    %c0_1 = arith.constant 0 : index
    %c0_2 = arith.constant 0 : index
    %0 = vector.load %arg1[%c0, %c0_0, %c0_1, %c0_2] : memref<1x18x18x32xf32, #tpu.memory_space<vmem>>, vector<1x16x16x32xf32>
    %1 = vector.shape_cast %0 : vector<1x16x16x32xf32> to vector<16x16x32xf32>
    %2 = vector.shape_cast %1 : vector<16x16x32xf32> to vector<256x32xf32>
    %c0_3 = arith.constant 0 : index
    %c0_4 = arith.constant 0 : index
    %c1 = arith.constant 1 : index
    %c0_5 = arith.constant 0 : index
    %3 = vector.load %arg1[%c0_3, %c0_4, %c1, %c0_5] : memref<1x18x18x32xf32, #tpu.memory_space<vmem>>, vector<1x16x16x32xf32>
    %4 = vector.shape_cast %3 : vector<1x16x16x32xf32> to vector<16x16x32xf32>
    %5 = vector.shape_cast %4 : vector<16x16x32xf32> to vector<256x32xf32>
    %c0_6 = arith.constant 0 : index
    %c0_7 = arith.constant 0 : index
    %c2 = arith.constant 2 : index
    %c0_8 = arith.constant 0 : index
    %6 = vector.load %arg1[%c0_6, %c0_7, %c2, %c0_8] : memref<1x18x18x32xf32, #tpu.memory_space<vmem>>, vector<1x16x16x32xf32>
    %7 = vector.shape_cast %6 : vector<1x16x16x32xf32> to vector<16x16x32xf32>
    %8 = vector.shape_cast %7 : vector<16x16x32xf32> to vector<256x32xf32>
    %c0_9 = arith.constant 0 : index
    %c1_10 = arith.constant 1 : index
    %c0_11 = arith.constant 0 : index
    %c0_12 = arith.constant 0 : index
    %9 = vector.load %arg1[%c0_9, %c1_10, %c0_11, %c0_12] : memref<1x18x18x32xf32, #tpu.memory_space<vmem>>, vector<1x16x16x32xf32>
    %10 = vector.shape_cast %9 : vector<1x16x16x32xf32> to vector<16x16x32xf32>
    %11 = vector.shape_cast %10 : vector<16x16x32xf32> to vector<256x32xf32>
    %c0_13 = arith.constant 0 : index
    %c1_14 = arith.constant 1 : index
    %c1_15 = arith.constant 1 : index
    %c0_16 = arith.constant 0 : index
    %12 = vector.load %arg1[%c0_13, %c1_14, %c1_15, %c0_16] : memref<1x18x18x32xf32, #tpu.memory_space<vmem>>, vector<1x16x16x32xf32>
    %13 = vector.shape_cast %12 : vector<1x16x16x32xf32> to vector<16x16x32xf32>
    %14 = vector.shape_cast %13 : vector<16x16x32xf32> to vector<256x32xf32>
    %c0_17 = arith.constant 0 : index
    %c1_18 = arith.constant 1 : index
    %c2_19 = arith.constant 2 : index
    %c0_20 = arith.constant 0 : index
    %15 = vector.load %arg1[%c0_17, %c1_18, %c2_19, %c0_20] : memref<1x18x18x32xf32, #tpu.memory_space<vmem>>, vector<1x16x16x32xf32>
    %16 = vector.shape_cast %15 : vector<1x16x16x32xf32> to vector<16x16x32xf32>
    %17 = vector.shape_cast %16 : vector<16x16x32xf32> to vector<256x32xf32>
    %c0_21 = arith.constant 0 : index
    %c2_22 = arith.constant 2 : index
    %c0_23 = arith.constant 0 : index
    %c0_24 = arith.constant 0 : index
    %18 = vector.load %arg1[%c0_21, %c2_22, %c0_23, %c0_24] : memref<1x18x18x32xf32, #tpu.memory_space<vmem>>, vector<1x16x16x32xf32>
    %19 = vector.shape_cast %18 : vector<1x16x16x32xf32> to vector<16x16x32xf32>
    %20 = vector.shape_cast %19 : vector<16x16x32xf32> to vector<256x32xf32>
    %c0_25 = arith.constant 0 : index
    %c2_26 = arith.constant 2 : index
    %c1_27 = arith.constant 1 : index
    %c0_28 = arith.constant 0 : index
    %21 = vector.load %arg1[%c0_25, %c2_26, %c1_27, %c0_28] : memref<1x18x18x32xf32, #tpu.memory_space<vmem>>, vector<1x16x16x32xf32>
    %22 = vector.shape_cast %21 : vector<1x16x16x32xf32> to vector<16x16x32xf32>
    %23 = vector.shape_cast %22 : vector<16x16x32xf32> to vector<256x32xf32>
    %c0_29 = arith.constant 0 : index
    %c2_30 = arith.constant 2 : index
    %c2_31 = arith.constant 2 : index
    %c0_32 = arith.constant 0 : index
    %24 = vector.load %arg1[%c0_29, %c2_30, %c2_31, %c0_32] : memref<1x18x18x32xf32, #tpu.memory_space<vmem>>, vector<1x16x16x32xf32>
    %25 = vector.shape_cast %24 : vector<1x16x16x32xf32> to vector<16x16x32xf32>
    %26 = vector.shape_cast %25 : vector<16x16x32xf32> to vector<256x32xf32>
    %cst = arith.constant 0.000000e+00 : f32
    %27 = vector.broadcast %cst : f32 to vector<256x32xf32>
    %c0_33 = arith.constant 0 : index
    %c0_34 = arith.constant 0 : index
    %28 = vector.load %arg2[%c0_33, %c0_34] : memref<288x32xf32, #tpu.memory_space<vmem>>, vector<32x32xf32>
    %cst_35 = arith.constant dense<0.000000e+00> : vector<256x32xf32>
    %29 = tpu.matmul %2, %28, %cst_35 {dimension_numbers = #tpu.dot_dimension_numbers<[1], [0], [0], [1], [0, 0, 1, 1], [], []>} : vector<256x32xf32>, vector<32x32xf32>, vector<256x32xf32> -> vector<256x32xf32>
    %30 = arith.addf %27, %29 : vector<256x32xf32>
    %c32 = arith.constant 32 : index
    %c0_36 = arith.constant 0 : index
    %31 = vector.load %arg2[%c32, %c0_36] : memref<288x32xf32, #tpu.memory_space<vmem>>, vector<32x32xf32>
    %cst_37 = arith.constant dense<0.000000e+00> : vector<256x32xf32>
    %32 = tpu.matmul %5, %31, %cst_37 {dimension_numbers = #tpu.dot_dimension_numbers<[1], [0], [0], [1], [0, 0, 1, 1], [], []>} : vector<256x32xf32>, vector<32x32xf32>, vector<256x32xf32> -> vector<256x32xf32>
    %33 = arith.addf %30, %32 : vector<256x32xf32>
    %c64 = arith.constant 64 : index
    %c0_38 = arith.constant 0 : index
    %34 = vector.load %arg2[%c64, %c0_38] : memref<288x32xf32, #tpu.memory_space<vmem>>, vector<32x32xf32>
    %cst_39 = arith.constant dense<0.000000e+00> : vector<256x32xf32>
    %35 = tpu.matmul %8, %34, %cst_39 {dimension_numbers = #tpu.dot_dimension_numbers<[1], [0], [0], [1], [0, 0, 1, 1], [], []>} : vector<256x32xf32>, vector<32x32xf32>, vector<256x32xf32> -> vector<256x32xf32>
    %36 = arith.addf %33, %35 : vector<256x32xf32>
    %c96 = arith.constant 96 : index
    %c0_40 = arith.constant 0 : index
    %37 = vector.load %arg2[%c96, %c0_40] : memref<288x32xf32, #tpu.memory_space<vmem>>, vector<32x32xf32>
    %cst_41 = arith.constant dense<0.000000e+00> : vector<256x32xf32>
    %38 = tpu.matmul %11, %37, %cst_41 {dimension_numbers = #tpu.dot_dimension_numbers<[1], [0], [0], [1], [0, 0, 1, 1], [], []>} : vector<256x32xf32>, vector<32x32xf32>, vector<256x32xf32> -> vector<256x32xf32>
    %39 = arith.addf %36, %38 : vector<256x32xf32>
    %c128 = arith.constant 128 : index
    %c0_42 = arith.constant 0 : index
    %40 = vector.load %arg2[%c128, %c0_42] : memref<288x32xf32, #tpu.memory_space<vmem>>, vector<32x32xf32>
    %cst_43 = arith.constant dense<0.000000e+00> : vector<256x32xf32>
    %41 = tpu.matmul %14, %40, %cst_43 {dimension_numbers = #tpu.dot_dimension_numbers<[1], [0], [0], [1], [0, 0, 1, 1], [], []>} : vector<256x32xf32>, vector<32x32xf32>, vector<256x32xf32> -> vector<256x32xf32>
    %42 = arith.addf %39, %41 : vector<256x32xf32>
    %c160 = arith.constant 160 : index
    %c0_44 = arith.constant 0 : index
    %43 = vector.load %arg2[%c160, %c0_44] : memref<288x32xf32, #tpu.memory_space<vmem>>, vector<32x32xf32>
    %cst_45 = arith.constant dense<0.000000e+00> : vector<256x32xf32>
    %44 = tpu.matmul %17, %43, %cst_45 {dimension_numbers = #tpu.dot_dimension_numbers<[1], [0], [0], [1], [0, 0, 1, 1], [], []>} : vector<256x32xf32>, vector<32x32xf32>, vector<256x32xf32> -> vector<256x32xf32>
    %45 = arith.addf %42, %44 : vector<256x32xf32>
    %c192 = arith.constant 192 : index
    %c0_46 = arith.constant 0 : index
    %46 = vector.load %arg2[%c192, %c0_46] : memref<288x32xf32, #tpu.memory_space<vmem>>, vector<32x32xf32>
    %cst_47 = arith.constant dense<0.000000e+00> : vector<256x32xf32>
    %47 = tpu.matmul %20, %46, %cst_47 {dimension_numbers = #tpu.dot_dimension_numbers<[1], [0], [0], [1], [0, 0, 1, 1], [], []>} : vector<256x32xf32>, vector<32x32xf32>, vector<256x32xf32> -> vector<256x32xf32>
    %48 = arith.addf %45, %47 : vector<256x32xf32>
    %c224 = arith.constant 224 : index
    %c0_48 = arith.constant 0 : index
    %49 = vector.load %arg2[%c224, %c0_48] : memref<288x32xf32, #tpu.memory_space<vmem>>, vector<32x32xf32>
    %cst_49 = arith.constant dense<0.000000e+00> : vector<256x32xf32>
    %50 = tpu.matmul %23, %49, %cst_49 {dimension_numbers = #tpu.dot_dimension_numbers<[1], [0], [0], [1], [0, 0, 1, 1], [], []>} : vector<256x32xf32>, vector<32x32xf32>, vector<256x32xf32> -> vector<256x32xf32>
    %51 = arith.addf %48, %50 : vector<256x32xf32>
    %c256 = arith.constant 256 : index
    %c0_50 = arith.constant 0 : index
    %52 = vector.load %arg2[%c256, %c0_50] : memref<288x32xf32, #tpu.memory_space<vmem>>, vector<32x32xf32>
    %cst_51 = arith.constant dense<0.000000e+00> : vector<256x32xf32>
    %53 = tpu.matmul %26, %52, %cst_51 {dimension_numbers = #tpu.dot_dimension_numbers<[1], [0], [0], [1], [0, 0, 1, 1], [], []>} : vector<256x32xf32>, vector<32x32xf32>, vector<256x32xf32> -> vector<256x32xf32>
    %54 = arith.addf %51, %53 : vector<256x32xf32>
    %c0_52 = arith.constant 0 : index
    %c0_53 = arith.constant 0 : index
    %55 = vector.load %arg3[%c0_52, %c0_53] : memref<256x32xf32, #tpu.memory_space<vmem>>, vector<256x32xf32>
    tpu.vector_store %arg3[%c0_52, %c0_53], %54 {strides = array<i32>} : memref<256x32xf32, #tpu.memory_space<vmem>>, vector<256x32xf32>,
    %cst_54 = arith.constant dense<0.000000e+00> : vector<32xf32>
    %56 = vector.multi_reduction <add>, %54, %cst_54 [0] : vector<256x32xf32> to vector<32xf32>
    %57 = vector.shape_cast %56 : vector<32xf32> to vector<1x32xf32>
    %58 = arith.mulf %54, %54 : vector<256x32xf32>
    %cst_55 = arith.constant dense<0.000000e+00> : vector<32xf32>
    %59 = vector.multi_reduction <add>, %58, %cst_55 [0] : vector<256x32xf32> to vector<32xf32>
    %60 = vector.shape_cast %59 : vector<32xf32> to vector<1x32xf32>
    %61 = vector.shape_cast %57 : vector<1x32xf32> to vector<1x32xf32>
    %62 = vector.broadcast %61 : vector<1x32xf32> to vector<8x32xf32>
    %c0_56 = arith.constant 0 : index
    %c0_57 = arith.constant 0 : index
    %63 = vector.load %arg4[%c0_56, %c0_57] : memref<8x32xf32, #tpu.memory_space<vmem>>, vector<8x32xf32>
    tpu.vector_store %arg4[%c0_56, %c0_57], %62 {strides = array<i32>} : memref<8x32xf32, #tpu.memory_space<vmem>>, vector<8x32xf32>,
    %64 = vector.shape_cast %60 : vector<1x32xf32> to vector<1x32xf32>
    %65 = vector.broadcast %64 : vector<1x32xf32> to vector<8x32xf32>
    %c0_58 = arith.constant 0 : index
    %c0_59 = arith.constant 0 : index
    %66 = vector.load %arg5[%c0_58, %c0_59] : memref<8x32xf32, #tpu.memory_space<vmem>>, vector<8x32xf32>
    tpu.vector_store %arg5[%c0_58, %c0_59], %65 {strides = array<i32>} : memref<8x32xf32, #tpu.memory_space<vmem>>, vector<8x32xf32>,
    return
  }
  func.func @transform_0(%arg0: i32) -> (i32, i32, i32, i32) {
    %c0_i32 = arith.constant 0 : i32
    %c0_i32_0 = arith.constant 0 : i32
    %c0_i32_1 = arith.constant 0 : i32
    %c0_i32_2 = arith.constant 0 : i32
    return %arg0, %c0_i32, %c0_i32_0, %c0_i32_1 : i32, i32, i32, i32
  }
  func.func @transform_1(%arg0: i32) -> (i32, i32) {
    %c0_i32 = arith.constant 0 : i32
    %c0_i32_0 = arith.constant 0 : i32
    %c0_i32_1 = arith.constant 0 : i32
    return %c0_i32, %c0_i32_0 : i32, i32
  }
  func.func @transform_2(%arg0: i32) -> (i32, i32) {
    %c0_i32 = arith.constant 0 : i32
    %c0_i32_0 = arith.constant 0 : i32
    return %arg0, %c0_i32 : i32, i32
  }
  func.func @transform_3(%arg0: i32) -> (i32, i32) {
    %c0_i32 = arith.constant 0 : i32
    %c0_i32_0 = arith.constant 0 : i32
    return %arg0, %c0_i32 : i32, i32
  }
  func.func @transform_4(%arg0: i32) -> (i32, i32) {
    %c0_i32 = arith.constant 0 : i32
    %c0_i32_0 = arith.constant 0 : i32
    return %arg0, %c0_i32 : i32, i32
  }
}

module attributes {stable_mosaic.version = 11 : i64} {
  func.func @bn_relu_kernel(%arg0: i32, %arg1: memref<512x32xf32, #tpu.memory_space<vmem>>, %arg2: memref<1x32xf32, #tpu.memory_space<vmem>>, %arg3: memref<1x32xf32, #tpu.memory_space<vmem>>, %arg4: memref<512x32xf32, #tpu.memory_space<vmem>>) attributes {dimension_semantics = [#tpu.dimension_semantics<parallel>], iteration_bounds = array<i64: 1>, scalar_prefetch = 0 : i64, scratch_operands = 0 : i64, tpu.core_type = #tpu.core_type<tc>, window_params = [{transform_indices = @transform_0, window_bounds = array<i64: 512, 32>}, {pipeline_mode = #tpu.pipeline_mode<synchronous>, transform_indices = @transform_1, window_bounds = array<i64: 1, 32>}, {pipeline_mode = #tpu.pipeline_mode<synchronous>, transform_indices = @transform_2, window_bounds = array<i64: 1, 32>}, {transform_indices = @transform_3, window_bounds = array<i64: 512, 32>}]} {
    %c0 = arith.constant 0 : index
    %c0_0 = arith.constant 0 : index
    %0 = vector.load %arg1[%c0, %c0_0] : memref<512x32xf32, #tpu.memory_space<vmem>>, vector<512x32xf32>
    %c0_1 = arith.constant 0 : index
    %c0_2 = arith.constant 0 : index
    %1 = vector.load %arg2[%c0_1, %c0_2] : memref<1x32xf32, #tpu.memory_space<vmem>>, vector<1x32xf32>
    %2 = vector.broadcast %1 : vector<1x32xf32> to vector<512x32xf32>
    %3 = arith.mulf %0, %2 : vector<512x32xf32>
    %c0_3 = arith.constant 0 : index
    %c0_4 = arith.constant 0 : index
    %4 = vector.load %arg3[%c0_3, %c0_4] : memref<1x32xf32, #tpu.memory_space<vmem>>, vector<1x32xf32>
    %5 = vector.broadcast %4 : vector<1x32xf32> to vector<512x32xf32>
    %6 = arith.addf %3, %5 : vector<512x32xf32>
    %cst = arith.constant 0.000000e+00 : f32
    %7 = vector.broadcast %cst : f32 to vector<512x32xf32>
    %8 = arith.maximumf %6, %7 : vector<512x32xf32>
    %c0_5 = arith.constant 0 : index
    %c0_6 = arith.constant 0 : index
    %9 = vector.load %arg4[%c0_5, %c0_6] : memref<512x32xf32, #tpu.memory_space<vmem>>, vector<512x32xf32>
    tpu.vector_store %arg4[%c0_5, %c0_6], %8 {strides = array<i32>} : memref<512x32xf32, #tpu.memory_space<vmem>>, vector<512x32xf32>,
    return
  }
  func.func @transform_0(%arg0: i32) -> (i32, i32) {
    %c0_i32 = arith.constant 0 : i32
    %c0_i32_0 = arith.constant 0 : i32
    return %arg0, %c0_i32 : i32, i32
  }
  func.func @transform_1(%arg0: i32) -> (i32, i32) {
    %c0_i32 = arith.constant 0 : i32
    %c0_i32_0 = arith.constant 0 : i32
    %c0_i32_1 = arith.constant 0 : i32
    return %c0_i32, %c0_i32_0 : i32, i32
  }
  func.func @transform_2(%arg0: i32) -> (i32, i32) {
    %c0_i32 = arith.constant 0 : i32
    %c0_i32_0 = arith.constant 0 : i32
    %c0_i32_1 = arith.constant 0 : i32
    return %c0_i32, %c0_i32_0 : i32, i32
  }
  func.func @transform_3(%arg0: i32) -> (i32, i32) {
    %c0_i32 = arith.constant 0 : i32
    %c0_i32_0 = arith.constant 0 : i32
    return %arg0, %c0_i32 : i32, i32
  }
}

module attributes {stable_mosaic.version = 11 : i64} {
  func.func @bn_residual_relu_kernel(%arg0: i32, %arg1: memref<512x32xf32, #tpu.memory_space<vmem>>, %arg2: memref<512x32xf32, #tpu.memory_space<vmem>>, %arg3: memref<1x32xf32, #tpu.memory_space<vmem>>, %arg4: memref<1x32xf32, #tpu.memory_space<vmem>>, %arg5: memref<512x32xf32, #tpu.memory_space<vmem>>) attributes {dimension_semantics = [#tpu.dimension_semantics<parallel>], iteration_bounds = array<i64: 1>, scalar_prefetch = 0 : i64, scratch_operands = 0 : i64, tpu.core_type = #tpu.core_type<tc>, window_params = [{transform_indices = @transform_0, window_bounds = array<i64: 512, 32>}, {transform_indices = @transform_1, window_bounds = array<i64: 512, 32>}, {pipeline_mode = #tpu.pipeline_mode<synchronous>, transform_indices = @transform_2, window_bounds = array<i64: 1, 32>}, {pipeline_mode = #tpu.pipeline_mode<synchronous>, transform_indices = @transform_3, window_bounds = array<i64: 1, 32>}, {transform_indices = @transform_4, window_bounds = array<i64: 512, 32>}]} {
    %c0 = arith.constant 0 : index
    %c0_0 = arith.constant 0 : index
    %0 = vector.load %arg1[%c0, %c0_0] : memref<512x32xf32, #tpu.memory_space<vmem>>, vector<512x32xf32>
    %c0_1 = arith.constant 0 : index
    %c0_2 = arith.constant 0 : index
    %1 = vector.load %arg3[%c0_1, %c0_2] : memref<1x32xf32, #tpu.memory_space<vmem>>, vector<1x32xf32>
    %2 = vector.broadcast %1 : vector<1x32xf32> to vector<512x32xf32>
    %3 = arith.mulf %0, %2 : vector<512x32xf32>
    %c0_3 = arith.constant 0 : index
    %c0_4 = arith.constant 0 : index
    %4 = vector.load %arg4[%c0_3, %c0_4] : memref<1x32xf32, #tpu.memory_space<vmem>>, vector<1x32xf32>
    %5 = vector.broadcast %4 : vector<1x32xf32> to vector<512x32xf32>
    %6 = arith.addf %3, %5 : vector<512x32xf32>
    %c0_5 = arith.constant 0 : index
    %c0_6 = arith.constant 0 : index
    %7 = vector.load %arg2[%c0_5, %c0_6] : memref<512x32xf32, #tpu.memory_space<vmem>>, vector<512x32xf32>
    %8 = arith.addf %6, %7 : vector<512x32xf32>
    %cst = arith.constant 0.000000e+00 : f32
    %9 = vector.broadcast %cst : f32 to vector<512x32xf32>
    %10 = arith.maximumf %8, %9 : vector<512x32xf32>
    %c0_7 = arith.constant 0 : index
    %c0_8 = arith.constant 0 : index
    %11 = vector.load %arg5[%c0_7, %c0_8] : memref<512x32xf32, #tpu.memory_space<vmem>>, vector<512x32xf32>
    tpu.vector_store %arg5[%c0_7, %c0_8], %10 {strides = array<i32>} : memref<512x32xf32, #tpu.memory_space<vmem>>, vector<512x32xf32>,
    return
  }
  func.func @transform_0(%arg0: i32) -> (i32, i32) {
    %c0_i32 = arith.constant 0 : i32
    %c0_i32_0 = arith.constant 0 : i32
    return %arg0, %c0_i32 : i32, i32
  }
  func.func @transform_1(%arg0: i32) -> (i32, i32) {
    %c0_i32 = arith.constant 0 : i32
    %c0_i32_0 = arith.constant 0 : i32
    return %arg0, %c0_i32 : i32, i32
  }
  func.func @transform_2(%arg0: i32) -> (i32, i32) {
    %c0_i32 = arith.constant 0 : i32
    %c0_i32_0 = arith.constant 0 : i32
    %c0_i32_1 = arith.constant 0 : i32
    return %c0_i32, %c0_i32_0 : i32, i32
  }
  func.func @transform_3(%arg0: i32) -> (i32, i32) {
    %c0_i32 = arith.constant 0 : i32
    %c0_i32_0 = arith.constant 0 : i32
    %c0_i32_1 = arith.constant 0 : i32
    return %c0_i32, %c0_i32_0 : i32, i32
  }
  func.func @transform_4(%arg0: i32) -> (i32, i32) {
    %c0_i32 = arith.constant 0 : i32
    %c0_i32_0 = arith.constant 0 : i32
    return %arg0, %c0_i32 : i32, i32
  }
}

</mosaic_0001>

<bundles_post_ra>
// kernel: unit_forward.5
= control target key start
LH: loop header
LB: loop body
LE: loop exit
PB: predicated region body
PF: predicated region fallthrough
CT: control target
= control target key end

     0   :  { %vm284_vm0 = vcmask 261120   ;;  %s961_s0 = inlined_call_operand.vmem [shape: f32[512,32], index: 0, kind: input, shape index: {}]   ;;  %s962_s1 = inlined_call_operand.vmem [shape: f32[1,32], index: 1, kind: input, shape index: {}]   ;;  %s963_s2 = inlined_call_operand.vmem [shape: f32[1,32], index: 2, kind: input, shape index: {}]   ;;  %s964_s3 = inlined_call_operand.vmem [shape: f32[512,32], index: 3, kind: output, shape index: {}]  }
   0x1   :  { %v14_v0 = vld [vmem:[%s961_s0] sm:$0xff]  ;;  %v15_v4 = vld [vmem:[%s961_s0 + $0x8] sm:$0xff]  ;;  %v16_v5 = vld [vmem:[%s961_s0 + $0x10] sm:$0xff] }
   0x2   :  { %v381_v1 = vld [vmem:[%s962_s1] ss:$0 sm:$0xff]  ;;  %v17_v6 = vld [vmem:[%s961_s0 + $0x18] sm:$0xff]  ;;  %v19_v11 = vld [vmem:[%s961_s0 + $0x28] sm:$0xff] }
   0x3   :  { %v386_v2 = vld [vmem:[%s963_s2] ss:$0 sm:$0xff]  ;;  %v85_v3 = vmul.f32 %v381_v1, %v14_v0  ;;  %v86_v7 = vmul.f32 %v381_v1, %v15_v4  ;;  %v87_v8 = vmul.f32 %v381_v1, %v16_v5  ;;  %v88_v9 = vmul.f32 %v381_v1, %v17_v6  ;;  %v20_v12 = vld [vmem:[%s961_s0 + $0x30] sm:$0xff]  ;;  %v21_v17 = vld [vmem:[%s961_s0 + $0x38] sm:$0xff] }
   0x4   :  { %v18_v10 = vld [vmem:[%s961_s0 + $0x20] sm:$0xff]  ;;  %v90_v15 = vmul.f32 %v381_v1, %v19_v11  ;;  %v91_v16 = vmul.f32 %v381_v1, %v20_v12  ;;  %v92_v21 = vmul.f32 %v381_v1, %v21_v17  ;;  %v23_v27 = vld [vmem:[%s961_s0 + $0x48] sm:$0xff]  ;;  %v24_v28 = vld [vmem:[%s961_s0 + $0x50] sm:$0xff] }
   0x5   :  { %v156_v13 = vadd.f32 %v386_v2, %v85_v3  ;;  %v89_v14 = vmul.f32 %v381_v1, %v18_v10  ;;  %v157_v18 = vadd.f32 %v386_v2, %v86_v7  ;;  %v158_v19 = vadd.f32 %v386_v2, %v87_v8  ;;  %v22_v22 = vld [vmem:[%s961_s0 + $0x40] sm:$0xff]  ;;  %v25_v29 = vld [vmem:[%s961_s0 + $0x58] sm:$0xff]  ;;  %v27_v35 = vld [vmem:[%s961_s0 + $0x68] sm:$0xff] }
   0x6   :  { %v159_v20 = vadd.f32 %v386_v2, %v88_v9  ;;  %v161_v25 = vadd.f32 %v386_v2, %v90_v15  ;;  %v162_v26 = vadd.f32 %v386_v2, %v91_v16  ;;  %v163_v33 = vadd.f32 %v386_v2, %v92_v21  ;;  %v26_v34 = vld [vmem:[%s961_s0 + $0x60] sm:$0xff]  ;;  %v28_v36 = vld [vmem:[%s961_s0 + $0x70] sm:$0xff]  ;;  %v29_v41 = vld [vmem:[%s961_s0 + $0x78] sm:$0xff] }
   0x7   :  { %v220_v23 = vmax.f32 %v156_v13, 0.0  ;;  %v160_v24 = vadd.f32 %v386_v2, %v89_v14  ;;  %v221_v30 = vmax.f32 %v157_v18, 0.0  ;;  %v222_v31 = vmax.f32 %v158_v19, 0.0  ;;  %v30_v54 = vld [vmem:[%s961_s0 + $0x80] sm:$0xff]  ;;  %v31_v59 = vld [vmem:[%s961_s0 + $0x88] sm:$0xff]  ;;  %v32_v60 = vld [vmem:[%s961_s0 + $0x90] sm:$0xff] }
   0x8   :  { %v223_v32 = vmax.f32 %v159_v20, 0.0  ;;  %v225_v38 = vmax.f32 %v161_v25, 0.0  ;;  %v226_v39 = vmax.f32 %v162_v26, 0.0  ;;  %v93_v40 = vmul.f32 %v381_v1, %v22_v22  ;;  %v33_v61 = vld [vmem:[%s961_s0 + $0x98] sm:$0xff]  ;;  %v34_v4 = vld [vmem:[%s961_s0 + $0xa0] sm:$0xff]  ;;  %v35_v5 = vld [vmem:[%s961_s0 + $0xa8] sm:$0xff] }
   0x9   :  { %285 = vst.msk [vmem:[%s964_s3] sm:$0xff] %vm284_vm0, %v220_v23  ;;  %v224_v37 = vmax.f32 %v160_v24, 0.0  ;;  %286 = vst.msk [vmem:[%s964_s3 + $0x8] sm:$0xff] %vm284_vm0, %v221_v30  ;;  %v227_v42 = vmax.f32 %v163_v33, 0.0  ;;  %v94_v43 = vmul.f32 %v381_v1, %v23_v27  ;;  %v95_v44 = vmul.f32 %v381_v1, %v24_v28  ;;  %v36_v6 = vld [vmem:[%s961_s0 + $0xb0] sm:$0xff]  ;;  %v37_v11 = vld [vmem:[%s961_s0 + $0xb8] sm:$0xff] }
   0xa   :  { %287 = vst.msk [vmem:[%s964_s3 + $0x10] sm:$0xff] %vm284_vm0, %v222_v31  ;;  %288 = vst.msk [vmem:[%s964_s3 + $0x18] sm:$0xff] %vm284_vm0, %v223_v32  ;;  %v96_v45 = vmul.f32 %v381_v1, %v25_v29  ;;  %v164_v46 = vadd.f32 %v386_v2, %v93_v40  ;;  %v97_v47 = vmul.f32 %v381_v1, %v26_v34  ;;  %v38_v24 = vld [vmem:[%s961_s0 + $0xc0] sm:$0xff]  ;;  %v39_v29 = vld [vmem:[%s961_s0 + $0xc8] sm:$0xff] }
   0xb   :  { %289 = vst.msk [vmem:[%s964_s3 + $0x20] sm:$0xff] %vm284_vm0, %v224_v37  ;;  %290 = vst.msk [vmem:[%s964_s3 + $0x28] sm:$0xff] %vm284_vm0, %v225_v38  ;;  %v98_v48 = vmul.f32 %v381_v1, %v27_v35  ;;  %v99_v49 = vmul.f32 %v381_v1, %v28_v36  ;;  %v165_v50 = vadd.f32 %v386_v2, %v94_v43  ;;  %v40_v30 = vld [vmem:[%s961_s0 + $0xd0] sm:$0xff]  ;;  %v41_v31 = vld [vmem:[%s961_s0 + $0xd8] sm:$0xff] }
   0xc   :  { %291 = vst.msk [vmem:[%s964_s3 + $0x30] sm:$0xff] %vm284_vm0, %v226_v39  ;;  %292 = vst.msk [vmem:[%s964_s3 + $0x38] sm:$0xff] %vm284_vm0, %v227_v42  ;;  %v166_v51 = vadd.f32 %v386_v2, %v95_v44  ;;  %v167_v52 = vadd.f32 %v386_v2, %v96_v45  ;;  %v100_v53 = vmul.f32 %v381_v1, %v29_v41  ;;  %v228_v55 = vmax.f32 %v164_v46, 0.0  ;;  %v42_v36 = vld [vmem:[%s961_s0 + $0xe0] sm:$0xff]  ;;  %v43_v37 = vld [vmem:[%s961_s0 + $0xe8] sm:$0xff] }
   0xd   :  { %v168_v56 = vadd.f32 %v386_v2, %v97_v47  ;;  %v169_v57 = vadd.f32 %v386_v2, %v98_v48  ;;  %v170_v58 = vadd.f32 %v386_v2, %v99_v49  ;;  %v229_v62 = vmax.f32 %v165_v50, 0.0  ;;  %v44_v38 = vld [vmem:[%s961_s0 + $0xf0] sm:$0xff]  ;;  %v45_v43 = vld [vmem:[%s961_s0 + $0xf8] sm:$0xff] }
   0xe   :  { %v230_v63 = vmax.f32 %v166_v51, 0.0  ;;  %v231_v0 = vmax.f32 %v167_v52, 0.0  ;;  %v171_v3 = vadd.f32 %v386_v2, %v100_v53  ;;  %293 = vst.msk [vmem:[%s964_s3 + $0x40] sm:$0xff] %vm284_vm0, %v228_v55  ;;  %v101_v10 = vmul.f32 %v381_v1, %v30_v54 }
   0xf   :  { %v232_v7 = vmax.f32 %v168_v56, 0.0  ;;  %v233_v8 = vmax.f32 %v169_v57, 0.0  ;;  %v234_v9 = vmax.f32 %v170_v58, 0.0  ;;  %294 = vst.msk [vmem:[%s964_s3 + $0x48] sm:$0xff] %vm284_vm0, %v229_v62  ;;  %v102_v13 = vmul.f32 %v381_v1, %v31_v59  ;;  %v46_v56 = vld [vmem:[%s961_s0 + $0x100] sm:$0xff]  ;;  %v48_v62 = vld [vmem:[%s961_s0 + $0x110] sm:$0xff] }
  0x10   :  { %295 = vst.msk [vmem:[%s964_s3 + $0x50] sm:$0xff] %vm284_vm0, %v230_v63  ;;  %296 = vst.msk [vmem:[%s964_s3 + $0x58] sm:$0xff] %vm284_vm0, %v231_v0  ;;  %v235_v12 = vmax.f32 %v171_v3, 0.0  ;;  %v103_v14 = vmul.f32 %v381_v1, %v32_v60  ;;  %v104_v15 = vmul.f32 %v381_v1, %v33_v61  ;;  %v172_v16 = vadd.f32 %v386_v2, %v101_v10  ;;  %v47_v61 = vld [vmem:[%s961_s0 + $0x108] sm:$0xff]  ;;  %v49_v63 = vld [vmem:[%s961_s0 + $0x118] sm:$0xff] }
  0x11   :  { %297 = vst.msk [vmem:[%s964_s3 + $0x60] sm:$0xff] %vm284_vm0, %v232_v7  ;;  %298 = vst.msk [vmem:[%s964_s3 + $0x68] sm:$0xff] %vm284_vm0, %v233_v8  ;;  %v105_v17 = vmul.f32 %v381_v1, %v34_v4  ;;  %v106_v18 = vmul.f32 %v381_v1, %v35_v5  ;;  %v107_v19 = vmul.f32 %v381_v1, %v36_v6  ;;  %v50_v6 = vld [vmem:[%s961_s0 + $0x120] sm:$0xff]  ;;  %v51_v7 = vld [vmem:[%s961_s0 + $0x128] sm:$0xff] }
  0x12   :  { %299 = vst.msk [vmem:[%s964_s3 + $0x70] sm:$0xff] %vm284_vm0, %v234_v9  ;;  %300 = vst.msk [vmem:[%s964_s3 + $0x78] sm:$0xff] %vm284_vm0, %v235_v12  ;;  %v173_v20 = vadd.f32 %v386_v2, %v102_v13  ;;  %v174_v21 = vadd.f32 %v386_v2, %v103_v14  ;;  %v175_v22 = vadd.f32 %v386_v2, %v104_v15  ;;  %v236_v25 = vmax.f32 %v172_v16, 0.0  ;;  %v52_v8 = vld [vmem:[%s961_s0 + $0x130] sm:$0xff]  ;;  %v53_v13 = vld [vmem:[%s961_s0 + $0x138] sm:$0xff] }
  0x13   :  { %v108_v23 = vmul.f32 %v381_v1, %v37_v11  ;;  %v176_v26 = vadd.f32 %v386_v2, %v105_v17  ;;  %v177_v27 = vadd.f32 %v386_v2, %v106_v18  ;;  %v178_v28 = vadd.f32 %v386_v2, %v107_v19 }
  0x14   :  { %v237_v32 = vmax.f32 %v173_v20, 0.0  ;;  %v238_v33 = vmax.f32 %v174_v21, 0.0  ;;  %v239_v34 = vmax.f32 %v175_v22, 0.0  ;;  %301 = vst.msk [vmem:[%s964_s3 + $0x80] sm:$0xff] %vm284_vm0, %v236_v25  ;;  %v109_v42 = vmul.f32 %v381_v1, %v38_v24 }
  0x15   :  { %v179_v35 = vadd.f32 %v386_v2, %v108_v23  ;;  %v240_v39 = vmax.f32 %v176_v26, 0.0  ;;  %v241_v40 = vmax.f32 %v177_v27, 0.0  ;;  %v242_v41 = vmax.f32 %v178_v28, 0.0  ;;  %v54_v26 = vld [vmem:[%s961_s0 + $0x140] sm:$0xff] }
  0x16   :  { %302 = vst.msk [vmem:[%s964_s3 + $0x88] sm:$0xff] %vm284_vm0, %v237_v32  ;;  %303 = vst.msk [vmem:[%s964_s3 + $0x90] sm:$0xff] %vm284_vm0, %v238_v33  ;;  %v110_v45 = vmul.f32 %v381_v1, %v39_v29  ;;  %v111_v46 = vmul.f32 %v381_v1, %v40_v30  ;;  %v112_v47 = vmul.f32 %v381_v1, %v41_v31  ;;  %v55_v31 = vld [vmem:[%s961_s0 + $0x148] sm:$0xff]  ;;  %v56_v32 = vld [vmem:[%s961_s0 + $0x150] sm:$0xff] }
  0x17   :  { %304 = vst.msk [vmem:[%s964_s3 + $0x98] sm:$0xff] %vm284_vm0, %v239_v34  ;;  %v243_v44 = vmax.f32 %v179_v35, 0.0  ;;  %305 = vst.msk [vmem:[%s964_s3 + $0xa0] sm:$0xff] %vm284_vm0, %v240_v39  ;;  %v180_v48 = vadd.f32 %v386_v2, %v109_v42  ;;  %v113_v49 = vmul.f32 %v381_v1, %v42_v36  ;;  %v114_v50 = vmul.f32 %v381_v1, %v43_v37  ;;  %v57_v33 = vld [vmem:[%s961_s0 + $0x158] sm:$0xff]  ;;  %v59_v39 = vld [vmem:[%s961_s0 + $0x168] sm:$0xff] }
  0x18   :  { %306 = vst.msk [vmem:[%s964_s3 + $0xa8] sm:$0xff] %vm284_vm0, %v241_v40  ;;  %307 = vst.msk [vmem:[%s964_s3 + $0xb0] sm:$0xff] %vm284_vm0, %v242_v41  ;;  %v115_v51 = vmul.f32 %v381_v1, %v44_v38  ;;  %v181_v52 = vadd.f32 %v386_v2, %v110_v45  ;;  %v182_v53 = vadd.f32 %v386_v2, %v111_v46  ;;  %v58_v38 = vld [vmem:[%s961_s0 + $0x160] sm:$0xff]  ;;  %v60_v40 = vld [vmem:[%s961_s0 + $0x170] sm:$0xff] }
  0x19   :  { %308 = vst.msk [vmem:[%s964_s3 + $0xb8] sm:$0xff] %vm284_vm0, %v243_v44  ;;  %v183_v54 = vadd.f32 %v386_v2, %v112_v47  ;;  %v116_v55 = vmul.f32 %v381_v1, %v45_v43  ;;  %v244_v57 = vmax.f32 %v180_v48, 0.0  ;;  %v184_v58 = vadd.f32 %v386_v2, %v113_v49  ;;  %v61_v45 = vld [vmem:[%s961_s0 + $0x178] sm:$0xff] }
  0x1a   :  { %v185_v59 = vadd.f32 %v386_v2, %v114_v50  ;;  %v186_v60 = vadd.f32 %v386_v2, %v115_v51  ;;  %v245_v0 = vmax.f32 %v181_v52, 0.0  ;;  %v246_v3 = vmax.f32 %v182_v53, 0.0 }
  0x1b   :  { %v247_v4 = vmax.f32 %v183_v54, 0.0  ;;  %v187_v5 = vadd.f32 %v386_v2, %v116_v55  ;;  %309 = vst.msk [vmem:[%s964_s3 + $0xc0] sm:$0xff] %vm284_vm0, %v244_v57  ;;  %v248_v9 = vmax.f32 %v184_v58, 0.0  ;;  %v117_v12 = vmul.f32 %v381_v1, %v46_v56  ;;  %v62_v58 = vld [vmem:[%s961_s0 + $0x180] sm:$0xff] }
  0x1c   :  { %v249_v10 = vmax.f32 %v185_v59, 0.0  ;;  %v250_v11 = vmax.f32 %v186_v60, 0.0  ;;  %310 = vst.msk [vmem:[%s964_s3 + $0xc8] sm:$0xff] %vm284_vm0, %v245_v0  ;;  %311 = vst.msk [vmem:[%s964_s3 + $0xd0] sm:$0xff] %vm284_vm0, %v246_v3  ;;  %v118_v15 = vmul.f32 %v381_v1, %v47_v61  ;;  %v119_v16 = vmul.f32 %v381_v1, %v48_v62  ;;  %v64_v0 = vld [vmem:[%s961_s0 + $0x190] sm:$0xff]  ;;  %v65_v3 = vld [vmem:[%s961_s0 + $0x198] sm:$0xff] }
  0x1d   :  { %312 = vst.msk [vmem:[%s964_s3 + $0xd8] sm:$0xff] %vm284_vm0, %v247_v4  ;;  %v251_v14 = vmax.f32 %v187_v5, 0.0  ;;  %v120_v17 = vmul.f32 %v381_v1, %v49_v63  ;;  %313 = vst.msk [vmem:[%s964_s3 + $0xe0] sm:$0xff] %vm284_vm0, %v248_v9  ;;  %v188_v18 = vadd.f32 %v386_v2, %v117_v12  ;;  %v121_v19 = vmul.f32 %v381_v1, %v50_v6  ;;  %v63_v63 = vld [vmem:[%s961_s0 + $0x188] sm:$0xff] }
  0x1e   :  { %314 = vst.msk [vmem:[%s964_s3 + $0xe8] sm:$0xff] %vm284_vm0, %v249_v10  ;;  %315 = vst.msk [vmem:[%s964_s3 + $0xf0] sm:$0xff] %vm284_vm0, %v250_v11  ;;  %v122_v20 = vmul.f32 %v381_v1, %v51_v7  ;;  %v123_v21 = vmul.f32 %v381_v1, %v52_v8  ;;  %v189_v22 = vadd.f32 %v386_v2, %v118_v15  ;;  %v66_v8 = vld [vmem:[%s961_s0 + $0x1a0] sm:$0xff]  ;;  %v67_v9 = vld [vmem:[%s961_s0 + $0x1a8] sm:$0xff] }
  0x1f   :  { %316 = vst.msk [vmem:[%s964_s3 + $0xf8] sm:$0xff] %vm284_vm0, %v251_v14  ;;  %v190_v23 = vadd.f32 %v386_v2, %v119_v16  ;;  %v191_v24 = vadd.f32 %v386_v2, %v120_v17  ;;  %v124_v25 = vmul.f32 %v381_v1, %v53_v13  ;;  %v252_v27 = vmax.f32 %v188_v18, 0.0  ;;  %v68_v10 = vld [vmem:[%s961_s0 + $0x1b0] sm:$0xff]  ;;  %v69_v15 = vld [vmem:[%s961_s0 + $0x1b8] sm:$0xff] }
  0x20   :  { %v192_v28 = vadd.f32 %v386_v2, %v121_v19  ;;  %v193_v29 = vadd.f32 %v386_v2, %v122_v20  ;;  %v194_v30 = vadd.f32 %v386_v2, %v123_v21  ;;  %v253_v34 = vmax.f32 %v189_v22, 0.0 }
  0x21   :  { %v254_v35 = vmax.f32 %v190_v23, 0.0  ;;  %v255_v36 = vmax.f32 %v191_v24, 0.0  ;;  %v195_v37 = vadd.f32 %v386_v2, %v124_v25  ;;  %317 = vst.msk [vmem:[%s964_s3 + $0x100] sm:$0xff] %vm284_vm0, %v252_v27  ;;  %v125_v44 = vmul.f32 %v381_v1, %v54_v26 }
  0x22   :  { %v256_v41 = vmax.f32 %v192_v28, 0.0  ;;  %v257_v42 = vmax.f32 %v193_v29, 0.0  ;;  %v258_v43 = vmax.f32 %v194_v30, 0.0  ;;  %318 = vst.msk [vmem:[%s964_s3 + $0x108] sm:$0xff] %vm284_vm0, %v253_v34  ;;  %v126_v47 = vmul.f32 %v381_v1, %v55_v31  ;;  %v70_v28 = vld [vmem:[%s961_s0 + $0x1c0] sm:$0xff]  ;;  %v72_v34 = vld [vmem:[%s961_s0 + $0x1d0] sm:$0xff] }
  0x23   :  { %319 = vst.msk [vmem:[%s964_s3 + $0x110] sm:$0xff] %vm284_vm0, %v254_v35  ;;  %320 = vst.msk [vmem:[%s964_s3 + $0x118] sm:$0xff] %vm284_vm0, %v255_v36  ;;  %v259_v46 = vmax.f32 %v195_v37, 0.0  ;;  %v127_v48 = vmul.f32 %v381_v1, %v56_v32  ;;  %v128_v49 = vmul.f32 %v381_v1, %v57_v33  ;;  %v196_v50 = vadd.f32 %v386_v2, %v125_v44  ;;  %v71_v33 = vld [vmem:[%s961_s0 + $0x1c8] sm:$0xff]  ;;  %v73_v35 = vld [vmem:[%s961_s0 + $0x1d8] sm:$0xff] }
  0x24   :  { %321 = vst.msk [vmem:[%s964_s3 + $0x120] sm:$0xff] %vm284_vm0, %v256_v41  ;;  %322 = vst.msk [vmem:[%s964_s3 + $0x128] sm:$0xff] %vm284_vm0, %v257_v42  ;;  %v129_v51 = vmul.f32 %v381_v1, %v58_v38  ;;  %v130_v52 = vmul.f32 %v381_v1, %v59_v39  ;;  %v131_v53 = vmul.f32 %v381_v1, %v60_v40  ;;  %v74_v40 = vld [vmem:[%s961_s0 + $0x1e0] sm:$0xff]  ;;  %v75_v41 = vld [vmem:[%s961_s0 + $0x1e8] sm:$0xff] }
  0x25   :  { %323 = vst.msk [vmem:[%s964_s3 + $0x130] sm:$0xff] %vm284_vm0, %v258_v43  ;;  %324 = vst.msk [vmem:[%s964_s3 + $0x138] sm:$0xff] %vm284_vm0, %v259_v46  ;;  %v197_v54 = vadd.f32 %v386_v2, %v126_v47  ;;  %v198_v55 = vadd.f32 %v386_v2, %v127_v48  ;;  %v199_v56 = vadd.f32 %v386_v2, %v128_v49  ;;  %v260_v59 = vmax.f32 %v196_v50, 0.0  ;;  %v76_v42 = vld [vmem:[%s961_s0 + $0x1f0] sm:$0xff]  ;;  %v77_v47 = vld [vmem:[%s961_s0 + $0x1f8] sm:$0xff] }
  0x26   :  { %v132_v57 = vmul.f32 %v381_v1, %v61_v45  ;;  %v200_v60 = vadd.f32 %v386_v2, %v129_v51  ;;  %v201_v61 = vadd.f32 %v386_v2, %v130_v52  ;;  %v202_v62 = vadd.f32 %v386_v2, %v131_v53 }
  0x27   :  { %v261_v4 = vmax.f32 %v197_v54, 0.0  ;;  %v262_v5 = vmax.f32 %v198_v55, 0.0  ;;  %v263_v6 = vmax.f32 %v199_v56, 0.0  ;;  %325 = vst.msk [vmem:[%s964_s3 + $0x140] sm:$0xff] %vm284_vm0, %v260_v59  ;;  %v133_v14 = vmul.f32 %v381_v1, %v62_v58 }
  0x28   :  { %v203_v7 = vadd.f32 %v386_v2, %v132_v57  ;;  %v264_v11 = vmax.f32 %v200_v60, 0.0  ;;  %v265_v12 = vmax.f32 %v201_v61, 0.0  ;;  %v266_v13 = vmax.f32 %v202_v62, 0.0 }
  0x29   :  { %326 = vst.msk [vmem:[%s964_s3 + $0x148] sm:$0xff] %vm284_vm0, %v261_v4  ;;  %327 = vst.msk [vmem:[%s964_s3 + $0x150] sm:$0xff] %vm284_vm0, %v262_v5  ;;  %v134_v17 = vmul.f32 %v381_v1, %v63_v63  ;;  %v135_v18 = vmul.f32 %v381_v1, %v64_v0  ;;  %v136_v19 = vmul.f32 %v381_v1, %v65_v3 }
  0x2a   :  { %328 = vst.msk [vmem:[%s964_s3 + $0x158] sm:$0xff] %vm284_vm0, %v263_v6  ;;  %v267_v16 = vmax.f32 %v203_v7, 0.0  ;;  %329 = vst.msk [vmem:[%s964_s3 + $0x160] sm:$0xff] %vm284_vm0, %v264_v11  ;;  %v204_v20 = vadd.f32 %v386_v2, %v133_v14  ;;  %v137_v21 = vmul.f32 %v381_v1, %v66_v8  ;;  %v138_v22 = vmul.f32 %v381_v1, %v67_v9 }
  0x2b   :  { %330 = vst.msk [vmem:[%s964_s3 + $0x168] sm:$0xff] %vm284_vm0, %v265_v12  ;;  %331 = vst.msk [vmem:[%s964_s3 + $0x170] sm:$0xff] %vm284_vm0, %v266_v13  ;;  %v139_v23 = vmul.f32 %v381_v1, %v68_v10  ;;  %v205_v24 = vadd.f32 %v386_v2, %v134_v17  ;;  %v206_v25 = vadd.f32 %v386_v2, %v135_v18 }
  0x2c   :  { %332 = vst.msk [vmem:[%s964_s3 + $0x178] sm:$0xff] %vm284_vm0, %v267_v16  ;;  %v207_v26 = vadd.f32 %v386_v2, %v136_v19  ;;  %v140_v27 = vmul.f32 %v381_v1, %v69_v15  ;;  %v268_v29 = vmax.f32 %v204_v20, 0.0  ;;  %v208_v30 = vadd.f32 %v386_v2, %v137_v21 }
  0x2d   :  { %v209_v31 = vadd.f32 %v386_v2, %v138_v22  ;;  %v210_v32 = vadd.f32 %v386_v2, %v139_v23  ;;  %v269_v36 = vmax.f32 %v205_v24, 0.0  ;;  %v270_v37 = vmax.f32 %v206_v25, 0.0 }
  0x2e   :  { %v271_v38 = vmax.f32 %v207_v26, 0.0  ;;  %v211_v39 = vadd.f32 %v386_v2, %v140_v27  ;;  %333 = vst.msk [vmem:[%s964_s3 + $0x180] sm:$0xff] %vm284_vm0, %v268_v29  ;;  %v272_v43 = vmax.f32 %v208_v30, 0.0  ;;  %v141_v46 = vmul.f32 %v381_v1, %v70_v28 }
  0x2f   :  { %v273_v44 = vmax.f32 %v209_v31, 0.0  ;;  %v274_v45 = vmax.f32 %v210_v32, 0.0  ;;  %334 = vst.msk [vmem:[%s964_s3 + $0x188] sm:$0xff] %vm284_vm0, %v269_v36  ;;  %335 = vst.msk [vmem:[%s964_s3 + $0x190] sm:$0xff] %vm284_vm0, %v270_v37  ;;  %v142_v49 = vmul.f32 %v381_v1, %v71_v33  ;;  %v143_v50 = vmul.f32 %v381_v1, %v72_v34 }
  0x30   :  { %336 = vst.msk [vmem:[%s964_s3 + $0x198] sm:$0xff] %vm284_vm0, %v271_v38  ;;  %v275_v48 = vmax.f32 %v211_v39, 0.0  ;;  %v144_v51 = vmul.f32 %v381_v1, %v73_v35  ;;  %337 = vst.msk [vmem:[%s964_s3 + $0x1a0] sm:$0xff] %vm284_vm0, %v272_v43  ;;  %v212_v52 = vadd.f32 %v386_v2, %v141_v46  ;;  %v145_v53 = vmul.f32 %v381_v1, %v74_v40 }
  0x31   :  { %338 = vst.msk [vmem:[%s964_s3 + $0x1a8] sm:$0xff] %vm284_vm0, %v273_v44  ;;  %339 = vst.msk [vmem:[%s964_s3 + $0x1b0] sm:$0xff] %vm284_vm0, %v274_v45  ;;  %v146_v54 = vmul.f32 %v381_v1, %v75_v41  ;;  %v147_v55 = vmul.f32 %v381_v1, %v76_v42  ;;  %v213_v56 = vadd.f32 %v386_v2, %v142_v49 }
  0x32   :  { %340 = vst.msk [vmem:[%s964_s3 + $0x1b8] sm:$0xff] %vm284_vm0, %v275_v48  ;;  %v214_v57 = vadd.f32 %v386_v2, %v143_v50  ;;  %v215_v58 = vadd.f32 %v386_v2, %v144_v51  ;;  %v148_v59 = vmul.f32 %v381_v1, %v77_v47  ;;  %v276_v60 = vmax.f32 %v212_v52, 0.0 }
  0x33   :  { %v216_v61 = vadd.f32 %v386_v2, %v145_v53  ;;  %v217_v62 = vadd.f32 %v386_v2, %v146_v54  ;;  %v218_v63 = vadd.f32 %v386_v2, %v147_v55  ;;  %v277_v0 = vmax.f32 %v213_v56, 0.0 }
  0x34   :  { %v278_v3 = vmax.f32 %v214_v57, 0.0  ;;  %v279_v4 = vmax.f32 %v215_v58, 0.0  ;;  %v219_v5 = vadd.f32 %v386_v2, %v148_v59  ;;  %341 = vst.msk [vmem:[%s964_s3 + $0x1c0] sm:$0xff] %vm284_vm0, %v276_v60 }
  0x35   :  { %v280_v6 = vmax.f32 %v216_v61, 0.0  ;;  %v281_v7 = vmax.f32 %v217_v62, 0.0  ;;  %v282_v1 = vmax.f32 %v218_v63, 0.0  ;;  %342 = vst.msk [vmem:[%s964_s3 + $0x1c8] sm:$0xff] %vm284_vm0, %v277_v0 }
  0x36   :  { %343 = vst.msk [vmem:[%s964_s3 + $0x1d0] sm:$0xff] %vm284_vm0, %v278_v3  ;;  %344 = vst.msk [vmem:[%s964_s3 + $0x1d8] sm:$0xff] %vm284_vm0, %v279_v4  ;;  %v283_v2 = vmax.f32 %v219_v5, 0.0 }
  0x37   :  { %345 = vst.msk [vmem:[%s964_s3 + $0x1e0] sm:$0xff] %vm284_vm0, %v280_v6  ;;  %346 = vst.msk [vmem:[%s964_s3 + $0x1e8] sm:$0xff] %vm284_vm0, %v281_v7 }
  0x38   :  { %347 = vst.msk [vmem:[%s964_s3 + $0x1f0] sm:$0xff] %vm284_vm0, %v282_v1  ;;  %348 = vst.msk [vmem:[%s964_s3 + $0x1f8] sm:$0xff] %vm284_vm0, %v283_v2 }

// kernel: unit_forward.7
= control target key start
LH: loop header
LB: loop body
LE: loop exit
PB: predicated region body
PF: predicated region fallthrough
CT: control target
= control target key end

     0   :  { %vm416_vm0 = vcmask 261120   ;;  %s1152_s0 = inlined_call_operand.vmem [shape: f32[512,32], index: 0, kind: input, shape index: {}]   ;;  %s1153_s1 = inlined_call_operand.vmem [shape: f32[512,32], index: 1, kind: input, shape index: {}]   ;;  %s1154_s2 = inlined_call_operand.vmem [shape: f32[1,32], index: 2, kind: input, shape index: {}]   ;;  %s1155_s3 = inlined_call_operand.vmem [shape: f32[1,32], index: 3, kind: input, shape index: {}]   ;;  %s1156_s4 = inlined_call_operand.hbm [shape: f32[512,32], index: 4, kind: output, shape index: {}]  }
   0x1   :  { %v18_v0 = vld [vmem:[%s1152_s0] sm:$0xff]  ;;  %v19_v4 = vld [vmem:[%s1152_s0 + $0x8] sm:$0xff]  ;;  %v20_v7 = vld [vmem:[%s1152_s0 + $0x10] sm:$0xff] }
   0x2   :  { %v560_v1 = vld [vmem:[%s1154_s2] ss:$0 sm:$0xff]  ;;  %v21_v8 = vld [vmem:[%s1152_s0 + $0x18] sm:$0xff]  ;;  %v225_v10 = vld [vmem:[%s1153_s1 + $0x8] sm:$0xff] }
   0x3   :  { %v565_v2 = vld [vmem:[%s1155_s3] ss:$0 sm:$0xff]  ;;  %v89_v3 = vmul.f32 %v560_v1, %v18_v0  ;;  %v90_v6 = vmul.f32 %v560_v1, %v19_v4  ;;  %v91_v11 = vmul.f32 %v560_v1, %v20_v7  ;;  %v226_v12 = vld [vmem:[%s1153_s1 + $0x10] sm:$0xff]  ;;  %v92_v13 = vmul.f32 %v560_v1, %v21_v8  ;;  %v227_v16 = vld [vmem:[%s1153_s1 + $0x18] sm:$0xff] }
   0x4   :  { %v224_v5 = vld [vmem:[%s1153_s1] sm:$0xff]  ;;  %v23_v18 = vld [vmem:[%s1152_s0 + $0x28] sm:$0xff]  ;;  %v24_v19 = vld [vmem:[%s1152_s0 + $0x30] sm:$0xff] }
   0x5   :  { %v160_v9 = vadd.f32 %v565_v2, %v89_v3  ;;  %v22_v14 = vld [vmem:[%s1152_s0 + $0x20] sm:$0xff]  ;;  %v161_v15 = vadd.f32 %v565_v2, %v90_v6  ;;  %v162_v21 = vadd.f32 %v565_v2, %v91_v11  ;;  %v163_v22 = vadd.f32 %v565_v2, %v92_v13  ;;  %v25_v25 = vld [vmem:[%s1152_s0 + $0x38] sm:$0xff]  ;;  %v229_v28 = vld [vmem:[%s1153_s1 + $0x28] sm:$0xff] }
   0x6   :  { %v93_v17 = vmul.f32 %v560_v1, %v22_v14  ;;  %v228_v23 = vld [vmem:[%s1153_s1 + $0x20] sm:$0xff]  ;;  %v94_v24 = vmul.f32 %v560_v1, %v23_v18  ;;  %v95_v29 = vmul.f32 %v560_v1, %v24_v19  ;;  %v96_v30 = vmul.f32 %v560_v1, %v25_v25  ;;  %v230_v36 = vld [vmem:[%s1153_s1 + $0x30] sm:$0xff]  ;;  %v231_v37 = vld [vmem:[%s1153_s1 + $0x38] sm:$0xff] }
   0x7   :  { %v288_v20 = vadd.f32 %v224_v5, %v160_v9  ;;  %v289_v26 = vadd.f32 %v225_v10, %v161_v15  ;;  %v26_v31 = vld [vmem:[%s1152_s0 + $0x40] sm:$0xff]  ;;  %v290_v33 = vadd.f32 %v226_v12, %v162_v21  ;;  %v291_v34 = vadd.f32 %v227_v16, %v163_v22  ;;  %v27_v38 = vld [vmem:[%s1152_s0 + $0x48] sm:$0xff]  ;;  %v28_v43 = vld [vmem:[%s1152_s0 + $0x50] sm:$0xff] }
   0x8   :  { %v164_v27 = vadd.f32 %v565_v2, %v93_v17  ;;  %v165_v35 = vadd.f32 %v565_v2, %v94_v24  ;;  %v166_v41 = vadd.f32 %v565_v2, %v95_v29  ;;  %v167_v42 = vadd.f32 %v565_v2, %v96_v30  ;;  %v29_v44 = vld [vmem:[%s1152_s0 + $0x58] sm:$0xff]  ;;  %v30_v49 = vld [vmem:[%s1152_s0 + $0x60] sm:$0xff]  ;;  %v31_v55 = vld [vmem:[%s1152_s0 + $0x68] sm:$0xff] }
   0x9   :  { %v352_v32 = vmax.f32 %v288_v20, 0.0  ;;  %v353_v39 = vmax.f32 %v289_v26, 0.0  ;;  %v354_v45 = vmax.f32 %v290_v33, 0.0  ;;  %v355_v46 = vmax.f32 %v291_v34, 0.0  ;;  %v232_v53 = vld [vmem:[%s1153_s1 + $0x40] sm:$0xff]  ;;  %v233_v58 = vld [vmem:[%s1153_s1 + $0x48] sm:$0xff] }
   0xa   :  { %v292_v40 = vadd.f32 %v228_v23, %v164_v27  ;;  %v293_v47 = vadd.f32 %v229_v28, %v165_v35  ;;  %v97_v48 = vmul.f32 %v560_v1, %v26_v31  ;;  %v294_v51 = vadd.f32 %v230_v36, %v166_v41  ;;  %v32_v61 = vld [vmem:[%s1152_s0 + $0x70] sm:$0xff]  ;;  %v33_v62 = vld [vmem:[%s1152_s0 + $0x78] sm:$0xff]  ;;  %v236_v10 = vld [vmem:[%s1153_s1 + $0x60] sm:$0xff] }
   0xb   :  { %417 = vst.msk [vmem:[#allocation2] sm:$0xff] %vm416_vm0, %v352_v32  ;;  %418 = vst.msk [vmem:[#allocation2 + $0x8] sm:$0xff] %vm416_vm0, %v353_v39  ;;  %v295_v52 = vadd.f32 %v231_v37, %v167_v42  ;;  %v98_v54 = vmul.f32 %v560_v1, %v27_v38  ;;  %v99_v59 = vmul.f32 %v560_v1, %v28_v43  ;;  %v234_v4 = vld [vmem:[%s1153_s1 + $0x50] sm:$0xff]  ;;  %v235_v5 = vld [vmem:[%s1153_s1 + $0x58] sm:$0xff] }
   0xc   :  { %v356_v50 = vmax.f32 %v292_v40, 0.0  ;;  %419 = vst.msk [vmem:[#allocation2 + $0x10] sm:$0xff] %vm416_vm0, %v354_v45  ;;  %420 = vst.msk [vmem:[#allocation2 + $0x18] sm:$0xff] %vm416_vm0, %v355_v46  ;;  %v357_v56 = vmax.f32 %v293_v47, 0.0  ;;  %v168_v57 = vadd.f32 %v565_v2, %v97_v48  ;;  %v100_v60 = vmul.f32 %v560_v1, %v29_v44  ;;  %v237_v14 = vld [vmem:[%s1153_s1 + $0x68] sm:$0xff]  ;;  %v34_v17 = vld [vmem:[%s1152_s0 + $0x80] sm:$0xff] }
   0xd   :  { %v358_v63 = vmax.f32 %v294_v51, 0.0  ;;  %v359_v0 = vmax.f32 %v295_v52, 0.0  ;;  %v169_v3 = vadd.f32 %v565_v2, %v98_v54  ;;  %v101_v6 = vmul.f32 %v560_v1, %v30_v49  ;;  %v238_v22 = vld [vmem:[%s1153_s1 + $0x70] sm:$0xff]  ;;  %v239_v23 = vld [vmem:[%s1153_s1 + $0x78] sm:$0xff]  ;;  %v35_v24 = vld [vmem:[%s1152_s0 + $0x88] sm:$0xff] }
   0xe   :  { %421 = vst.msk [vmem:[#allocation2 + $0x20] sm:$0xff] %vm416_vm0, %v356_v50  ;;  %422 = vst.msk [vmem:[#allocation2 + $0x28] sm:$0xff] %vm416_vm0, %v357_v56  ;;  %v296_v7 = vadd.f32 %v232_v53, %v168_v57  ;;  %v170_v8 = vadd.f32 %v565_v2, %v99_v59  ;;  %v171_v9 = vadd.f32 %v565_v2, %v100_v60  ;;  %v36_v29 = vld [vmem:[%s1152_s0 + $0x90] sm:$0xff]  ;;  %v37_v30 = vld [vmem:[%s1152_s0 + $0x98] sm:$0xff] }
   0xf   :  { %v102_v11 = vmul.f32 %v560_v1, %v31_v55  ;;  %423 = vst.msk [vmem:[#allocation2 + $0x30] sm:$0xff] %vm416_vm0, %v358_v63  ;;  %424 = vst.msk [vmem:[#allocation2 + $0x38] sm:$0xff] %vm416_vm0, %v359_v0  ;;  %v297_v12 = vadd.f32 %v233_v58, %v169_v3  ;;  %v172_v13 = vadd.f32 %v565_v2, %v101_v6  ;;  %v38_v35 = vld [vmem:[%s1152_s0 + $0xa0] sm:$0xff]  ;;  %v39_v41 = vld [vmem:[%s1152_s0 + $0xa8] sm:$0xff] }
  0x10   :  { %v103_v15 = vmul.f32 %v560_v1, %v32_v61  ;;  %v104_v16 = vmul.f32 %v560_v1, %v33_v62  ;;  %v360_v18 = vmax.f32 %v296_v7, 0.0  ;;  %v298_v19 = vadd.f32 %v234_v4, %v170_v8  ;;  %v240_v39 = vld [vmem:[%s1153_s1 + $0x80] sm:$0xff]  ;;  %v241_v44 = vld [vmem:[%s1153_s1 + $0x88] sm:$0xff]  ;;  %v40_v47 = vld [vmem:[%s1152_s0 + $0xb0] sm:$0xff] }
  0x11   :  { %v299_v20 = vadd.f32 %v235_v5, %v171_v9  ;;  %v173_v21 = vadd.f32 %v565_v2, %v102_v11  ;;  %v361_v25 = vmax.f32 %v297_v12, 0.0  ;;  %v300_v26 = vadd.f32 %v236_v10, %v172_v13  ;;  %v41_v48 = vld [vmem:[%s1152_s0 + $0xb8] sm:$0xff]  ;;  %v242_v52 = vld [vmem:[%s1153_s1 + $0x90] sm:$0xff]  ;;  %v244_v58 = vld [vmem:[%s1153_s1 + $0xa0] sm:$0xff] }
  0x12   :  { %v174_v27 = vadd.f32 %v565_v2, %v103_v15  ;;  %v175_v28 = vadd.f32 %v565_v2, %v104_v16  ;;  %425 = vst.msk [vmem:[#allocation2 + $0x40] sm:$0xff] %vm416_vm0, %v360_v18  ;;  %v362_v31 = vmax.f32 %v298_v19, 0.0  ;;  %v105_v34 = vmul.f32 %v560_v1, %v34_v17  ;;  %v243_v53 = vld [vmem:[%s1153_s1 + $0x98] sm:$0xff]  ;;  %v245_v62 = vld [vmem:[%s1153_s1 + $0xa8] sm:$0xff]  ;;  %v42_v3 = vld [vmem:[%s1152_s0 + $0xc0] sm:$0xff] }
  0x13   :  { %v363_v32 = vmax.f32 %v299_v20, 0.0  ;;  %v301_v33 = vadd.f32 %v237_v14, %v173_v21  ;;  %426 = vst.msk [vmem:[#allocation2 + $0x48] sm:$0xff] %vm416_vm0, %v361_v25  ;;  %v364_v36 = vmax.f32 %v300_v26, 0.0  ;;  %v106_v40 = vmul.f32 %v560_v1, %v35_v24  ;;  %v246_v8 = vld [vmem:[%s1153_s1 + $0xb0] sm:$0xff]  ;;  %v247_v9 = vld [vmem:[%s1153_s1 + $0xb8] sm:$0xff]  ;;  %v43_v10 = vld [vmem:[%s1152_s0 + $0xc8] sm:$0xff] }
  0x14   :  { %v302_v37 = vadd.f32 %v238_v22, %v174_v27  ;;  %v303_v38 = vadd.f32 %v239_v23, %v175_v28  ;;  %427 = vst.msk [vmem:[#allocation2 + $0x50] sm:$0xff] %vm416_vm0, %v362_v31  ;;  %v176_v43 = vadd.f32 %v565_v2, %v105_v34  ;;  %v107_v45 = vmul.f32 %v560_v1, %v36_v29  ;;  %v44_v15 = vld [vmem:[%s1152_s0 + $0xd0] sm:$0xff]  ;;  %v45_v16 = vld [vmem:[%s1152_s0 + $0xd8] sm:$0xff]  ;;  %v46_v21 = vld [vmem:[%s1152_s0 + $0xe0] sm:$0xff] }
  0x15   :  { %428 = vst.msk [vmem:[#allocation2 + $0x58] sm:$0xff] %vm416_vm0, %v363_v32  ;;  %v365_v42 = vmax.f32 %v301_v33, 0.0  ;;  %v108_v46 = vmul.f32 %v560_v1, %v37_v30  ;;  %429 = vst.msk [vmem:[#allocation2 + $0x60] sm:$0xff] %vm416_vm0, %v364_v36  ;;  %v177_v51 = vadd.f32 %v565_v2, %v106_v40  ;;  %v109_v54 = vmul.f32 %v560_v1, %v38_v35  ;;  %v248_v25 = vld [vmem:[%s1153_s1 + $0xc0] sm:$0xff]  ;;  %v47_v27 = vld [vmem:[%s1152_s0 + $0xe8] sm:$0xff] }
  0x16   :  { %v366_v49 = vmax.f32 %v302_v37, 0.0  ;;  %v367_v50 = vmax.f32 %v303_v38, 0.0  ;;  %v304_v55 = vadd.f32 %v240_v39, %v176_v43  ;;  %v178_v56 = vadd.f32 %v565_v2, %v107_v45  ;;  %v249_v30 = vld [vmem:[%s1153_s1 + $0xc8] sm:$0xff]  ;;  %v48_v33 = vld [vmem:[%s1152_s0 + $0xf0] sm:$0xff]  ;;  %v49_v34 = vld [vmem:[%s1152_s0 + $0xf8] sm:$0xff] }
  0x17   :  { %430 = vst.msk [vmem:[#allocation2 + $0x68] sm:$0xff] %vm416_vm0, %v365_v42  ;;  %v179_v57 = vadd.f32 %v565_v2, %v108_v46  ;;  %v110_v59 = vmul.f32 %v560_v1, %v39_v41  ;;  %v305_v60 = vadd.f32 %v241_v44, %v177_v51  ;;  %v180_v61 = vadd.f32 %v565_v2, %v109_v54  ;;  %v250_v38 = vld [vmem:[%s1153_s1 + $0xd0] sm:$0xff]  ;;  %v251_v39 = vld [vmem:[%s1153_s1 + $0xd8] sm:$0xff]  ;;  %v252_v44 = vld [vmem:[%s1153_s1 + $0xe0] sm:$0xff] }
  0x18   :  { %431 = vst.msk [vmem:[#allocation2 + $0x70] sm:$0xff] %vm416_vm0, %v366_v49  ;;  %432 = vst.msk [vmem:[#allocation2 + $0x78] sm:$0xff] %vm416_vm0, %v367_v50  ;;  %v111_v63 = vmul.f32 %v560_v1, %v40_v47  ;;  %v112_v0 = vmul.f32 %v560_v1, %v41_v48  ;;  %v368_v4 = vmax.f32 %v304_v55, 0.0  ;;  %v306_v5 = vadd.f32 %v242_v52, %v178_v56  ;;  %v253_v48 = vld [vmem:[%s1153_s1 + $0xe8] sm:$0xff]  ;;  %v50_v51 = vld [vmem:[%s1152_s0 + $0x100] sm:$0xff] }
  0x19   :  { %v307_v6 = vadd.f32 %v243_v53, %v179_v57  ;;  %v181_v7 = vadd.f32 %v565_v2, %v110_v59  ;;  %v369_v11 = vmax.f32 %v305_v60, 0.0  ;;  %v308_v12 = vadd.f32 %v244_v58, %v180_v61  ;;  %v254_v56 = vld [vmem:[%s1153_s1 + $0xf0] sm:$0xff]  ;;  %v255_v57 = vld [vmem:[%s1153_s1 + $0xf8] sm:$0xff]  ;;  %v51_v58 = vld [vmem:[%s1152_s0 + $0x108] sm:$0xff] }
  0x1a   :  { %v182_v13 = vadd.f32 %v565_v2, %v111_v63  ;;  %v183_v14 = vadd.f32 %v565_v2, %v112_v0  ;;  %433 = vst.msk [vmem:[#allocation2 + $0x80] sm:$0xff] %vm416_vm0, %v368_v4  ;;  %v370_v17 = vmax.f32 %v306_v5, 0.0  ;;  %v113_v20 = vmul.f32 %v560_v1, %v42_v3  ;;  %v52_v63 = vld [vmem:[%s1152_s0 + $0x110] sm:$0xff]  ;;  %v53_v0 = vld [vmem:[%s1152_s0 + $0x118] sm:$0xff] }
  0x1b   :  { %v371_v18 = vmax.f32 %v307_v6, 0.0  ;;  %v309_v19 = vadd.f32 %v245_v62, %v181_v7  ;;  %434 = vst.msk [vmem:[#allocation2 + $0x88] sm:$0xff] %vm416_vm0, %v369_v11  ;;  %v372_v22 = vmax.f32 %v308_v12, 0.0  ;;  %v114_v26 = vmul.f32 %v560_v1, %v43_v10  ;;  %v54_v7 = vld [vmem:[%s1152_s0 + $0x120] sm:$0xff] }
  0x1c   :  { %v310_v23 = vadd.f32 %v246_v8, %v182_v13  ;;  %v311_v24 = vadd.f32 %v247_v9, %v183_v14  ;;  %435 = vst.msk [vmem:[#allocation2 + $0x90] sm:$0xff] %vm416_vm0, %v370_v17  ;;  %v184_v29 = vadd.f32 %v565_v2, %v113_v20  ;;  %v115_v31 = vmul.f32 %v560_v1, %v44_v15  ;;  %v256_v11 = vld [vmem:[%s1153_s1 + $0x100] sm:$0xff]  ;;  %v55_v13 = vld [vmem:[%s1152_s0 + $0x128] sm:$0xff]  ;;  %v57_v20 = vld [vmem:[%s1152_s0 + $0x138] sm:$0xff] }
  0x1d   :  { %436 = vst.msk [vmem:[#allocation2 + $0x98] sm:$0xff] %vm416_vm0, %v371_v18  ;;  %v373_v28 = vmax.f32 %v309_v19, 0.0  ;;  %v116_v32 = vmul.f32 %v560_v1, %v45_v16  ;;  %437 = vst.msk [vmem:[#allocation2 + $0xa0] sm:$0xff] %vm416_vm0, %v372_v22  ;;  %v185_v37 = vadd.f32 %v565_v2, %v114_v26  ;;  %v117_v40 = vmul.f32 %v560_v1, %v46_v21  ;;  %v257_v16 = vld [vmem:[%s1153_s1 + $0x108] sm:$0xff]  ;;  %v56_v19 = vld [vmem:[%s1152_s0 + $0x130] sm:$0xff] }
  0x1e   :  { %v374_v35 = vmax.f32 %v310_v23, 0.0  ;;  %v375_v36 = vmax.f32 %v311_v24, 0.0  ;;  %v312_v41 = vadd.f32 %v248_v25, %v184_v29  ;;  %v186_v42 = vadd.f32 %v565_v2, %v115_v31  ;;  %v258_v24 = vld [vmem:[%s1153_s1 + $0x110] sm:$0xff]  ;;  %v259_v25 = vld [vmem:[%s1153_s1 + $0x118] sm:$0xff] }
  0x1f   :  { %438 = vst.msk [vmem:[#allocation2 + $0xa8] sm:$0xff] %vm416_vm0, %v373_v28  ;;  %v187_v43 = vadd.f32 %v565_v2, %v116_v32  ;;  %v118_v45 = vmul.f32 %v560_v1, %v47_v27  ;;  %v313_v46 = vadd.f32 %v249_v30, %v185_v37  ;;  %v188_v47 = vadd.f32 %v565_v2, %v117_v40  ;;  %v260_v30 = vld [vmem:[%s1153_s1 + $0x120] sm:$0xff] }
  0x20   :  { %439 = vst.msk [vmem:[#allocation2 + $0xb0] sm:$0xff] %vm416_vm0, %v374_v35  ;;  %440 = vst.msk [vmem:[#allocation2 + $0xb8] sm:$0xff] %vm416_vm0, %v375_v36  ;;  %v119_v49 = vmul.f32 %v560_v1, %v48_v33  ;;  %v120_v50 = vmul.f32 %v560_v1, %v49_v34  ;;  %v376_v52 = vmax.f32 %v312_v41, 0.0  ;;  %v314_v53 = vadd.f32 %v250_v38, %v186_v42  ;;  %v261_v34 = vld [vmem:[%s1153_s1 + $0x128] sm:$0xff]  ;;  %v58_v37 = vld [vmem:[%s1152_s0 + $0x140] sm:$0xff] }
  0x21   :  { %v315_v54 = vadd.f32 %v251_v39, %v187_v43  ;;  %v189_v55 = vadd.f32 %v565_v2, %v118_v45  ;;  %v377_v59 = vmax.f32 %v313_v46, 0.0  ;;  %v316_v60 = vadd.f32 %v252_v44, %v188_v47  ;;  %v262_v42 = vld [vmem:[%s1153_s1 + $0x130] sm:$0xff]  ;;  %v263_v43 = vld [vmem:[%s1153_s1 + $0x138] sm:$0xff]  ;;  %v59_v44 = vld [vmem:[%s1152_s0 + $0x148] sm:$0xff] }
  0x22   :  { %v190_v61 = vadd.f32 %v565_v2, %v119_v49  ;;  %v191_v62 = vadd.f32 %v565_v2, %v120_v50  ;;  %441 = vst.msk [vmem:[#allocation2 + $0xc0] sm:$0xff] %vm416_vm0, %v376_v52  ;;  %v378_v3 = vmax.f32 %v314_v53, 0.0  ;;  %v121_v6 = vmul.f32 %v560_v1, %v50_v51  ;;  %v60_v49 = vld [vmem:[%s1152_s0 + $0x150] sm:$0xff]  ;;  %v61_v50 = vld [vmem:[%s1152_s0 + $0x158] sm:$0xff] }
  0x23   :  { %v379_v4 = vmax.f32 %v315_v54, 0.0  ;;  %v317_v5 = vadd.f32 %v253_v48, %v189_v55  ;;  %442 = vst.msk [vmem:[#allocation2 + $0xc8] sm:$0xff] %vm416_vm0, %v377_v59  ;;  %v380_v8 = vmax.f32 %v316_v60, 0.0  ;;  %v122_v12 = vmul.f32 %v560_v1, %v51_v58  ;;  %v62_v55 = vld [vmem:[%s1152_s0 + $0x160] sm:$0xff] }
  0x24   :  { %v318_v9 = vadd.f32 %v254_v56, %v190_v61  ;;  %v319_v10 = vadd.f32 %v255_v57, %v191_v62  ;;  %443 = vst.msk [vmem:[#allocation2 + $0xd0] sm:$0xff] %vm416_vm0, %v378_v3  ;;  %v192_v15 = vadd.f32 %v565_v2, %v121_v6  ;;  %v123_v17 = vmul.f32 %v560_v1, %v52_v63  ;;  %v264_v59 = vld [vmem:[%s1153_s1 + $0x140] sm:$0xff]  ;;  %v265_v61 = vld [vmem:[%s1153_s1 + $0x148] sm:$0xff]  ;;  %v65_v6 = vld [vmem:[%s1152_s0 + $0x178] sm:$0xff] }
  0x25   :  { %444 = vst.msk [vmem:[#allocation2 + $0xd8] sm:$0xff] %vm416_vm0, %v379_v4  ;;  %v381_v14 = vmax.f32 %v317_v5, 0.0  ;;  %v124_v18 = vmul.f32 %v560_v1, %v53_v0  ;;  %445 = vst.msk [vmem:[#allocation2 + $0xe0] sm:$0xff] %vm416_vm0, %v380_v8  ;;  %v193_v23 = vadd.f32 %v565_v2, %v122_v12  ;;  %v125_v26 = vmul.f32 %v560_v1, %v54_v7  ;;  %v63_v62 = vld [vmem:[%s1152_s0 + $0x168] sm:$0xff]  ;;  %v64_v5 = vld [vmem:[%s1152_s0 + $0x170] sm:$0xff] }
  0x26   :  { %v382_v21 = vmax.f32 %v318_v9, 0.0  ;;  %v383_v22 = vmax.f32 %v319_v10, 0.0  ;;  %v320_v27 = vadd.f32 %v256_v11, %v192_v15  ;;  %v194_v28 = vadd.f32 %v565_v2, %v123_v17 }
  0x27   :  { %446 = vst.msk [vmem:[#allocation2 + $0xe8] sm:$0xff] %vm416_vm0, %v381_v14  ;;  %v195_v29 = vadd.f32 %v565_v2, %v124_v18  ;;  %v126_v31 = vmul.f32 %v560_v1, %v55_v13  ;;  %v321_v32 = vadd.f32 %v257_v16, %v193_v23  ;;  %v196_v33 = vadd.f32 %v565_v2, %v125_v26 }
  0x28   :  { %447 = vst.msk [vmem:[#allocation2 + $0xf0] sm:$0xff] %vm416_vm0, %v382_v21  ;;  %448 = vst.msk [vmem:[#allocation2 + $0xf8] sm:$0xff] %vm416_vm0, %v383_v22  ;;  %v127_v35 = vmul.f32 %v560_v1, %v56_v19  ;;  %v128_v36 = vmul.f32 %v560_v1, %v57_v20  ;;  %v384_v38 = vmax.f32 %v320_v27, 0.0  ;;  %v322_v39 = vadd.f32 %v258_v24, %v194_v28 }
  0x29   :  { %v323_v40 = vadd.f32 %v259_v25, %v195_v29  ;;  %v197_v41 = vadd.f32 %v565_v2, %v126_v31  ;;  %v385_v45 = vmax.f32 %v321_v32, 0.0  ;;  %v324_v46 = vadd.f32 %v260_v30, %v196_v33 }
  0x2a   :  { %v198_v47 = vadd.f32 %v565_v2, %v127_v35  ;;  %v199_v48 = vadd.f32 %v565_v2, %v128_v36  ;;  %449 = vst.msk [vmem:[#allocation2 + $0x100] sm:$0xff] %vm416_vm0, %v384_v38  ;;  %v386_v51 = vmax.f32 %v322_v39, 0.0  ;;  %v129_v54 = vmul.f32 %v560_v1, %v58_v37 }
  0x2b   :  { %v387_v52 = vmax.f32 %v323_v40, 0.0  ;;  %v325_v53 = vadd.f32 %v261_v34, %v197_v41  ;;  %450 = vst.msk [vmem:[#allocation2 + $0x108] sm:$0xff] %vm416_vm0, %v385_v45  ;;  %v388_v56 = vmax.f32 %v324_v46, 0.0  ;;  %v130_v60 = vmul.f32 %v560_v1, %v59_v44 }
  0x2c   :  { %v326_v57 = vadd.f32 %v262_v42, %v198_v47  ;;  %v327_v58 = vadd.f32 %v263_v43, %v199_v48  ;;  %451 = vst.msk [vmem:[#allocation2 + $0x110] sm:$0xff] %vm416_vm0, %v386_v51  ;;  %v200_v0 = vadd.f32 %v565_v2, %v129_v54  ;;  %v131_v3 = vmul.f32 %v560_v1, %v60_v49 }
  0x2d   :  { %452 = vst.msk [vmem:[#allocation2 + $0x118] sm:$0xff] %vm416_vm0, %v387_v52  ;;  %v389_v63 = vmax.f32 %v325_v53, 0.0  ;;  %v132_v4 = vmul.f32 %v560_v1, %v61_v50 }
  0x2e   :  { %9 = vsyncpa [#allocation3], 0  ;;  %453 = vst.msk [vmem:[#allocation2 + $0x120] sm:$0xff] %vm416_vm0, %v388_v56  ;;  %v390_v7 = vmax.f32 %v326_v57, 0.0  ;;  %v391_v8 = vmax.f32 %v327_v58, 0.0  ;;  %v201_v9 = vadd.f32 %v565_v2, %v130_v60  ;;  %v266_v10 = vld [vmem:[%s1153_s1 + $0x150] sm:$0xff]  ;;  %v133_v12 = vmul.f32 %v560_v1, %v62_v55 }
  0x2f   :  { %v267_v11 = vld [vmem:[%s1153_s1 + $0x158] sm:$0xff]  ;;  %454 = vst.msk [vmem:[#allocation2 + $0x128] sm:$0xff] %vm416_vm0, %v389_v63  ;;  %v328_v13 = vadd.f32 %v264_v59, %v200_v0  ;;  %v202_v14 = vadd.f32 %v565_v2, %v131_v3  ;;  %v203_v15 = vadd.f32 %v565_v2, %v132_v4  ;;  %v268_v16 = vld [vmem:[%s1153_s1 + $0x160] sm:$0xff]  ;;  %v134_v17 = vmul.f32 %v560_v1, %v63_v62  ;;  %v269_v20 = vld [vmem:[%s1153_s1 + $0x168] sm:$0xff]  ;;  %s526_s22 = smov [#allocation2]  }
  0x30   :  { %455 = vst.msk [vmem:[#allocation2 + $0x130] sm:$0xff] %vm416_vm0, %v390_v7  ;;  %456 = vst.msk [vmem:[#allocation2 + $0x138] sm:$0xff] %vm416_vm0, %v391_v8  ;;  %v329_v18 = vadd.f32 %v265_v61, %v201_v9  ;;  %v204_v19 = vadd.f32 %v565_v2, %v133_v12  ;;  %v135_v21 = vmul.f32 %v560_v1, %v64_v5  ;;  %v66_v23 = vld [vmem:[%s1152_s0 + $0x180] sm:$0xff]  ;;  %v270_v28 = vld [vmem:[%s1153_s1 + $0x170] sm:$0xff]  ;;  %s486_s23 = sshll.u32 %s526_s22, 4  ;;  %s487_s23 = int_to_ptr.vmem [resolvable:$true] %s486_s23 }
  0x31   :  { %v136_v22 = vmul.f32 %v560_v1, %v65_v6  ;;  %v392_v24 = vmax.f32 %v328_v13, 0.0  ;;  %v330_v25 = vadd.f32 %v266_v10, %v202_v14  ;;  %v331_v26 = vadd.f32 %v267_v11, %v203_v15  ;;  %v271_v29 = vld [vmem:[%s1153_s1 + $0x178] sm:$0xff]  ;;  %v67_v30 = vld [vmem:[%s1152_s0 + $0x188] sm:$0xff]  ;;  %v68_v35 = vld [vmem:[%s1152_s0 + $0x190] sm:$0xff]  ;;  %p507_p1 = scmp.lt.s32.totalorder %s487_s23, %s487_s23 }
  0x32   :  { %v205_v27 = vadd.f32 %v565_v2, %v134_v17  ;;  %v393_v31 = vmax.f32 %v329_v18, 0.0  ;;  %v332_v32 = vadd.f32 %v268_v16, %v204_v19  ;;  %v206_v33 = vadd.f32 %v565_v2, %v135_v21  ;;  %v69_v36 = vld [vmem:[%s1152_s0 + $0x198] sm:$0xff]  ;;  %v70_v41 = vld [vmem:[%s1152_s0 + $0x1a0] sm:$0xff]  ;;  %v71_v47 = vld [vmem:[%s1152_s0 + $0x1a8] sm:$0xff] }
  0x33   :  { %v207_v34 = vadd.f32 %v565_v2, %v136_v22  ;;  %457 = vst.msk [vmem:[#allocation2 + $0x140] sm:$0xff] %vm416_vm0, %v392_v24  ;;  %v394_v37 = vmax.f32 %v330_v25, 0.0  ;;  %v395_v38 = vmax.f32 %v331_v26, 0.0  ;;  %v137_v40 = vmul.f32 %v560_v1, %v66_v23  ;;  %v272_v45 = vld [vmem:[%s1153_s1 + $0x180] sm:$0xff]  ;;  %v273_v50 = vld [vmem:[%s1153_s1 + $0x188] sm:$0xff]  ;;  %v72_v53 = vld [vmem:[%s1152_s0 + $0x1b0] sm:$0xff] }
  0x34   :  { %v333_v39 = vadd.f32 %v269_v20, %v205_v27  ;;  %458 = vst.msk [vmem:[#allocation2 + $0x148] sm:$0xff] %vm416_vm0, %v393_v31  ;;  %v396_v42 = vmax.f32 %v332_v32, 0.0  ;;  %v334_v43 = vadd.f32 %v270_v28, %v206_v33  ;;  %v138_v46 = vmul.f32 %v560_v1, %v67_v30  ;;  %v73_v54 = vld [vmem:[%s1152_s0 + $0x1b8] sm:$0xff]  ;;  %v274_v58 = vld [vmem:[%s1153_s1 + $0x190] sm:$0xff]  ;;  %v276_v0 = vld [vmem:[%s1153_s1 + $0x1a0] sm:$0xff] }
  0x35   :  { %v335_v44 = vadd.f32 %v271_v29, %v207_v34  ;;  %459 = vst.msk [vmem:[#allocation2 + $0x150] sm:$0xff] %vm416_vm0, %v394_v37  ;;  %460 = vst.msk [vmem:[#allocation2 + $0x158] sm:$0xff] %vm416_vm0, %v395_v38  ;;  %v208_v49 = vadd.f32 %v565_v2, %v137_v40  ;;  %v139_v51 = vmul.f32 %v560_v1, %v68_v35  ;;  %v275_v59 = vld [vmem:[%s1153_s1 + $0x198] sm:$0xff]  ;;  %v277_v6 = vld [vmem:[%s1153_s1 + $0x1a8] sm:$0xff] }
  0x36   :  { %v397_v48 = vmax.f32 %v333_v39, 0.0  ;;  %v140_v52 = vmul.f32 %v560_v1, %v69_v36  ;;  %461 = vst.msk [vmem:[#allocation2 + $0x160] sm:$0xff] %vm416_vm0, %v396_v42  ;;  %v398_v55 = vmax.f32 %v334_v43, 0.0  ;;  %v209_v57 = vadd.f32 %v565_v2, %v138_v46  ;;  %v74_v9 = vld [vmem:[%s1152_s0 + $0x1c0] sm:$0xff]  ;;  %v278_v14 = vld [vmem:[%s1153_s1 + $0x1b0] sm:$0xff]  ;;  %v279_v15 = vld [vmem:[%s1153_s1 + $0x1b8] sm:$0xff] }
  0x37   :  { %v399_v56 = vmax.f32 %v335_v44, 0.0  ;;  %v141_v60 = vmul.f32 %v560_v1, %v70_v41  ;;  %v336_v61 = vadd.f32 %v272_v45, %v208_v49  ;;  %v210_v62 = vadd.f32 %v565_v2, %v139_v51  ;;  %v75_v16 = vld [vmem:[%s1152_s0 + $0x1c8] sm:$0xff]  ;;  %v76_v21 = vld [vmem:[%s1152_s0 + $0x1d0] sm:$0xff]  ;;  %v77_v22 = vld [vmem:[%s1152_s0 + $0x1d8] sm:$0xff] }
  0x38   :  { %462 = vst.msk [vmem:[#allocation2 + $0x168] sm:$0xff] %vm416_vm0, %v397_v48  ;;  %v211_v63 = vadd.f32 %v565_v2, %v140_v52  ;;  %v142_v3 = vmul.f32 %v560_v1, %v71_v47  ;;  %463 = vst.msk [vmem:[#allocation2 + $0x170] sm:$0xff] %vm416_vm0, %v398_v55  ;;  %v337_v4 = vadd.f32 %v273_v50, %v209_v57  ;;  %v78_v27 = vld [vmem:[%s1152_s0 + $0x1e0] sm:$0xff]  ;;  %v79_v33 = vld [vmem:[%s1152_s0 + $0x1e8] sm:$0xff] }
  0x39   :  { %464 = vst.msk [vmem:[#allocation2 + $0x178] sm:$0xff] %vm416_vm0, %v399_v56  ;;  %v212_v5 = vadd.f32 %v565_v2, %v141_v60  ;;  %v143_v7 = vmul.f32 %v560_v1, %v72_v53  ;;  %v144_v8 = vmul.f32 %v560_v1, %v73_v54  ;;  %v400_v10 = vmax.f32 %v336_v61, 0.0  ;;  %v280_v31 = vld [vmem:[%s1153_s1 + $0x1c0] sm:$0xff]  ;;  %v281_v36 = vld [vmem:[%s1153_s1 + $0x1c8] sm:$0xff]  ;;  %v80_v39 = vld [vmem:[%s1152_s0 + $0x1f0] sm:$0xff] }
  0x3a   :  { %v338_v11 = vadd.f32 %v274_v58, %v210_v62  ;;  %v339_v12 = vadd.f32 %v275_v59, %v211_v63  ;;  %v213_v13 = vadd.f32 %v565_v2, %v142_v3  ;;  %v401_v17 = vmax.f32 %v337_v4, 0.0  ;;  %v81_v40 = vld [vmem:[%s1152_s0 + $0x1f8] sm:$0xff]  ;;  %v282_v44 = vld [vmem:[%s1153_s1 + $0x1d0] sm:$0xff]  ;;  %v284_v50 = vld [vmem:[%s1153_s1 + $0x1e0] sm:$0xff] }
  0x3b   :  { %v340_v18 = vadd.f32 %v276_v0, %v212_v5  ;;  %v214_v19 = vadd.f32 %v565_v2, %v143_v7  ;;  %v215_v20 = vadd.f32 %v565_v2, %v144_v8  ;;  %465 = vst.msk [vmem:[#allocation2 + $0x180] sm:$0xff] %vm416_vm0, %v400_v10  ;;  %v145_v26 = vmul.f32 %v560_v1, %v74_v9  ;;  %v283_v45 = vld [vmem:[%s1153_s1 + $0x1d8] sm:$0xff]  ;;  %v285_v54 = vld [vmem:[%s1153_s1 + $0x1e8] sm:$0xff]  ;;  %v286_v61 = vld [vmem:[%s1153_s1 + $0x1f0] sm:$0xff] }
  0x3c   :  { %v402_v23 = vmax.f32 %v338_v11, 0.0  ;;  %v403_v24 = vmax.f32 %v339_v12, 0.0  ;;  %v341_v25 = vadd.f32 %v277_v6, %v213_v13  ;;  %466 = vst.msk [vmem:[#allocation2 + $0x188] sm:$0xff] %vm416_vm0, %v401_v17  ;;  %v146_v32 = vmul.f32 %v560_v1, %v75_v16  ;;  %v287_v62 = vld [vmem:[%s1153_s1 + $0x1f8] sm:$0xff]  ;;  %s502_s1 = scalar_lea.vmem %s487_s23, 8192 }
  0x3d   :  { %v404_v28 = vmax.f32 %v340_v18, 0.0  ;;  %v342_v29 = vadd.f32 %v278_v14, %v214_v19  ;;  %v343_v30 = vadd.f32 %v279_v15, %v215_v20  ;;  %v216_v35 = vadd.f32 %v565_v2, %v145_v26  ;;  %p503_p0 = scmp.ne.s32.totalorder %s487_s23, %s502_s1  ;;  %p508_p2 = scmp.lt.s32.totalorder %s502_s1, %s502_s1 }
  0x3e   :  { %467 = vst.msk [vmem:[#allocation2 + $0x190] sm:$0xff] %vm416_vm0, %v402_v23  ;;  %468 = vst.msk [vmem:[#allocation2 + $0x198] sm:$0xff] %vm416_vm0, %v403_v24  ;;  %v405_v34 = vmax.f32 %v341_v25, 0.0  ;;  %v147_v37 = vmul.f32 %v560_v1, %v76_v21  ;;  %v148_v38 = vmul.f32 %v560_v1, %v77_v22  ;;  %v217_v43 = vadd.f32 %v565_v2, %v146_v32 }
  0x3f   :  { %469 = vst.msk [vmem:[#allocation2 + $0x1a0] sm:$0xff] %vm416_vm0, %v404_v28  ;;  %v406_v41 = vmax.f32 %v342_v29, 0.0  ;;  %v407_v42 = vmax.f32 %v343_v30, 0.0  ;;  %v149_v46 = vmul.f32 %v560_v1, %v78_v27  ;;  %v344_v47 = vadd.f32 %v280_v31, %v216_v35  ;;  %p509_p3 = por %p508_p2, %p507_p1 }
  0x40   :  { %470 = vst.msk [vmem:[#allocation2 + $0x1a8] sm:$0xff] %vm416_vm0, %v405_v34  ;;  %v218_v48 = vadd.f32 %v565_v2, %v147_v37  ;;  %v219_v49 = vadd.f32 %v565_v2, %v148_v38  ;;  %v150_v51 = vmul.f32 %v560_v1, %v79_v33  ;;  %v345_v52 = vadd.f32 %v281_v36, %v217_v43 }
  0x41   :  { %471 = vst.msk [vmem:[#allocation2 + $0x1b0] sm:$0xff] %vm416_vm0, %v406_v41  ;;  %472 = vst.msk [vmem:[#allocation2 + $0x1b8] sm:$0xff] %vm416_vm0, %v407_v42  ;;  %v220_v53 = vadd.f32 %v565_v2, %v149_v46  ;;  %v151_v55 = vmul.f32 %v560_v1, %v80_v39  ;;  %v152_v56 = vmul.f32 %v560_v1, %v81_v40  ;;  %v408_v57 = vmax.f32 %v344_v47, 0.0  ;;  %p510_p4 = pnand %p509_p3, %p503_p0 }
  0x42   :  { %v346_v58 = vadd.f32 %v282_v44, %v218_v48  ;;  %v347_v59 = vadd.f32 %v283_v45, %v219_v49  ;;  %v221_v60 = vadd.f32 %v565_v2, %v150_v51  ;;  %v409_v63 = vmax.f32 %v345_v52, 0.0 }
  0x43   :  { %v348_v0 = vadd.f32 %v284_v50, %v220_v53  ;;  %v222_v3 = vadd.f32 %v565_v2, %v151_v55  ;;  %v223_v4 = vadd.f32 %v565_v2, %v152_v56  ;;  %473 = vst.msk [vmem:[#allocation2 + $0x1c0] sm:$0xff] %vm416_vm0, %v408_v57 }
  0x44   :  { %v410_v1 = vmax.f32 %v346_v58, 0.0  ;;  %v411_v5 = vmax.f32 %v347_v59, 0.0  ;;  %v349_v6 = vadd.f32 %v285_v54, %v221_v60  ;;  %474 = vst.msk [vmem:[#allocation2 + $0x1c8] sm:$0xff] %vm416_vm0, %v409_v63 }
  0x45   :  { %v412_v7 = vmax.f32 %v348_v0, 0.0  ;;  %v350_v8 = vadd.f32 %v286_v61, %v222_v3  ;;  %v351_v9 = vadd.f32 %v287_v62, %v223_v4 }
  0x46   :  { %475 = vst.msk [vmem:[#allocation2 + $0x1d0] sm:$0xff] %vm416_vm0, %v410_v1  ;;  %476 = vst.msk [vmem:[#allocation2 + $0x1d8] sm:$0xff] %vm416_vm0, %v411_v5  ;;  %v413_v10 = vmax.f32 %v349_v6, 0.0 }
  0x47   :  { %477 = vst.msk [vmem:[#allocation2 + $0x1e0] sm:$0xff] %vm416_vm0, %v412_v7  ;;  %v414_v2 = vmax.f32 %v350_v8, 0.0  ;;  %v415_v11 = vmax.f32 %v351_v9, 0.0 }
  0x48   :  { %478 = vst.msk [vmem:[#allocation2 + $0x1e8] sm:$0xff] %vm416_vm0, %v413_v10 }
  0x49   :  { %479 = vst.msk [vmem:[#allocation2 + $0x1f0] sm:$0xff] %vm416_vm0, %v414_v2  ;;  %480 = vst.msk [vmem:[#allocation2 + $0x1f8] sm:$0xff] %vm416_vm0, %v415_v11 }
  0x4a   :  { %513 = shalt.err (!%p510_p4)
}
  0x4b   :  { %s514_s2 = scalar_lea.hbm %s1156_s4, 8192 }
  0x4c   :  { %p515_p5 = scmp.ne.s32.totalorder %s1156_s4, %s514_s2  ;;  %p518_p6 = scmp.lt.u32.totalorder %s514_s2, %s1156_s4 }
  0x4e   :  { %p520_p7 = pnand %p518_p6, %p515_p5 }
  0x50   :  { %523 = shalt.err (!%p520_p7)
}
  0x51   :  { %s527_s29 = smov 128   ;;  %s528_s30 = smov 8  }
  0x52   :  { %492 = dma.vmem_to_hbm [thread:$0]  %s487_s23, 8192, %s1156_s4, [#allocation3], %s527_s29, %s527_s29, %s528_s30  }
  0x53   :  { %524 = dma.done.wait [#allocation3], 8192  }
  0x54   :  { %525 = vsyncadd [#allocation3], 4294959104 }
  0x55   :  { %496 = vsyncpa [#allocation3], 1 }

// kernel: unit_forward.4
= control target key start
LH: loop header
LB: loop body
LE: loop exit
PB: predicated region body
PF: predicated region fallthrough
CT: control target
= control target key end

     0   :  { %s3323_s15 = smov 0   ;;  %s4540_s0 = inlined_call_operand.vmem [shape: f32[2,18,18,32], index: 0, kind: input, shape index: {}]   ;;  %s4541_s1 = inlined_call_operand.vmem [shape: f32[288,32], index: 1, kind: input, shape index: {}]   ;;  %s4542_s2 = inlined_call_operand.vmem [shape: f32[512,32], index: 2, kind: output, shape index: {0}]   ;;  %s4543_s3 = inlined_call_operand.vmem [shape: f32[16,32], index: 3, kind: output, shape index: {1}]   ;;  %s4544_s4 = inlined_call_operand.vmem [shape: f32[16,32], index: 4, kind: output, shape index: {2}]  }
   0x1 LB: > { %s3329_s16 = sadd.s32 4294967295, %s3292_s15   ;;  %p2381_p0 = scmp.ge.s32.totalorder %s3292_s15, 1  ;;  %s3292_s15 = sphi %s3323_s15, %s15_s15  }
   0x2   : > { %p167_p1 = scmp.lt.s32.totalorder %s3292_s15, 3 }
   0x4   : > { %p168_p2 = pnand %p2381_p0, %p167_p1 }
   0x5   : > { %p201_p3 = scmp.lt.s32.totalorder (!%p168_p2), %s3329_s16, 1  ;;  %v1473_v0 = vld [vmem:[%s4541_s1] sm:$0xff] (!%p168_p2)  ;;  %v1474_v1 = vld [vmem:[%s4541_s1 + $0x8] sm:$0xff] (!%p168_p2)  ;;  %v1475_v2 = vld [vmem:[%s4541_s1 + $0x10] sm:$0xff] (!%p168_p2)  ;;  %v3294_v3 = vmov (!%p168_p2), 0.0|0.0   ;;  %s3295_s12 = smov (!%p168_p2), 96  }
   0x6   : > { %171 = sbr.rel (%p168_p2) target bundleno = 578 (0x242), region = 28  ;;  %2705 = vmatprep.subr.bf16.mxu0 (!%p168_p2), %v3294_v3  ;;  %v2706_v4 = vpack.c.bf16 (!%p168_p2), %v1474_v1, %v1473_v0  ;;  %v1476_v5 = vld [vmem:[%s4541_s1 + $0x18] sm:$0xff] (!%p168_p2)  ;;  %2761 = vmatprep.subr.bf16.mxu1 (!%p168_p2), %v3294_v3  ;;  %v1477_v7 = vld [vmem:[%s4541_s1 + $0x20] sm:$0xff] (!%p168_p2)  ;;  %v1478_v8 = vld [vmem:[%s4541_s1 + $0x28] sm:$0xff] (!%p168_p2)  ;;  %s3296_s13 = smov (!%p168_p2), 32   ;;  %vm1278_vm0 = vcmask (!%p168_p2), 261120  }
   0x7   : > { %v2709_v6 = vpack.c.bf16 (!%p168_p2), %v1476_v5, %v1475_v2  ;;  %v1479_v9 = vld [vmem:[%s4541_s1 + $0x30] sm:$0xff] (!%p168_p2)  ;;  %v1480_v10 = vld [vmem:[%s4541_s1 + $0x38] sm:$0xff] (!%p168_p2)  ;;  %v2712_v14 = vpack.c.bf16 (!%p168_p2), %v1478_v8, %v1477_v7  ;;  %v1481_v27 = vld [vmem:[%s4541_s1 + $0x40] sm:$0xff] (!%p168_p2)  ;;  %s3297_s20 = smov (!%p168_p2), 64   ;;  %vm1311_vm1 = vcmask (!%p168_p2), 523264   ;;  %vm1344_vm2 = vcmask (!%p168_p2), 785408  }
   0x8   : > { %2707 = vmatpush1.bf16.msra.mxu0 (!%p168_p2), %v2706_v4  ;;  %2777 = vmatpush1.bf16.msra.mxu1 (!%p168_p2), %v2706_v4  ;;  %v2715_v26 = vpack.c.bf16 (!%p168_p2), %v1480_v10, %v1479_v9  ;;  %v1482_v30 = vld [vmem:[%s4541_s1 + $0x48] sm:$0xff] (!%p168_p2)  ;;  %v1483_v35 = vld [vmem:[%s4541_s1 + $0x50] sm:$0xff] (!%p168_p2)  ;;  %v1484_v38 = vld [vmem:[%s4541_s1 + $0x58] sm:$0xff] (!%p168_p2) }
   0x9   : > { %2708 = vmatprep.subr.bf16.mxu0 (!%p168_p2), %v3294_v3  ;;  %2762 = vmatprep.subr.bf16.mxu1 (!%p168_p2), %v3294_v3  ;;  %v2718_v34 = vpack.c.bf16 (!%p168_p2), %v1482_v30, %v1481_v27  ;;  %v2721_v43 = vpack.c.bf16 (!%p168_p2), %v1484_v38, %v1483_v35  ;;  %v1485_v45 = vld [vmem:[%s4541_s1 + $0x60] sm:$0xff] (!%p168_p2)  ;;  %v1486_v46 = vld [vmem:[%s4541_s1 + $0x68] sm:$0xff] (!%p168_p2)  ;;  %v1487_v51 = vld [vmem:[%s4541_s1 + $0x70] sm:$0xff] (!%p168_p2) }
   0xa   : > { %v2724_v50 = vpack.c.bf16 (!%p168_p2), %v1486_v46, %v1485_v45  ;;  %v1488_v54 = vld [vmem:[%s4541_s1 + $0x78] sm:$0xff] (!%p168_p2)  ;;  %v1489_v59 = vld [vmem:[%s4541_s1 + $0x80] sm:$0xff] (!%p168_p2)  ;;  %v1490_v62 = vld [vmem:[%s4541_s1 + $0x88] sm:$0xff] (!%p168_p2) }
   0xb   : > { %v2727_v58 = vpack.c.bf16 (!%p168_p2), %v1488_v54, %v1487_v51  ;;  %v2730_v2 = vpack.c.bf16 (!%p168_p2), %v1490_v62, %v1489_v59  ;;  %v1491_v4 = vld [vmem:[%s4541_s1 + $0x90] sm:$0xff] (!%p168_p2)  ;;  %v1492_v7 = vld [vmem:[%s4541_s1 + $0x98] sm:$0xff] (!%p168_p2)  ;;  %v1498_v35 = vld [vmem:[%s4541_s1 + $0xc8] sm:$0xff] (!%p168_p2) }
   0xc   : > { %2710 = vmatpush1.bf16.msra.mxu0 (!%p168_p2), %v2709_v6  ;;  %2778 = vmatpush1.bf16.msra.mxu1 (!%p168_p2), %v2709_v6  ;;  %v1496_v27 = vld [vmem:[%s4541_s1 + $0xb8] sm:$0xff] (!%p168_p2)  ;;  %v1499_v46 = vld [vmem:[%s4541_s1 + $0xd0] sm:$0xff] (!%p168_p2) }
   0xd   : > { %s3349_s25 = scalar_select %p201_p3, %s3329_s16, 1  ;;  %2711 = vmatprep.subr.bf16.mxu0 %v3294_v3  ;;  %2763 = vmatprep.subr.bf16.mxu1 %v3294_v3 }
   0xf   : > { %s2793_s26 = smul.u32 432, %s3349_s25 }
  0x10   : > { %2713 = vmatpush1.bf16.msra.mxu0 %v2712_v14  ;;  %2779 = vmatpush1.bf16.msra.mxu1 %v2712_v14  ;;  %v1493_v14 = vld [vmem:[%s4541_s1 + $0xa0] sm:$0xff] }
  0x11   : > { %s3363_s7 = scalar_lea.vmem %s4540_s0, %s2793_s26  ;;  %2714 = vmatprep.subr.bf16.mxu0 %v3294_v3  ;;  %2764 = vmatprep.subr.bf16.mxu1 %v3294_v3 }
  0x12   : > { %v3372_v11 = vld [vmem:[%s3363_s7 + $0x18] sm:$0xff]  ;;  %v252_v13 = vld [vmem:[%s3363_s7 + $0x1] sm:$0xff]  ;;  %v253_v17 = vld [vmem:[%s3363_s7 + $0x9] sm:$0xff] }
  0x13   : > { %v3375_v12 = vld [vmem:[%s3363_s7 + $0x31] sm:$0xff]  ;;  %v2451_v16 = vld [vmem:[%s3363_s7 + $0x1a] sm:$0xff]  ;;  %v3383_v18 = vld [vmem:[%s3363_s7 + $0x22] sm:$0xff] }
  0x14   : > { %v2816_v15 = vpack.i.bf16 %v3372_v11, %v3375_v12  ;;  %v2806_v19 = vpack.i.bf16 %v252_v13, %v2451_v16  ;;  %v284_v20 = vld [vmem:[%s3363_s7 + $0x2] sm:$0xff]  ;;  %v3389_v21 = vld [vmem:[%s3363_s7 + $0x30] sm:$0xff]  ;;  %v2821_v22 = vpack.i.bf16 %v253_v17, %v3383_v18  ;;  %v3399_v25 = vld [vmem:[%s3363_s7 + $0x39] sm:$0xff]  ;;  %2716 = vmatpush1.bf16.msra.mxu0 %v2715_v26  ;;  %2780 = vmatpush1.bf16.msra.mxu1 %v2715_v26 }
  0x15   : > { %v2811_v23 = vpack.i.bf16 %v284_v20, %v3389_v21  ;;  %v3396_v24 = vld [vmem:[%s3363_s7 + $0x20] sm:$0xff]  ;;  %v285_v28 = vld [vmem:[%s3363_s7 + $0xa] sm:$0xff]  ;;  %v3406_v29 = vld [vmem:[%s3363_s7 + $0x38] sm:$0xff]  ;;  %2717 = vmatprep.subr.bf16.mxu0 %v3294_v3  ;;  %2765 = vmatprep.subr.bf16.mxu1 %v3294_v3  ;;  %v2733_v13 = vpack.c.bf16 %v1492_v7, %v1491_v4 }
  0x16   : > { %2817 = vrot.lane.b32.xlu1 %v2816_v15, %s3295_s12  ;;  %2807 = vrot.lane.b32.xlu0 %v2806_v19, %s3296_s13  ;;  %v2831_v31 = vpack.i.bf16 %v3396_v24, %v3399_v25  ;;  %v2826_v32 = vpack.i.bf16 %v285_v28, %v3406_v29  ;;  %v3419_v33 = vld [vmem:[%s3363_s7 + $0x48] sm:$0xff]  ;;  %v3425_v36 = vld [vmem:[%s3363_s7 + $0x19] sm:$0xff] }
  0x17   : > { %v3428_v37 = vld [vmem:[%s3363_s7 + $0x32] sm:$0xff]  ;;  %v2841_v39 = vpack.i.bf16 %v2451_v16, %v3419_v33  ;;  %v3441_v41 = vld [vmem:[%s3363_s7 + $0x21] sm:$0xff]  ;;  %v3447_v44 = vld [vmem:[%s3363_s7 + $0x49] sm:$0xff] }
  0x18   : > { %v2836_v40 = vpack.i.bf16 %v3425_v36, %v3428_v37  ;;  %v3444_v42 = vld [vmem:[%s3363_s7 + $0x3a] sm:$0xff]  ;;  %2719 = vmatpush1.bf16.msra.mxu0 %v2718_v34  ;;  %2781 = vmatpush1.bf16.msra.mxu1 %v2718_v34  ;;  %v2846_v48 = vpack.i.bf16 %v3389_v21, %v3447_v44  ;;  %v3464_v49 = vld [vmem:[%s3363_s7 + $0x50] sm:$0xff]  ;;  %v308_v60 = vld [vmem:[%s3363_s7 + $0x122] sm:$0xff] }
  0x19   : > { %2720 = vmatprep.subr.bf16.mxu0 %v3294_v3  ;;  %2766 = vmatprep.subr.bf16.mxu1 %v3294_v3  ;;  %v2851_v47 = vpack.i.bf16 %v3441_v41, %v3444_v42  ;;  %v276_v52 = vld [vmem:[%s3363_s7 + $0x121] sm:$0xff]  ;;  %v2861_v55 = vpack.i.bf16 %v3383_v18, %v3464_v49  ;;  %v3484_v57 = vld [vmem:[%s3363_s7 + $0x51] sm:$0xff]  ;;  %v277_v15 = vld [vmem:[%s3363_s7 + $0x129] sm:$0xff] }
  0x1a   : > { %2822 = vrot.lane.b32.xlu1 %v2821_v22, %s3296_s13  ;;  %2812 = vrot.lane.b32.xlu0 %v2811_v23, %s3297_s20  ;;  %v3471_v53 = vld [vmem:[%s3363_s7 + $0x13a] sm:$0xff]  ;;  %v3491_v61 = vld [vmem:[%s3363_s7 + $0x150] sm:$0xff]  ;;  %v2871_v63 = vpack.i.bf16 %v3406_v29, %v3484_v57 }
  0x1b   : > { %v2856_v56 = vpack.i.bf16 %v276_v52, %v3471_v53  ;;  %v2866_v0 = vpack.i.bf16 %v308_v60, %v3491_v61  ;;  %v3504_v1 = vld [vmem:[%s3363_s7 + $0x4a] sm:$0xff]  ;;  %v2411_v5 = vld [vmem:[%s3363_s7 + $0x138] sm:$0xff]  ;;  %v3524_v10 = vld [vmem:[%s3363_s7 + $0x60] sm:$0xff] }
  0x1c   : > { %2722 = vmatpush1.bf16.msra.mxu0 %v2721_v43  ;;  %2782 = vmatpush1.bf16.msra.mxu1 %v2721_v43  ;;  %v3511_v6 = vld [vmem:[%s3363_s7 + $0x151] sm:$0xff]  ;;  %v2881_v8 = vpack.i.bf16 %v3375_v12, %v3504_v1  ;;  %v3531_v16 = vld [vmem:[%s3363_s7 + $0x142] sm:$0xff]  ;;  %v2891_v18 = vpack.i.bf16 %v3428_v37, %v3524_v10  ;;  %v3568_v34 = vld [vmem:[%s3363_s7 + $0x159] sm:$0xff] }
  0x1d   : > { %2723 = vmatprep.subr.bf16.mxu0 %v3294_v3  ;;  %2767 = vmatprep.subr.bf16.mxu1 %v3294_v3  ;;  %v2876_v9 = vpack.i.bf16 %v2411_v5, %v3511_v6  ;;  %v1494_v17 = vld [vmem:[%s4541_s1 + $0xa8] sm:$0xff]  ;;  %v2886_v19 = vpack.i.bf16 %v277_v15, %v3531_v16  ;;  %v3548_v23 = vld [vmem:[%s3363_s7 + $0x158] sm:$0xff]  ;;  %v1495_v26 = vld [vmem:[%s4541_s1 + $0xb0] sm:$0xff] }
  0x1e   : > { %2832 = vrot.lane.b32.xlu1 %v2831_v31, %s3295_s12  ;;  %2827 = vrot.lane.b32.xlu0 %v2826_v32, %s3297_s20  ;;  %v3544_v20 = vld [vmem:[%s3363_s7 + $0x61] sm:$0xff]  ;;  %v309_v21 = vld [vmem:[%s3363_s7 + $0x12a] sm:$0xff]  ;;  %v2736_v22 = vpack.c.bf16 %v1494_v17, %v1493_v14  ;;  %v2739_v32 = vpack.c.bf16 %v1496_v27, %v1495_v26 }
  0x1f   : > { %v2901_v28 = vpack.i.bf16 %v3419_v33, %v3544_v20  ;;  %v2896_v29 = vpack.i.bf16 %v309_v21, %v3548_v23  ;;  %v3564_v30 = vld [vmem:[%s3363_s7 + $0x52] sm:$0xff]  ;;  %v2412_v31 = vld [vmem:[%s3363_s7 + $0x140] sm:$0xff]  ;;  %v3607_v51 = vld [vmem:[%s3363_s7 + $0x69] sm:$0xff] }
  0x20   : > { %2725 = vmatpush1.bf16.msra.mxu0 %v2724_v50  ;;  %2783 = vmatpush1.bf16.msra.mxu1 %v2724_v50  ;;  %v1497_v33 = vld [vmem:[%s4541_s1 + $0xc0] sm:$0xff]  ;;  %v2911_v37 = vpack.i.bf16 %v3399_v25, %v3564_v30  ;;  %v2906_v38 = vpack.i.bf16 %v2412_v31, %v3568_v34  ;;  %v3590_v45 = vld [vmem:[%s3363_s7 + $0x152] sm:$0xff]  ;;  %v3610_v54 = vld [vmem:[%s3363_s7 + $0x168] sm:$0xff] }
  0x21   : > { %2726 = vmatprep.subr.bf16.mxu0 %v3294_v3  ;;  %2768 = vmatprep.subr.bf16.mxu1 %v3294_v3  ;;  %v2742_v43 = vpack.c.bf16 %v1498_v35, %v1497_v33  ;;  %v3627_v59 = vld [vmem:[%s3363_s7 + $0x62] sm:$0xff]  ;;  %v2478_v7 = vld [vmem:[%s3363_s7 + $0x15a] sm:$0xff]  ;;  %v2458_v14 = vld [vmem:[%s3363_s7 + $0x6a] sm:$0xff] }
  0x22   : > { %2842 = vrot.lane.b32.xlu1 %v2841_v39, %s3297_s20  ;;  %2837 = vrot.lane.b32.xlu0 %v2836_v40, %s3296_s13  ;;  %v3584_v39 = vld [vmem:[%s3363_s7 + $0x68] sm:$0xff]  ;;  %v3587_v40 = vld [vmem:[%s3363_s7 + $0x139] sm:$0xff]  ;;  %v2971_v17 = vpack.i.bf16 %v3484_v57, %v2458_v14 }
  0x23   : > { %v2916_v50 = vpack.i.bf16 %v3587_v40, %v3590_v45  ;;  %v3630_v62 = vld [vmem:[%s3363_s7 + $0x169] sm:$0xff]  ;;  %v3648_v5 = vld [vmem:[%s3363_s7 + $0x141] sm:$0xff]  ;;  %v3668_v15 = vld [vmem:[%s3363_s7 + $0x171] sm:$0xff] }
  0x24   : > { %2728 = vmatpush1.bf16.msra.mxu0 %v2727_v58  ;;  %2784 = vmatpush1.bf16.msra.mxu1 %v2727_v58  ;;  %v2926_v58 = vpack.i.bf16 %v3471_v53, %v3610_v54  ;;  %v2941_v53 = vpack.i.bf16 %v3447_v44, %v3627_v59  ;;  %v2511_v57 = vld [vmem:[%s3363_s7 + $0x180] sm:$0xff]  ;;  %v2480_v31 = vld [vmem:[%s3363_s7 + $0x172] sm:$0xff] }
  0x25   : > { %2729 = vmatprep.subr.bf16.mxu0 %v3294_v3  ;;  %2769 = vmatprep.subr.bf16.mxu1 %v3294_v3  ;;  %v2986_v26 = vpack.i.bf16 %v3590_v45, %v2511_v57  ;;  %v2459_v27 = vld [vmem:[%s3363_s7 + $0x7a] sm:$0xff]  ;;  %v3006_v33 = vpack.i.bf16 %v3568_v34, %v2480_v31  ;;  %v3703_v35 = vld [vmem:[%s3363_s7 + $0x91] sm:$0xff] }
  0x26   : > { %2852 = vrot.lane.b32.xlu1 %v2851_v47, %s3296_s13  ;;  %2847 = vrot.lane.b32.xlu0 %v2846_v48, %s3295_s12  ;;  %v1500_v47 = vld [vmem:[%s4541_s1 + $0xd8] sm:$0xff]  ;;  %v2921_v48 = vpack.i.bf16 %v3444_v42, %v3584_v39  ;;  %v1502_v42 = vld [vmem:[%s4541_s1 + $0xe8] sm:$0xff] }
  0x27   : > { %v2745_v52 = vpack.c.bf16 %v1500_v47, %v1499_v46  ;;  %v2492_v46 = vld [vmem:[%s3363_s7 + $0x98] sm:$0xff]  ;;  %v2481_v47 = vld [vmem:[%s3363_s7 + $0x182] sm:$0xff] }
  0x28   : > { %2731 = vmatpush1.bf16.msra.mxu0 %v2730_v2  ;;  %2785 = vmatpush1.bf16.msra.mxu1 %v2730_v2  ;;  %v2489_v2 = vld [vmem:[%s3363_s7 + $0x78] sm:$0xff] }
  0x29   : > { %2732 = vmatprep.subr.bf16.mxu0 %v3294_v3  ;;  %2770 = vmatprep.subr.bf16.mxu1 %v3294_v3 }
  0x2a   : > { %2862 = vrot.lane.b32.xlu1 %v2861_v55, %s3297_s20  ;;  %2857 = vrot.lane.b32.xlu0 %v2856_v56, %s3296_s13  ;;  %v1501_v55 = vld [vmem:[%s4541_s1 + $0xe0] sm:$0xff]  ;;  %v2931_v56 = vpack.i.bf16 %v3464_v49, %v3607_v51  ;;  %v1503_v49 = vld [vmem:[%s4541_s1 + $0xf0] sm:$0xff] }
  0x2b   : > { %v2748_v60 = vpack.c.bf16 %v1502_v42, %v1501_v55  ;;  %v2461_v42 = vld [vmem:[%s3363_s7 + $0x92] sm:$0xff] }
  0x2c   : > { %2734 = vmatpush1.bf16.msra.mxu0 %v2733_v13  ;;  %2786 = vmatpush1.bf16.msra.mxu1 %v2733_v13  ;;  %v2510_v13 = vld [vmem:[%s3363_s7 + $0x170] sm:$0xff] }
  0x2d   : > { %2735 = vmatprep.subr.bf16.mxu0 %v3294_v3  ;;  %2771 = vmatprep.subr.bf16.mxu1 %v3294_v3 }
  0x2e   : > { %2872 = vrot.lane.b32.xlu1 %v2871_v63, %s3295_s12  ;;  %2867 = vrot.lane.b32.xlu0 %v2866_v0, %s3297_s20  ;;  %v1504_v63 = vld [vmem:[%s4541_s1 + $0xf8] sm:$0xff]  ;;  %v2936_v0 = vpack.i.bf16 %v3491_v61, %v3630_v62  ;;  %v2946_v61 = vpack.i.bf16 %v3648_v5, %v2478_v7 }
  0x2f   : > { %v2751_v4 = vpack.c.bf16 %v1504_v63, %v1503_v49  ;;  %v1506_v49 = vld [vmem:[%s4541_s1 + $0x108] sm:$0xff] }
  0x30   : > { %2737 = vmatpush1.bf16.msra.mxu0 %v2736_v22  ;;  %2787 = vmatpush1.bf16.msra.mxu1 %v2736_v22  ;;  %v3682_v22 = vld [vmem:[%s3363_s7 + $0x81] sm:$0xff]  ;;  %v2482_v63 = vld [vmem:[%s3363_s7 + $0x18a] sm:$0xff] }
  0x31   : > { %2738 = vmatprep.subr.bf16.mxu0 %v3294_v3  ;;  %2772 = vmatprep.subr.bf16.mxu1 %v3294_v3 }
  0x32   : > { %2882 = vrot.lane.b32.xlu1 %v2881_v8, %s3296_s13  ;;  %2877 = vrot.lane.b32.xlu0 %v2876_v9, %s3295_s12  ;;  %v2951_v8 = vpack.i.bf16 %v3504_v1, %v2489_v2  ;;  %v3658_v9 = vld [vmem:[%s3363_s7 + $0x79] sm:$0xff]  ;;  %v2956_v1 = vpack.i.bf16 %v3531_v16, %v2510_v13 }
  0x34   : > { %2740 = vmatpush1.bf16.msra.mxu0 %v2739_v32  ;;  %2788 = vmatpush1.bf16.msra.mxu1 %v2739_v32 }
  0x35   : > { %2741 = vmatprep.subr.bf16.mxu0 %v3294_v3  ;;  %2773 = vmatprep.subr.bf16.mxu1 %v3294_v3 }
  0x36   : > { %2892 = vrot.lane.b32.xlu1 %v2891_v18, %s3297_s20  ;;  %2887 = vrot.lane.b32.xlu0 %v2886_v19, %s3296_s13  ;;  %v2966_v18 = vpack.i.bf16 %v3548_v23, %v3668_v15  ;;  %v2479_v19 = vld [vmem:[%s3363_s7 + $0x16a] sm:$0xff]  ;;  %v2991_v23 = vpack.i.bf16 %v3584_v39, %v3682_v22  ;;  %v2460_v39 = vld [vmem:[%s3363_s7 + $0x82] sm:$0xff] }
  0x37   : > { %v2976_v21 = vpack.i.bf16 %v3511_v6, %v2479_v19  ;;  %v3001_v6 = vpack.i.bf16 %v3544_v20, %v2459_v27  ;;  %v2512_v20 = vld [vmem:[%s3363_s7 + $0x188] sm:$0xff]  ;;  %v3031_v45 = vpack.i.bf16 %v3607_v51, %v2460_v39 }
  0x38   : > { %2743 = vmatpush1.bf16.msra.mxu0 %v2742_v43  ;;  %2789 = vmatpush1.bf16.msra.mxu1 %v2742_v43  ;;  %v2544_v43 = vld [vmem:[%s3363_s7 + $0x189] sm:$0xff] }
  0x39   : > { %2744 = vmatprep.subr.bf16.mxu0 %v3294_v3  ;;  %2774 = vmatprep.subr.bf16.mxu1 %v3294_v3  ;;  %v3026_v34 = vpack.i.bf16 %v2510_v13, %v2544_v43  ;;  %v2546_v13 = vld [vmem:[%s3363_s7 + $0x1a1] sm:$0xff] }
  0x3a   : > { %2902 = vrot.lane.b32.xlu1 %v2901_v28, %s3295_s12  ;;  %2897 = vrot.lane.b32.xlu0 %v2896_v29, %s3297_s20  ;;  %v2543_v28 = vld [vmem:[%s3363_s7 + $0x181] sm:$0xff] }
  0x3b   : > { %v2996_v29 = vpack.i.bf16 %v3610_v54, %v2543_v28  ;;  %v2513_v54 = vld [vmem:[%s3363_s7 + $0x198] sm:$0xff] }
  0x3c   : > { %2746 = vmatpush1.bf16.msra.mxu0 %v2745_v52  ;;  %2790 = vmatpush1.bf16.msra.mxu1 %v2745_v52  ;;  %v3720_v52 = vld [vmem:[%s3363_s7 + $0x99] sm:$0xff]  ;;  %v3046_v55 = vpack.i.bf16 %v2479_v19, %v2513_v54 }
  0x3d   : > { %2747 = vmatprep.subr.bf16.mxu0 %v3294_v3  ;;  %2775 = vmatprep.subr.bf16.mxu1 %v3294_v3 }
  0x3e   : > { %2912 = vrot.lane.b32.xlu1 %v2911_v37, %s3296_s13  ;;  %2907 = vrot.lane.b32.xlu0 %v2906_v38, %s3295_s12  ;;  %v3021_v37 = vpack.i.bf16 %v2489_v2, %v3703_v35  ;;  %v3016_v38 = vpack.i.bf16 %v2478_v7, %v2512_v20  ;;  %v3066_v2 = vpack.i.bf16 %v3668_v15, %v2482_v63  ;;  %v2514_v7 = vld [vmem:[%s3363_s7 + $0x1a0] sm:$0xff]  ;;  %v3767_v15 = vld [vmem:[%s3363_s7 + $0xb0] sm:$0xff] }
  0x3f   : > { %v3821_v63 = vld [vmem:[%s3363_s7 + $0xd8] sm:$0xff] }
  0x40   : > { %2749 = vmatpush1.bf16.msra.mxu0 %v2748_v60  ;;  %2791 = vmatpush1.bf16.msra.mxu1 %v2748_v60  ;;  %v3732_v60 = vld [vmem:[%s3363_s7 + $0xa8] sm:$0xff] }
  0x41   : > { %2750 = vmatprep.subr.bf16.mxu0 %v3294_v3  ;;  %2776 = vmatprep.subr.bf16.mxu1 %v3294_v3  ;;  %v2961_v3 = vpack.i.bf16 %v3524_v10, %v3658_v9  ;;  %v2490_v10 = vld [vmem:[%s3363_s7 + $0x80] sm:$0xff] }
  0x42   : > { %2922 = vrot.lane.b32.xlu1 %v2921_v48, %s3297_s20  ;;  %2917 = vrot.lane.b32.xlu0 %v2916_v50, %s3296_s13  ;;  %v2981_v16 = vpack.i.bf16 %v3564_v30, %v2490_v10  ;;  %v2491_v30 = vld [vmem:[%s3363_s7 + $0x90] sm:$0xff]  ;;  %v3041_v48 = vpack.i.bf16 %v2458_v14, %v2492_v46  ;;  %v3036_v50 = vpack.i.bf16 %v3630_v62, %v2481_v47  ;;  %v1505_v62 = vld [vmem:[%s4541_s1 + $0x100] sm:$0xff] }
  0x43   : > { %v3011_v32 = vpack.i.bf16 %v3627_v59, %v2491_v30  ;;  %v3051_v51 = vpack.i.bf16 %v2490_v10, %v3720_v52  ;;  %v3764_v14 = vld [vmem:[%s3363_s7 + $0xb1] sm:$0xff]  ;;  %v3774_v10 = vld [vmem:[%s3363_s7 + $0xc0] sm:$0xff] }
  0x44   : > { %2752 = vmatpush1.bf16.msra.mxu0 %v2751_v4  ;;  %2792 = vmatpush1.bf16.msra.mxu1 %v2751_v4  ;;  %v3749_v4 = vld [vmem:[%s3363_s7 + $0xa9] sm:$0xff] }
  0x46   : > { %2932 = vrot.lane.b32.xlu1 %v2931_v56, %s3295_s12  ;;  %2927 = vrot.lane.b32.xlu0 %v2926_v58, %s3297_s20  ;;  %v2545_v56 = vld [vmem:[%s3363_s7 + $0x199] sm:$0xff]  ;;  %v3061_v58 = vpack.i.bf16 %v3658_v9, %v2461_v42 }
  0x47   : > { %v3056_v59 = vpack.i.bf16 %v2511_v57, %v2545_v56  ;;  %v3756_v9 = vld [vmem:[%s3363_s7 + $0x9a] sm:$0xff] }
  0x48   : > { %v3782_v57 = vld [vmem:[%s3363_s7 + $0xc1] sm:$0xff] }
  0x4a   : > { %2942 = vrot.lane.b32.xlu1 %v2941_v53, %s3296_s13  ;;  %2937 = vrot.lane.b32.xlu0 %v2936_v0, %s3295_s12  ;;  %v3741_v53 = vpack.c.bf16 %v1506_v49, %v1505_v62  ;;  %v3071_v0 = vpack.i.bf16 %v2459_v27, %v3732_v60 }
  0x4c   : > { %2754 = vmatprep.subr.bf16.mxu1 %v3741_v53 }
  0x4e   : > { %2952 = vrot.lane.b32.xlu1 %v2951_v8, %s3297_s20  ;;  %2947 = vrot.lane.b32.xlu0 %v2946_v61, %s3296_s13  ;;  %v3081_v8 = vpack.i.bf16 %v2491_v30, %v3749_v4  ;;  %v3076_v61 = vpack.i.bf16 %v2480_v31, %v2514_v7  ;;  %v3116_v31 = vpack.i.bf16 %v3732_v60, %v3782_v57 }
  0x52   : > { %2962 = vrot.lane.b32.xlu1 %v2961_v3, %s3295_s12  ;;  %2957 = vrot.lane.b32.xlu0 %v2956_v1, %s3297_s20  ;;  %v3091_v3 = vpack.i.bf16 %v3682_v22, %v3756_v9  ;;  %v3086_v1 = vpack.i.bf16 %v2512_v20, %v2546_v13  ;;  %v3111_v22 = vpack.i.bf16 %v2461_v42, %v3774_v10 }
  0x56   : > { %2972 = vrot.lane.b32.xlu1 %v2971_v17, %s3296_s13  ;;  %2967 = vrot.lane.b32.xlu0 %v2966_v18, %s3295_s12  ;;  %v3101_v17 = vpack.i.bf16 %v2492_v46, %v3764_v14  ;;  %v3096_v18 = vpack.i.bf16 %v2460_v39, %v3767_v15 }
  0x5a   : > { %2982 = vrot.lane.b32.xlu1 %v2981_v16, %s3297_s20  ;;  %2977 = vrot.lane.b32.xlu0 %v2976_v21, %s3296_s13  ;;  %v3777_v16 = vld [vmem:[%s3363_s7 + $0xaa] sm:$0xff] }
  0x5b   : > { %v3106_v28 = vpack.i.bf16 %v3703_v35, %v3777_v16 }
  0x5e   : > { %2992 = vrot.lane.b32.xlu1 %v2991_v23, %s3295_s12  ;;  %2987 = vrot.lane.b32.xlu0 %v2986_v26, %s3297_s20  ;;  %v3785_v23 = vld [vmem:[%s3363_s7 + $0xb2] sm:$0xff] }
  0x62   : > { %3002 = vrot.lane.b32.xlu1 %v3001_v6, %s3296_s13  ;;  %2997 = vrot.lane.b32.xlu0 %v2996_v29, %s3295_s12  ;;  %v220_v29 = vld [vmem:[%s3363_s7] sm:$0xff] }
  0x66   : > { %3012 = vrot.lane.b32.xlu1 %v3011_v32, %s3297_s20  ;;  %3007 = vrot.lane.b32.xlu0 %v3006_v33, %s3296_s13  ;;  %v3121_v32 = vpack.i.bf16 %v3720_v52, %v3785_v23  ;;  %v221_v52 = vld [vmem:[%s3363_s7 + $0x8] sm:$0xff] }
  0x6a   : > { %3022 = vrot.lane.b32.xlu1 %v3021_v37, %s3295_s12  ;;  %3017 = vrot.lane.b32.xlu0 %v3016_v38, %s3297_s20 }
  0x6e   : > { %3032 = vrot.lane.b32.xlu1 %v3031_v45, %s3296_s13  ;;  %3027 = vrot.lane.b32.xlu0 %v3026_v34, %s3295_s12  ;;  %v3801_v34 = vld [vmem:[%s3363_s7 + $0xc9] sm:$0xff] }
  0x72   : > { %3042 = vrot.lane.b32.xlu1 %v3041_v48, %s3297_s20  ;;  %3037 = vrot.lane.b32.xlu0 %v3036_v50, %s3296_s13  ;;  %v3806_v50 = vld [vmem:[%s3363_s7 + $0xc8] sm:$0xff] }
  0x73   : > { %v3126_v62 = vpack.i.bf16 %v3756_v9, %v3806_v50 }
  0x76   : > { %3052 = vrot.lane.b32.xlu1 %v3051_v51, %s3295_s12  ;;  %3047 = vrot.lane.b32.xlu0 %v3046_v55, %s3297_s20 }
  0x7a   : > { %3062 = vrot.lane.b32.xlu1 %v3061_v58, %s3296_s13  ;;  %3057 = vrot.lane.b32.xlu0 %v3056_v59, %s3295_s12  ;;  %v3131_v59 = vpack.i.bf16 %v3767_v15, %v3801_v34 }
  0x7e   : > { %3072 = vrot.lane.b32.xlu1 %v3071_v0, %s3297_s20  ;;  %3067 = vrot.lane.b32.xlu0 %v3066_v2, %s3296_s13 }
  0x82   : > { %3082 = vrot.lane.b32.xlu1 %v3081_v8, %s3295_s12  ;;  %3077 = vrot.lane.b32.xlu0 %v3076_v61, %s3297_s20  ;;  %v3826_v8 = vld [vmem:[%s3363_s7 + $0xc2] sm:$0xff] }
  0x86   : > { %3092 = vrot.lane.b32.xlu1 %v3091_v3, %s3296_s13  ;;  %3087 = vrot.lane.b32.xlu0 %v3086_v1, %s3295_s12  ;;  %v3141_v1 = vpack.i.bf16 %v3777_v16, %v3821_v63  ;;  %v3844_v16 = vld [vmem:[%s3363_s7 + $0xd9] sm:$0xff] }
  0x88   : > { %v2818_v19 = vpop.permute.xlu1 %2817  ;;  %v2808_v21 = vpop.permute.xlu0 %2807 }
  0x89   : > { %v2810_v26 = vunpack.i.h.bf16 %v2808_v21  ;;  %v2809_v27 = vunpack.i.l.bf16 %v2808_v21  ;;  %v2820_v33 = vunpack.i.h.bf16 %v2818_v19  ;;  %v2819_v20 = vunpack.i.l.bf16 %v2818_v19  ;;  %v3837_v19 = vld [vmem:[%s3363_s7 + $0xca] sm:$0xff] }
  0x8a   : > { %3102 = vrot.lane.b32.xlu1 %v3101_v17, %s3295_s12  ;;  %3097 = vrot.lane.b32.xlu0 %v3096_v18, %s3297_s20  ;;  %v3136_v18 = vpack.i.bf16 %v3749_v4, %v3826_v8  ;;  %v3151_v4 = vpack.i.bf16 %v3764_v14, %v3837_v19 }
  0x8b   : > { %v1377_v43 = vsel %vm1278_vm0, %v3425_v36, %v2809_v27  ;;  %v1279_v45 = vsel %vm1278_vm0, %v220_v29, %v2810_v26 }
  0x8c   : > { %v2823_v6 = vpop.permute.xlu1 %2822  ;;  %v2813_v30 = vpop.permute.xlu0 %2812 }
  0x8d   : > { %v2815_v37 = vunpack.i.h.bf16 %v2813_v30  ;;  %v2814_v38 = vunpack.i.l.bf16 %v2813_v30  ;;  %v2825_v35 = vunpack.i.h.bf16 %v2823_v6  ;;  %v2824_v39 = vunpack.i.l.bf16 %v2823_v6  ;;  %v3855_v30 = vld [vmem:[%s3363_s7 + $0xe1] sm:$0xff] }
  0x8e   : > { %3112 = vrot.lane.b32.xlu1 %v3111_v22, %s3297_s20  ;;  %3107 = vrot.lane.b32.xlu0 %v3106_v28, %s3296_s13 }
  0x8f   : > { %v1409_v47 = vsel %vm1311_vm1, %v1377_v43, %v2814_v38  ;;  %v1312_v48 = vsel %vm1311_vm1, %v1279_v45, %v2815_v37  ;;  %v1378_v60 = vsel %vm1278_vm0, %v3441_v41, %v2824_v39  ;;  %v1280_v49 = vsel %vm1278_vm0, %v221_v52, %v2825_v35  ;;  %v3863_v35 = vld [vmem:[%s3363_s7 + $0xda] sm:$0xff]  ;;  %v3866_v39 = vld [vmem:[%s3363_s7 + $0xf0] sm:$0xff] }
  0x90   : > { %v2833_v46 = vpop.permute.xlu1 %2832  ;;  %v2828_v55 = vpop.permute.xlu0 %2827  ;;  %v1441_v42 = vsel %vm1344_vm2, %v1409_v47, %v2819_v20  ;;  %v1345_v36 = vsel %vm1344_vm2, %v1312_v48, %v2820_v33  ;;  %v3860_v20 = vld [vmem:[%s3363_s7 + $0xe0] sm:$0xff]  ;;  %v3166_v48 = vpack.i.bf16 %v3782_v57, %v3863_v35  ;;  %v3171_v52 = vpack.i.bf16 %v3826_v8, %v3866_v39  ;;  %v1507_v8 = vld [vmem:[%s4541_s1 + $0x110] sm:$0xff] }
  0x91   : > { %v2835_v54 = vunpack.i.h.bf16 %v2833_v46  ;;  %v2834_v51 = vunpack.i.l.bf16 %v2833_v46  ;;  %v2830_v56 = vunpack.i.h.bf16 %v2828_v55  ;;  %v2829_v58 = vunpack.i.l.bf16 %v2828_v55  ;;  %1669 = vmatprep.mubr.f32.mxu0 %v1441_v42 }
  0x92   : > { %3122 = vrot.lane.b32.xlu1 %v3121_v32, %s3296_s13  ;;  %3117 = vrot.lane.b32.xlu0 %v3116_v31, %s3295_s12  ;;  %v3156_v46 = vpack.i.bf16 %v3785_v23, %v3860_v20 }
  0x93   : > { %1670 = vmatmul.mubr.f32.vlgmr.msra.gmra.mrb[0].mxu0 %v1345_v36  ;;  %v1410_v2 = vsel %vm1311_vm1, %v1378_v60, %v2829_v58  ;;  %v1313_v7 = vsel %vm1311_vm1, %v1280_v49, %v2830_v56  ;;  %v3886_v58 = vld [vmem:[%s3363_s7 + $0xe2] sm:$0xff] }
  0x94   : > { %v2843_v0 = vpop.permute.xlu1 %2842  ;;  %v2838_v61 = vpop.permute.xlu0 %2837  ;;  %v1442_v13 = vsel %vm1344_vm2, %v1410_v2, %v2834_v51  ;;  %v1346_v41 = vsel %vm1344_vm2, %v1313_v7, %v2835_v54  ;;  %v3892_v49 = vld [vmem:[%s3363_s7 + $0x120] sm:$0xff]  ;;  %v3181_v7 = vpack.i.bf16 %v3801_v34, %v3886_v58 }
  0x95   : > { %v2840_v3 = vunpack.i.h.bf16 %v2838_v61  ;;  %v2839_v9 = vunpack.i.l.bf16 %v2838_v61  ;;  %1674 = vmatprep.mubr.f32.mxu0 %v1442_v13  ;;  %v2845_v15 = vunpack.i.h.bf16 %v2843_v0  ;;  %v2844_v17 = vunpack.i.l.bf16 %v2843_v0  ;;  %v3895_v0 = vld [vmem:[%s3363_s7 + $0xf1] sm:$0xff] }
  0x96   : > { %3132 = vrot.lane.b32.xlu1 %v3131_v59, %s3295_s12  ;;  %3127 = vrot.lane.b32.xlu0 %v3126_v62, %s3297_s20  ;;  %v1508_v61 = vld [vmem:[%s4541_s1 + $0x118] sm:$0xff] }
  0x97   : > { %1675 = vmatmul.mubr.f32.gmra.mrb[2].mxu0 %v1346_v41  ;;  %v1379_v22 = vsel %vm1278_vm0, %v3375_v12, %v2839_v9  ;;  %v1281_v26 = vsel %vm1278_vm0, %v3372_v11, %v2840_v3  ;;  %v3146_v11 = vpack.i.bf16 %v3774_v10, %v3844_v16  ;;  %v3161_v10 = vpack.i.bf16 %v3806_v50, %v3855_v30 }
  0x98   : > { %v2853_v21 = vpop.permute.xlu1 %2852  ;;  %v2848_v27 = vpop.permute.xlu0 %2847  ;;  %v1411_v12 = vsel %vm1311_vm1, %v1379_v22, %v2844_v17  ;;  %v1314_v29 = vsel %vm1311_vm1, %v1281_v26, %v2845_v15  ;;  %v3176_v15 = vpack.i.bf16 %v3821_v63, %v3895_v0  ;;  %v3916_v17 = vld [vmem:[%s3363_s7 + $0xf9] sm:$0xff]  ;;  %v2757_v26 = vpack.c.bf16 %v1508_v61, %v1507_v8 }
  0x99   : > { %v2850_v28 = vunpack.i.h.bf16 %v2848_v27  ;;  %v2849_v6 = vunpack.i.l.bf16 %v2848_v27  ;;  %v2855_v37 = vunpack.i.h.bf16 %v2853_v21  ;;  %v2854_v14 = vunpack.i.l.bf16 %v2853_v21  ;;  %v3921_v22 = vld [vmem:[%s3363_s7 + $0xf8] sm:$0xff] }
  0x9a   : > { %3142 = vrot.lane.b32.xlu1 %v3141_v1, %s3297_s20  ;;  %3137 = vrot.lane.b32.xlu0 %v3136_v18, %s3296_s13 }
  0x9b   : > { %v1443_v32 = vsel %vm1344_vm2, %v1411_v12, %v2849_v6  ;;  %v1347_v33 = vsel %vm1344_vm2, %v1314_v29, %v2850_v28  ;;  %v1380_v50 = vsel %vm1278_vm0, %v3399_v25, %v2854_v14  ;;  %v1282_v42 = vsel %vm1278_vm0, %v3396_v24, %v2855_v37  ;;  %v3927_v12 = vld [vmem:[%s3363_s7 + $0x108] sm:$0xff] }
  0x9c   : > { %v2863_v31 = vpop.permute.xlu1 %2862  ;;  %v2858_v38 = vpop.permute.xlu0 %2857  ;;  %1679 = vmatprep.mubr.f32.mxu0 %v1443_v32  ;;  %v3186_v32 = vpack.i.bf16 %v3837_v19, %v3921_v22  ;;  %v3201_v14 = vpack.i.bf16 %v3863_v35, %v3927_v12 }
  0x9d   : > { %v2865_v43 = vunpack.i.h.bf16 %v2863_v31  ;;  %v2864_v45 = vunpack.i.l.bf16 %v2863_v31  ;;  %1680 = vmatmul.mubr.f32.gmra.mrb[4].mxu0 %v1347_v33  ;;  %v2860_v36 = vunpack.i.h.bf16 %v2858_v38  ;;  %v2859_v23 = vunpack.i.l.bf16 %v2858_v38  ;;  %v224_v31 = vld [vmem:[%s3363_s7 + $0x30] sm:$0xff] }
  0x9e   : > { %3152 = vrot.lane.b32.xlu1 %v3151_v4, %s3296_s13  ;;  %3147 = vrot.lane.b32.xlu0 %v3146_v11, %s3295_s12  ;;  %v3924_v4 = vld [vmem:[%s3363_s7 + $0xf2] sm:$0xff]  ;;  %v3191_v11 = vpack.i.bf16 %v3860_v20, %v3916_v17 }
  0x9f   : > { %v1412_v57 = vsel %vm1311_vm1, %v1380_v50, %v2864_v45  ;;  %v1315_v56 = vsel %vm1311_vm1, %v1282_v42, %v2865_v43  ;;  %v1401_v3 = vsel %vm1278_vm0, %v3587_v40, %v2859_v23  ;;  %v1303_v34 = vsel %vm1278_vm0, %v3892_v49, %v2860_v36  ;;  %v3957_v50 = vld [vmem:[%s3363_s7 + $0x109] sm:$0xff] }
  0xa0   : > { %v2873_v47 = vpop.permute.xlu1 %2872  ;;  %v2868_v55 = vpop.permute.xlu0 %2867  ;;  %v3196_v37 = vpack.i.bf16 %v3844_v16, %v3924_v4 }
  0xa1   : > { %v2875_v54 = vunpack.i.h.bf16 %v2873_v47  ;;  %v2874_v51 = vunpack.i.l.bf16 %v2873_v47  ;;  %v2870_v59 = vunpack.i.h.bf16 %v2868_v55  ;;  %v2869_v60 = vunpack.i.l.bf16 %v2868_v55  ;;  %v3948_v47 = vld [vmem:[%s3363_s7 + $0xfa] sm:$0xff] }
  0xa2   : > { %3162 = vrot.lane.b32.xlu1 %v3161_v10, %s3295_s12  ;;  %3157 = vrot.lane.b32.xlu0 %v3156_v46, %s3297_s20  ;;  %v3211_v36 = vpack.i.bf16 %v3855_v30, %v3948_v47  ;;  %v3206_v30 = vpack.i.bf16 %v3866_v39, %v3957_v50 }
  0xa3   : > { %v1444_v25 = vsel %vm1344_vm2, %v1412_v57, %v2874_v51  ;;  %v1348_v62 = vsel %vm1344_vm2, %v1315_v56, %v2875_v54  ;;  %v1433_v9 = vsel %vm1311_vm1, %v1401_v3, %v2869_v60  ;;  %v1336_v1 = vsel %vm1311_vm1, %v1303_v34, %v2870_v59  ;;  %v3954_v51 = vld [vmem:[%s3363_s7 + $0x128] sm:$0xff] }
  0xa4   : > { %v2883_v24 = vpop.permute.xlu1 %2882  ;;  %1684 = vmatprep.mubr.f32.mxu0 %v1444_v25  ;;  %v2878_v2 = vpop.permute.xlu0 %2877 }
  0xa5   : > { %1685 = vmatmul.mubr.f32.gmra.mrb[6].mxu0 %v1348_v62  ;;  %v2880_v13 = vunpack.i.h.bf16 %v2878_v2  ;;  %v2879_v41 = vunpack.i.l.bf16 %v2878_v2  ;;  %v2885_v27 = vunpack.i.h.bf16 %v2883_v24  ;;  %v2884_v28 = vunpack.i.l.bf16 %v2883_v24  ;;  %v3972_v62 = vld [vmem:[%s3363_s7 + $0x111] sm:$0xff] }
  0xa6   : > { %3172 = vrot.lane.b32.xlu1 %v3171_v52, %s3297_s20  ;;  %3167 = vrot.lane.b32.xlu0 %v3166_v48, %s3296_s13  ;;  %v3221_v39 = vpack.i.bf16 %v3921_v22, %v3972_v62 }
  0xa7   : > { %v1465_v40 = vsel %vm1344_vm2, %v1433_v9, %v2879_v41  ;;  %v1369_v21 = vsel %vm1344_vm2, %v1336_v1, %v2880_v13  ;;  %v1381_v45 = vsel %vm1278_vm0, %v3447_v44, %v2884_v28  ;;  %v1283_v19 = vsel %vm1278_vm0, %v224_v31, %v2885_v27  ;;  %v3980_v41 = vld [vmem:[%s3363_s7 + $0x10a] sm:$0xff]  ;;  %v225_v1 = vld [vmem:[%s3363_s7 + $0x38] sm:$0xff] }
  0xa8   : > { %v2893_v18 = vpop.permute.xlu1 %2892  ;;  %v2888_v6 = vpop.permute.xlu0 %2887  ;;  %1789 = vmatprep.mubr.f32.mxu1 %v1465_v40  ;;  %v2424_v9 = vld [vmem:[%s3363_s7 + $0x51] sm:$0xff]  ;;  %v3226_v40 = vpack.i.bf16 %v3895_v0, %v3980_v41 }
  0xa9   : > { %v2895_v63 = vunpack.i.h.bf16 %v2893_v18  ;;  %v2894_v29 = vunpack.i.l.bf16 %v2893_v18  ;;  %1790 = vmatmul.mubr.f32.vlgmr.msra.gmra.mrb[0].mxu1 %v1369_v21  ;;  %v2890_v10 = vunpack.i.h.bf16 %v2888_v6  ;;  %v3231_v21 = vpack.i.bf16 %v3924_v4, %v3892_v49  ;;  %v4000_v31 = vld [vmem:[%s3363_s7 + $0x112] sm:$0xff] }
  0xaa   : > { %3182 = vrot.lane.b32.xlu1 %v3181_v7, %s3296_s13  ;;  %3177 = vrot.lane.b32.xlu0 %v3176_v15, %s3295_s12  ;;  %v3977_v7 = vld [vmem:[%s3363_s7 + $0x110] sm:$0xff] }
  0xab   : > { %2756 = vmatpush3.bf16.msra.mxu1 %v3741_v53  ;;  %v2889_v53 = vunpack.i.l.bf16 %v2888_v6  ;;  %v1413_v16 = vsel %vm1311_vm1, %v1381_v45, %v2894_v29  ;;  %v1316_v46 = vsel %vm1311_vm1, %v1283_v19, %v2895_v63  ;;  %v1304_v59 = vsel %vm1278_vm0, %v3954_v51, %v2890_v10  ;;  %v2535_v45 = vld [vmem:[%s3363_s7 + $0x121] sm:$0xff] }
  0xac   : > { %v2903_v33 = vpop.permute.xlu1 %2902  ;;  %2758 = vmatprep.subr.bf16.mxu1 %v2757_v26  ;;  %v2898_v43 = vpop.permute.xlu0 %2897  ;;  %v3216_v15 = vpack.i.bf16 %v3886_v58, %v3977_v7  ;;  %v3241_v10 = vpack.i.bf16 %v3916_v17, %v4000_v31  ;;  %v2536_v17 = vld [vmem:[%s3363_s7 + $0x129] sm:$0xff] }
  0xad   : > { %v2905_v38 = vunpack.i.h.bf16 %v2903_v33  ;;  %v2904_v20 = vunpack.i.l.bf16 %v2903_v33  ;;  %v2900_v48 = vunpack.i.h.bf16 %v2898_v43  ;;  %v2899_v52 = vunpack.i.l.bf16 %v2898_v43 }
  0xae   : > { %3192 = vrot.lane.b32.xlu1 %v3191_v11, %s3295_s12  ;;  %3187 = vrot.lane.b32.xlu0 %v3186_v32, %s3297_s20  ;;  %v1402_v56 = vsel %vm1278_vm0, %v3648_v5, %v2889_v53 }
  0xaf   : > { %v1445_v54 = vsel %vm1344_vm2, %v1413_v16, %v2904_v20  ;;  %v1349_v44 = vsel %vm1344_vm2, %v1316_v46, %v2905_v38  ;;  %2760 = vmatpush3.bf16.msra.mxu1 %v2757_v26  ;;  %v1434_v60 = vsel %vm1311_vm1, %v1402_v56, %v2899_v52  ;;  %v1337_v25 = vsel %vm1311_vm1, %v1304_v59, %v2900_v48  ;;  %v2445_v38 = vld [vmem:[%s3363_s7 + $0x151] sm:$0xff]  ;;  %v4024_v59 = vld [vmem:[%s3363_s7 + $0x122] sm:$0xff] }
  0xb0   : > { %v2913_v55 = vpop.permute.xlu1 %2912  ;;  %1689 = vmatprep.mubr.f32.mxu0 %v1445_v54  ;;  %v2908_v42 = vpop.permute.xlu0 %2907  ;;  %v4007_v20 = vld [vmem:[%s3363_s7 + $0x138] sm:$0xff] }
  0xb1   : > { %1690 = vmatmul.mubr.f32.gmra.mrb[8].mxu0 %v1349_v44  ;;  %v2910_v23 = vunpack.i.h.bf16 %v2908_v42  ;;  %v2909_v57 = vunpack.i.l.bf16 %v2908_v42  ;;  %v2915_v8 = vunpack.i.h.bf16 %v2913_v55  ;;  %v2914_v61 = vunpack.i.l.bf16 %v2913_v55 }
  0xb2   : > { %3202 = vrot.lane.b32.xlu1 %v3201_v14, %s3297_s20  ;;  %3197 = vrot.lane.b32.xlu0 %v3196_v37, %s3296_s13  ;;  %v3236_v44 = vpack.i.bf16 %v3927_v12, %v2535_v45  ;;  %v3251_v12 = vpack.i.bf16 %v3977_v7, %v2536_v17 }
  0xb3   : > { %v1466_v2 = vsel %vm1344_vm2, %v1434_v60, %v2909_v57  ;;  %v1370_v5 = vsel %vm1344_vm2, %v1337_v25, %v2910_v23  ;;  %v1382_v28 = vsel %vm1278_vm0, %v2424_v9, %v2914_v61  ;;  %v1284_v6 = vsel %vm1278_vm0, %v225_v1, %v2915_v8 }
  0xb4   : > { %v2923_v24 = vpop.permute.xlu1 %2922  ;;  %v2918_v13 = vpop.permute.xlu0 %2917  ;;  %1794 = vmatprep.mubr.f32.mxu1 %v1466_v2  ;;  %v3246_v2 = vpack.i.bf16 %v3948_v47, %v3954_v51  ;;  %v3256_v8 = vpack.i.bf16 %v3957_v50, %v4024_v59  ;;  %v3261_v61 = vpack.i.bf16 %v3980_v41, %v4007_v20 }
  0xb5   : > { %v2925_v3 = vunpack.i.h.bf16 %v2923_v24  ;;  %v2924_v34 = vunpack.i.l.bf16 %v2923_v24  ;;  %1795 = vmatmul.mubr.f32.gmra.mrb[2].mxu1 %v1370_v5  ;;  %v2920_v63 = vunpack.i.h.bf16 %v2918_v13  ;;  %v2919_v29 = vunpack.i.l.bf16 %v2918_v13  ;;  %v226_v24 = vld [vmem:[%s3363_s7 + $0x48] sm:$0xff] }
  0xb6   : > { %3212 = vrot.lane.b32.xlu1 %v3211_v36, %s3296_s13  ;;  %3207 = vrot.lane.b32.xlu0 %v3206_v30, %s3295_s12  ;;  %v2425_v30 = vld [vmem:[%s3363_s7 + $0x61] sm:$0xff] }
  0xb7   : > { %v1414_v11 = vsel %vm1311_vm1, %v1382_v28, %v2924_v34  ;;  %v1317_v0 = vsel %vm1311_vm1, %v1284_v6, %v2925_v3  ;;  %v1403_v46 = vsel %vm1278_vm0, %v2445_v38, %v2919_v29  ;;  %v1305_v48 = vsel %vm1278_vm0, %v4007_v20, %v2920_v63  ;;  %v247_v28 = vld [vmem:[%s3363_s7 + $0x140] sm:$0xff] }
  0xb8   : > { %v2933_v18 = vpop.permute.xlu1 %2932  ;;  %v2928_v22 = vpop.permute.xlu0 %2927  ;;  %v2537_v63 = vld [vmem:[%s3363_s7 + $0x139] sm:$0xff] }
  0xb9   : > { %v2935_v26 = vunpack.i.h.bf16 %v2933_v18  ;;  %v2934_v27 = vunpack.i.l.bf16 %v2933_v18  ;;  %v2930_v32 = vunpack.i.h.bf16 %v2928_v22  ;;  %v2929_v33 = vunpack.i.l.bf16 %v2928_v22  ;;  %v4043_v18 = vld [vmem:[%s3363_s7 + $0x12a] sm:$0xff]  ;;  %v2446_v22 = vld [vmem:[%s3363_s7 + $0x159] sm:$0xff] }
  0xba   : > { %3222 = vrot.lane.b32.xlu1 %v3221_v39, %s3295_s12  ;;  %3217 = vrot.lane.b32.xlu0 %v3216_v15, %s3297_s20  ;;  %v3266_v20 = vpack.i.bf16 %v3892_v49, %v2537_v63  ;;  %v3276_v49 = vpack.i.bf16 %v4000_v31, %v247_v28  ;;  %v228_v63 = vld [vmem:[%s3363_s7 + $0x60] sm:$0xff] }
  0xbb   : > { %v1446_v37 = vsel %vm1344_vm2, %v1414_v11, %v2934_v27  ;;  %v1350_v14 = vsel %vm1344_vm2, %v1317_v0, %v2935_v26  ;;  %v1435_v52 = vsel %vm1311_vm1, %v1403_v46, %v2929_v33  ;;  %v1338_v54 = vsel %vm1311_vm1, %v1305_v48, %v2930_v32 }
  0xbc   : > { %v2943_v43 = vpop.permute.xlu1 %2942  ;;  %1694 = vmatprep.mubr.f32.mxu0 %v1446_v37  ;;  %v2938_v19 = vpop.permute.xlu0 %2937  ;;  %v3271_v11 = vpack.i.bf16 %v3972_v62, %v4043_v18 }
  0xbd   : > { %1695 = vmatmul.mubr.f32.gmra.mrb[10].mxu0 %v1350_v14  ;;  %v2940_v53 = vunpack.i.h.bf16 %v2938_v19  ;;  %v2939_v16 = vunpack.i.l.bf16 %v2938_v19  ;;  %v2945_v23 = vunpack.i.h.bf16 %v2943_v43  ;;  %v2944_v57 = vunpack.i.l.bf16 %v2943_v43  ;;  %v2538_v43 = vld [vmem:[%s3363_s7 + $0x141] sm:$0xff] }
  0xbe   : > { %3232 = vrot.lane.b32.xlu1 %v3231_v21, %s3297_s20  ;;  %3227 = vrot.lane.b32.xlu0 %v3226_v40, %s3296_s13 }
  0xbf   : > { %v1467_v42 = vsel %vm1344_vm2, %v1435_v52, %v2939_v16  ;;  %v1371_v36 = vsel %vm1344_vm2, %v1338_v54, %v2940_v53  ;;  %v1383_v34 = vsel %vm1278_vm0, %v2425_v30, %v2944_v57  ;;  %v1285_v39 = vsel %vm1278_vm0, %v226_v24, %v2945_v23  ;;  %v2426_v54 = vld [vmem:[%s3363_s7 + $0x69] sm:$0xff] }
  0xc0   : > { %v2953_v55 = vpop.permute.xlu1 %2952  ;;  %v2948_v56 = vpop.permute.xlu0 %2947  ;;  %1799 = vmatprep.mubr.f32.mxu1 %v1467_v42  ;;  %v3281_v52 = vpack.i.bf16 %v3954_v51, %v2538_v43 }
  0xc1   : > { %v2955_v60 = vunpack.i.h.bf16 %v2953_v55  ;;  %v2954_v25 = vunpack.i.l.bf16 %v2953_v55  ;;  %1800 = vmatmul.mubr.f32.gmra.mrb[4].mxu1 %v1371_v36  ;;  %v2950_v9 = vunpack.i.h.bf16 %v2948_v56  ;;  %v2949_v1 = vunpack.i.l.bf16 %v2948_v56 }
  0xc2   : > { %3242 = vrot.lane.b32.xlu1 %v3241_v10, %s3296_s13  ;;  %3237 = vrot.lane.b32.xlu0 %v3236_v44, %s3295_s12  ;;  %v227_v44 = vld [vmem:[%s3363_s7 + $0x50] sm:$0xff] }
  0xc3   : > { %v1415_v15 = vsel %vm1311_vm1, %v1383_v34, %v2954_v25  ;;  %v1318_v50 = vsel %vm1311_vm1, %v1285_v39, %v2955_v60  ;;  %v1404_v33 = vsel %vm1278_vm0, %v2446_v22, %v2949_v1  ;;  %v1306_v37 = vsel %vm1278_vm0, %v247_v28, %v2950_v9 }
  0xc4   : > { %v2963_v5 = vpop.permute.xlu1 %2962  ;;  %v2958_v7 = vpop.permute.xlu0 %2957 }
  0xc5   : > { %v2965_v13 = vunpack.i.h.bf16 %v2963_v5  ;;  %v2964_v3 = vunpack.i.l.bf16 %v2963_v5  ;;  %v2960_v40 = vunpack.i.h.bf16 %v2958_v7  ;;  %v2959_v21 = vunpack.i.l.bf16 %v2958_v7  ;;  %v2447_v5 = vld [vmem:[%s3363_s7 + $0x169] sm:$0xff] }
  0xc6   : > { %3252 = vrot.lane.b32.xlu1 %v3251_v12, %s3295_s12  ;;  %3247 = vrot.lane.b32.xlu0 %v3246_v2, %s3297_s20 }
  0xc7   : > { %v1447_v26 = vsel %vm1344_vm2, %v1415_v15, %v2964_v3  ;;  %v1351_v27 = vsel %vm1344_vm2, %v1318_v50, %v2965_v13  ;;  %v1436_v14 = vsel %vm1311_vm1, %v1404_v33, %v2959_v21  ;;  %v1339_v38 = vsel %vm1311_vm1, %v1306_v37, %v2960_v40 }
  0xc8   : > { %v2973_v6 = vpop.permute.xlu1 %2972  ;;  %1699 = vmatprep.mubr.f32.mxu0 %v1447_v26  ;;  %v2968_v29 = vpop.permute.xlu0 %2967 }
  0xc9   : > { %1700 = vmatmul.mubr.f32.gmra.mrb[12].mxu0 %v1351_v27  ;;  %v2970_v0 = vunpack.i.h.bf16 %v2968_v29  ;;  %v2969_v32 = vunpack.i.l.bf16 %v2968_v29  ;;  %v2975_v10 = vunpack.i.h.bf16 %v2973_v6  ;;  %v2974_v53 = vunpack.i.l.bf16 %v2973_v6  ;;  %v2427_v6 = vld [vmem:[%s3363_s7 + $0x79] sm:$0xff] }
  0xca   : > { %3262 = vrot.lane.b32.xlu1 %v3261_v61, %s3297_s20  ;;  %3257 = vrot.lane.b32.xlu0 %v3256_v8, %s3296_s13  ;;  %v248_v8 = vld [vmem:[%s3363_s7 + $0x150] sm:$0xff] }
  0xcb   : > { %v1468_v45 = vsel %vm1344_vm2, %v1436_v14, %v2969_v32  ;;  %v1372_v19 = vsel %vm1344_vm2, %v1339_v38, %v2970_v0  ;;  %v1384_v23 = vsel %vm1278_vm0, %v2426_v54, %v2974_v53  ;;  %v1286_v57 = vsel %vm1278_vm0, %v227_v44, %v2975_v10  ;;  %v2448_v53 = vld [vmem:[%s3363_s7 + $0x171] sm:$0xff] }
  0xcc   : > { %v2983_v62 = vpop.permute.xlu1 %2982  ;;  %v2978_v16 = vpop.permute.xlu0 %2977  ;;  %1804 = vmatprep.mubr.f32.mxu1 %v1468_v45 }
  0xcd   : > { %v2985_v46 = vunpack.i.h.bf16 %v2983_v62  ;;  %v2984_v48 = vunpack.i.l.bf16 %v2983_v62  ;;  %1805 = vmatmul.mubr.f32.gmra.mrb[6].mxu1 %v1372_v19  ;;  %v2980_v56 = vunpack.i.h.bf16 %v2978_v16  ;;  %v2979_v60 = vunpack.i.l.bf16 %v2978_v16  ;;  %v249_v16 = vld [vmem:[%s3363_s7 + $0x158] sm:$0xff] }
  0xce   : > { %3272 = vrot.lane.b32.xlu1 %v3271_v11, %s3296_s13  ;;  %3267 = vrot.lane.b32.xlu0 %v3266_v20, %s3295_s12 }
  0xcf   : > { %v1416_v51 = vsel %vm1311_vm1, %v1384_v23, %v2984_v48  ;;  %v1319_v25 = vsel %vm1311_vm1, %v1286_v57, %v2985_v46  ;;  %v1405_v34 = vsel %vm1278_vm0, %v2447_v5, %v2979_v60  ;;  %v1307_v39 = vsel %vm1278_vm0, %v248_v8, %v2980_v56 }
  0xd0   : > { %v2993_v17 = vpop.permute.xlu1 %2992  ;;  %v2988_v36 = vpop.permute.xlu0 %2987 }
  0xd1   : > { %v2995_v55 = vunpack.i.h.bf16 %v2993_v17  ;;  %v2994_v42 = vunpack.i.l.bf16 %v2993_v17  ;;  %v2990_v12 = vunpack.i.h.bf16 %v2988_v36  ;;  %v2989_v30 = vunpack.i.l.bf16 %v2988_v36 }
  0xd2   : > { %3282 = vrot.lane.b32.xlu1 %v3281_v52, %s3295_s12  ;;  %3277 = vrot.lane.b32.xlu0 %v3276_v49, %s3297_s20 }
  0xd3   : > { %v1448_v24 = vsel %vm1344_vm2, %v1416_v51, %v2994_v42  ;;  %v1352_v2 = vsel %vm1344_vm2, %v1319_v25, %v2995_v55  ;;  %v1437_v9 = vsel %vm1311_vm1, %v1405_v34, %v2989_v30  ;;  %v1340_v1 = vsel %vm1311_vm1, %v1307_v39, %v2990_v12  ;;  %v2428_v12 = vld [vmem:[%s3363_s7 + $0x81] sm:$0xff] }
  0xd4   : > { %v3003_v61 = vpop.permute.xlu1 %3002  ;;  %1704 = vmatprep.mubr.f32.mxu0 %v1448_v24  ;;  %v2998_v13 = vpop.permute.xlu0 %2997  ;;  %v229_v30 = vld [vmem:[%s3363_s7 + $0x68] sm:$0xff] }
  0xd5   : > { %1705 = vmatmul.mubr.f32.gmra.mrb[14].mxu0 %v1352_v2  ;;  %v3000_v3 = vunpack.i.h.bf16 %v2998_v13  ;;  %v2999_v7 = vunpack.i.l.bf16 %v2998_v13  ;;  %v3005_v21 = vunpack.i.h.bf16 %v3003_v61  ;;  %v3004_v26 = vunpack.i.l.bf16 %v3003_v61 }
  0xd7   : > { %v1469_v50 = vsel %vm1344_vm2, %v1437_v9, %v2999_v7  ;;  %v1373_v40 = vsel %vm1344_vm2, %v1340_v1, %v3000_v3  ;;  %v1385_v33 = vsel %vm1278_vm0, %v2427_v6, %v3004_v26  ;;  %v1287_v37 = vsel %vm1278_vm0, %v228_v63, %v3005_v21  ;;  %v250_v21 = vld [vmem:[%s3363_s7 + $0x168] sm:$0xff] }
  0xd8   : > { %v3013_v15 = vpop.permute.xlu1 %3012  ;;  %v3008_v27 = vpop.permute.xlu0 %3007  ;;  %1809 = vmatprep.mubr.f32.mxu1 %v1469_v50 }
  0xd9   : > { %v3015_v22 = vunpack.i.h.bf16 %v3013_v15  ;;  %v3014_v28 = vunpack.i.l.bf16 %v3013_v15  ;;  %1810 = vmatmul.mubr.f32.gmra.mrb[8].mxu1 %v1373_v40  ;;  %v3010_v14 = vunpack.i.h.bf16 %v3008_v27  ;;  %v3009_v38 = vunpack.i.l.bf16 %v3008_v27  ;;  %v2449_v40 = vld [vmem:[%s3363_s7 + $0x181] sm:$0xff] }
  0xdb   : > { %v1417_v20 = vsel %vm1311_vm1, %v1385_v33, %v3014_v28  ;;  %v1320_v43 = vsel %vm1311_vm1, %v1287_v37, %v3015_v22  ;;  %v1406_v44 = vsel %vm1278_vm0, %v2448_v53, %v3009_v38  ;;  %v1308_v49 = vsel %vm1278_vm0, %v249_v16, %v3010_v14 }
  0xdc   : > { %v3023_v29 = vpop.permute.xlu1 %3022  ;;  %v3018_v32 = vpop.permute.xlu0 %3017 }
  0xdd   : > { %v3025_v11 = vunpack.i.h.bf16 %v3023_v29  ;;  %v3024_v0 = vunpack.i.l.bf16 %v3023_v29  ;;  %v3020_v62 = vunpack.i.h.bf16 %v3018_v32  ;;  %v3019_v45 = vunpack.i.l.bf16 %v3018_v32 }
  0xdf   : > { %v1449_v19 = vsel %vm1344_vm2, %v1417_v20, %v3024_v0  ;;  %v1353_v10 = vsel %vm1344_vm2, %v1320_v43, %v3025_v11  ;;  %v1438_v17 = vsel %vm1311_vm1, %v1406_v44, %v3019_v45  ;;  %v1341_v55 = vsel %vm1311_vm1, %v1308_v49, %v3020_v62  ;;  %v2429_v62 = vld [vmem:[%s3363_s7 + $0x91] sm:$0xff] }
  0xe0   : > { %v3033_v46 = vpop.permute.xlu1 %3032  ;;  %1709 = vmatprep.mubr.f32.mxu0 %v1449_v19  ;;  %v3028_v48 = vpop.permute.xlu0 %3027  ;;  %v230_v45 = vld [vmem:[%s3363_s7 + $0x78] sm:$0xff] }
  0xe1   : > { %1710 = vmatmul.mubr.f32.gmra.mrb[16].mxu0 %v1353_v10  ;;  %v3030_v52 = vunpack.i.h.bf16 %v3028_v48  ;;  %v3029_v54 = vunpack.i.l.bf16 %v3028_v48  ;;  %v3035_v57 = vunpack.i.h.bf16 %v3033_v46  ;;  %v3034_v56 = vunpack.i.l.bf16 %v3033_v46 }
  0xe3   : > { %v1470_v36 = vsel %vm1344_vm2, %v1438_v17, %v3029_v54  ;;  %v1374_v23 = vsel %vm1344_vm2, %v1341_v55, %v3030_v52  ;;  %v1386_v61 = vsel %vm1278_vm0, %v2428_v12, %v3034_v56  ;;  %v1288_v13 = vsel %vm1278_vm0, %v229_v30, %v3035_v57  ;;  %v251_v57 = vld [vmem:[%s3363_s7 + $0x170] sm:$0xff] }
  0xe4   : > { %v3043_v42 = vpop.permute.xlu1 %3042  ;;  %v3038_v60 = vpop.permute.xlu0 %3037  ;;  %1814 = vmatprep.mubr.f32.mxu1 %v1470_v36 }
  0xe5   : > { %v3045_v51 = vunpack.i.h.bf16 %v3043_v42  ;;  %v3044_v25 = vunpack.i.l.bf16 %v3043_v42  ;;  %1815 = vmatmul.mubr.f32.gmra.mrb[10].mxu1 %v1374_v23  ;;  %v3040_v3 = vunpack.i.h.bf16 %v3038_v60  ;;  %v3039_v7 = vunpack.i.l.bf16 %v3038_v60  ;;  %v2450_v23 = vld [vmem:[%s3363_s7 + $0x189] sm:$0xff] }
  0xe7   : > { %v1418_v34 = vsel %vm1311_vm1, %v1386_v61, %v3044_v25  ;;  %v1321_v39 = vsel %vm1311_vm1, %v1288_v13, %v3045_v51  ;;  %v1407_v6 = vsel %vm1278_vm0, %v2449_v40, %v3039_v7  ;;  %v1309_v63 = vsel %vm1278_vm0, %v250_v21, %v3040_v3  ;;  %v2547_v7 = vld [vmem:[%s3363_s7 + $0x32] sm:$0xff] }
  0xe8   : > { %v3053_v24 = vpop.permute.xlu1 %3052  ;;  %v3048_v8 = vpop.permute.xlu0 %3047 }
  0xe9   : > { %v3055_v2 = vunpack.i.h.bf16 %v3053_v24  ;;  %v3054_v5 = vunpack.i.l.bf16 %v3053_v24  ;;  %v3050_v9 = vunpack.i.h.bf16 %v3048_v8  ;;  %v3049_v1 = vunpack.i.l.bf16 %v3048_v8 }
  0xeb   : > { %v1450_v15 = vsel %vm1344_vm2, %v1418_v34, %v3054_v5  ;;  %v1354_v50 = vsel %vm1344_vm2, %v1321_v39, %v3055_v2  ;;  %v1439_v29 = vsel %vm1311_vm1, %v1407_v6, %v3049_v1  ;;  %v1342_v11 = vsel %vm1311_vm1, %v1309_v63, %v3050_v9  ;;  %v2430_v34 = vld [vmem:[%s3363_s7 + $0x99] sm:$0xff]  ;;  %v2549_v63 = vld [vmem:[%s3363_s7 + $0x4a] sm:$0xff] }
  0xec   : > { %v3063_v26 = vpop.permute.xlu1 %3062  ;;  %1714 = vmatprep.mubr.f32.mxu0 %v1450_v15  ;;  %v3058_v27 = vpop.permute.xlu0 %3057  ;;  %v231_v39 = vld [vmem:[%s3363_s7 + $0x80] sm:$0xff] }
  0xed   : > { %1715 = vmatmul.mubr.f32.gmra.mrb[18].mxu0 %v1354_v50  ;;  %v3060_v22 = vunpack.i.h.bf16 %v3058_v27  ;;  %v3059_v28 = vunpack.i.l.bf16 %v3058_v27  ;;  %v3065_v37 = vunpack.i.h.bf16 %v3063_v26  ;;  %v3064_v14 = vunpack.i.l.bf16 %v3063_v26  ;;  %v2548_v26 = vld [vmem:[%s3363_s7 + $0x3a] sm:$0xff] }
  0xef   : > { %v1471_v32 = vsel %vm1344_vm2, %v1439_v29, %v3059_v28  ;;  %v1375_v33 = vsel %vm1344_vm2, %v1342_v11, %v3060_v22  ;;  %v1387_v46 = vsel %vm1278_vm0, %v2429_v62, %v3064_v14  ;;  %v1289_v48 = vsel %vm1278_vm0, %v230_v45, %v3065_v37 }
  0xf0   : > { %v3073_v0 = vpop.permute.xlu1 %3072  ;;  %v3068_v38 = vpop.permute.xlu0 %3067  ;;  %1819 = vmatprep.mubr.f32.mxu1 %v1471_v32  ;;  %v2431_v32 = vld [vmem:[%s3363_s7 + $0xa9] sm:$0xff] }
  0xf1   : > { %v3075_v20 = vunpack.i.h.bf16 %v3073_v0  ;;  %v3074_v43 = vunpack.i.l.bf16 %v3073_v0  ;;  %1820 = vmatmul.mubr.f32.gmra.mrb[12].mxu1 %v1375_v33  ;;  %v3070_v52 = vunpack.i.h.bf16 %v3068_v38  ;;  %v3069_v54 = vunpack.i.l.bf16 %v3068_v38  ;;  %v232_v33 = vld [vmem:[%s3363_s7 + $0x90] sm:$0xff] }
  0xf3   : > { %v1419_v44 = vsel %vm1311_vm1, %v1387_v46, %v3074_v43  ;;  %v1322_v49 = vsel %vm1311_vm1, %v1289_v48, %v3075_v20  ;;  %v1408_v12 = vsel %vm1278_vm0, %v2450_v23, %v3069_v54  ;;  %v1310_v30 = vsel %vm1278_vm0, %v251_v57, %v3070_v52  ;;  %v2550_v43 = vld [vmem:[%s3363_s7 + $0x52] sm:$0xff] }
  0xf4   : > { %v3083_v19 = vpop.permute.xlu1 %3082  ;;  %v3078_v16 = vpop.permute.xlu0 %3077  ;;  %v2432_v23 = vld [vmem:[%s3363_s7 + $0xb1] sm:$0xff] }
  0xf5   : > { %v3085_v10 = vunpack.i.h.bf16 %v3083_v19  ;;  %v3084_v53 = vunpack.i.l.bf16 %v3083_v19  ;;  %v3080_v17 = vunpack.i.h.bf16 %v3078_v16  ;;  %v3079_v55 = vunpack.i.l.bf16 %v3078_v16  ;;  %v2551_v19 = vld [vmem:[%s3363_s7 + $0x62] sm:$0xff]  ;;  %v233_v57 = vld [vmem:[%s3363_s7 + $0x98] sm:$0xff] }
  0xf7   : > { %v1451_v42 = vsel %vm1344_vm2, %v1419_v44, %v3084_v53  ;;  %v1355_v36 = vsel %vm1344_vm2, %v1322_v49, %v3085_v10  ;;  %v1440_v5 = vsel %vm1311_vm1, %v1408_v12, %v3079_v55  ;;  %v1343_v8 = vsel %vm1311_vm1, %v1310_v30, %v3080_v17  ;;  %v2552_v49 = vld [vmem:[%s3363_s7 + $0x6a] sm:$0xff] }
  0xf8   : > { %1719 = vmatprep.mubr.f32.mxu0 %v1451_v42  ;;  %v3093_v56 = vpop.permute.xlu1 %3092  ;;  %v3088_v60 = vpop.permute.xlu0 %3087 }
  0xf9   : > { %1720 = vmatmul.mubr.f32.gmra.mrb[20].mxu0 %v1355_v36  ;;  %v3090_v51 = vunpack.i.h.bf16 %v3088_v60  ;;  %v3089_v25 = vunpack.i.l.bf16 %v3088_v60  ;;  %v3095_v24 = vunpack.i.h.bf16 %v3093_v56  ;;  %v3094_v2 = vunpack.i.l.bf16 %v3093_v56  ;;  %v2553_v36 = vld [vmem:[%s3363_s7 + $0x7a] sm:$0xff] }
  0xfb   : > { %v1472_v61 = vsel %vm1344_vm2, %v1440_v5, %v3089_v25  ;;  %v1376_v3 = vsel %vm1344_vm2, %v1343_v8, %v3090_v51  ;;  %v1388_v21 = vsel %vm1278_vm0, %v2430_v34, %v3094_v2  ;;  %v1290_v27 = vsel %vm1278_vm0, %v231_v39, %v3095_v24  ;;  %v2554_v24 = vld [vmem:[%s3363_s7 + $0x82] sm:$0xff] }
  0xfc   : > { %v3103_v13 = vpop.permute.xlu1 %3102  ;;  %v3098_v9 = vpop.permute.xlu0 %3097  ;;  %1824 = vmatprep.mubr.f32.mxu1 %v1472_v61  ;;  %v2433_v39 = vld [vmem:[%s3363_s7 + $0xc1] sm:$0xff] }
  0xfd   : > { %v3105_v1 = vunpack.i.h.bf16 %v3103_v13  ;;  %v3104_v15 = vunpack.i.l.bf16 %v3103_v13  ;;  %v3100_v50 = vunpack.i.h.bf16 %v3098_v9  ;;  %v3099_v40 = vunpack.i.l.bf16 %v3098_v9  ;;  %1825 = vmatmul.mubr.f32.gmra.mrb[14].mxu1 %v1376_v3  ;;  %v2555_v13 = vld [vmem:[%s3363_s7 + $0x92] sm:$0xff]  ;;  %v234_v9 = vld [vmem:[%s3363_s7 + $0xa8] sm:$0xff] }
  0xfe   : > { %2657 = vmatprep.mubr.msk.f32.mxu1 %vm1278_vm0, %v2547_v7 }
  0xff   : > { %v1420_v28 = vsel %vm1311_vm1, %v1388_v21, %v3099_v40  ;;  %v1323_v6 = vsel %vm1311_vm1, %v1290_v27, %v3100_v50  ;;  %v2556_v21 = vld [vmem:[%s3363_s7 + $0x9a] sm:$0xff] }
 0x100   : > { %v3113_v22 = vpop.permute.xlu1 %3112  ;;  %v3108_v29 = vpop.permute.xlu0 %3107  ;;  %v1452_v11 = vsel %vm1344_vm2, %v1420_v28, %v3104_v15  ;;  %v1356_v0 = vsel %vm1344_vm2, %v1323_v6, %v3105_v1 }
 0x101   : > { %v3110_v37 = vunpack.i.h.bf16 %v3108_v29  ;;  %v3109_v14 = vunpack.i.l.bf16 %v3108_v29  ;;  %1724 = vmatprep.mubr.f32.mxu0 %v1452_v11  ;;  %2658 = vmatmul.mubr.msk.f32.vlgmr.msra.gmra.mrb[16].mxu1 %vm1278_vm0, %v2548_v26  ;;  %v3115_v38 = vunpack.i.h.bf16 %v3113_v22  ;;  %v3114_v20 = vunpack.i.l.bf16 %v3113_v22  ;;  %v2557_v22 = vld [vmem:[%s3363_s7 + $0xaa] sm:$0xff] }
 0x102   : > { %1725 = vmatmul.mubr.f32.gmra.mrb[22].mxu0 %v1356_v0  ;;  %2660 = vmatprep.mubr.msk.f32.mxu1 %vm1278_vm0, %v2549_v63 }
 0x103   : > { %v1389_v45 = vsel %vm1278_vm0, %v2431_v32, %v3109_v14  ;;  %v1291_v10 = vsel %vm1278_vm0, %v232_v33, %v3110_v37  ;;  %v2558_v37 = vld [vmem:[%s3363_s7 + $0xb2] sm:$0xff] }
 0x104   : > { %v3123_v62 = vpop.permute.xlu1 %3122  ;;  %v3118_v53 = vpop.permute.xlu0 %3117  ;;  %v1421_v54 = vsel %vm1311_vm1, %v1389_v45, %v3114_v20  ;;  %v1324_v44 = vsel %vm1311_vm1, %v1291_v10, %v3115_v38  ;;  %v235_v45 = vld [vmem:[%s3363_s7 + $0xb0] sm:$0xff] }
 0x105   : > { %v3120_v16 = vunpack.i.h.bf16 %v3118_v53  ;;  %v3119_v46 = vunpack.i.l.bf16 %v3118_v53  ;;  %2661 = vmatmul.mubr.msk.f32.gmra.mrb[18].mxu1 %vm1278_vm0, %v2550_v43  ;;  %v3125_v48 = vunpack.i.h.bf16 %v3123_v62  ;;  %v3124_v52 = vunpack.i.l.bf16 %v3123_v62  ;;  %v2559_v43 = vld [vmem:[%s3363_s7 + $0xc2] sm:$0xff] }
 0x106   : > { %2663 = vmatprep.mubr.msk.f32.mxu1 %vm1278_vm0, %v2551_v19  ;;  %v2434_v62 = vld [vmem:[%s3363_s7 + $0xc9] sm:$0xff] }
 0x107   : > { %v1453_v17 = vsel %vm1344_vm2, %v1421_v54, %v3119_v46  ;;  %v1357_v42 = vsel %vm1344_vm2, %v1324_v44, %v3120_v16  ;;  %v1390_v30 = vsel %vm1278_vm0, %v2432_v23, %v3124_v52  ;;  %v1292_v2 = vsel %vm1278_vm0, %v233_v57, %v3125_v48  ;;  %v2560_v52 = vld [vmem:[%s3363_s7 + $0xca] sm:$0xff]  ;;  %v2435_v23 = vld [vmem:[%s3363_s7 + $0xd9] sm:$0xff] }
 0x108   : > { %v3133_v55 = vpop.permute.xlu1 %3132  ;;  %v3128_v56 = vpop.permute.xlu0 %3127  ;;  %1729 = vmatprep.mubr.f32.mxu0 %v1453_v17  ;;  %v236_v57 = vld [vmem:[%s3363_s7 + $0xc0] sm:$0xff] }
 0x109   : > { %v3135_v60 = vunpack.i.h.bf16 %v3133_v55  ;;  %v3134_v51 = vunpack.i.l.bf16 %v3133_v55  ;;  %v3130_v25 = vunpack.i.h.bf16 %v3128_v56  ;;  %v3129_v12 = vunpack.i.l.bf16 %v3128_v56  ;;  %1730 = vmatmul.mubr.f32.gmra.mrb[24].mxu0 %v1357_v42  ;;  %2664 = vmatmul.mubr.msk.f32.gmra.mrb[20].mxu1 %vm1278_vm0, %v2552_v49 }
 0x10a   : > { %2666 = vmatprep.mubr.msk.f32.mxu1 %vm1278_vm0, %v2553_v36 }
 0x10b   : > { %v1422_v8 = vsel %vm1311_vm1, %v1390_v30, %v3129_v12  ;;  %v1325_v61 = vsel %vm1311_vm1, %v1292_v2, %v3130_v25 }
 0x10c   : > { %v3143_v5 = vpop.permute.xlu1 %3142  ;;  %v3138_v3 = vpop.permute.xlu0 %3137  ;;  %v1454_v7 = vsel %vm1344_vm2, %v1422_v8, %v3134_v51  ;;  %v1358_v34 = vsel %vm1344_vm2, %v1325_v61, %v3135_v60 }
 0x10d   : > { %v3140_v1 = vunpack.i.h.bf16 %v3138_v3  ;;  %v3139_v15 = vunpack.i.l.bf16 %v3138_v3  ;;  %1734 = vmatprep.mubr.f32.mxu0 %v1454_v7  ;;  %2667 = vmatmul.mubr.msk.f32.gmra.mrb[22].mxu1 %vm1278_vm0, %v2554_v24  ;;  %v3145_v50 = vunpack.i.h.bf16 %v3143_v5  ;;  %v3144_v40 = vunpack.i.l.bf16 %v3143_v5 }
 0x10e   : > { %1735 = vmatmul.mubr.f32.gmra.mrb[26].mxu0 %v1358_v34  ;;  %2669 = vmatprep.mubr.msk.f32.mxu1 %vm1278_vm0, %v2555_v13 }
 0x10f   : > { %v1391_v27 = vsel %vm1278_vm0, %v2433_v39, %v3139_v15  ;;  %v1293_v28 = vsel %vm1278_vm0, %v234_v9, %v3140_v1  ;;  %v2436_v9 = vld [vmem:[%s3363_s7 + $0xe1] sm:$0xff] }
 0x110   : > { %v3153_v26 = vpop.permute.xlu1 %3152  ;;  %v3148_v6 = vpop.permute.xlu0 %3147  ;;  %v1423_v32 = vsel %vm1311_vm1, %v1391_v27, %v3144_v40  ;;  %v1326_v33 = vsel %vm1311_vm1, %v1293_v28, %v3145_v50  ;;  %v237_v1 = vld [vmem:[%s3363_s7 + $0xc8] sm:$0xff] }
 0x111   : > { %v3150_v63 = vunpack.i.h.bf16 %v3148_v6  ;;  %v3149_v29 = vunpack.i.l.bf16 %v3148_v6  ;;  %2670 = vmatmul.mubr.msk.f32.gmra.mrb[24].mxu1 %vm1278_vm0, %v2556_v21  ;;  %v3155_v11 = vunpack.i.h.bf16 %v3153_v26  ;;  %v3154_v0 = vunpack.i.l.bf16 %v3153_v26 }
 0x112   : > { %2672 = vmatprep.mubr.msk.f32.mxu1 %vm1278_vm0, %v2557_v22 }
 0x113   : > { %v1455_v14 = vsel %vm1344_vm2, %v1423_v32, %v3149_v29  ;;  %v1359_v20 = vsel %vm1344_vm2, %v1326_v33, %v3150_v63  ;;  %v1392_v48 = vsel %vm1278_vm0, %v2434_v62, %v3154_v0  ;;  %v1294_v54 = vsel %vm1278_vm0, %v235_v45, %v3155_v11  ;;  %v2437_v11 = vld [vmem:[%s3363_s7 + $0xf1] sm:$0xff] }
 0x114   : > { %v3163_v38 = vpop.permute.xlu1 %3162  ;;  %v3158_v19 = vpop.permute.xlu0 %3157  ;;  %1739 = vmatprep.mubr.f32.mxu0 %v1455_v14 }
 0x115   : > { %v3165_v10 = vunpack.i.h.bf16 %v3163_v38  ;;  %v3164_v53 = vunpack.i.l.bf16 %v3163_v38  ;;  %v3160_v16 = vunpack.i.h.bf16 %v3158_v19  ;;  %v3159_v46 = vunpack.i.l.bf16 %v3158_v19  ;;  %1740 = vmatmul.mubr.f32.gmra.mrb[28].mxu0 %v1359_v20  ;;  %2673 = vmatmul.mubr.msk.f32.gmra.mrb[26].mxu1 %vm1278_vm0, %v2558_v37  ;;  %v2569_v38 = vld [vmem:[%s3363_s7 + $0x13a] sm:$0xff] }
 0x116   : > { %2675 = vmatprep.mubr.msk.f32.mxu1 %vm1278_vm0, %v2559_v43 }
 0x117   : > { %v1424_v49 = vsel %vm1311_vm1, %v1392_v48, %v3159_v46  ;;  %v1327_v17 = vsel %vm1311_vm1, %v1294_v54, %v3160_v16  ;;  %v2438_v54 = vld [vmem:[%s3363_s7 + $0xf9] sm:$0xff] }
 0x118   : > { %v3173_v44 = vpop.permute.xlu1 %3172  ;;  %v3168_v55 = vpop.permute.xlu0 %3167  ;;  %v1456_v42 = vsel %vm1344_vm2, %v1424_v49, %v3164_v53  ;;  %v1360_v36 = vsel %vm1344_vm2, %v1327_v17, %v3165_v10  ;;  %v2570_v53 = vld [vmem:[%s3363_s7 + $0x142] sm:$0xff] }
 0x119   : > { %v3170_v56 = vunpack.i.h.bf16 %v3168_v55  ;;  %v3169_v60 = vunpack.i.l.bf16 %v3168_v55  ;;  %1744 = vmatprep.mubr.f32.mxu0 %v1456_v42  ;;  %2676 = vmatmul.mubr.msk.f32.gmra.mrb[28].mxu1 %vm1278_vm0, %v2560_v52  ;;  %v3175_v51 = vunpack.i.h.bf16 %v3173_v44  ;;  %v3174_v25 = vunpack.i.l.bf16 %v3173_v44  ;;  %v2571_v52 = vld [vmem:[%s3363_s7 + $0x152] sm:$0xff]  ;;  %v239_v44 = vld [vmem:[%s3363_s7 + $0xe0] sm:$0xff] }
 0x11a   : > { %1745 = vmatmul.mubr.f32.gmra.mrb[30].mxu0 %v1360_v36  ;;  %2678 = vmatprep.mubr.msk.f32.mxu1 %vm1278_vm0, %v3863_v35 }
 0x11b   : > { %v1393_v30 = vsel %vm1278_vm0, %v2435_v23, %v3169_v60  ;;  %v1295_v24 = vsel %vm1278_vm0, %v236_v57, %v3170_v56  ;;  %v2572_v23 = vld [vmem:[%s3363_s7 + $0x15a] sm:$0xff] }
 0x11c   : > { %v3183_v12 = vpop.permute.xlu1 %3182  ;;  %v3178_v2 = vpop.permute.xlu0 %3177  ;;  %v1425_v3 = vsel %vm1311_vm1, %v1393_v30, %v3174_v25  ;;  %v1328_v35 = vsel %vm1311_vm1, %v1295_v24, %v3175_v51  ;;  %v2573_v25 = vld [vmem:[%s3363_s7 + $0x16a] sm:$0xff] }
 0x11d   : > { %v3180_v5 = vunpack.i.h.bf16 %v3178_v2  ;;  %v3179_v8 = vunpack.i.l.bf16 %v3178_v2  ;;  %2679 = vmatmul.mubr.msk.f32.gmra.mrb[30].mxu1 %vm1278_vm0, %v3886_v58  ;;  %v3185_v61 = vunpack.i.h.bf16 %v3183_v12  ;;  %v3184_v13 = vunpack.i.l.bf16 %v3183_v12  ;;  %v2439_v2 = vld [vmem:[%s3363_s7 + $0x109] sm:$0xff] }
 0x11e   : > { %2681 = vmatprep.mubr.msk.f32.mxu1 %vm1278_vm0, %v3924_v4 }
 0x11f   : > { %v1457_v7 = vsel %vm1344_vm2, %v1425_v3, %v3179_v8  ;;  %v1361_v39 = vsel %vm1344_vm2, %v1328_v35, %v3180_v5  ;;  %v1394_v4 = vsel %vm1278_vm0, %v2436_v9, %v3184_v13  ;;  %v1296_v26 = vsel %vm1278_vm0, %v237_v1, %v3185_v61  ;;  %v240_v5 = vld [vmem:[%s3363_s7 + $0xf0] sm:$0xff] }
 0x120   : > { %v3193_v34 = vpop.permute.xlu1 %3192  ;;  %v3188_v15 = vpop.permute.xlu0 %3187  ;;  %1749 = vmatprep.mubr.f32.mxu0 %v1457_v7  ;;  %v2574_v35 = vld [vmem:[%s3363_s7 + $0x172] sm:$0xff] }
 0x121   : > { %v3195_v58 = vunpack.i.h.bf16 %v3193_v34  ;;  %v3194_v50 = vunpack.i.l.bf16 %v3193_v34  ;;  %v3190_v40 = vunpack.i.h.bf16 %v3188_v15  ;;  %v3189_v21 = vunpack.i.l.bf16 %v3188_v15  ;;  %1750 = vmatmul.mubr.f32.gmra.mrb[32].mxu0 %v1361_v39  ;;  %2682 = vmatmul.mubr.msk.f32.gmra.mrb[32].mxu1 %vm1278_vm0, %v3948_v47  ;;  %v238_v47 = vld [vmem:[%s3363_s7 + $0xd8] sm:$0xff]  ;;  %v2575_v39 = vld [vmem:[%s3363_s7 + $0x182] sm:$0xff] }
 0x122   : > { %2684 = vmatprep.mubr.msk.f32.mxu1 %vm1278_vm0, %v3980_v41 }
 0x123   : > { %v1426_v22 = vsel %vm1311_vm1, %v1394_v4, %v3189_v21  ;;  %v1329_v28 = vsel %vm1311_vm1, %v1296_v26, %v3190_v40  ;;  %v2576_v26 = vld [vmem:[%s3363_s7 + $0x18a] sm:$0xff] }
 0x124   : > { %v3203_v27 = vpop.permute.xlu1 %3202  ;;  %v3198_v6 = vpop.permute.xlu0 %3197  ;;  %v1458_v63 = vsel %vm1344_vm2, %v1426_v22, %v3194_v50  ;;  %v1362_v29 = vsel %vm1344_vm2, %v1329_v28, %v3195_v58 }
 0x125   : > { %v3200_v0 = vunpack.i.h.bf16 %v3198_v6  ;;  %v3199_v32 = vunpack.i.l.bf16 %v3198_v6  ;;  %1754 = vmatprep.mubr.f32.mxu0 %v1458_v63  ;;  %2685 = vmatmul.mubr.msk.f32.gmra.mrb[34].mxu1 %vm1278_vm0, %v4000_v31  ;;  %v3205_v41 = vunpack.i.h.bf16 %v3203_v27  ;;  %v3204_v33 = vunpack.i.l.bf16 %v3203_v27  ;;  %v2577_v6 = vld [vmem:[%s3363_s7 + $0x19a] sm:$0xff]  ;;  %v2440_v63 = vld [vmem:[%s3363_s7 + $0x111] sm:$0xff] }
 0x126   : > { %1755 = vmatmul.mubr.f32.gmra.mrb[34].mxu0 %v1362_v29  ;;  %2687 = vmatprep.mubr.msk.f32.mxu1 %vm1278_vm0, %v4024_v59  ;;  %v241_v29 = vld [vmem:[%s3363_s7 + $0xf8] sm:$0xff] }
 0x127   : > { %v1395_v14 = vsel %vm1278_vm0, %v2437_v11, %v3199_v32  ;;  %v1297_v20 = vsel %vm1278_vm0, %v238_v47, %v3200_v0 }
 0x128   : > { %v3213_v37 = vpop.permute.xlu1 %3212  ;;  %v3208_v43 = vpop.permute.xlu0 %3207  ;;  %v1427_v10 = vsel %vm1311_vm1, %v1395_v14, %v3204_v33  ;;  %v1330_v59 = vsel %vm1311_vm1, %v1297_v20, %v3205_v41 }
 0x129   : > { %v3210_v62 = vunpack.i.h.bf16 %v3208_v43  ;;  %v3209_v45 = vunpack.i.l.bf16 %v3208_v43  ;;  %2688 = vmatmul.mubr.msk.f32.gmra.mrb[36].mxu1 %vm1278_vm0, %v4043_v18  ;;  %v3215_v31 = vunpack.i.h.bf16 %v3213_v37  ;;  %v3214_v19 = vunpack.i.l.bf16 %v3213_v37  ;;  %v2578_v37 = vld [vmem:[%s3363_s7 + $0x1a2] sm:$0xff] }
 0x12a   : > { %2690 = vmatprep.mubr.msk.f32.mxu1 %vm1278_vm0, %v2569_v38 }
 0x12b   : > { %v1459_v16 = vsel %vm1344_vm2, %v1427_v10, %v3209_v45  ;;  %v1363_v48 = vsel %vm1344_vm2, %v1330_v59, %v3210_v62  ;;  %v1396_v36 = vsel %vm1278_vm0, %v2438_v54, %v3214_v19  ;;  %v1298_v57 = vsel %vm1278_vm0, %v239_v44, %v3215_v31  ;;  %v2441_v19 = vld [vmem:[%s3363_s7 + $0x121] sm:$0xff] }
 0x12c   : > { %v3223_v46 = vpop.permute.xlu1 %3222  ;;  %v3218_v18 = vpop.permute.xlu0 %3217  ;;  %1759 = vmatprep.mubr.f32.mxu0 %v1459_v16  ;;  %v242_v10 = vld [vmem:[%s3363_s7 + $0x108] sm:$0xff] }
 0x12d   : > { %v3225_v49 = vunpack.i.h.bf16 %v3223_v46  ;;  %v3224_v17 = vunpack.i.l.bf16 %v3223_v46  ;;  %v3220_v55 = vunpack.i.h.bf16 %v3218_v18  ;;  %v3219_v42 = vunpack.i.l.bf16 %v3218_v18  ;;  %1760 = vmatmul.mubr.f32.gmra.mrb[36].mxu0 %v1363_v48  ;;  %2691 = vmatmul.mubr.msk.f32.gmra.mrb[38].mxu1 %vm1278_vm0, %v2570_v53 }
 0x12e   : > { %2693 = vmatprep.mubr.msk.f32.mxu1 %vm1278_vm0, %v2571_v52 }
 0x12f   : > { %v1428_v60 = vsel %vm1311_vm1, %v1396_v36, %v3219_v42  ;;  %v1331_v51 = vsel %vm1311_vm1, %v1298_v57, %v3220_v55 }
 0x130   : > { %v3233_v56 = vpop.permute.xlu1 %3232  ;;  %v3228_v12 = vpop.permute.xlu0 %3227  ;;  %v1460_v30 = vsel %vm1344_vm2, %v1428_v60, %v3224_v17  ;;  %v1364_v24 = vsel %vm1344_vm2, %v1331_v51, %v3225_v49  ;;  %v2442_v60 = vld [vmem:[%s3363_s7 + $0x129] sm:$0xff] }
 0x131   : > { %v3230_v8 = vunpack.i.h.bf16 %v3228_v12  ;;  %v3229_v61 = vunpack.i.l.bf16 %v3228_v12  ;;  %1764 = vmatprep.mubr.f32.mxu0 %v1460_v30  ;;  %2694 = vmatmul.mubr.msk.f32.gmra.mrb[40].mxu1 %vm1278_vm0, %v2572_v23  ;;  %v3235_v13 = vunpack.i.h.bf16 %v3233_v56  ;;  %v3234_v3 = vunpack.i.l.bf16 %v3233_v56  ;;  %v243_v51 = vld [vmem:[%s3363_s7 + $0x110] sm:$0xff]  ;;  %s2383_s7 = sshll.u32 %s3329_s16, 5  ;;  %s2385_s16 = sshll.u32 %s3349_s25, 3 }
 0x132   : > { %1765 = vmatmul.mubr.f32.gmra.mrb[38].mxu0 %v1364_v24  ;;  %2696 = vmatprep.mubr.msk.f32.mxu1 %vm1278_vm0, %v2573_v25  ;;  %p207_p4 = scmp.lt.s32.totalorder %s2383_s7, 63  ;;  %s215_s18 = scalar_lea.vmem %s4543_s3, %s2385_s16 }
 0x133   : > { %v1397_v34 = vsel %vm1278_vm0, %v2439_v2, %v3229_v61  ;;  %v1299_v9 = vsel %vm1278_vm0, %v240_v5, %v3230_v8  ;;  %s219_s22 = scalar_lea.vmem %s4544_s4, %s2385_s16 }
 0x134   : > { %v3243_v7 = vpop.permute.xlu1 %3242  ;;  %v3238_v1 = vpop.permute.xlu0 %3237  ;;  %v1429_v21 = vsel %vm1311_vm1, %v1397_v34, %v3234_v3  ;;  %v1332_v4 = vsel %vm1311_vm1, %v1299_v9, %v3235_v13  ;;  %s4546_s7 = smov (!%p207_p4, %s2383_s7), 63 }
 0x135   : > { %v3240_v15 = vunpack.i.h.bf16 %v3238_v1  ;;  %v3239_v58 = vunpack.i.l.bf16 %v3238_v1  ;;  %2697 = vmatmul.mubr.msk.f32.gmra.mrb[42].mxu1 %vm1278_vm0, %v2574_v35  ;;  %v3245_v50 = vunpack.i.h.bf16 %v3243_v7  ;;  %v3244_v40 = vunpack.i.l.bf16 %v3243_v7  ;;  %s2384_s12 = sshll.u32 %s4546_s7, 3 }
 0x136   : > { %2699 = vmatprep.mubr.msk.f32.mxu1 %vm1278_vm0, %v2575_v39  ;;  %s4333_s11 = scalar_lea.vmem %s4542_s2, %s2384_s12 }
 0x137   : > { %v1461_v27 = vsel %vm1344_vm2, %v1429_v21, %v3239_v58  ;;  %v1365_v28 = vsel %vm1344_vm2, %v1332_v4, %v3240_v15  ;;  %v1398_v33 = vsel %vm1278_vm0, %v2440_v63, %v3244_v40  ;;  %v1300_v14 = vsel %vm1278_vm0, %v241_v29, %v3245_v50 }
 0x138   : > { %v3253_v22 = vpop.permute.xlu1 %3252  ;;  %v3248_v11 = vpop.permute.xlu0 %3247  ;;  %1769 = vmatprep.mubr.f32.mxu0 %v1461_v27 }
 0x139   : > { %v3255_v47 = vunpack.i.h.bf16 %v3253_v22  ;;  %v3254_v0 = vunpack.i.l.bf16 %v3253_v22  ;;  %v3250_v32 = vunpack.i.h.bf16 %v3248_v11  ;;  %v3249_v41 = vunpack.i.l.bf16 %v3248_v11  ;;  %1770 = vmatmul.mubr.f32.gmra.mrb[40].mxu0 %v1365_v28  ;;  %2700 = vmatmul.mubr.msk.f32.gmra.mrb[44].mxu1 %vm1278_vm0, %v2576_v26 }
 0x13a   : > { %2702 = vmatprep.mubr.msk.f32.mxu1 %vm1278_vm0, %v2577_v6 }
 0x13b   : > { %v1430_v20 = vsel %vm1311_vm1, %v1398_v33, %v3249_v41  ;;  %v1333_v43 = vsel %vm1311_vm1, %v1300_v14, %v3250_v32 }
 0x13c   : > { %v3263_v38 = vpop.permute.xlu1 %3262  ;;  %v3258_v62 = vpop.permute.xlu0 %3257  ;;  %v1462_v45 = vsel %vm1344_vm2, %v1430_v20, %v3254_v0  ;;  %v1366_v31 = vsel %vm1344_vm2, %v1333_v43, %v3255_v47 }
 0x13d   : > { %v3260_v59 = vunpack.i.h.bf16 %v3258_v62  ;;  %v3259_v53 = vunpack.i.l.bf16 %v3258_v62  ;;  %1774 = vmatprep.mubr.f32.mxu0 %v1462_v45  ;;  %2703 = vmatmul.mubr.msk.f32.gmra.mrb[46].mxu1 %vm1278_vm0, %v2578_v37  ;;  %v3265_v16 = vunpack.i.h.bf16 %v3263_v38  ;;  %v3264_v46 = vunpack.i.l.bf16 %v3263_v38 }
 0x13e   : > { %1775 = vmatmul.mubr.f32.gmra.mrb[42].mxu0 %v1366_v31 }
 0x13f   : > { %v1399_v52 = vsel %vm1278_vm0, %v2441_v19, %v3259_v53  ;;  %v1301_v54 = vsel %vm1278_vm0, %v242_v10, %v3260_v59 }
 0x140   : > { %v3273_v48 = vpop.permute.xlu1 %3272  ;;  %v3268_v44 = vpop.permute.xlu0 %3267  ;;  %v1431_v42 = vsel %vm1311_vm1, %v1399_v52, %v3264_v46  ;;  %v1334_v36 = vsel %vm1311_vm1, %v1301_v54, %v3265_v16 }
 0x141   : > { %v3270_v18 = vunpack.i.h.bf16 %v3268_v44  ;;  %v3269_v49 = vunpack.i.l.bf16 %v3268_v44  ;;  %v3275_v17 = vunpack.i.h.bf16 %v3273_v48  ;;  %v3274_v55 = vunpack.i.l.bf16 %v3273_v48 }
 0x143   : > { %v1463_v23 = vsel %vm1344_vm2, %v1431_v42, %v3269_v49  ;;  %v1367_v56 = vsel %vm1344_vm2, %v1334_v36, %v3270_v18  ;;  %v1400_v5 = vsel %vm1278_vm0, %v2442_v60, %v3274_v55  ;;  %v1302_v8 = vsel %vm1278_vm0, %v243_v51, %v3275_v17 }
 0x144   : > { %v3283_v57 = vpop.permute.xlu1 %3282  ;;  %v3278_v25 = vpop.permute.xlu0 %3277  ;;  %1779 = vmatprep.mubr.f32.mxu0 %v1463_v23 }
 0x145   : > { %v3285_v12 = vunpack.i.h.bf16 %v3283_v57  ;;  %v3284_v30 = vunpack.i.l.bf16 %v3283_v57  ;;  %v3280_v24 = vunpack.i.h.bf16 %v3278_v25  ;;  %v3279_v2 = vunpack.i.l.bf16 %v3278_v25  ;;  %1780 = vmatmul.mubr.f32.gmra.mrb[44].mxu0 %v1367_v56 }
 0x147   : > { %v1432_v61 = vsel %vm1311_vm1, %v1400_v5, %v3279_v2  ;;  %v1335_v13 = vsel %vm1311_vm1, %v1302_v8, %v3280_v24 }
 0x148   : > { %v1464_v3 = vsel %vm1344_vm2, %v1432_v61, %v3284_v30  ;;  %v1368_v35 = vsel %vm1344_vm2, %v1335_v13, %v3285_v12 }
 0x149   : > { %1784 = vmatprep.mubr.f32.mxu0 %v1464_v3 }
 0x14a   : > { %1785 = vmatmul.mubr.f32.gmra.mrb[46].mxu0 %v1368_v35 }
 0x166   : > { %v1671_v7 = vpop.f32.mrb[0].mxu0 }
 0x167   : > { %v1673_v34 = vpop.f32.mrb[1].mxu0 }
 0x16a   : > { %v1676_v39 = vpop.f32.mrb[2].mxu0 }
 0x16b   : > { %v1678_v9 = vpop.f32.mrb[3].mxu0 }
 0x170   : > { %v1681_v1 = vpop.f32.mrb[4].mxu0 }
 0x171   : > { %v1683_v15 = vpop.f32.mrb[5].mxu0 }
 0x178   : > { %v1686_v58 = vpop.f32.mrb[6].mxu0 }
 0x179   : > { %v1688_v50 = vpop.f32.mrb[7].mxu0 }
 0x17c   : > { %v4301_v40 = vpop.f32.mrb[0].mxu1 }
 0x17d   : > { %v1793_v21 = vpop.f32.mrb[1].mxu1 }
 0x184   : > { %v4303_v4 = vpop.f32.mrb[8].mxu0 }
 0x185   : > { %v1693_v26 = vpop.f32.mrb[9].mxu0 }
 0x188   : > { %v4305_v27 = vpop.f32.mrb[2].mxu1 }
 0x189   : > { %v1798_v22 = vpop.f32.mrb[3].mxu1 }
 0x190   : > { %v1696_v28 = vpop.f32.mrb[10].mxu0 }
 0x191   : > { %v1698_v6 = vpop.f32.mrb[11].mxu0 }
 0x194   : > { %v4307_v63 = vpop.f32.mrb[4].mxu1 }
 0x195   : > { %v1803_v29 = vpop.f32.mrb[5].mxu1 }
 0x19c   : > { %v4309_v11 = vpop.f32.mrb[12].mxu0 }
 0x19d   : > { %v1703_v47 = vpop.f32.mrb[13].mxu0 }
 0x1a0   : > { %v4311_v0 = vpop.f32.mrb[6].mxu1 }
 0x1a1   : > { %v1808_v32 = vpop.f32.mrb[7].mxu1 }
 0x1a8   : > { %v4313_v41 = vpop.f32.mrb[14].mxu0 }
 0x1a9   : > { %v1708_v33 = vpop.f32.mrb[15].mxu0 }
 0x1ac   : > { %v4315_v37 = vpop.f32.mrb[8].mxu1 }
 0x1ad   : > { %v1813_v14 = vpop.f32.mrb[9].mxu1 }
 0x1b4   : > { %v4317_v38 = vpop.f32.mrb[16].mxu0 }
 0x1b5   : > { %v1713_v20 = vpop.f32.mrb[17].mxu0 }
 0x1b8   : > { %v4319_v43 = vpop.f32.mrb[10].mxu1 }
 0x1b9   : > { %v1818_v62 = vpop.f32.mrb[11].mxu1 }
 0x1c0   : > { %v4321_v45 = vpop.f32.mrb[18].mxu0 }
 0x1c1   : > { %v1718_v31 = vpop.f32.mrb[19].mxu0 }
 0x1c4   : > { %v4323_v19 = vpop.f32.mrb[12].mxu1 }
 0x1c5   : > { %v1823_v10 = vpop.f32.mrb[13].mxu1 }
 0x1cc   : > { %v4326_v59 = vpop.f32.mrb[20].mxu0 }
 0x1cd   : > { %v1723_v53 = vpop.f32.mrb[21].mxu0 }
 0x1d0   : > { %v4328_v16 = vpop.f32.mrb[14].mxu1 }
 0x1d1   : > { %v1828_v46 = vpop.f32.mrb[15].mxu1 }
 0x1d4   : > { %v2659_v48 = vpop.f32.mrb[16].mxu1 }
 0x1d5   : > { %v1902_v52 = vadd.f32 %v2659_v48, %v1676_v39  ;;  %v4335_v54 = vpop.f32.mrb[22].mxu0  ;;  %v1896_v44 = vpop.f32.mrb[17].mxu1 }
 0x1d6   : > { %v1897_v18 = vadd.f32 %v1896_v44, %v1671_v7  ;;  %v1728_v49 = vpop.f32.mrb[23].mxu0 }
 0x1d7   : > { %2056 = vst.msk [vmem:[%s4333_s11 + $0x8] sm:$0xff] %vm1278_vm0, %v1902_v52  ;;  %v2088_v17 = vsel %vm1278_vm0, %v1902_v52, 0.0  ;;  %v2157_v55 = vmul.f32 %v1902_v52, %v1902_v52 }
 0x1d8   : > { %2055 = vst.msk [vmem:[%s4333_s11] sm:$0xff] %vm1278_vm0, %v1897_v18  ;;  %v2087_v42 = vsel %vm1278_vm0, %v1897_v18, 0.0  ;;  %v2156_v36 = vmul.f32 %v1897_v18, %v1897_v18  ;;  %v2662_v23 = vpop.f32.mrb[18].mxu1 }
 0x1d9   : > { %v2189_v57 = vsel %vm1278_vm0, %v2157_v55, 0.0  ;;  %v2089_v56 = vadd.f32 %v2088_v17, %v2087_v42  ;;  %v1912_v60 = vadd.f32 %v2662_v23, %v1686_v58  ;;  %v1906_v51 = vpop.f32.mrb[19].mxu1 }
 0x1da   : > { %v2188_v25 = vsel %vm1278_vm0, %v2156_v36, 0.0  ;;  %v1907_v12 = vadd.f32 %v1906_v51, %v1681_v1 }
 0x1db   : > { %v2190_v30 = vadd.f32 %v2189_v57, %v2188_v25  ;;  %2058 = vst.msk [vmem:[%s4333_s11 + $0x18] sm:$0xff] %vm1278_vm0, %v1912_v60  ;;  %v2159_v24 = vmul.f32 %v1912_v60, %v1912_v60  ;;  %v2092_v34 = vsel %vm1278_vm0, %v1912_v60, 0.0 }
 0x1dc   : > { %2057 = vst.msk [vmem:[%s4333_s11 + $0x10] sm:$0xff] %vm1278_vm0, %v1907_v12  ;;  %v2090_v2 = vsel %vm1278_vm0, %v1907_v12, 0.0  ;;  %v2158_v5 = vmul.f32 %v1907_v12, %v1907_v12  ;;  %v4350_v8 = vpop.f32.mrb[24].mxu0  ;;  %v2665_v61 = vpop.f32.mrb[20].mxu1 }
 0x1dd   : > { %v2091_v13 = vadd.f32 %v2090_v2, %v2089_v56  ;;  %v1922_v3 = vadd.f32 %v2665_v61, %v1696_v28  ;;  %v1733_v35 = vpop.f32.mrb[25].mxu0  ;;  %v1916_v7 = vpop.f32.mrb[21].mxu1  ;;  %v2193_v58 = vsel %vm1278_vm0, %v2159_v24, 0.0 }
 0x1de   : > { %v2191_v39 = vsel %vm1278_vm0, %v2158_v5, 0.0  ;;  %v1917_v9 = vadd.f32 %v1916_v7, %v4303_v4 }
 0x1df   : > { %v2192_v1 = vadd.f32 %v2191_v39, %v2190_v30  ;;  %2060 = vst.msk [vmem:[%s4333_s11 + $0x28] sm:$0xff] %vm1278_vm0, %v1922_v3  ;;  %v2093_v15 = vadd.f32 %v2092_v34, %v2091_v13  ;;  %v2161_v50 = vmul.f32 %v1922_v3, %v1922_v3  ;;  %v2096_v32 = vsel %vm1278_vm0, %v1922_v3, 0.0 }
 0x1e0   : > { %2059 = vst.msk [vmem:[%s4333_s11 + $0x20] sm:$0xff] %vm1278_vm0, %v1917_v9  ;;  %v2094_v21 = vsel %vm1278_vm0, %v1917_v9, 0.0  ;;  %v2160_v26 = vmul.f32 %v1917_v9, %v1917_v9  ;;  %v2668_v22 = vpop.f32.mrb[22].mxu1 }
 0x1e1   : > { %v2095_v28 = vadd.f32 %v2094_v21, %v2093_v15  ;;  %v2194_v6 = vadd.f32 %v2193_v58, %v2192_v1  ;;  %v1932_v29 = vadd.f32 %v2668_v22, %v4313_v41  ;;  %v1736_v4 = vpop.f32.mrb[26].mxu0  ;;  %v1926_v47 = vpop.f32.mrb[23].mxu1  ;;  %v2197_v10 = vsel %vm1278_vm0, %v2161_v50, 0.0 }
 0x1e2   : > { %v2195_v33 = vsel %vm1278_vm0, %v2160_v26, 0.0  ;;  %v1927_v14 = vadd.f32 %v1926_v47, %v4309_v11  ;;  %v1738_v20 = vpop.f32.mrb[27].mxu0 }
 0x1e3   : > { %v2196_v62 = vadd.f32 %v2195_v33, %v2194_v6  ;;  %2062 = vst.msk [vmem:[%s4333_s11 + $0x38] sm:$0xff] %vm1278_vm0, %v1932_v29  ;;  %v2097_v31 = vadd.f32 %v2096_v32, %v2095_v28  ;;  %v2163_v53 = vmul.f32 %v1932_v29, %v1932_v29  ;;  %v2100_v49 = vsel %vm1278_vm0, %v1932_v29, 0.0 }
 0x1e4   : > { %2061 = vst.msk [vmem:[%s4333_s11 + $0x30] sm:$0xff] %vm1278_vm0, %v1927_v14  ;;  %v2098_v41 = vsel %vm1278_vm0, %v1927_v14, 0.0  ;;  %v2162_v46 = vmul.f32 %v1927_v14, %v1927_v14  ;;  %v2671_v48 = vpop.f32.mrb[24].mxu1 }
 0x1e5   : > { %v2099_v52 = vadd.f32 %v2098_v41, %v2097_v31  ;;  %v2198_v44 = vadd.f32 %v2197_v10, %v2196_v62  ;;  %v1942_v11 = vadd.f32 %v2671_v48, %v4321_v45  ;;  %v1936_v18 = vpop.f32.mrb[25].mxu1  ;;  %v2201_v23 = vsel %vm1278_vm0, %v2163_v53, 0.0 }
 0x1e6   : > { %v2199_v17 = vsel %vm1278_vm0, %v2162_v46, 0.0  ;;  %v1937_v55 = vadd.f32 %v1936_v18, %v4317_v38 }
 0x1e7   : > { %v2200_v42 = vadd.f32 %v2199_v17, %v2198_v44  ;;  %2064 = vst.msk [vmem:[%s4333_s11 + $0x48] sm:$0xff] %vm1278_vm0, %v1942_v11  ;;  %v2101_v36 = vadd.f32 %v2100_v49, %v2099_v52  ;;  %v2165_v57 = vmul.f32 %v1942_v11, %v1942_v11  ;;  %v2104_v2 = vsel %vm1278_vm0, %v1942_v11, 0.0 }
 0x1e8   : > { %2063 = vst.msk [vmem:[%s4333_s11 + $0x40] sm:$0xff] %vm1278_vm0, %v1937_v55  ;;  %v2102_v56 = vsel %vm1278_vm0, %v1937_v55, 0.0  ;;  %v2164_v45 = vmul.f32 %v1937_v55, %v1937_v55  ;;  %v1741_v60 = vpop.f32.mrb[28].mxu0  ;;  %v2674_v51 = vpop.f32.mrb[26].mxu1 }
 0x1e9   : > { %v2103_v25 = vadd.f32 %v2102_v56, %v2101_v36  ;;  %v2202_v12 = vadd.f32 %v2201_v23, %v2200_v42  ;;  %v1952_v38 = vadd.f32 %v2674_v51, %v4335_v54  ;;  %v1743_v30 = vpop.f32.mrb[29].mxu0  ;;  %v1946_v24 = vpop.f32.mrb[27].mxu1  ;;  %v2205_v35 = vsel %vm1278_vm0, %v2165_v57, 0.0 }
 0x1ea   : > { %v2203_v5 = vsel %vm1278_vm0, %v2164_v45, 0.0  ;;  %v1947_v61 = vadd.f32 %v1946_v24, %v4326_v59 }
 0x1eb   : > { %v2204_v13 = vadd.f32 %v2203_v5, %v2202_v12  ;;  %2066 = vst.msk [vmem:[%s4333_s11 + $0x58] sm:$0xff] %vm1278_vm0, %v1952_v38  ;;  %v2105_v3 = vadd.f32 %v2104_v2, %v2103_v25  ;;  %v2167_v7 = vmul.f32 %v1952_v38, %v1952_v38  ;;  %v2108_v50 = vsel %vm1278_vm0, %v1952_v38, 0.0 }
 0x1ec   : > { %2065 = vst.msk [vmem:[%s4333_s11 + $0x50] sm:$0xff] %vm1278_vm0, %v1947_v61  ;;  %v2106_v54 = vsel %vm1278_vm0, %v1947_v61, 0.0  ;;  %v2166_v34 = vmul.f32 %v1947_v61, %v1947_v61  ;;  %v2677_v39 = vpop.f32.mrb[28].mxu1 }
 0x1ed   : > { %v2107_v9 = vadd.f32 %v2106_v54, %v2105_v3  ;;  %v2206_v1 = vadd.f32 %v2205_v35, %v2204_v13  ;;  %v1962_v15 = vadd.f32 %v2677_v39, %v1736_v4  ;;  %v1746_v58 = vpop.f32.mrb[30].mxu0  ;;  %v1956_v59 = vpop.f32.mrb[29].mxu1  ;;  %v2209_v29 = vsel %vm1278_vm0, %v2167_v7, 0.0 }
 0x1ee   : > { %v2207_v21 = vsel %vm1278_vm0, %v2166_v34, 0.0  ;;  %v1957_v26 = vadd.f32 %v1956_v59, %v4350_v8  ;;  %v1748_v22 = vpop.f32.mrb[31].mxu0 }
 0x1ef   : > { %v2208_v28 = vadd.f32 %v2207_v21, %v2206_v1  ;;  %2068 = vst.msk [vmem:[%s4333_s11 + $0x68] sm:$0xff] %vm1278_vm0, %v1962_v15  ;;  %v2109_v6 = vadd.f32 %v2108_v50, %v2107_v9  ;;  %v2169_v47 = vmul.f32 %v1962_v15, %v1962_v15  ;;  %v2112_v31 = vsel %vm1278_vm0, %v1962_v15, 0.0 }
 0x1f0   : > { %2067 = vst.msk [vmem:[%s4333_s11 + $0x60] sm:$0xff] %vm1278_vm0, %v1957_v26  ;;  %v2110_v4 = vsel %vm1278_vm0, %v1957_v26, 0.0  ;;  %v2168_v32 = vmul.f32 %v1957_v26, %v1957_v26  ;;  %v2680_v33 = vpop.f32.mrb[30].mxu1 }
 0x1f1   : > { %v2111_v14 = vadd.f32 %v2110_v4, %v2109_v6  ;;  %v2210_v20 = vadd.f32 %v2209_v29, %v2208_v28  ;;  %v1972_v62 = vadd.f32 %v2680_v33, %v1746_v58  ;;  %v1966_v8 = vpop.f32.mrb[31].mxu1  ;;  %v2213_v48 = vsel %vm1278_vm0, %v2169_v47, 0.0 }
 0x1f2   : > { %v2211_v10 = vsel %vm1278_vm0, %v2168_v32, 0.0  ;;  %v1967_v53 = vadd.f32 %v1966_v8, %v1741_v60 }
 0x1f3   : > { %v2212_v41 = vadd.f32 %v2211_v10, %v2210_v20  ;;  %2070 = vst.msk [vmem:[%s4333_s11 + $0x78] sm:$0xff] %vm1278_vm0, %v1972_v62  ;;  %v2113_v46 = vadd.f32 %v2112_v31, %v2111_v14  ;;  %v2171_v52 = vmul.f32 %v1972_v62, %v1972_v62  ;;  %v2116_v23 = vsel %vm1278_vm0, %v1972_v62, 0.0 }
 0x1f4   : > { %2069 = vst.msk [vmem:[%s4333_s11 + $0x70] sm:$0xff] %vm1278_vm0, %v1967_v53  ;;  %v2114_v44 = vsel %vm1278_vm0, %v1967_v53, 0.0  ;;  %v2170_v11 = vmul.f32 %v1967_v53, %v1967_v53  ;;  %v1751_v18 = vpop.f32.mrb[32].mxu0  ;;  %v2683_v49 = vpop.f32.mrb[32].mxu1 }
 0x1f5   : > { %v2115_v17 = vadd.f32 %v2114_v44, %v2113_v46  ;;  %v2214_v55 = vadd.f32 %v2213_v48, %v2212_v41  ;;  %v1753_v42 = vpop.f32.mrb[33].mxu0  ;;  %v1976_v36 = vpop.f32.mrb[33].mxu1  ;;  %v2217_v51 = vsel %vm1278_vm0, %v2171_v52, 0.0 }
 0x1f6   : > { %v2215_v57 = vsel %vm1278_vm0, %v2170_v11, 0.0  ;;  %v1977_v56 = vadd.f32 %v1976_v36, %v1751_v18 }
 0x1f7   : > { %v2216_v45 = vadd.f32 %v2215_v57, %v2214_v55  ;;  %v2117_v60 = vadd.f32 %v2116_v23, %v2115_v17 }
 0x1f8   : > { %2071 = vst.msk [vmem:[%s4333_s11 + $0x80] sm:$0xff] %vm1278_vm0, %v1977_v56  ;;  %v2118_v25 = vsel %vm1278_vm0, %v1977_v56, 0.0  ;;  %v2172_v12 = vmul.f32 %v1977_v56, %v1977_v56  ;;  %v2686_v38 = vpop.f32.mrb[34].mxu1 }
 0x1f9   : > { %v2119_v30 = vadd.f32 %v2118_v25, %v2117_v60  ;;  %v2218_v24 = vadd.f32 %v2217_v51, %v2216_v45  ;;  %v1756_v2 = vpop.f32.mrb[34].mxu0  ;;  %v1986_v5 = vpop.f32.mrb[35].mxu1 }
 0x1fa   : > { %v2219_v61 = vsel %vm1278_vm0, %v2172_v12, 0.0  ;;  %v1982_v13 = vadd.f32 %v2683_v49, %v1756_v2  ;;  %v1758_v3 = vpop.f32.mrb[35].mxu0 }
 0x1fb   : > { %v2220_v35 = vadd.f32 %v2219_v61, %v2218_v24 }
 0x1fc   : > { %2072 = vst.msk [vmem:[%s4333_s11 + $0x88] sm:$0xff] %vm1278_vm0, %v1982_v13  ;;  %v2120_v7 = vsel %vm1278_vm0, %v1982_v13, 0.0  ;;  %v2173_v54 = vmul.f32 %v1982_v13, %v1982_v13  ;;  %v2689_v34 = vpop.f32.mrb[36].mxu1 }
 0x1fd   : > { %v2121_v39 = vadd.f32 %v2120_v7, %v2119_v30  ;;  %v1996_v9 = vpop.f32.mrb[37].mxu1 }
 0x1fe   : > { %v2221_v1 = vsel %vm1278_vm0, %v2173_v54, 0.0 }
 0x1ff   : > { %v2222_v15 = vadd.f32 %v2221_v1, %v2220_v35 }
 0x200   : > { %v1761_v58 = vpop.f32.mrb[36].mxu0  ;;  %v4419_v59 = vpop.f32.mrb[38].mxu1 }
 0x201   : > { %v1987_v50 = vadd.f32 %v1986_v5, %v1761_v58  ;;  %v1763_v21 = vpop.f32.mrb[37].mxu0  ;;  %v2006_v26 = vpop.f32.mrb[39].mxu1 }
 0x203   : > { %2073 = vst.msk [vmem:[%s4333_s11 + $0x90] sm:$0xff] %vm1278_vm0, %v1987_v50  ;;  %v2122_v22 = vsel %vm1278_vm0, %v1987_v50, 0.0  ;;  %v2174_v28 = vmul.f32 %v1987_v50, %v1987_v50 }
 0x204   : > { %v2123_v6 = vadd.f32 %v2122_v22, %v2121_v39  ;;  %v2695_v29 = vpop.f32.mrb[40].mxu1 }
 0x205   : > { %v2223_v47 = vsel %vm1278_vm0, %v2174_v28, 0.0  ;;  %v4426_v4 = vadd.f32 %v2695_v29, %v4305_v27  ;;  %v1766_v32 = vpop.f32.mrb[38].mxu0  ;;  %v2016_v33 = vpop.f32.mrb[41].mxu1 }
 0x206   : > { %v2224_v14 = vadd.f32 %v2223_v47, %v2222_v15  ;;  %v1992_v20 = vadd.f32 %v2686_v38, %v1766_v32  ;;  %v4429_v62 = vadd.f32 %v2016_v33, %v4301_v40  ;;  %v1768_v8 = vpop.f32.mrb[39].mxu0 }
 0x207   : > { %2080 = vst.msk [vmem:[%s4333_s11 + $0xc8] sm:$0xff] %vm1278_vm0, %v4426_v4  ;;  %v2181_v50 = vmul.f32 %v4426_v4, %v4426_v4  ;;  %v2136_v28 = vsel %vm1278_vm0, %v4426_v4, 0.0 }
 0x208   : > { %2074 = vst.msk [vmem:[%s4333_s11 + $0x98] sm:$0xff] %vm1278_vm0, %v1992_v20  ;;  %v2124_v31 = vsel %vm1278_vm0, %v1992_v20, 0.0  ;;  %v2175_v10 = vmul.f32 %v1992_v20, %v1992_v20  ;;  %2079 = vst.msk [vmem:[%s4333_s11 + $0xc0] sm:$0xff] %vm1278_vm0, %v4429_v62  ;;  %v2698_v27 = vpop.f32.mrb[42].mxu1  ;;  %v2134_v21 = vsel %vm1278_vm0, %v4429_v62, 0.0 }
 0x209   : > { %v2125_v53 = vadd.f32 %v2124_v31, %v2123_v6  ;;  %v4441_v41 = vadd.f32 %v2698_v27, %v4311_v0  ;;  %v2026_v40 = vpop.f32.mrb[43].mxu1  ;;  %v2237_v33 = vsel %vm1278_vm0, %v2181_v50, 0.0 }
 0x20a   : > { %v2225_v46 = vsel %vm1278_vm0, %v2175_v10, 0.0  ;;  %v4445_v48 = vadd.f32 %v2026_v40, %v4307_v63 }
 0x20b   : > { %v2226_v52 = vadd.f32 %v2225_v46, %v2224_v14  ;;  %2082 = vst.msk [vmem:[%s4333_s11 + $0xd8] sm:$0xff] %vm1278_vm0, %v4441_v41  ;;  %v2183_v14 = vmul.f32 %v4441_v41, %v4441_v41  ;;  %v2140_v4 = vsel %vm1278_vm0, %v4441_v41, 0.0 }
 0x20c   : > { %2081 = vst.msk [vmem:[%s4333_s11 + $0xd0] sm:$0xff] %vm1278_vm0, %v4445_v48  ;;  %v1771_v44 = vpop.f32.mrb[40].mxu0  ;;  %v2701_v11 = vpop.f32.mrb[44].mxu1  ;;  %v2182_v29 = vmul.f32 %v4445_v48, %v4445_v48  ;;  %v2138_v20 = vsel %vm1278_vm0, %v4445_v48, 0.0 }
 0x20d   : > { %v1997_v18 = vadd.f32 %v1996_v9, %v1771_v44  ;;  %v4454_v0 = vadd.f32 %v2701_v11, %v4319_v43  ;;  %v1773_v49 = vpop.f32.mrb[41].mxu0  ;;  %v2036_v17 = vpop.f32.mrb[45].mxu1  ;;  %v2180_v9 = vmul.f32 %v4429_v62, %v4429_v62  ;;  %v2241_v40 = vsel %vm1278_vm0, %v2183_v14, 0.0 }
 0x20e   : > { %v4457_v55 = vadd.f32 %v2036_v17, %v4315_v37  ;;  %v2239_v31 = vsel %vm1278_vm0, %v2182_v29, 0.0 }
 0x20f   : > { %2075 = vst.msk [vmem:[%s4333_s11 + $0xa0] sm:$0xff] %vm1278_vm0, %v1997_v18  ;;  %v2126_v63 = vsel %vm1278_vm0, %v1997_v18, 0.0  ;;  %v2176_v42 = vmul.f32 %v1997_v18, %v1997_v18  ;;  %2084 = vst.msk [vmem:[%s4333_s11 + $0xe8] sm:$0xff] %vm1278_vm0, %v4454_v0  ;;  %v2235_v6 = vsel %vm1278_vm0, %v2180_v9, 0.0  ;;  %v2185_v46 = vmul.f32 %v4454_v0, %v4454_v0 }
 0x210   : > { %v2127_v36 = vadd.f32 %v2126_v63, %v2125_v53  ;;  %2083 = vst.msk [vmem:[%s4333_s11 + $0xe0] sm:$0xff] %vm1278_vm0, %v4457_v55  ;;  %v2704_v43 = vpop.f32.mrb[46].mxu1  ;;  %v2184_v10 = vmul.f32 %v4457_v55, %v4457_v55  ;;  %v2142_v48 = vsel %vm1278_vm0, %v4457_v55, 0.0  ;;  %v2144_v41 = vsel %vm1278_vm0, %v4454_v0, 0.0 }
 0x211   : > { %v2227_v23 = vsel %vm1278_vm0, %v2176_v42, 0.0  ;;  %v4470_v37 = vadd.f32 %v2704_v43, %v4328_v16  ;;  %v1776_v57 = vpop.f32.mrb[42].mxu0  ;;  %v2046_v56 = vpop.f32.mrb[47].mxu1  ;;  %v2245_v63 = vsel %vm1278_vm0, %v2185_v46, 0.0 }
 0x212   : > { %v2228_v45 = vadd.f32 %v2227_v23, %v2226_v52  ;;  %v2002_v60 = vadd.f32 %v2689_v34, %v1776_v57  ;;  %v2047_v51 = vadd.f32 %v2046_v56, %v4323_v19  ;;  %v1778_v25 = vpop.f32.mrb[43].mxu0  ;;  %v2243_v11 = vsel %vm1278_vm0, %v2184_v10, 0.0 }
 0x213   : > { %2086 = vst.msk [vmem:[%s4333_s11 + $0xf8] sm:$0xff] %vm1278_vm0, %v4470_v37  ;;  %v2187_v42 = vmul.f32 %v4470_v37, %v4470_v37  ;;  %v2148_v23 = vsel %vm1278_vm0, %v4470_v37, 0.0 }
 0x214   : > { %2076 = vst.msk [vmem:[%s4333_s11 + $0xa8] sm:$0xff] %vm1278_vm0, %v2002_v60  ;;  %v2128_v12 = vsel %vm1278_vm0, %v2002_v60, 0.0  ;;  %v2177_v38 = vmul.f32 %v2002_v60, %v2002_v60  ;;  %2085 = vst.msk [vmem:[%s4333_s11 + $0xf0] sm:$0xff] %vm1278_vm0, %v2047_v51  ;;  %v2186_v18 = vmul.f32 %v2047_v51, %v2047_v51 }
 0x215   : > { %v2129_v16 = vadd.f32 %v2128_v12, %v2127_v36  ;;  %v2146_v36 = vsel %vm1278_vm0, %v2047_v51, 0.0 }
 0x216   : > { %v2229_v30 = vsel %vm1278_vm0, %v2177_v38, 0.0  ;;  %v2247_v0 = vsel %vm1278_vm0, %v2186_v18, 0.0 }
 0x217   : > { %v2230_v24 = vadd.f32 %v2229_v30, %v2228_v45  ;;  %v2249_v45 = vsel %vm1278_vm0, %v2187_v42, 0.0 }
 0x218   : > { %v1781_v2 = vpop.f32.mrb[44].mxu0 }
 0x219   : > { %v2007_v5 = vadd.f32 %v2006_v26, %v1781_v2  ;;  %v1783_v61 = vpop.f32.mrb[45].mxu0 }
 0x21b   : > { %2077 = vst.msk [vmem:[%s4333_s11 + $0xb0] sm:$0xff] %vm1278_vm0, %v2007_v5  ;;  %v2130_v19 = vsel %vm1278_vm0, %v2007_v5, 0.0  ;;  %v2178_v13 = vmul.f32 %v2007_v5, %v2007_v5 }
 0x21c   : > { %v2131_v3 = vadd.f32 %v2130_v19, %v2129_v16 }
 0x21d   : > { %v2231_v35 = vsel %vm1278_vm0, %v2178_v13, 0.0  ;;  %v1786_v7 = vpop.f32.mrb[46].mxu0 }
 0x21e   : > { %v2232_v54 = vadd.f32 %v2231_v35, %v2230_v24  ;;  %v2012_v34 = vadd.f32 %v4419_v59, %v1786_v7  ;;  %v1788_v39 = vpop.f32.mrb[47].mxu0 }
 0x220   : > { %2078 = vst.msk [vmem:[%s4333_s11 + $0xb8] sm:$0xff] %vm1278_vm0, %v2012_v34  ;;  %v2132_v1 = vsel %vm1278_vm0, %v2012_v34, 0.0  ;;  %v2179_v15 = vmul.f32 %v2012_v34, %v2012_v34 }
 0x221   : > { %v2133_v58 = vadd.f32 %v2132_v1, %v2131_v3 }
 0x222   : > { %v2233_v26 = vsel %vm1278_vm0, %v2179_v15, 0.0 }
 0x223   : > { %v2135_v22 = vadd.f32 %v2134_v21, %v2133_v58  ;;  %v2234_v59 = vadd.f32 %v2233_v26, %v2232_v54 }
 0x225   : > { %v2137_v47 = vadd.f32 %v2136_v28, %v2135_v22  ;;  %v2236_v32 = vadd.f32 %v2235_v6, %v2234_v59 }
 0x227   : > { %v2139_v62 = vadd.f32 %v2138_v20, %v2137_v47  ;;  %v2238_v8 = vadd.f32 %v2237_v33, %v2236_v32 }
 0x229   : > { %v2141_v27 = vadd.f32 %v2140_v4, %v2139_v62  ;;  %v2240_v53 = vadd.f32 %v2239_v31, %v2238_v8 }
 0x22b   : > { %v2143_v52 = vadd.f32 %v2142_v48, %v2141_v27  ;;  %v2242_v44 = vadd.f32 %v2241_v40, %v2240_v53 }
 0x22d   : > { %v2145_v49 = vadd.f32 %v2144_v41, %v2143_v52  ;;  %v2244_v17 = vadd.f32 %v2243_v11, %v2242_v44 }
 0x22f   : > { %v2147_v43 = vadd.f32 %v2146_v36, %v2145_v49  ;;  %v2246_v55 = vadd.f32 %v2245_v63, %v2244_v17 }
 0x231   : > { %v2149_v57 = vadd.f32 %v2148_v23, %v2147_v43  ;;  %v2248_v56 = vadd.f32 %v2247_v0, %v2246_v55 }
 0x233   : > { %v2150_v60 = vrot.slane %v2149_v57, 4  ;;  %v2250_v25 = vadd.f32 %v2249_v45, %v2248_v56 }
 0x235   : > { %v2151_v12 = vadd.f32 %v2150_v60, %v2149_v57  ;;  %v2251_v38 = vrot.slane %v2250_v25, 4 }
 0x237   : > { %v2152_v16 = vrot.slane %v2151_v12, 2  ;;  %v2252_v30 = vadd.f32 %v2251_v38, %v2250_v25 }
 0x239   : > { %v2153_v24 = vadd.f32 %v2152_v16, %v2151_v12  ;;  %v2253_v51 = vrot.slane %v2252_v30, 2 }
 0x23b   : > { %v2154_v2 = vrot.slane %v2153_v24, 1  ;;  %v2254_v5 = vadd.f32 %v2253_v51, %v2252_v30 }
 0x23d   : > { %v2155_v37 = vadd.f32 %v2154_v2, %v2153_v24  ;;  %v2255_v61 = vrot.slane %v2254_v5, 1 }
 0x23f   : > { %v2256_v19 = vadd.f32 %v2255_v61, %v2254_v5  ;;  %2257 = vst.msk [vmem:[%s215_s18] sm:$0xff] %vm1278_vm0, %v2155_v37 }
 0x241   : > { %2258 = vst.msk [vmem:[%s219_s22] sm:$0xff] %vm1278_vm0, %v2256_v19 }
 0x242 PF: > { %s15_s15 = sadd.s32 1, %s3292_s15  }
 0x243   : > { %p12_p5 = scmp.ge.s32.totalorder %s15_s15, 4  }
 0x245   :  { %14 = sbr.rel (!%p12_p5) target bundleno = 1 (0x1), region = 84 }

// kernel: unit_forward.5
= control target key start
LH: loop header
LB: loop body
LE: loop exit
PB: predicated region body
PF: predicated region fallthrough
CT: control target
= control target key end

     0   :  { %vm284_vm0 = vcmask 261120   ;;  %s961_s0 = inlined_call_operand.vmem [shape: f32[512,32], index: 0, kind: input, shape index: {}]   ;;  %s962_s1 = inlined_call_operand.vmem [shape: f32[1,32], index: 1, kind: input, shape index: {}]   ;;  %s963_s2 = inlined_call_operand.vmem [shape: f32[1,32], index: 2, kind: input, shape index: {}]   ;;  %s964_s3 = inlined_call_operand.vmem [shape: f32[512,32], index: 3, kind: output, shape index: {}]  }
   0x1   :  { %v14_v0 = vld [vmem:[%s961_s0] sm:$0xff]  ;;  %v15_v4 = vld [vmem:[%s961_s0 + $0x8] sm:$0xff]  ;;  %v16_v5 = vld [vmem:[%s961_s0 + $0x10] sm:$0xff] }
   0x2   :  { %v381_v1 = vld [vmem:[%s962_s1] ss:$0 sm:$0xff]  ;;  %v17_v6 = vld [vmem:[%s961_s0 + $0x18] sm:$0xff]  ;;  %v19_v11 = vld [vmem:[%s961_s0 + $0x28] sm:$0xff] }
   0x3   :  { %v386_v2 = vld [vmem:[%s963_s2] ss:$0 sm:$0xff]  ;;  %v85_v3 = vmul.f32 %v381_v1, %v14_v0  ;;  %v86_v7 = vmul.f32 %v381_v1, %v15_v4  ;;  %v87_v8 = vmul.f32 %v381_v1, %v16_v5  ;;  %v88_v9 = vmul.f32 %v381_v1, %v17_v6  ;;  %v20_v12 = vld [vmem:[%s961_s0 + $0x30] sm:$0xff]  ;;  %v21_v17 = vld [vmem:[%s961_s0 + $0x38] sm:$0xff] }
   0x4   :  { %v18_v10 = vld [vmem:[%s961_s0 + $0x20] sm:$0xff]  ;;  %v90_v15 = vmul.f32 %v381_v1, %v19_v11  ;;  %v91_v16 = vmul.f32 %v381_v1, %v20_v12  ;;  %v92_v21 = vmul.f32 %v381_v1, %v21_v17  ;;  %v23_v27 = vld [vmem:[%s961_s0 + $0x48] sm:$0xff]  ;;  %v24_v28 = vld [vmem:[%s961_s0 + $0x50] sm:$0xff] }
   0x5   :  { %v156_v13 = vadd.f32 %v386_v2, %v85_v3  ;;  %v89_v14 = vmul.f32 %v381_v1, %v18_v10  ;;  %v157_v18 = vadd.f32 %v386_v2, %v86_v7  ;;  %v158_v19 = vadd.f32 %v386_v2, %v87_v8  ;;  %v22_v22 = vld [vmem:[%s961_s0 + $0x40] sm:$0xff]  ;;  %v25_v29 = vld [vmem:[%s961_s0 + $0x58] sm:$0xff]  ;;  %v27_v35 = vld [vmem:[%s961_s0 + $0x68] sm:$0xff] }
   0x6   :  { %v159_v20 = vadd.f32 %v386_v2, %v88_v9  ;;  %v161_v25 = vadd.f32 %v386_v2, %v90_v15  ;;  %v162_v26 = vadd.f32 %v386_v2, %v91_v16  ;;  %v163_v33 = vadd.f32 %v386_v2, %v92_v21  ;;  %v26_v34 = vld [vmem:[%s961_s0 + $0x60] sm:$0xff]  ;;  %v28_v36 = vld [vmem:[%s961_s0 + $0x70] sm:$0xff]  ;;  %v29_v41 = vld [vmem:[%s961_s0 + $0x78] sm:$0xff] }
   0x7   :  { %v220_v23 = vmax.f32 %v156_v13, 0.0  ;;  %v160_v24 = vadd.f32 %v386_v2, %v89_v14  ;;  %v221_v30 = vmax.f32 %v157_v18, 0.0  ;;  %v222_v31 = vmax.f32 %v158_v19, 0.0  ;;  %v30_v54 = vld [vmem:[%s961_s0 + $0x80] sm:$0xff]  ;;  %v31_v59 = vld [vmem:[%s961_s0 + $0x88] sm:$0xff]  ;;  %v32_v60 = vld [vmem:[%s961_s0 + $0x90] sm:$0xff] }
   0x8   :  { %v223_v32 = vmax.f32 %v159_v20, 0.0  ;;  %v225_v38 = vmax.f32 %v161_v25, 0.0  ;;  %v226_v39 = vmax.f32 %v162_v26, 0.0  ;;  %v93_v40 = vmul.f32 %v381_v1, %v22_v22  ;;  %v33_v61 = vld [vmem:[%s961_s0 + $0x98] sm:$0xff]  ;;  %v34_v4 = vld [vmem:[%s961_s0 + $0xa0] sm:$0xff]  ;;  %v35_v5 = vld [vmem:[%s961_s0 + $0xa8] sm:$0xff] }
   0x9   :  { %285 = vst.msk [vmem:[%s964_s3] sm:$0xff] %vm284_vm0, %v220_v23  ;;  %v224_v37 = vmax.f32 %v160_v24, 0.0  ;;  %286 = vst.msk [vmem:[%s964_s3 + $0x8] sm:$0xff] %vm284_vm0, %v221_v30  ;;  %v227_v42 = vmax.f32 %v163_v33, 0.0  ;;  %v94_v43 = vmul.f32 %v381_v1, %v23_v27  ;;  %v95_v44 = vmul.f32 %v381_v1, %v24_v28  ;;  %v36_v6 = vld [vmem:[%s961_s0 + $0xb0] sm:$0xff]  ;;  %v37_v11 = vld [vmem:[%s961_s0 + $0xb8] sm:$0xff] }
   0xa   :  { %287 = vst.msk [vmem:[%s964_s3 + $0x10] sm:$0xff] %vm284_vm0, %v222_v31  ;;  %288 = vst.msk [vmem:[%s964_s3 + $0x18] sm:$0xff] %vm284_vm0, %v223_v32  ;;  %v96_v45 = vmul.f32 %v381_v1, %v25_v29  ;;  %v164_v46 = vadd.f32 %v386_v2, %v93_v40  ;;  %v97_v47 = vmul.f32 %v381_v1, %v26_v34  ;;  %v38_v24 = vld [vmem:[%s961_s0 + $0xc0] sm:$0xff]  ;;  %v39_v29 = vld [vmem:[%s961_s0 + $0xc8] sm:$0xff] }
   0xb   :  { %289 = vst.msk [vmem:[%s964_s3 + $0x20] sm:$0xff] %vm284_vm0, %v224_v37  ;;  %290 = vst.msk [vmem:[%s964_s3 + $0x28] sm:$0xff] %vm284_vm0, %v225_v38  ;;  %v98_v48 = vmul.f32 %v381_v1, %v27_v35  ;;  %v99_v49 = vmul.f32 %v381_v1, %v28_v36  ;;  %v165_v50 = vadd.f32 %v386_v2, %v94_v43  ;;  %v40_v30 = vld [vmem:[%s961_s0 + $0xd0] sm:$0xff]  ;;  %v41_v31 = vld [vmem:[%s961_s0 + $0xd8] sm:$0xff] }
   0xc   :  { %291 = vst.msk [vmem:[%s964_s3 + $0x30] sm:$0xff] %vm284_vm0, %v226_v39  ;;  %292 = vst.msk [vmem:[%s964_s3 + $0x38] sm:$0xff] %vm284_vm0, %v227_v42  ;;  %v166_v51 = vadd.f32 %v386_v2, %v95_v44  ;;  %v167_v52 = vadd.f32 %v386_v2, %v96_v45  ;;  %v100_v53 = vmul.f32 %v381_v1, %v29_v41  ;;  %v228_v55 = vmax.f32 %v164_v46, 0.0  ;;  %v42_v36 = vld [vmem:[%s961_s0 + $0xe0] sm:$0xff]  ;;  %v43_v37 = vld [vmem:[%s961_s0 + $0xe8] sm:$0xff] }
   0xd   :  { %v168_v56 = vadd.f32 %v386_v2, %v97_v47  ;;  %v169_v57 = vadd.f32 %v386_v2, %v98_v48  ;;  %v170_v58 = vadd.f32 %v386_v2, %v99_v49  ;;  %v229_v62 = vmax.f32 %v165_v50, 0.0  ;;  %v44_v38 = vld [vmem:[%s961_s0 + $0xf0] sm:$0xff]  ;;  %v45_v43 = vld [vmem:[%s961_s0 + $0xf8] sm:$0xff] }
   0xe   :  { %v230_v63 = vmax.f32 %v166_v51, 0.0  ;;  %v231_v0 = vmax.f32 %v167_v52, 0.0  ;;  %v171_v3 = vadd.f32 %v386_v2, %v100_v53  ;;  %293 = vst.msk [vmem:[%s964_s3 + $0x40] sm:$0xff] %vm284_vm0, %v228_v55  ;;  %v101_v10 = vmul.f32 %v381_v1, %v30_v54 }
   0xf   :  { %v232_v7 = vmax.f32 %v168_v56, 0.0  ;;  %v233_v8 = vmax.f32 %v169_v57, 0.0  ;;  %v234_v9 = vmax.f32 %v170_v58, 0.0  ;;  %294 = vst.msk [vmem:[%s964_s3 + $0x48] sm:$0xff] %vm284_vm0, %v229_v62  ;;  %v102_v13 = vmul.f32 %v381_v1, %v31_v59  ;;  %v46_v56 = vld [vmem:[%s961_s0 + $0x100] sm:$0xff]  ;;  %v48_v62 = vld [vmem:[%s961_s0 + $0x110] sm:$0xff] }
  0x10   :  { %295 = vst.msk [vmem:[%s964_s3 + $0x50] sm:$0xff] %vm284_vm0, %v230_v63  ;;  %296 = vst.msk [vmem:[%s964_s3 + $0x58] sm:$0xff] %vm284_vm0, %v231_v0  ;;  %v235_v12 = vmax.f32 %v171_v3, 0.0  ;;  %v103_v14 = vmul.f32 %v381_v1, %v32_v60  ;;  %v104_v15 = vmul.f32 %v381_v1, %v33_v61  ;;  %v172_v16 = vadd.f32 %v386_v2, %v101_v10  ;;  %v47_v61 = vld [vmem:[%s961_s0 + $0x108] sm:$0xff]  ;;  %v49_v63 = vld [vmem:[%s961_s0 + $0x118] sm:$0xff] }
  0x11   :  { %297 = vst.msk [vmem:[%s964_s3 + $0x60] sm:$0xff] %vm284_vm0, %v232_v7  ;;  %298 = vst.msk [vmem:[%s964_s3 + $0x68] sm:$0xff] %vm284_vm0, %v233_v8  ;;  %v105_v17 = vmul.f32 %v381_v1, %v34_v4  ;;  %v106_v18 = vmul.f32 %v381_v1, %v35_v5  ;;  %v107_v19 = vmul.f32 %v381_v1, %v36_v6  ;;  %v50_v6 = vld [vmem:[%s961_s0 + $0x120] sm:$0xff]  ;;  %v51_v7 = vld [vmem:[%s961_s0 + $0x128] sm:$0xff] }
  0x12   :  { %299 = vst.msk [vmem:[%s964_s3 + $0x70] sm:$0xff] %vm284_vm0, %v234_v9  ;;  %300 = vst.msk [vmem:[%s964_s3 + $0x78] sm:$0xff] %vm284_vm0, %v235_v12  ;;  %v173_v20 = vadd.f32 %v386_v2, %v102_v13  ;;  %v174_v21 = vadd.f32 %v386_v2, %v103_v14  ;;  %v175_v22 = vadd.f32 %v386_v2, %v104_v15  ;;  %v236_v25 = vmax.f32 %v172_v16, 0.0  ;;  %v52_v8 = vld [vmem:[%s961_s0 + $0x130] sm:$0xff]  ;;  %v53_v13 = vld [vmem:[%s961_s0 + $0x138] sm:$0xff] }
  0x13   :  { %v108_v23 = vmul.f32 %v381_v1, %v37_v11  ;;  %v176_v26 = vadd.f32 %v386_v2, %v105_v17  ;;  %v177_v27 = vadd.f32 %v386_v2, %v106_v18  ;;  %v178_v28 = vadd.f32 %v386_v2, %v107_v19 }
  0x14   :  { %v237_v32 = vmax.f32 %v173_v20, 0.0  ;;  %v238_v33 = vmax.f32 %v174_v21, 0.0  ;;  %v239_v34 = vmax.f32 %v175_v22, 0.0  ;;  %301 = vst.msk [vmem:[%s964_s3 + $0x80] sm:$0xff] %vm284_vm0, %v236_v25  ;;  %v109_v42 = vmul.f32 %v381_v1, %v38_v24 }
  0x15   :  { %v179_v35 = vadd.f32 %v386_v2, %v108_v23  ;;  %v240_v39 = vmax.f32 %v176_v26, 0.0  ;;  %v241_v40 = vmax.f32 %v177_v27, 0.0  ;;  %v242_v41 = vmax.f32 %v178_v28, 0.0  ;;  %v54_v26 = vld [vmem:[%s961_s0 + $0x140] sm:$0xff] }
  0x16   :  { %302 = vst.msk [vmem:[%s964_s3 + $0x88] sm:$0xff] %vm284_vm0, %v237_v32  ;;  %303 = vst.msk [vmem:[%s964_s3 + $0x90] sm:$0xff] %vm284_vm0, %v238_v33  ;;  %v110_v45 = vmul.f32 %v381_v1, %v39_v29  ;;  %v111_v46 = vmul.f32 %v381_v1, %v40_v30  ;;  %v112_v47 = vmul.f32 %v381_v1, %v41_v31  ;;  %v55_v31 = vld [vmem:[%s961_s0 + $0x148] sm:$0xff]  ;;  %v56_v32 = vld [vmem:[%s961_s0 + $0x150] sm:$0xff] }
  0x17   :  { %304 = vst.msk [vmem:[%s964_s3 + $0x98] sm:$0xff] %vm284_vm0, %v239_v34  ;;  %v243_v44 = vmax.f32 %v179_v35, 0.0  ;;  %305 = vst.msk [vmem:[%s964_s3 + $0xa0] sm:$0xff] %vm284_vm0, %v240_v39  ;;  %v180_v48 = vadd.f32 %v386_v2, %v109_v42  ;;  %v113_v49 = vmul.f32 %v381_v1, %v42_v36  ;;  %v114_v50 = vmul.f32 %v381_v1, %v43_v37  ;;  %v57_v33 = vld [vmem:[%s961_s0 + $0x158] sm:$0xff]  ;;  %v59_v39 = vld [vmem:[%s961_s0 + $0x168] sm:$0xff] }
  0x18   :  { %306 = vst.msk [vmem:[%s964_s3 + $0xa8] sm:$0xff] %vm284_vm0, %v241_v40  ;;  %307 = vst.msk [vmem:[%s964_s3 + $0xb0] sm:$0xff] %vm284_vm0, %v242_v41  ;;  %v115_v51 = vmul.f32 %v381_v1, %v44_v38  ;;  %v181_v52 = vadd.f32 %v386_v2, %v110_v45  ;;  %v182_v53 = vadd.f32 %v386_v2, %v111_v46  ;;  %v58_v38 = vld [vmem:[%s961_s0 + $0x160] sm:$0xff]  ;;  %v60_v40 = vld [vmem:[%s961_s0 + $0x170] sm:$0xff] }
  0x19   :  { %308 = vst.msk [vmem:[%s964_s3 + $0xb8] sm:$0xff] %vm284_vm0, %v243_v44  ;;  %v183_v54 = vadd.f32 %v386_v2, %v112_v47  ;;  %v116_v55 = vmul.f32 %v381_v1, %v45_v43  ;;  %v244_v57 = vmax.f32 %v180_v48, 0.0  ;;  %v184_v58 = vadd.f32 %v386_v2, %v113_v49  ;;  %v61_v45 = vld [vmem:[%s961_s0 + $0x178] sm:$0xff] }
  0x1a   :  { %v185_v59 = vadd.f32 %v386_v2, %v114_v50  ;;  %v186_v60 = vadd.f32 %v386_v2, %v115_v51  ;;  %v245_v0 = vmax.f32 %v181_v52, 0.0  ;;  %v246_v3 = vmax.f32 %v182_v53, 0.0 }
  0x1b   :  { %v247_v4 = vmax.f32 %v183_v54, 0.0  ;;  %v187_v5 = vadd.f32 %v386_v2, %v116_v55  ;;  %309 = vst.msk [vmem:[%s964_s3 + $0xc0] sm:$0xff] %vm284_vm0, %v244_v57  ;;  %v248_v9 = vmax.f32 %v184_v58, 0.0  ;;  %v117_v12 = vmul.f32 %v381_v1, %v46_v56  ;;  %v62_v58 = vld [vmem:[%s961_s0 + $0x180] sm:$0xff] }
  0x1c   :  { %v249_v10 = vmax.f32 %v185_v59, 0.0  ;;  %v250_v11 = vmax.f32 %v186_v60, 0.0  ;;  %310 = vst.msk [vmem:[%s964_s3 + $0xc8] sm:$0xff] %vm284_vm0, %v245_v0  ;;  %311 = vst.msk [vmem:[%s964_s3 + $0xd0] sm:$0xff] %vm284_vm0, %v246_v3  ;;  %v118_v15 = vmul.f32 %v381_v1, %v47_v61  ;;  %v119_v16 = vmul.f32 %v381_v1, %v48_v62  ;;  %v64_v0 = vld [vmem:[%s961_s0 + $0x190] sm:$0xff]  ;;  %v65_v3 = vld [vmem:[%s961_s0 + $0x198] sm:$0xff] }
  0x1d   :  { %312 = vst.msk [vmem:[%s964_s3 + $0xd8] sm:$0xff] %vm284_vm0, %v247_v4  ;;  %v251_v14 = vmax.f32 %v187_v5, 0.0  ;;  %v120_v17 = vmul.f32 %v381_v1, %v49_v63  ;;  %313 = vst.msk [vmem:[%s964_s3 + $0xe0] sm:$0xff] %vm284_vm0, %v248_v9  ;;  %v188_v18 = vadd.f32 %v386_v2, %v117_v12  ;;  %v121_v19 = vmul.f32 %v381_v1, %v50_v6  ;;  %v63_v63 = vld [vmem:[%s961_s0 + $0x188] sm:$0xff] }
  0x1e   :  { %314 = vst.msk [vmem:[%s964_s3 + $0xe8] sm:$0xff] %vm284_vm0, %v249_v10  ;;  %315 = vst.msk [vmem:[%s964_s3 + $0xf0] sm:$0xff] %vm284_vm0, %v250_v11  ;;  %v122_v20 = vmul.f32 %v381_v1, %v51_v7  ;;  %v123_v21 = vmul.f32 %v381_v1, %v52_v8  ;;  %v189_v22 = vadd.f32 %v386_v2, %v118_v15  ;;  %v66_v8 = vld [vmem:[%s961_s0 + $0x1a0] sm:$0xff]  ;;  %v67_v9 = vld [vmem:[%s961_s0 + $0x1a8] sm:$0xff] }
  0x1f   :  { %316 = vst.msk [vmem:[%s964_s3 + $0xf8] sm:$0xff] %vm284_vm0, %v251_v14  ;;  %v190_v23 = vadd.f32 %v386_v2, %v119_v16  ;;  %v191_v24 = vadd.f32 %v386_v2, %v120_v17  ;;  %v124_v25 = vmul.f32 %v381_v1, %v53_v13  ;;  %v252_v27 = vmax.f32 %v188_v18, 0.0  ;;  %v68_v10 = vld [vmem:[%s961_s0 + $0x1b0] sm:$0xff]  ;;  %v69_v15 = vld [vmem:[%s961_s0 + $0x1b8] sm:$0xff] }
  0x20   :  { %v192_v28 = vadd.f32 %v386_v2, %v121_v19  ;;  %v193_v29 = vadd.f32 %v386_v2, %v122_v20  ;;  %v194_v30 = vadd.f32 %v386_v2, %v123_v21  ;;  %v253_v34 = vmax.f32 %v189_v22, 0.0 }
  0x21   :  { %v254_v35 = vmax.f32 %v190_v23, 0.0  ;;  %v255_v36 = vmax.f32 %v191_v24, 0.0  ;;  %v195_v37 = vadd.f32 %v386_v2, %v124_v25  ;;  %317 = vst.msk [vmem:[%s964_s3 + $0x100] sm:$0xff] %vm284_vm0, %v252_v27  ;;  %v125_v44 = vmul.f32 %v381_v1, %v54_v26 }
  0x22   :  { %v256_v41 = vmax.f32 %v192_v28, 0.0  ;;  %v257_v42 = vmax.f32 %v193_v29, 0.0  ;;  %v258_v43 = vmax.f32 %v194_v30, 0.0  ;;  %318 = vst.msk [vmem:[%s964_s3 + $0x108] sm:$0xff] %vm284_vm0, %v253_v34  ;;  %v126_v47 = vmul.f32 %v381_v1, %v55_v31  ;;  %v70_v28 = vld [vmem:[%s961_s0 + $0x1c0] sm:$0xff]  ;;  %v72_v34 = vld [vmem:[%s961_s0 + $0x1d0] sm:$0xff] }
  0x23   :  { %319 = vst.msk [vmem:[%s964_s3 + $0x110] sm:$0xff] %vm284_vm0, %v254_v35  ;;  %320 = vst.msk [vmem:[%s964_s3 + $0x118] sm:$0xff] %vm284_vm0, %v255_v36  ;;  %v259_v46 = vmax.f32 %v195_v37, 0.0  ;;  %v127_v48 = vmul.f32 %v381_v1, %v56_v32  ;;  %v128_v49 = vmul.f32 %v381_v1, %v57_v33  ;;  %v196_v50 = vadd.f32 %v386_v2, %v125_v44  ;;  %v71_v33 = vld [vmem:[%s961_s0 + $0x1c8] sm:$0xff]  ;;  %v73_v35 = vld [vmem:[%s961_s0 + $0x1d8] sm:$0xff] }
  0x24   :  { %321 = vst.msk [vmem:[%s964_s3 + $0x120] sm:$0xff] %vm284_vm0, %v256_v41  ;;  %322 = vst.msk [vmem:[%s964_s3 + $0x128] sm:$0xff] %vm284_vm0, %v257_v42  ;;  %v129_v51 = vmul.f32 %v381_v1, %v58_v38  ;;  %v130_v52 = vmul.f32 %v381_v1, %v59_v39  ;;  %v131_v53 = vmul.f32 %v381_v1, %v60_v40  ;;  %v74_v40 = vld [vmem:[%s961_s0 + $0x1e0] sm:$0xff]  ;;  %v75_v41 = vld [vmem:[%s961_s0 + $0x1e8] sm:$0xff] }
  0x25   :  { %323 = vst.msk [vmem:[%s964_s3 + $0x130] sm:$0xff] %vm284_vm0, %v258_v43  ;;  %324 = vst.msk [vmem:[%s964_s3 + $0x138] sm:$0xff] %vm284_vm0, %v259_v46  ;;  %v197_v54 = vadd.f32 %v386_v2, %v126_v47  ;;  %v198_v55 = vadd.f32 %v386_v2, %v127_v48  ;;  %v199_v56 = vadd.f32 %v386_v2, %v128_v49  ;;  %v260_v59 = vmax.f32 %v196_v50, 0.0  ;;  %v76_v42 = vld [vmem:[%s961_s0 + $0x1f0] sm:$0xff]  ;;  %v77_v47 = vld [vmem:[%s961_s0 + $0x1f8] sm:$0xff] }
  0x26   :  { %v132_v57 = vmul.f32 %v381_v1, %v61_v45  ;;  %v200_v60 = vadd.f32 %v386_v2, %v129_v51  ;;  %v201_v61 = vadd.f32 %v386_v2, %v130_v52  ;;  %v202_v62 = vadd.f32 %v386_v2, %v131_v53 }
  0x27   :  { %v261_v4 = vmax.f32 %v197_v54, 0.0  ;;  %v262_v5 = vmax.f32 %v198_v55, 0.0  ;;  %v263_v6 = vmax.f32 %v199_v56, 0.0  ;;  %325 = vst.msk [vmem:[%s964_s3 + $0x140] sm:$0xff] %vm284_vm0, %v260_v59  ;;  %v133_v14 = vmul.f32 %v381_v1, %v62_v58 }
  0x28   :  { %v203_v7 = vadd.f32 %v386_v2, %v132_v57  ;;  %v264_v11 = vmax.f32 %v200_v60, 0.0  ;;  %v265_v12 = vmax.f32 %v201_v61, 0.0  ;;  %v266_v13 = vmax.f32 %v202_v62, 0.0 }
  0x29   :  { %326 = vst.msk [vmem:[%s964_s3 + $0x148] sm:$0xff] %vm284_vm0, %v261_v4  ;;  %327 = vst.msk [vmem:[%s964_s3 + $0x150] sm:$0xff] %vm284_vm0, %v262_v5  ;;  %v134_v17 = vmul.f32 %v381_v1, %v63_v63  ;;  %v135_v18 = vmul.f32 %v381_v1, %v64_v0  ;;  %v136_v19 = vmul.f32 %v381_v1, %v65_v3 }
  0x2a   :  { %328 = vst.msk [vmem:[%s964_s3 + $0x158] sm:$0xff] %vm284_vm0, %v263_v6  ;;  %v267_v16 = vmax.f32 %v203_v7, 0.0  ;;  %329 = vst.msk [vmem:[%s964_s3 + $0x160] sm:$0xff] %vm284_vm0, %v264_v11  ;;  %v204_v20 = vadd.f32 %v386_v2, %v133_v14  ;;  %v137_v21 = vmul.f32 %v381_v1, %v66_v8  ;;  %v138_v22 = vmul.f32 %v381_v1, %v67_v9 }
  0x2b   :  { %330 = vst.msk [vmem:[%s964_s3 + $0x168] sm:$0xff] %vm284_vm0, %v265_v12  ;;  %331 = vst.msk [vmem:[%s964_s3 + $0x170] sm:$0xff] %vm284_vm0, %v266_v13  ;;  %v139_v23 = vmul.f32 %v381_v1, %v68_v10  ;;  %v205_v24 = vadd.f32 %v386_v2, %v134_v17  ;;  %v206_v25 = vadd.f32 %v386_v2, %v135_v18 }
  0x2c   :  { %332 = vst.msk [vmem:[%s964_s3 + $0x178] sm:$0xff] %vm284_vm0, %v267_v16  ;;  %v207_v26 = vadd.f32 %v386_v2, %v136_v19  ;;  %v140_v27 = vmul.f32 %v381_v1, %v69_v15  ;;  %v268_v29 = vmax.f32 %v204_v20, 0.0  ;;  %v208_v30 = vadd.f32 %v386_v2, %v137_v21 }
  0x2d   :  { %v209_v31 = vadd.f32 %v386_v2, %v138_v22  ;;  %v210_v32 = vadd.f32 %v386_v2, %v139_v23  ;;  %v269_v36 = vmax.f32 %v205_v24, 0.0  ;;  %v270_v37 = vmax.f32 %v206_v25, 0.0 }
  0x2e   :  { %v271_v38 = vmax.f32 %v207_v26, 0.0  ;;  %v211_v39 = vadd.f32 %v386_v2, %v140_v27  ;;  %333 = vst.msk [vmem:[%s964_s3 + $0x180] sm:$0xff] %vm284_vm0, %v268_v29  ;;  %v272_v43 = vmax.f32 %v208_v30, 0.0  ;;  %v141_v46 = vmul.f32 %v381_v1, %v70_v28 }
  0x2f   :  { %v273_v44 = vmax.f32 %v209_v31, 0.0  ;;  %v274_v45 = vmax.f32 %v210_v32, 0.0  ;;  %334 = vst.msk [vmem:[%s964_s3 + $0x188] sm:$0xff] %vm284_vm0, %v269_v36  ;;  %335 = vst.msk [vmem:[%s964_s3 + $0x190] sm:$0xff] %vm284_vm0, %v270_v37  ;;  %v142_v49 = vmul.f32 %v381_v1, %v71_v33  ;;  %v143_v50 = vmul.f32 %v381_v1, %v72_v34 }
  0x30   :  { %336 = vst.msk [vmem:[%s964_s3 + $0x198] sm:$0xff] %vm284_vm0, %v271_v38  ;;  %v275_v48 = vmax.f32 %v211_v39, 0.0  ;;  %v144_v51 = vmul.f32 %v381_v1, %v73_v35  ;;  %337 = vst.msk [vmem:[%s964_s3 + $0x1a0] sm:$0xff] %vm284_vm0, %v272_v43  ;;  %v212_v52 = vadd.f32 %v386_v2, %v141_v46  ;;  %v145_v53 = vmul.f32 %v381_v1, %v74_v40 }
  0x31   :  { %338 = vst.msk [vmem:[%s964_s3 + $0x1a8] sm:$0xff] %vm284_vm0, %v273_v44  ;;  %339 = vst.msk [vmem:[%s964_s3 + $0x1b0] sm:$0xff] %vm284_vm0, %v274_v45  ;;  %v146_v54 = vmul.f32 %v381_v1, %v75_v41  ;;  %v147_v55 = vmul.f32 %v381_v1, %v76_v42  ;;  %v213_v56 = vadd.f32 %v386_v2, %v142_v49 }
  0x32   :  { %340 = vst.msk [vmem:[%s964_s3 + $0x1b8] sm:$0xff] %vm284_vm0, %v275_v48  ;;  %v214_v57 = vadd.f32 %v386_v2, %v143_v50  ;;  %v215_v58 = vadd.f32 %v386_v2, %v144_v51  ;;  %v148_v59 = vmul.f32 %v381_v1, %v77_v47  ;;  %v276_v60 = vmax.f32 %v212_v52, 0.0 }
  0x33   :  { %v216_v61 = vadd.f32 %v386_v2, %v145_v53  ;;  %v217_v62 = vadd.f32 %v386_v2, %v146_v54  ;;  %v218_v63 = vadd.f32 %v386_v2, %v147_v55  ;;  %v277_v0 = vmax.f32 %v213_v56, 0.0 }
  0x34   :  { %v278_v3 = vmax.f32 %v214_v57, 0.0  ;;  %v279_v4 = vmax.f32 %v215_v58, 0.0  ;;  %v219_v5 = vadd.f32 %v386_v2, %v148_v59  ;;  %341 = vst.msk [vmem:[%s964_s3 + $0x1c0] sm:$0xff] %vm284_vm0, %v276_v60 }
  0x35   :  { %v280_v6 = vmax.f32 %v216_v61, 0.0  ;;  %v281_v7 = vmax.f32 %v217_v62, 0.0  ;;  %v282_v1 = vmax.f32 %v218_v63, 0.0  ;;  %342 = vst.msk [vmem:[%s964_s3 + $0x1c8] sm:$0xff] %vm284_vm0, %v277_v0 }
  0x36   :  { %343 = vst.msk [vmem:[%s964_s3 + $0x1d0] sm:$0xff] %vm284_vm0, %v278_v3  ;;  %344 = vst.msk [vmem:[%s964_s3 + $0x1d8] sm:$0xff] %vm284_vm0, %v279_v4  ;;  %v283_v2 = vmax.f32 %v219_v5, 0.0 }
  0x37   :  { %345 = vst.msk [vmem:[%s964_s3 + $0x1e0] sm:$0xff] %vm284_vm0, %v280_v6  ;;  %346 = vst.msk [vmem:[%s964_s3 + $0x1e8] sm:$0xff] %vm284_vm0, %v281_v7 }
  0x38   :  { %347 = vst.msk [vmem:[%s964_s3 + $0x1f0] sm:$0xff] %vm284_vm0, %v282_v1  ;;  %348 = vst.msk [vmem:[%s964_s3 + $0x1f8] sm:$0xff] %vm284_vm0, %v283_v2 }

// kernel: unit_forward.7
= control target key start
LH: loop header
LB: loop body
LE: loop exit
PB: predicated region body
PF: predicated region fallthrough
CT: control target
= control target key end

     0   :  { %vm416_vm0 = vcmask 261120   ;;  %s1152_s0 = inlined_call_operand.vmem [shape: f32[512,32], index: 0, kind: input, shape index: {}]   ;;  %s1153_s1 = inlined_call_operand.vmem [shape: f32[512,32], index: 1, kind: input, shape index: {}]   ;;  %s1154_s2 = inlined_call_operand.vmem [shape: f32[1,32], index: 2, kind: input, shape index: {}]   ;;  %s1155_s3 = inlined_call_operand.vmem [shape: f32[1,32], index: 3, kind: input, shape index: {}]   ;;  %s1156_s4 = inlined_call_operand.hbm [shape: f32[512,32], index: 4, kind: output, shape index: {}]  }
   0x1   :  { %v18_v0 = vld [vmem:[%s1152_s0] sm:$0xff]  ;;  %v19_v4 = vld [vmem:[%s1152_s0 + $0x8] sm:$0xff]  ;;  %v20_v7 = vld [vmem:[%s1152_s0 + $0x10] sm:$0xff] }
   0x2   :  { %v560_v1 = vld [vmem:[%s1154_s2] ss:$0 sm:$0xff]  ;;  %v21_v8 = vld [vmem:[%s1152_s0 + $0x18] sm:$0xff]  ;;  %v225_v10 = vld [vmem:[%s1153_s1 + $0x8] sm:$0xff] }
   0x3   :  { %v565_v2 = vld [vmem:[%s1155_s3] ss:$0 sm:$0xff]  ;;  %v89_v3 = vmul.f32 %v560_v1, %v18_v0  ;;  %v90_v6 = vmul.f32 %v560_v1, %v19_v4  ;;  %v91_v11 = vmul.f32 %v560_v1, %v20_v7  ;;  %v226_v12 = vld [vmem:[%s1153_s1 + $0x10] sm:$0xff]  ;;  %v92_v13 = vmul.f32 %v560_v1, %v21_v8  ;;  %v227_v16 = vld [vmem:[%s1153_s1 + $0x18] sm:$0xff] }
   0x4   :  { %v224_v5 = vld [vmem:[%s1153_s1] sm:$0xff]  ;;  %v23_v18 = vld [vmem:[%s1152_s0 + $0x28] sm:$0xff]  ;;  %v24_v19 = vld [vmem:[%s1152_s0 + $0x30] sm:$0xff] }
   0x5   :  { %v160_v9 = vadd.f32 %v565_v2, %v89_v3  ;;  %v22_v14 = vld [vmem:[%s1152_s0 + $0x20] sm:$0xff]  ;;  %v161_v15 = vadd.f32 %v565_v2, %v90_v6  ;;  %v162_v21 = vadd.f32 %v565_v2, %v91_v11  ;;  %v163_v22 = vadd.f32 %v565_v2, %v92_v13  ;;  %v25_v25 = vld [vmem:[%s1152_s0 + $0x38] sm:$0xff]  ;;  %v229_v28 = vld [vmem:[%s1153_s1 + $0x28] sm:$0xff] }
   0x6   :  { %v93_v17 = vmul.f32 %v560_v1, %v22_v14  ;;  %v228_v23 = vld [vmem:[%s1153_s1 + $0x20] sm:$0xff]  ;;  %v94_v24 = vmul.f32 %v560_v1, %v23_v18  ;;  %v95_v29 = vmul.f32 %v560_v1, %v24_v19  ;;  %v96_v30 = vmul.f32 %v560_v1, %v25_v25  ;;  %v230_v36 = vld [vmem:[%s1153_s1 + $0x30] sm:$0xff]  ;;  %v231_v37 = vld [vmem:[%s1153_s1 + $0x38] sm:$0xff] }
   0x7   :  { %v288_v20 = vadd.f32 %v224_v5, %v160_v9  ;;  %v289_v26 = vadd.f32 %v225_v10, %v161_v15  ;;  %v26_v31 = vld [vmem:[%s1152_s0 + $0x40] sm:$0xff]  ;;  %v290_v33 = vadd.f32 %v226_v12, %v162_v21  ;;  %v291_v34 = vadd.f32 %v227_v16, %v163_v22  ;;  %v27_v38 = vld [vmem:[%s1152_s0 + $0x48] sm:$0xff]  ;;  %v28_v43 = vld [vmem:[%s1152_s0 + $0x50] sm:$0xff] }
   0x8   :  { %v164_v27 = vadd.f32 %v565_v2, %v93_v17  ;;  %v165_v35 = vadd.f32 %v565_v2, %v94_v24  ;;  %v166_v41 = vadd.f32 %v565_v2, %v95_v29  ;;  %v167_v42 = vadd.f32 %v565_v2, %v96_v30  ;;  %v29_v44 = vld [vmem:[%s1152_s0 + $0x58] sm:$0xff]  ;;  %v30_v49 = vld [vmem:[%s1152_s0 + $0x60] sm:$0xff]  ;;  %v31_v55 = vld [vmem:[%s1152_s0 + $0x68] sm:$0xff] }
   0x9   :  { %v352_v32 = vmax.f32 %v288_v20, 0.0  ;;  %v353_v39 = vmax.f32 %v289_v26, 0.0  ;;  %v354_v45 = vmax.f32 %v290_v33, 0.0  ;;  %v355_v46 = vmax.f32 %v291_v34, 0.0  ;;  %v232_v53 = vld [vmem:[%s1153_s1 + $0x40] sm:$0xff]  ;;  %v233_v58 = vld [vmem:[%s1153_s1 + $0x48] sm:$0xff] }
   0xa   :  { %v292_v40 = vadd.f32 %v228_v23, %v164_v27  ;;  %v293_v47 = vadd.f32 %v229_v28, %v165_v35  ;;  %v97_v48 = vmul.f32 %v560_v1, %v26_v31  ;;  %v294_v51 = vadd.f32 %v230_v36, %v166_v41  ;;  %v32_v61 = vld [vmem:[%s1152_s0 + $0x70] sm:$0xff]  ;;  %v33_v62 = vld [vmem:[%s1152_s0 + $0x78] sm:$0xff]  ;;  %v236_v10 = vld [vmem:[%s1153_s1 + $0x60] sm:$0xff] }
   0xb   :  { %417 = vst.msk [vmem:[#allocation2] sm:$0xff] %vm416_vm0, %v352_v32  ;;  %418 = vst.msk [vmem:[#allocation2 + $0x8] sm:$0xff] %vm416_vm0, %v353_v39  ;;  %v295_v52 = vadd.f32 %v231_v37, %v167_v42  ;;  %v98_v54 = vmul.f32 %v560_v1, %v27_v38  ;;  %v99_v59 = vmul.f32 %v560_v1, %v28_v43  ;;  %v234_v4 = vld [vmem:[%s1153_s1 + $0x50] sm:$0xff]  ;;  %v235_v5 = vld [vmem:[%s1153_s1 + $0x58] sm:$0xff] }
   0xc   :  { %v356_v50 = vmax.f32 %v292_v40, 0.0  ;;  %419 = vst.msk [vmem:[#allocation2 + $0x10] sm:$0xff] %vm416_vm0, %v354_v45  ;;  %420 = vst.msk [vmem:[#allocation2 + $0x18] sm:$0xff] %vm416_vm0, %v355_v46  ;;  %v357_v56 = vmax.f32 %v293_v47, 0.0  ;;  %v168_v57 = vadd.f32 %v565_v2, %v97_v48  ;;  %v100_v60 = vmul.f32 %v560_v1, %v29_v44  ;;  %v237_v14 = vld [vmem:[%s1153_s1 + $0x68] sm:$0xff]  ;;  %v34_v17 = vld [vmem:[%s1152_s0 + $0x80] sm:$0xff] }
   0xd   :  { %v358_v63 = vmax.f32 %v294_v51, 0.0  ;;  %v359_v0 = vmax.f32 %v295_v52, 0.0  ;;  %v169_v3 = vadd.f32 %v565_v2, %v98_v54  ;;  %v101_v6 = vmul.f32 %v560_v1, %v30_v49  ;;  %v238_v22 = vld [vmem:[%s1153_s1 + $0x70] sm:$0xff]  ;;  %v239_v23 = vld [vmem:[%s1153_s1 + $0x78] sm:$0xff]  ;;  %v35_v24 = vld [vmem:[%s1152_s0 + $0x88] sm:$0xff] }
   0xe   :  { %421 = vst.msk [vmem:[#allocation2 + $0x20] sm:$0xff] %vm416_vm0, %v356_v50  ;;  %422 = vst.msk [vmem:[#allocation2 + $0x28] sm:$0xff] %vm416_vm0, %v357_v56  ;;  %v296_v7 = vadd.f32 %v232_v53, %v168_v57  ;;  %v170_v8 = vadd.f32 %v565_v2, %v99_v59  ;;  %v171_v9 = vadd.f32 %v565_v2, %v100_v60  ;;  %v36_v29 = vld [vmem:[%s1152_s0 + $0x90] sm:$0xff]  ;;  %v37_v30 = vld [vmem:[%s1152_s0 + $0x98] sm:$0xff] }
   0xf   :  { %v102_v11 = vmul.f32 %v560_v1, %v31_v55  ;;  %423 = vst.msk [vmem:[#allocation2 + $0x30] sm:$0xff] %vm416_vm0, %v358_v63  ;;  %424 = vst.msk [vmem:[#allocation2 + $0x38] sm:$0xff] %vm416_vm0, %v359_v0  ;;  %v297_v12 = vadd.f32 %v233_v58, %v169_v3  ;;  %v172_v13 = vadd.f32 %v565_v2, %v101_v6  ;;  %v38_v35 = vld [vmem:[%s1152_s0 + $0xa0] sm:$0xff]  ;;  %v39_v41 = vld [vmem:[%s1152_s0 + $0xa8] sm:$0xff] }
  0x10   :  { %v103_v15 = vmul.f32 %v560_v1, %v32_v61  ;;  %v104_v16 = vmul.f32 %v560_v1, %v33_v62  ;;  %v360_v18 = vmax.f32 %v296_v7, 0.0  ;;  %v298_v19 = vadd.f32 %v234_v4, %v170_v8  ;;  %v240_v39 = vld [vmem:[%s1153_s1 + $0x80] sm:$0xff]  ;;  %v241_v44 = vld [vmem:[%s1153_s1 + $0x88] sm:$0xff]  ;;  %v40_v47 = vld [vmem:[%s1152_s0 + $0xb0] sm:$0xff] }
  0x11   :  { %v299_v20 = vadd.f32 %v235_v5, %v171_v9  ;;  %v173_v21 = vadd.f32 %v565_v2, %v102_v11  ;;  %v361_v25 = vmax.f32 %v297_v12, 0.0  ;;  %v300_v26 = vadd.f32 %v236_v10, %v172_v13  ;;  %v41_v48 = vld [vmem:[%s1152_s0 + $0xb8] sm:$0xff]  ;;  %v242_v52 = vld [vmem:[%s1153_s1 + $0x90] sm:$0xff]  ;;  %v244_v58 = vld [vmem:[%s1153_s1 + $0xa0] sm:$0xff] }
  0x12   :  { %v174_v27 = vadd.f32 %v565_v2, %v103_v15  ;;  %v175_v28 = vadd.f32 %v565_v2, %v104_v16  ;;  %425 = vst.msk [vmem:[#allocation2 + $0x40] sm:$0xff] %vm416_vm0, %v360_v18  ;;  %v362_v31 = vmax.f32 %v298_v19, 0.0  ;;  %v105_v34 = vmul.f32 %v560_v1, %v34_v17  ;;  %v243_v53 = vld [vmem:[%s1153_s1 + $0x98] sm:$0xff]  ;;  %v245_v62 = vld [vmem:[%s1153_s1 + $0xa8] sm:$0xff]  ;;  %v42_v3 = vld [vmem:[%s1152_s0 + $0xc0] sm:$0xff] }
  0x13   :  { %v363_v32 = vmax.f32 %v299_v20, 0.0  ;;  %v301_v33 = vadd.f32 %v237_v14, %v173_v21  ;;  %426 = vst.msk [vmem:[#allocation2 + $0x48] sm:$0xff] %vm416_vm0, %v361_v25  ;;  %v364_v36 = vmax.f32 %v300_v26, 0.0  ;;  %v106_v40 = vmul.f32 %v560_v1, %v35_v24  ;;  %v246_v8 = vld [vmem:[%s1153_s1 + $0xb0] sm:$0xff]  ;;  %v247_v9 = vld [vmem:[%s1153_s1 + $0xb8] sm:$0xff]  ;;  %v43_v10 = vld [vmem:[%s1152_s0 + $0xc8] sm:$0xff] }
  0x14   :  { %v302_v37 = vadd.f32 %v238_v22, %v174_v27  ;;  %v303_v38 = vadd.f32 %v239_v23, %v175_v28  ;;  %427 = vst.msk [vmem:[#allocation2 + $0x50] sm:$0xff] %vm416_vm0, %v362_v31  ;;  %v176_v43 = vadd.f32 %v565_v2, %v105_v34  ;;  %v107_v45 = vmul.f32 %v560_v1, %v36_v29  ;;  %v44_v15 = vld [vmem:[%s1152_s0 + $0xd0] sm:$0xff]  ;;  %v45_v16 = vld [vmem:[%s1152_s0 + $0xd8] sm:$0xff]  ;;  %v46_v21 = vld [vmem:[%s1152_s0 + $0xe0] sm:$0xff] }
  0x15   :  { %428 = vst.msk [vmem:[#allocation2 + $0x58] sm:$0xff] %vm416_vm0, %v363_v32  ;;  %v365_v42 = vmax.f32 %v301_v33, 0.0  ;;  %v108_v46 = vmul.f32 %v560_v1, %v37_v30  ;;  %429 = vst.msk [vmem:[#allocation2 + $0x60] sm:$0xff] %vm416_vm0, %v364_v36  ;;  %v177_v51 = vadd.f32 %v565_v2, %v106_v40  ;;  %v109_v54 = vmul.f32 %v560_v1, %v38_v35  ;;  %v248_v25 = vld [vmem:[%s1153_s1 + $0xc0] sm:$0xff]  ;;  %v47_v27 = vld [vmem:[%s1152_s0 + $0xe8] sm:$0xff] }
  0x16   :  { %v366_v49 = vmax.f32 %v302_v37, 0.0  ;;  %v367_v50 = vmax.f32 %v303_v38, 0.0  ;;  %v304_v55 = vadd.f32 %v240_v39, %v176_v43  ;;  %v178_v56 = vadd.f32 %v565_v2, %v107_v45  ;;  %v249_v30 = vld [vmem:[%s1153_s1 + $0xc8] sm:$0xff]  ;;  %v48_v33 = vld [vmem:[%s1152_s0 + $0xf0] sm:$0xff]  ;;  %v49_v34 = vld [vmem:[%s1152_s0 + $0xf8] sm:$0xff] }
  0x17   :  { %430 = vst.msk [vmem:[#allocation2 + $0x68] sm:$0xff] %vm416_vm0, %v365_v42  ;;  %v179_v57 = vadd.f32 %v565_v2, %v108_v46  ;;  %v110_v59 = vmul.f32 %v560_v1, %v39_v41  ;;  %v305_v60 = vadd.f32 %v241_v44, %v177_v51  ;;  %v180_v61 = vadd.f32 %v565_v2, %v109_v54  ;;  %v250_v38 = vld [vmem:[%s1153_s1 + $0xd0] sm:$0xff]  ;;  %v251_v39 = vld [vmem:[%s1153_s1 + $0xd8] sm:$0xff]  ;;  %v252_v44 = vld [vmem:[%s1153_s1 + $0xe0] sm:$0xff] }
  0x18   :  { %431 = vst.msk [vmem:[#allocation2 + $0x70] sm:$0xff] %vm416_vm0, %v366_v49  ;;  %432 = vst.msk [vmem:[#allocation2 + $0x78] sm:$0xff] %vm416_vm0, %v367_v50  ;;  %v111_v63 = vmul.f32 %v560_v1, %v40_v47  ;;  %v112_v0 = vmul.f32 %v560_v1, %v41_v48  ;;  %v368_v4 = vmax.f32 %v304_v55, 0.0  ;;  %v306_v5 = vadd.f32 %v242_v52, %v178_v56  ;;  %v253_v48 = vld [vmem:[%s1153_s1 + $0xe8] sm:$0xff]  ;;  %v50_v51 = vld [vmem:[%s1152_s0 + $0x100] sm:$0xff] }
  0x19   :  { %v307_v6 = vadd.f32 %v243_v53, %v179_v57  ;;  %v181_v7 = vadd.f32 %v565_v2, %v110_v59  ;;  %v369_v11 = vmax.f32 %v305_v60, 0.0  ;;  %v308_v12 = vadd.f32 %v244_v58, %v180_v61  ;;  %v254_v56 = vld [vmem:[%s1153_s1 + $0xf0] sm:$0xff]  ;;  %v255_v57 = vld [vmem:[%s1153_s1 + $0xf8] sm:$0xff]  ;;  %v51_v58 = vld [vmem:[%s1152_s0 + $0x108] sm:$0xff] }
  0x1a   :  { %v182_v13 = vadd.f32 %v565_v2, %v111_v63  ;;  %v183_v14 = vadd.f32 %v565_v2, %v112_v0  ;;  %433 = vst.msk [vmem:[#allocation2 + $0x80] sm:$0xff] %vm416_vm0, %v368_v4  ;;  %v370_v17 = vmax.f32 %v306_v5, 0.0  ;;  %v113_v20 = vmul.f32 %v560_v1, %v42_v3  ;;  %v52_v63 = vld [vmem:[%s1152_s0 + $0x110] sm:$0xff]  ;;  %v53_v0 = vld [vmem:[%s1152_s0 + $0x118] sm:$0xff] }
  0x1b   :  { %v371_v18 = vmax.f32 %v307_v6, 0.0  ;;  %v309_v19 = vadd.f32 %v245_v62, %v181_v7  ;;  %434 = vst.msk [vmem:[#allocation2 + $0x88] sm:$0xff] %vm416_vm0, %v369_v11  ;;  %v372_v22 = vmax.f32 %v308_v12, 0.0  ;;  %v114_v26 = vmul.f32 %v560_v1, %v43_v10  ;;  %v54_v7 = vld [vmem:[%s1152_s0 + $0x120] sm:$0xff] }
  0x1c   :  { %v310_v23 = vadd.f32 %v246_v8, %v182_v13  ;;  %v311_v24 = vadd.f32 %v247_v9, %v183_v14  ;;  %435 = vst.msk [vmem:[#allocation2 + $0x90] sm:$0xff] %vm416_vm0, %v370_v17  ;;  %v184_v29 = vadd.f32 %v565_v2, %v113_v20  ;;  %v115_v31 = vmul.f32 %v560_v1, %v44_v15  ;;  %v256_v11 = vld [vmem:[%s1153_s1 + $0x100] sm:$0xff]  ;;  %v55_v13 = vld [vmem:[%s1152_s0 + $0x128] sm:$0xff]  ;;  %v57_v20 = vld [vmem:[%s1152_s0 + $0x138] sm:$0xff] }
  0x1d   :  { %436 = vst.msk [vmem:[#allocation2 + $0x98] sm:$0xff] %vm416_vm0, %v371_v18  ;;  %v373_v28 = vmax.f32 %v309_v19, 0.0  ;;  %v116_v32 = vmul.f32 %v560_v1, %v45_v16  ;;  %437 = vst.msk [vmem:[#allocation2 + $0xa0] sm:$0xff] %vm416_vm0, %v372_v22  ;;  %v185_v37 = vadd.f32 %v565_v2, %v114_v26  ;;  %v117_v40 = vmul.f32 %v560_v1, %v46_v21  ;;  %v257_v16 = vld [vmem:[%s1153_s1 + $0x108] sm:$0xff]  ;;  %v56_v19 = vld [vmem:[%s1152_s0 + $0x130] sm:$0xff] }
  0x1e   :  { %v374_v35 = vmax.f32 %v310_v23, 0.0  ;;  %v375_v36 = vmax.f32 %v311_v24, 0.0  ;;  %v312_v41 = vadd.f32 %v248_v25, %v184_v29  ;;  %v186_v42 = vadd.f32 %v565_v2, %v115_v31  ;;  %v258_v24 = vld [vmem:[%s1153_s1 + $0x110] sm:$0xff]  ;;  %v259_v25 = vld [vmem:[%s1153_s1 + $0x118] sm:$0xff] }
  0x1f   :  { %438 = vst.msk [vmem:[#allocation2 + $0xa8] sm:$0xff] %vm416_vm0, %v373_v28  ;;  %v187_v43 = vadd.f32 %v565_v2, %v116_v32  ;;  %v118_v45 = vmul.f32 %v560_v1, %v47_v27  ;;  %v313_v46 = vadd.f32 %v249_v30, %v185_v37  ;;  %v188_v47 = vadd.f32 %v565_v2, %v117_v40  ;;  %v260_v30 = vld [vmem:[%s1153_s1 + $0x120] sm:$0xff] }
  0x20   :  { %439 = vst.msk [vmem:[#allocation2 + $0xb0] sm:$0xff] %vm416_vm0, %v374_v35  ;;  %440 = vst.msk [vmem:[#allocation2 + $0xb8] sm:$0xff] %vm416_vm0, %v375_v36  ;;  %v119_v49 = vmul.f32 %v560_v1, %v48_v33  ;;  %v120_v50 = vmul.f32 %v560_v1, %v49_v34  ;;  %v376_v52 = vmax.f32 %v312_v41, 0.0  ;;  %v314_v53 = vadd.f32 %v250_v38, %v186_v42  ;;  %v261_v34 = vld [vmem:[%s1153_s1 + $0x128] sm:$0xff]  ;;  %v58_v37 = vld [vmem:[%s1152_s0 + $0x140] sm:$0xff] }
  0x21   :  { %v315_v54 = vadd.f32 %v251_v39, %v187_v43  ;;  %v189_v55 = vadd.f32 %v565_v2, %v118_v45  ;;  %v377_v59 = vmax.f32 %v313_v46, 0.0  ;;  %v316_v60 = vadd.f32 %v252_v44, %v188_v47  ;;  %v262_v42 = vld [vmem:[%s1153_s1 + $0x130] sm:$0xff]  ;;  %v263_v43 = vld [vmem:[%s1153_s1 + $0x138] sm:$0xff]  ;;  %v59_v44 = vld [vmem:[%s1152_s0 + $0x148] sm:$0xff] }
  0x22   :  { %v190_v61 = vadd.f32 %v565_v2, %v119_v49  ;;  %v191_v62 = vadd.f32 %v565_v2, %v120_v50  ;;  %441 = vst.msk [vmem:[#allocation2 + $0xc0] sm:$0xff] %vm416_vm0, %v376_v52  ;;  %v378_v3 = vmax.f32 %v314_v53, 0.0  ;;  %v121_v6 = vmul.f32 %v560_v1, %v50_v51  ;;  %v60_v49 = vld [vmem:[%s1152_s0 + $0x150] sm:$0xff]  ;;  %v61_v50 = vld [vmem:[%s1152_s0 + $0x158] sm:$0xff] }
  0x23   :  { %v379_v4 = vmax.f32 %v315_v54, 0.0  ;;  %v317_v5 = vadd.f32 %v253_v48, %v189_v55  ;;  %442 = vst.msk [vmem:[#allocation2 + $0xc8] sm:$0xff] %vm416_vm0, %v377_v59  ;;  %v380_v8 = vmax.f32 %v316_v60, 0.0  ;;  %v122_v12 = vmul.f32 %v560_v1, %v51_v58  ;;  %v62_v55 = vld [vmem:[%s1152_s0 + $0x160] sm:$0xff] }
  0x24   :  { %v318_v9 = vadd.f32 %v254_v56, %v190_v61  ;;  %v319_v10 = vadd.f32 %v255_v57, %v191_v62  ;;  %443 = vst.msk [vmem:[#allocation2 + $0xd0] sm:$0xff] %vm416_vm0, %v378_v3  ;;  %v192_v15 = vadd.f32 %v565_v2, %v121_v6  ;;  %v123_v17 = vmul.f32 %v560_v1, %v52_v63  ;;  %v264_v59 = vld [vmem:[%s1153_s1 + $0x140] sm:$0xff]  ;;  %v265_v61 = vld [vmem:[%s1153_s1 + $0x148] sm:$0xff]  ;;  %v65_v6 = vld [vmem:[%s1152_s0 + $0x178] sm:$0xff] }
  0x25   :  { %444 = vst.msk [vmem:[#allocation2 + $0xd8] sm:$0xff] %vm416_vm0, %v379_v4  ;;  %v381_v14 = vmax.f32 %v317_v5, 0.0  ;;  %v124_v18 = vmul.f32 %v560_v1, %v53_v0  ;;  %445 = vst.msk [vmem:[#allocation2 + $0xe0] sm:$0xff] %vm416_vm0, %v380_v8  ;;  %v193_v23 = vadd.f32 %v565_v2, %v122_v12  ;;  %v125_v26 = vmul.f32 %v560_v1, %v54_v7  ;;  %v63_v62 = vld [vmem:[%s1152_s0 + $0x168] sm:$0xff]  ;;  %v64_v5 = vld [vmem:[%s1152_s0 + $0x170] sm:$0xff] }
  0x26   :  { %v382_v21 = vmax.f32 %v318_v9, 0.0  ;;  %v383_v22 = vmax.f32 %v319_v10, 0.0  ;;  %v320_v27 = vadd.f32 %v256_v11, %v192_v15  ;;  %v194_v28 = vadd.f32 %v565_v2, %v123_v17 }
  0x27   :  { %446 = vst.msk [vmem:[#allocation2 + $0xe8] sm:$0xff] %vm416_vm0, %v381_v14  ;;  %v195_v29 = vadd.f32 %v565_v2, %v124_v18  ;;  %v126_v31 = vmul.f32 %v560_v1, %v55_v13  ;;  %v321_v32 = vadd.f32 %v257_v16, %v193_v23  ;;  %v196_v33 = vadd.f32 %v565_v2, %v125_v26 }
  0x28   :  { %447 = vst.msk [vmem:[#allocation2 + $0xf0] sm:$0xff] %vm416_vm0, %v382_v21  ;;  %448 = vst.msk [vmem:[#allocation2 + $0xf8] sm:$0xff] %vm416_vm0, %v383_v22  ;;  %v127_v35 = vmul.f32 %v560_v1, %v56_v19  ;;  %v128_v36 = vmul.f32 %v560_v1, %v57_v20  ;;  %v384_v38 = vmax.f32 %v320_v27, 0.0  ;;  %v322_v39 = vadd.f32 %v258_v24, %v194_v28 }
  0x29   :  { %v323_v40 = vadd.f32 %v259_v25, %v195_v29  ;;  %v197_v41 = vadd.f32 %v565_v2, %v126_v31  ;;  %v385_v45 = vmax.f32 %v321_v32, 0.0  ;;  %v324_v46 = vadd.f32 %v260_v30, %v196_v33 }
  0x2a   :  { %v198_v47 = vadd.f32 %v565_v2, %v127_v35  ;;  %v199_v48 = vadd.f32 %v565_v2, %v128_v36  ;;  %449 = vst.msk [vmem:[#allocation2 + $0x100] sm:$0xff] %vm416_vm0, %v384_v38  ;;  %v386_v51 = vmax.f32 %v322_v39, 0.0  ;;  %v129_v54 = vmul.f32 %v560_v1, %v58_v37 }
  0x2b   :  { %v387_v52 = vmax.f32 %v323_v40, 0.0  ;;  %v325_v53 = vadd.f32 %v261_v34, %v197_v41  ;;  %450 = vst.msk [vmem:[#allocation2 + $0x108] sm:$0xff] %vm416_vm0, %v385_v45  ;;  %v388_v56 = vmax.f32 %v324_v46, 0.0  ;;  %v130_v60 = vmul.f32 %v560_v1, %v59_v44 }
  0x2c   :  { %v326_v57 = vadd.f32 %v262_v42, %v198_v47  ;;  %v327_v58 = vadd.f32 %v263_v43, %v199_v48  ;;  %451 = vst.msk [vmem:[#allocation2 + $0x110] sm:$0xff] %vm416_vm0, %v386_v51  ;;  %v200_v0 = vadd.f32 %v565_v2, %v129_v54  ;;  %v131_v3 = vmul.f32 %v560_v1, %v60_v49 }
  0x2d   :  { %452 = vst.msk [vmem:[#allocation2 + $0x118] sm:$0xff] %vm416_vm0, %v387_v52  ;;  %v389_v63 = vmax.f32 %v325_v53, 0.0  ;;  %v132_v4 = vmul.f32 %v560_v1, %v61_v50 }
  0x2e   :  { %9 = vsyncpa [#allocation3], 0  ;;  %453 = vst.msk [vmem:[#allocation2 + $0x120] sm:$0xff] %vm416_vm0, %v388_v56  ;;  %v390_v7 = vmax.f32 %v326_v57, 0.0  ;;  %v391_v8 = vmax.f32 %v327_v58, 0.0  ;;  %v201_v9 = vadd.f32 %v565_v2, %v130_v60  ;;  %v266_v10 = vld [vmem:[%s1153_s1 + $0x150] sm:$0xff]  ;;  %v133_v12 = vmul.f32 %v560_v1, %v62_v55 }
  0x2f   :  { %v267_v11 = vld [vmem:[%s1153_s1 + $0x158] sm:$0xff]  ;;  %454 = vst.msk [vmem:[#allocation2 + $0x128] sm:$0xff] %vm416_vm0, %v389_v63  ;;  %v328_v13 = vadd.f32 %v264_v59, %v200_v0  ;;  %v202_v14 = vadd.f32 %v565_v2, %v131_v3  ;;  %v203_v15 = vadd.f32 %v565_v2, %v132_v4  ;;  %v268_v16 = vld [vmem:[%s1153_s1 + $0x160] sm:$0xff]  ;;  %v134_v17 = vmul.f32 %v560_v1, %v63_v62  ;;  %v269_v20 = vld [vmem:[%s1153_s1 + $0x168] sm:$0xff]  ;;  %s526_s22 = smov [#allocation2]  }
  0x30   :  { %455 = vst.msk [vmem:[#allocation2 + $0x130] sm:$0xff] %vm416_vm0, %v390_v7  ;;  %456 = vst.msk [vmem:[#allocation2 + $0x138] sm:$0xff] %vm416_vm0, %v391_v8  ;;  %v329_v18 = vadd.f32 %v265_v61, %v201_v9  ;;  %v204_v19 = vadd.f32 %v565_v2, %v133_v12  ;;  %v135_v21 = vmul.f32 %v560_v1, %v64_v5  ;;  %v66_v23 = vld [vmem:[%s1152_s0 + $0x180] sm:$0xff]  ;;  %v270_v28 = vld [vmem:[%s1153_s1 + $0x170] sm:$0xff]  ;;  %s486_s23 = sshll.u32 %s526_s22, 4  ;;  %s487_s23 = int_to_ptr.vmem [resolvable:$true] %s486_s23 }
  0x31   :  { %v136_v22 = vmul.f32 %v560_v1, %v65_v6  ;;  %v392_v24 = vmax.f32 %v328_v13, 0.0  ;;  %v330_v25 = vadd.f32 %v266_v10, %v202_v14  ;;  %v331_v26 = vadd.f32 %v267_v11, %v203_v15  ;;  %v271_v29 = vld [vmem:[%s1153_s1 + $0x178] sm:$0xff]  ;;  %v67_v30 = vld [vmem:[%s1152_s0 + $0x188] sm:$0xff]  ;;  %v68_v35 = vld [vmem:[%s1152_s0 + $0x190] sm:$0xff]  ;;  %p507_p1 = scmp.lt.s32.totalorder %s487_s23, %s487_s23 }
  0x32   :  { %v205_v27 = vadd.f32 %v565_v2, %v134_v17  ;;  %v393_v31 = vmax.f32 %v329_v18, 0.0  ;;  %v332_v32 = vadd.f32 %v268_v16, %v204_v19  ;;  %v206_v33 = vadd.f32 %v565_v2, %v135_v21  ;;  %v69_v36 = vld [vmem:[%s1152_s0 + $0x198] sm:$0xff]  ;;  %v70_v41 = vld [vmem:[%s1152_s0 + $0x1a0] sm:$0xff]  ;;  %v71_v47 = vld [vmem:[%s1152_s0 + $0x1a8] sm:$0xff] }
  0x33   :  { %v207_v34 = vadd.f32 %v565_v2, %v136_v22  ;;  %457 = vst.msk [vmem:[#allocation2 + $0x140] sm:$0xff] %vm416_vm0, %v392_v24  ;;  %v394_v37 = vmax.f32 %v330_v25, 0.0  ;;  %v395_v38 = vmax.f32 %v331_v26, 0.0  ;;  %v137_v40 = vmul.f32 %v560_v1, %v66_v23  ;;  %v272_v45 = vld [vmem:[%s1153_s1 + $0x180] sm:$0xff]  ;;  %v273_v50 = vld [vmem:[%s1153_s1 + $0x188] sm:$0xff]  ;;  %v72_v53 = vld [vmem:[%s1152_s0 + $0x1b0] sm:$0xff] }
  0x34   :  { %v333_v39 = vadd.f32 %v269_v20, %v205_v27  ;;  %458 = vst.msk [vmem:[#allocation2 + $0x148] sm:$0xff] %vm416_vm0, %v393_v31  ;;  %v396_v42 = vmax.f32 %v332_v32, 0.0  ;;  %v334_v43 = vadd.f32 %v270_v28, %v206_v33  ;;  %v138_v46 = vmul.f32 %v560_v1, %v67_v30  ;;  %v73_v54 = vld [vmem:[%s1152_s0 + $0x1b8] sm:$0xff]  ;;  %v274_v58 = vld [vmem:[%s1153_s1 + $0x190] sm:$0xff]  ;;  %v276_v0 = vld [vmem:[%s1153_s1 + $0x1a0] sm:$0xff] }
  0x35   :  { %v335_v44 = vadd.f32 %v271_v29, %v207_v34  ;;  %459 = vst.msk [vmem:[#allocation2 + $0x150] sm:$0xff] %vm416_vm0, %v394_v37  ;;  %460 = vst.msk [vmem:[#allocation2 + $0x158] sm:$0xff] %vm416_vm0, %v395_v38  ;;  %v208_v49 = vadd.f32 %v565_v2, %v137_v40  ;;  %v139_v51 = vmul.f32 %v560_v1, %v68_v35  ;;  %v275_v59 = vld [vmem:[%s1153_s1 + $0x198] sm:$0xff]  ;;  %v277_v6 = vld [vmem:[%s1153_s1 + $0x1a8] sm:$0xff] }
  0x36   :  { %v397_v48 = vmax.f32 %v333_v39, 0.0  ;;  %v140_v52 = vmul.f32 %v560_v1, %v69_v36  ;;  %461 = vst.msk [vmem:[#allocation2 + $0x160] sm:$0xff] %vm416_vm0, %v396_v42  ;;  %v398_v55 = vmax.f32 %v334_v43, 0.0  ;;  %v209_v57 = vadd.f32 %v565_v2, %v138_v46  ;;  %v74_v9 = vld [vmem:[%s1152_s0 + $0x1c0] sm:$0xff]  ;;  %v278_v14 = vld [vmem:[%s1153_s1 + $0x1b0] sm:$0xff]  ;;  %v279_v15 = vld [vmem:[%s1153_s1 + $0x1b8] sm:$0xff] }
  0x37   :  { %v399_v56 = vmax.f32 %v335_v44, 0.0  ;;  %v141_v60 = vmul.f32 %v560_v1, %v70_v41  ;;  %v336_v61 = vadd.f32 %v272_v45, %v208_v49  ;;  %v210_v62 = vadd.f32 %v565_v2, %v139_v51  ;;  %v75_v16 = vld [vmem:[%s1152_s0 + $0x1c8] sm:$0xff]  ;;  %v76_v21 = vld [vmem:[%s1152_s0 + $0x1d0] sm:$0xff]  ;;  %v77_v22 = vld [vmem:[%s1152_s0 + $0x1d8] sm:$0xff] }
  0x38   :  { %462 = vst.msk [vmem:[#allocation2 + $0x168] sm:$0xff] %vm416_vm0, %v397_v48  ;;  %v211_v63 = vadd.f32 %v565_v2, %v140_v52  ;;  %v142_v3 = vmul.f32 %v560_v1, %v71_v47  ;;  %463 = vst.msk [vmem:[#allocation2 + $0x170] sm:$0xff] %vm416_vm0, %v398_v55  ;;  %v337_v4 = vadd.f32 %v273_v50, %v209_v57  ;;  %v78_v27 = vld [vmem:[%s1152_s0 + $0x1e0] sm:$0xff]  ;;  %v79_v33 = vld [vmem:[%s1152_s0 + $0x1e8] sm:$0xff] }
  0x39   :  { %464 = vst.msk [vmem:[#allocation2 + $0x178] sm:$0xff] %vm416_vm0, %v399_v56  ;;  %v212_v5 = vadd.f32 %v565_v2, %v141_v60  ;;  %v143_v7 = vmul.f32 %v560_v1, %v72_v53  ;;  %v144_v8 = vmul.f32 %v560_v1, %v73_v54  ;;  %v400_v10 = vmax.f32 %v336_v61, 0.0  ;;  %v280_v31 = vld [vmem:[%s1153_s1 + $0x1c0] sm:$0xff]  ;;  %v281_v36 = vld [vmem:[%s1153_s1 + $0x1c8] sm:$0xff]  ;;  %v80_v39 = vld [vmem:[%s1152_s0 + $0x1f0] sm:$0xff] }
  0x3a   :  { %v338_v11 = vadd.f32 %v274_v58, %v210_v62  ;;  %v339_v12 = vadd.f32 %v275_v59, %v211_v63  ;;  %v213_v13 = vadd.f32 %v565_v2, %v142_v3  ;;  %v401_v17 = vmax.f32 %v337_v4, 0.0  ;;  %v81_v40 = vld [vmem:[%s1152_s0 + $0x1f8] sm:$0xff]  ;;  %v282_v44 = vld [vmem:[%s1153_s1 + $0x1d0] sm:$0xff]  ;;  %v284_v50 = vld [vmem:[%s1153_s1 + $0x1e0] sm:$0xff] }
  0x3b   :  { %v340_v18 = vadd.f32 %v276_v0, %v212_v5  ;;  %v214_v19 = vadd.f32 %v565_v2, %v143_v7  ;;  %v215_v20 = vadd.f32 %v565_v2, %v144_v8  ;;  %465 = vst.msk [vmem:[#allocation2 + $0x180] sm:$0xff] %vm416_vm0, %v400_v10  ;;  %v145_v26 = vmul.f32 %v560_v1, %v74_v9  ;;  %v283_v45 = vld [vmem:[%s1153_s1 + $0x1d8] sm:$0xff]  ;;  %v285_v54 = vld [vmem:[%s1153_s1 + $0x1e8] sm:$0xff]  ;;  %v286_v61 = vld [vmem:[%s1153_s1 + $0x1f0] sm:$0xff] }
  0x3c   :  { %v402_v23 = vmax.f32 %v338_v11, 0.0  ;;  %v403_v24 = vmax.f32 %v339_v12, 0.0  ;;  %v341_v25 = vadd.f32 %v277_v6, %v213_v13  ;;  %466 = vst.msk [vmem:[#allocation2 + $0x188] sm:$0xff] %vm416_vm0, %v401_v17  ;;  %v146_v32 = vmul.f32 %v560_v1, %v75_v16  ;;  %v287_v62 = vld [vmem:[%s1153_s1 + $0x1f8] sm:$0xff]  ;;  %s502_s1 = scalar_lea.vmem %s487_s23, 8192 }
  0x3d   :  { %v404_v28 = vmax.f32 %v340_v18, 0.0  ;;  %v342_v29 = vadd.f32 %v278_v14, %v214_v19  ;;  %v343_v30 = vadd.f32 %v279_v15, %v215_v20  ;;  %v216_v35 = vadd.f32 %v565_v2, %v145_v26  ;;  %p503_p0 = scmp.ne.s32.totalorder %s487_s23, %s502_s1  ;;  %p508_p2 = scmp.lt.s32.totalorder %s502_s1, %s502_s1 }
  0x3e   :  { %467 = vst.msk [vmem:[#allocation2 + $0x190] sm:$0xff] %vm416_vm0, %v402_v23  ;;  %468 = vst.msk [vmem:[#allocation2 + $0x198] sm:$0xff] %vm416_vm0, %v403_v24  ;;  %v405_v34 = vmax.f32 %v341_v25, 0.0  ;;  %v147_v37 = vmul.f32 %v560_v1, %v76_v21  ;;  %v148_v38 = vmul.f32 %v560_v1, %v77_v22  ;;  %v217_v43 = vadd.f32 %v565_v2, %v146_v32 }
  0x3f   :  { %469 = vst.msk [vmem:[#allocation2 + $0x1a0] sm:$0xff] %vm416_vm0, %v404_v28  ;;  %v406_v41 = vmax.f32 %v342_v29, 0.0  ;;  %v407_v42 = vmax.f32 %v343_v30, 0.0  ;;  %v149_v46 = vmul.f32 %v560_v1, %v78_v27  ;;  %v344_v47 = vadd.f32 %v280_v31, %v216_v35  ;;  %p509_p3 = por %p508_p2, %p507_p1 }
  0x40   :  { %470 = vst.msk [vmem:[#allocation2 + $0x1a8] sm:$0xff] %vm416_vm0, %v405_v34  ;;  %v218_v48 = vadd.f32 %v565_v2, %v147_v37  ;;  %v219_v49 = vadd.f32 %v565_v2, %v148_v38  ;;  %v150_v51 = vmul.f32 %v560_v1, %v79_v33  ;;  %v345_v52 = vadd.f32 %v281_v36, %v217_v43 }
  0x41   :  { %471 = vst.msk [vmem:[#allocation2 + $0x1b0] sm:$0xff] %vm416_vm0, %v406_v41  ;;  %472 = vst.msk [vmem:[#allocation2 + $0x1b8] sm:$0xff] %vm416_vm0, %v407_v42  ;;  %v220_v53 = vadd.f32 %v565_v2, %v149_v46  ;;  %v151_v55 = vmul.f32 %v560_v1, %v80_v39  ;;  %v152_v56 = vmul.f32 %v560_v1, %v81_v40  ;;  %v408_v57 = vmax.f32 %v344_v47, 0.0  ;;  %p510_p4 = pnand %p509_p3, %p503_p0 }
  0x42   :  { %v346_v58 = vadd.f32 %v282_v44, %v218_v48  ;;  %v347_v59 = vadd.f32 %v283_v45, %v219_v49  ;;  %v221_v60 = vadd.f32 %v565_v2, %v150_v51  ;;  %v409_v63 = vmax.f32 %v345_v52, 0.0 }
  0x43   :  { %v348_v0 = vadd.f32 %v284_v50, %v220_v53  ;;  %v222_v3 = vadd.f32 %v565_v2, %v151_v55  ;;  %v223_v4 = vadd.f32 %v565_v2, %v152_v56  ;;  %473 = vst.msk [vmem:[#allocation2 + $0x1c0] sm:$0xff] %vm416_vm0, %v408_v57 }
  0x44   :  { %v410_v1 = vmax.f32 %v346_v58, 0.0  ;;  %v411_v5 = vmax.f32 %v347_v59, 0.0  ;;  %v349_v6 = vadd.f32 %v285_v54, %v221_v60  ;;  %474 = vst.msk [vmem:[#allocation2 + $0x1c8] sm:$0xff] %vm416_vm0, %v409_v63 }
  0x45   :  { %v412_v7 = vmax.f32 %v348_v0, 0.0  ;;  %v350_v8 = vadd.f32 %v286_v61, %v222_v3  ;;  %v351_v9 = vadd.f32 %v287_v62, %v223_v4 }
  0x46   :  { %475 = vst.msk [vmem:[#allocation2 + $0x1d0] sm:$0xff] %vm416_vm0, %v410_v1  ;;  %476 = vst.msk [vmem:[#allocation2 + $0x1d8] sm:$0xff] %vm416_vm0, %v411_v5  ;;  %v413_v10 = vmax.f32 %v349_v6, 0.0 }
  0x47   :  { %477 = vst.msk [vmem:[#allocation2 + $0x1e0] sm:$0xff] %vm416_vm0, %v412_v7  ;;  %v414_v2 = vmax.f32 %v350_v8, 0.0  ;;  %v415_v11 = vmax.f32 %v351_v9, 0.0 }
  0x48   :  { %478 = vst.msk [vmem:[#allocation2 + $0x1e8] sm:$0xff] %vm416_vm0, %v413_v10 }
  0x49   :  { %479 = vst.msk [vmem:[#allocation2 + $0x1f0] sm:$0xff] %vm416_vm0, %v414_v2  ;;  %480 = vst.msk [vmem:[#allocation2 + $0x1f8] sm:$0xff] %vm416_vm0, %v415_v11 }
  0x4a   :  { %513 = shalt.err (!%p510_p4)
}
  0x4b   :  { %s514_s2 = scalar_lea.hbm %s1156_s4, 8192 }
  0x4c   :  { %p515_p5 = scmp.ne.s32.totalorder %s1156_s4, %s514_s2  ;;  %p518_p6 = scmp.lt.u32.totalorder %s514_s2, %s1156_s4 }
  0x4e   :  { %p520_p7 = pnand %p518_p6, %p515_p5 }
  0x50   :  { %523 = shalt.err (!%p520_p7)
}
  0x51   :  { %s527_s29 = smov 128   ;;  %s528_s30 = smov 8  }
  0x52   :  { %492 = dma.vmem_to_hbm [thread:$0]  %s487_s23, 8192, %s1156_s4, [#allocation3], %s527_s29, %s527_s29, %s528_s30  }
  0x53   :  { %524 = dma.done.wait [#allocation3], 8192  }
  0x54   :  { %525 = vsyncadd [#allocation3], 4294959104 }
  0x55   :  { %496 = vsyncpa [#allocation3], 1 }

// kernel: unit_forward.4
= control target key start
LH: loop header
LB: loop body
LE: loop exit
PB: predicated region body
PF: predicated region fallthrough
CT: control target
= control target key end

     0   :  { %s5676_s15 = smov 0   ;;  %s6858_s0 = inlined_call_operand.vmem [shape: f32[2,18,18,32], index: 0, kind: input, shape index: {}]   ;;  %s6859_s1 = inlined_call_operand.vmem [shape: f32[288,32], index: 1, kind: input, shape index: {}]   ;;  %s6860_s2 = inlined_call_operand.vmem [shape: f32[512,32], index: 2, kind: output, shape index: {0}]   ;;  %s6861_s3 = inlined_call_operand.vmem [shape: f32[16,32], index: 3, kind: output, shape index: {1}]   ;;  %s6862_s4 = inlined_call_operand.vmem [shape: f32[16,32], index: 4, kind: output, shape index: {2}]  }
   0x1 LB: > { %s5682_s16 = sadd.s32 4294967295, %s5649_s15   ;;  %p3986_p0 = scmp.ge.s32.totalorder %s5649_s15, 1  ;;  %s5649_s15 = sphi %s5676_s15, %s15_s15  }
   0x2   : > { %p167_p1 = scmp.lt.s32.totalorder %s5649_s15, 3 }
   0x4   : > { %p168_p2 = pnand %p3986_p0, %p167_p1 }
   0x6   : > { %171 = sbr.rel (%p168_p2) target bundleno = 544 (0x220), region = 28 }
   0xd   : > { %v514_v0 = vld [vmem:[%s6859_s1 + $0x20] sm:$0xff]  ;;  %v515_v1 = vld [vmem:[%s6859_s1 + $0x28] sm:$0xff]  ;;  %p201_p3 = scmp.lt.s32.totalorder %s5682_s16, 1  ;;  %v516_v5 = vld [vmem:[%s6859_s1 + $0x30] sm:$0xff]  ;;  %vm518_vm0 = vcmask 261120   ;;  %s3988_s26 = sshll.u32 %s5682_s16, 5 }
   0xe   : > { %v1875_v2 = vld [vmem:[%s6859_s1 + $0x80] sm:$0xff]  ;;  %v5302_v3 = vpack.c.bf16 %v515_v1, %v514_v0  ;;  %v1876_v4 = vld [vmem:[%s6859_s1 + $0x88] sm:$0xff]  ;;  %v517_v6 = vld [vmem:[%s6859_s1 + $0x38] sm:$0xff]  ;;  %p207_p4 = scmp.lt.s32.totalorder %s3988_s26, 63 }
   0xf   : > { %v5705_v7 = vpack.c.bf16 %v1876_v4, %v1875_v2  ;;  %v5306_v8 = vpack.c.bf16 %v517_v6, %v516_v5  ;;  %v1877_v9 = vld [vmem:[%s6859_s1 + $0x90] sm:$0xff]  ;;  %v1878_v10 = vld [vmem:[%s6859_s1 + $0x98] sm:$0xff]  ;;  %s5714_s7 = scalar_select %p201_p3, %s5682_s16, 1  ;;  %v510_v11 = vld [vmem:[%s6859_s1] sm:$0xff] }
  0x10   : > { %5303 = vmatprep.subr.bf16.mxu1 %v5302_v3  ;;  %v5719_v12 = vpack.c.bf16 %v1878_v10, %v1877_v9  ;;  %v511_v13 = vld [vmem:[%s6859_s1 + $0x8] sm:$0xff]  ;;  %v2232_v14 = vld [vmem:[%s6859_s1 + $0xa0] sm:$0xff]  ;;  %v2234_v18 = vld [vmem:[%s6859_s1 + $0xb0] sm:$0xff]  ;;  %s6987_s26 = smov (!%p207_p4, %s3988_s26), 63 }
  0x11   : > { %v2233_v15 = vld [vmem:[%s6859_s1 + $0xa8] sm:$0xff]  ;;  %5335 = vmatprep.subr.bf16.mxu0 %v5705_v7  ;;  %5305 = vmatpush3.bf16.msra.mxu1 %v5302_v3  ;;  %s5634_s18 = smul.u32 432, %s5714_s7  ;;  %v5310_v16 = vpack.c.bf16 %v511_v13, %v510_v11  ;;  %v2235_v21 = vld [vmem:[%s6859_s1 + $0xb8] sm:$0xff]  ;;  %v512_v23 = vld [vmem:[%s6859_s1 + $0x10] sm:$0xff]  ;;  %s3990_s16 = sshll.u32 %s5714_s7, 3 }
  0x12   : > { %6915 = vst [vmem:[#allocation2_spill] sm:$0xff] %v5719_v12  ;;  %5337 = vmatpush3.bf16.msra.mxu0 %v5705_v7  ;;  %5307 = vmatprep.subr.bf16.mxu1 %v5306_v8  ;;  %v5342_v17 = vpack.c.bf16 %v2233_v15, %v2232_v14  ;;  %v513_v24 = vld [vmem:[%s6859_s1 + $0x18] sm:$0xff]  ;;  %v5346_v26 = vpack.c.bf16 %v2235_v21, %v2234_v18  ;;  %v2589_v29 = vld [vmem:[%s6859_s1 + $0xc0] sm:$0xff]  ;;  %v2590_v30 = vld [vmem:[%s6859_s1 + $0xc8] sm:$0xff]  ;;  %s215_s6 = scalar_lea.vmem %s6861_s3, %s3990_s16  ;;  %s219_s10 = scalar_lea.vmem %s6862_s4, %s3990_s16 }
  0x13   : > { %5339 = vmatprep.subr.bf16.mxu0 %v5719_v12  ;;  %s5737_s21 = scalar_lea.vmem %s6858_s0, %s5634_s18  ;;  %v5314_v28 = vpack.c.bf16 %v513_v24, %v512_v23  ;;  %v1161_v31 = vld [vmem:[%s6859_s1 + $0x40] sm:$0xff]  ;;  %v1162_v32 = vld [vmem:[%s6859_s1 + $0x48] sm:$0xff]  ;;  %v5350_v35 = vpack.c.bf16 %v2590_v30, %v2589_v29  ;;  %v2591_v49 = vld [vmem:[%s6859_s1 + $0xd0] sm:$0xff] }
  0x14   : > { %v252_v19 = vld [vmem:[%s5737_s21 + $0x1] sm:$0xff]  ;;  %v4024_v20 = vld [vmem:[%s5737_s21 + $0x19] sm:$0xff]  ;;  %v253_v22 = vld [vmem:[%s5737_s21 + $0x9] sm:$0xff]  ;;  %v5785_v36 = vpack.c.bf16 %v1162_v32, %v1161_v31 }
  0x15   : > { %5309 = vmatpush3.bf16.msra.mxu1 %v5306_v8  ;;  %4806 = vmatprep.mubr.msk.f32.mxu1 %vm518_vm0, %v252_v19  ;;  %v4025_v25 = vld [vmem:[%s5737_s21 + $0x21] sm:$0xff]  ;;  %v5760_v27 = vld [vmem:[%s5737_s21 + $0x31] sm:$0xff]  ;;  %v5777_v33 = vld [vmem:[%s5737_s21 + $0x39] sm:$0xff] }
  0x16   : > { %5341 = vmatpush3.bf16.msra.mxu0 %v5719_v12  ;;  %5030 = vmatprep.mubr.msk.f32.mxu0 %vm518_vm0, %v4024_v20  ;;  %v5782_v34 = vld [vmem:[%s5737_s21 + $0x49] sm:$0xff]  ;;  %v5794_v37 = vld [vmem:[%s5737_s21 + $0x51] sm:$0xff]  ;;  %v5797_v38 = vld [vmem:[%s5737_s21 + $0x61] sm:$0xff] }
  0x17   : > { %5311 = vmatprep.subr.bf16.mxu1 %v5310_v16  ;;  %5343 = vmatprep.subr.bf16.mxu0 %v5342_v17  ;;  %v5809_v39 = vld [vmem:[%s5737_s21 + $0x69] sm:$0xff]  ;;  %v5812_v40 = vld [vmem:[%s5737_s21 + $0x79] sm:$0xff]  ;;  %v5823_v41 = vld [vmem:[%s5737_s21 + $0x81] sm:$0xff] }
  0x18   : > { %4807 = vmatmul.mubr.msk.f32.vlgmr.msra.gmra.mrb[0].mxu1 %vm518_vm0, %v253_v22  ;;  %v5826_v42 = vld [vmem:[%s5737_s21 + $0x91] sm:$0xff]  ;;  %v5837_v43 = vld [vmem:[%s5737_s21 + $0x99] sm:$0xff]  ;;  %v5840_v44 = vld [vmem:[%s5737_s21 + $0xa9] sm:$0xff] }
  0x19   : > { %5031 = vmatmul.mubr.msk.f32.vlgmr.msra.gmra.mrb[0].mxu0 %vm518_vm0, %v4025_v25  ;;  %5313 = vmatpush3.bf16.msra.mxu1 %v5310_v16  ;;  %v5851_v45 = vld [vmem:[%s5737_s21 + $0xb1] sm:$0xff]  ;;  %v5854_v46 = vld [vmem:[%s5737_s21 + $0xc1] sm:$0xff]  ;;  %v5865_v47 = vld [vmem:[%s5737_s21 + $0xc9] sm:$0xff] }
  0x1a   : > { %5345 = vmatpush3.bf16.msra.mxu0 %v5342_v17  ;;  %4809 = vmatprep.mubr.msk.f32.mxu1 %vm518_vm0, %v4024_v20  ;;  %6916 = vst [vmem:[#allocation3_spill] sm:$0xff] %v5865_v47  ;;  %v5868_v48 = vld [vmem:[%s5737_s21 + $0x1a] sm:$0xff]  ;;  %v5885_v51 = vld [vmem:[%s5737_s21 + $0x22] sm:$0xff]  ;;  %v5891_v53 = vld [vmem:[%s5737_s21 + $0x32] sm:$0xff] }
  0x1b   : > { %5033 = vmatprep.mubr.msk.f32.mxu0 %vm518_vm0, %v5760_v27  ;;  %5347 = vmatprep.subr.bf16.mxu0 %v5346_v26  ;;  %v2592_v50 = vld [vmem:[%s6859_s1 + $0xd8] sm:$0xff]  ;;  %v2946_v55 = vld [vmem:[%s6859_s1 + $0xe0] sm:$0xff]  ;;  %v2947_v56 = vld [vmem:[%s6859_s1 + $0xe8] sm:$0xff] }
  0x1c   : > { %4810 = vmatmul.mubr.msk.f32.gmra.mrb[2].mxu1 %vm518_vm0, %v4025_v25  ;;  %5315 = vmatprep.subr.bf16.mxu1 %v5314_v28  ;;  %v5888_v52 = vld [vmem:[%s5737_s21 + $0xd9] sm:$0xff]  ;;  %v5354_v54 = vpack.c.bf16 %v2592_v50, %v2591_v49  ;;  %v5906_v57 = vld [vmem:[%s5737_s21 + $0xe1] sm:$0xff]  ;;  %v5914_v59 = vld [vmem:[%s5737_s21 + $0xf1] sm:$0xff]  ;;  %v5919_v61 = vpack.c.bf16 %v2947_v56, %v2946_v55 }
  0x1d   : > { %5034 = vmatmul.mubr.msk.f32.gmra.mrb[2].mxu0 %vm518_vm0, %v5777_v33  ;;  %4812 = vmatprep.mubr.msk.f32.mxu1 %vm518_vm0, %v5760_v27  ;;  %6917 = vst [vmem:[#allocation4_spill] sm:$0xff] %v5888_v52  ;;  %6918 = vst [vmem:[#allocation5_spill] sm:$0xff] %v5906_v57  ;;  %v5911_v58 = vld [vmem:[%s5737_s21 + $0x3a] sm:$0xff]  ;;  %v5917_v60 = vld [vmem:[%s5737_s21 + $0x4a] sm:$0xff] }
  0x1e   : > { %5036 = vmatprep.mubr.msk.f32.mxu0 %vm518_vm0, %v5782_v34  ;;  %5349 = vmatpush3.bf16.msra.mxu0 %v5346_v26  ;;  %6919 = vst [vmem:[#allocation6_spill] sm:$0xff] %v5914_v59  ;;  %v5928_v62 = vld [vmem:[%s5737_s21 + $0xf9] sm:$0xff]  ;;  %v5936_v0 = vld [vmem:[%s5737_s21 + $0x109] sm:$0xff]  ;;  %v5949_v2 = vld [vmem:[%s5737_s21 + $0x111] sm:$0xff] }
  0x1f   : > { %5351 = vmatprep.subr.bf16.mxu0 %v5350_v35  ;;  %5317 = vmatpush3.bf16.msra.mxu1 %v5314_v28  ;;  %6920 = vst [vmem:[#allocation7_spill] sm:$0xff] %v5928_v62  ;;  %v5933_v63 = vld [vmem:[%s5737_s21 + $0x52] sm:$0xff]  ;;  %6921 = vst [vmem:[#allocation8_spill] sm:$0xff] %v5936_v0  ;;  %v5939_v1 = vld [vmem:[%s5737_s21 + $0x62] sm:$0xff] }
  0x20   : > { %4813 = vmatmul.mubr.msk.f32.gmra.mrb[4].mxu1 %vm518_vm0, %v5777_v33  ;;  %5319 = vmatprep.subr.bf16.mxu1 %v5785_v36  ;;  %6922 = vst [vmem:[#allocation9_spill] sm:$0xff] %v5949_v2  ;;  %v5954_v3 = vld [vmem:[%s5737_s21 + $0x6a] sm:$0xff]  ;;  %v5957_v4 = vld [vmem:[%s5737_s21 + $0x121] sm:$0xff]  ;;  %v5977_v9 = vld [vmem:[%s5737_s21 + $0x139] sm:$0xff] }
  0x21   : > { %5037 = vmatmul.mubr.msk.f32.gmra.mrb[4].mxu0 %vm518_vm0, %v5794_v37  ;;  %4815 = vmatprep.mubr.msk.f32.mxu1 %vm518_vm0, %v5782_v34  ;;  %6923 = vst [vmem:[#allocation10_spill] sm:$0xff] %v5957_v4  ;;  %v5960_v5 = vld [vmem:[%s5737_s21 + $0x7a] sm:$0xff]  ;;  %v5969_v6 = vld [vmem:[%s5737_s21 + $0x129] sm:$0xff]  ;;  %6925 = vst [vmem:[#allocation12_spill] sm:$0xff] %v5977_v9 }
  0x22   : > { %5039 = vmatprep.mubr.msk.f32.mxu0 %vm518_vm0, %v5797_v38  ;;  %6924 = vst [vmem:[#allocation11_spill] sm:$0xff] %v5969_v6  ;;  %v5974_v8 = vld [vmem:[%s5737_s21 + $0x82] sm:$0xff]  ;;  %v5980_v10 = vld [vmem:[%s5737_s21 + $0x92] sm:$0xff]  ;;  %v5994_v13 = vld [vmem:[%s5737_s21 + $0x9a] sm:$0xff] }
  0x23   : > { %v5989_v11 = vld [vmem:[%s5737_s21 + $0x141] sm:$0xff]  ;;  %v5997_v14 = vld [vmem:[%s5737_s21 + $0x151] sm:$0xff]  ;;  %v6009_v16 = vld [vmem:[%s5737_s21 + $0x159] sm:$0xff] }
  0x24   : > { %4816 = vmatmul.mubr.msk.f32.gmra.mrb[6].mxu1 %vm518_vm0, %v5794_v37  ;;  %6926 = vst [vmem:[#allocation13_spill] sm:$0xff] %v5989_v11  ;;  %6927 = vst [vmem:[#allocation14_spill] sm:$0xff] %v5997_v14  ;;  %v6000_v15 = vld [vmem:[%s5737_s21 + $0xaa] sm:$0xff]  ;;  %v6014_v17 = vld [vmem:[%s5737_s21 + $0xb2] sm:$0xff] }
  0x25   : > { %5040 = vmatmul.mubr.msk.f32.gmra.mrb[6].mxu0 %vm518_vm0, %v5809_v39  ;;  %4818 = vmatprep.mubr.msk.f32.mxu1 %vm518_vm0, %v5797_v38  ;;  %6928 = vst [vmem:[#allocation15_spill] sm:$0xff] %v6009_v16  ;;  %v6017_v18 = vld [vmem:[%s5737_s21 + $0x169] sm:$0xff]  ;;  %v6029_v20 = vld [vmem:[%s5737_s21 + $0x171] sm:$0xff]  ;;  %v220_v22 = vld [vmem:[%s5737_s21] sm:$0xff] }
  0x26   : > { %5042 = vmatprep.mubr.msk.f32.mxu0 %vm518_vm0, %v5812_v40  ;;  %6929 = vst [vmem:[#allocation16_spill] sm:$0xff] %v6017_v18  ;;  %v6020_v19 = vld [vmem:[%s5737_s21 + $0xc2] sm:$0xff]  ;;  %6930 = vst [vmem:[#allocation17_spill] sm:$0xff] %v6029_v20  ;;  %v6034_v21 = vld [vmem:[%s5737_s21 + $0xca] sm:$0xff] }
  0x27   : > { %v6038_v23 = vld [vmem:[%s5737_s21 + $0xda] sm:$0xff]  ;;  %v1163_v24 = vld [vmem:[%s6859_s1 + $0x50] sm:$0xff]  ;;  %v221_v26 = vld [vmem:[%s5737_s21 + $0x8] sm:$0xff] }
  0x28   : > { %4819 = vmatmul.mubr.msk.f32.gmra.mrb[8].mxu1 %vm518_vm0, %v5809_v39  ;;  %v1164_v25 = vld [vmem:[%s6859_s1 + $0x58] sm:$0xff]  ;;  %v6055_v28 = vld [vmem:[%s5737_s21 + $0xe2] sm:$0xff]  ;;  %v6087_v55 = vld [vmem:[%s5737_s21 + $0x10a] sm:$0xff] }
  0x29   : > { %5043 = vmatmul.mubr.msk.f32.gmra.mrb[8].mxu0 %vm518_vm0, %v5823_v41  ;;  %4821 = vmatprep.mubr.msk.f32.mxu1 %vm518_vm0, %v5812_v40  ;;  %v6058_v29 = vld [vmem:[%s5737_s21 + $0x18] sm:$0xff]  ;;  %v5322_v31 = vpack.c.bf16 %v1164_v25, %v1163_v24  ;;  %v1518_v32 = vld [vmem:[%s6859_s1 + $0x60] sm:$0xff]  ;;  %v6106_v24 = vld [vmem:[%s5737_s21 + $0x48] sm:$0xff] }
  0x2a   : > { %5045 = vmatprep.mubr.msk.f32.mxu0 %vm518_vm0, %v5826_v42  ;;  %6931 = vst [vmem:[#allocation18_spill] sm:$0xff] %v6058_v29  ;;  %v6061_v30 = vld [vmem:[%s5737_s21 + $0xf2] sm:$0xff]  ;;  %v6074_v49 = vld [vmem:[%s5737_s21 + $0x20] sm:$0xff]  ;;  %6934 = vst [vmem:[#allocation21_spill] sm:$0xff] %v6106_v24 }
  0x2b   : > { %6932 = vst [vmem:[#allocation19_spill] sm:$0xff] %v6074_v49  ;;  %v6081_v50 = vld [vmem:[%s5737_s21 + $0xfa] sm:$0xff]  ;;  %v6109_v25 = vld [vmem:[%s5737_s21 + $0x122] sm:$0xff]  ;;  %v6184_v12 = vld [vmem:[%s5737_s21 + $0x172] sm:$0xff] }
  0x2c   : > { %4822 = vmatmul.mubr.msk.f32.gmra.mrb[10].mxu1 %vm518_vm0, %v5823_v41  ;;  %6942 = vst [vmem:[#allocation29_spill] sm:$0xff] %v6184_v12 }
  0x2d   : > { %5046 = vmatmul.mubr.msk.f32.gmra.mrb[10].mxu0 %vm518_vm0, %v5837_v43  ;;  %4824 = vmatprep.mubr.msk.f32.mxu1 %vm518_vm0, %v5826_v42 }
  0x2e   : > { %5048 = vmatprep.mubr.msk.f32.mxu0 %vm518_vm0, %v5840_v44 }
  0x30   : > { %4825 = vmatmul.mubr.msk.f32.gmra.mrb[12].mxu1 %vm518_vm0, %v5837_v43 }
  0x31   : > { %5049 = vmatmul.mubr.msk.f32.gmra.mrb[12].mxu0 %vm518_vm0, %v5851_v45  ;;  %4827 = vmatprep.mubr.msk.f32.mxu1 %vm518_vm0, %v5840_v44 }
  0x32   : > { %5051 = vmatprep.mubr.msk.f32.mxu0 %vm518_vm0, %v5854_v46 }
  0x34   : > { %4828 = vmatmul.mubr.msk.f32.gmra.mrb[14].mxu1 %vm518_vm0, %v5851_v45 }
  0x35   : > { %5052 = vmatmul.mubr.msk.f32.gmra.mrb[14].mxu0 %vm518_vm0, %v5865_v47  ;;  %4830 = vmatprep.mubr.msk.f32.mxu1 %vm518_vm0, %v5854_v46 }
  0x36   : > { %5086 = vmatprep.mubr.msk.f32.mxu0 %vm518_vm0, %v5868_v48 }
  0x38   : > { %4831 = vmatmul.mubr.msk.f32.gmra.mrb[16].mxu1 %vm518_vm0, %v5865_v47  ;;  %v3304_v47 = vld [vmem:[%s6859_s1 + $0x108] sm:$0xff] }
  0x39   : > { %5087 = vmatmul.mubr.msk.f32.vlgmr.msra.gmra.mrb[0].mxu0 %vm518_vm0, %v5885_v51  ;;  %4833 = vmatprep.mubr.msk.f32.mxu1 %vm518_vm0, %v5888_v52  ;;  %v6227_v52 = vld [vmem:[%s5737_s21 + $0xd8] sm:$0xff] }
  0x3a   : > { %5353 = vmatpush3.bf16.msra.mxu0 %v5350_v35  ;;  %5089 = vmatprep.mubr.msk.f32.mxu0 %vm518_vm0, %v5891_v53  ;;  %v1519_v35 = vld [vmem:[%s6859_s1 + $0x68] sm:$0xff]  ;;  %6949 = vst [vmem:[#allocation36_spill] sm:$0xff] %v6227_v52 }
  0x3b   : > { %5355 = vmatprep.subr.bf16.mxu0 %v5354_v54  ;;  %v6089_v56 = vpack.c.bf16 %v1519_v35, %v1518_v32  ;;  %v6127_v32 = vld [vmem:[%s5737_s21 + $0x60] sm:$0xff] }
  0x3c   : > { %4834 = vmatmul.mubr.msk.f32.gmra.mrb[18].mxu1 %vm518_vm0, %v5906_v57  ;;  %6935 = vst [vmem:[#allocation22_spill] sm:$0xff] %v6127_v32  ;;  %v6130_v35 = vld [vmem:[%s5737_s21 + $0x13a] sm:$0xff]  ;;  %v2948_v57 = vld [vmem:[%s6859_s1 + $0xf0] sm:$0xff] }
  0x3d   : > { %5090 = vmatmul.mubr.msk.f32.gmra.mrb[2].mxu0 %vm518_vm0, %v5911_v58  ;;  %4836 = vmatprep.mubr.msk.f32.mxu1 %vm518_vm0, %v5914_v59  ;;  %v6204_v59 = vld [vmem:[%s5737_s21 + $0x18a] sm:$0xff] }
  0x3e   : > { %5092 = vmatprep.mubr.msk.f32.mxu0 %vm518_vm0, %v5917_v60  ;;  %5357 = vmatpush3.bf16.msra.mxu0 %v5354_v54  ;;  %v6084_v54 = vld [vmem:[%s5737_s21 + $0x30] sm:$0xff]  ;;  %6946 = vst [vmem:[#allocation33_spill] sm:$0xff] %v6204_v59 }
  0x3f   : > { %5359 = vmatprep.subr.bf16.mxu0 %v5919_v61  ;;  %6933 = vst [vmem:[#allocation20_spill] sm:$0xff] %v6084_v54 }
  0x40   : > { %4837 = vmatmul.mubr.msk.f32.gmra.mrb[20].mxu1 %vm518_vm0, %v5928_v62  ;;  %v6190_v62 = vld [vmem:[%s5737_s21 + $0x182] sm:$0xff] }
  0x41   : > { %5093 = vmatmul.mubr.msk.f32.gmra.mrb[4].mxu0 %vm518_vm0, %v5933_v63  ;;  %4839 = vmatprep.mubr.msk.f32.mxu1 %vm518_vm0, %v5936_v0  ;;  %v6187_v0 = vld [vmem:[%s5737_s21 + $0xa8] sm:$0xff]  ;;  %6944 = vst [vmem:[#allocation31_spill] sm:$0xff] %v6190_v62 }
  0x42   : > { %5095 = vmatprep.mubr.msk.f32.mxu0 %vm518_vm0, %v5939_v1  ;;  %6943 = vst [vmem:[#allocation30_spill] sm:$0xff] %v6187_v0 }
  0x44   : > { %4840 = vmatmul.mubr.msk.f32.gmra.mrb[22].mxu1 %vm518_vm0, %v5949_v2  ;;  %v6179_v2 = vld [vmem:[%s5737_s21 + $0x98] sm:$0xff] }
  0x45   : > { %5096 = vmatmul.mubr.msk.f32.gmra.mrb[6].mxu0 %vm518_vm0, %v5954_v3  ;;  %4842 = vmatprep.mubr.msk.f32.mxu1 %vm518_vm0, %v5957_v4  ;;  %v6170_v4 = vld [vmem:[%s5737_s21 + $0x16a] sm:$0xff]  ;;  %6941 = vst [vmem:[#allocation28_spill] sm:$0xff] %v6179_v2 }
  0x46   : > { %5098 = vmatprep.mubr.msk.f32.mxu0 %vm518_vm0, %v5960_v5  ;;  %6940 = vst [vmem:[#allocation27_spill] sm:$0xff] %v6170_v4 }
  0x48   : > { %4843 = vmatmul.mubr.msk.f32.gmra.mrb[24].mxu1 %vm518_vm0, %v5969_v6  ;;  %v6167_v6 = vld [vmem:[%s5737_s21 + $0x90] sm:$0xff] }
  0x49   : > { %5099 = vmatmul.mubr.msk.f32.gmra.mrb[8].mxu0 %vm518_vm0, %v5974_v8  ;;  %4845 = vmatprep.mubr.msk.f32.mxu1 %vm518_vm0, %v5977_v9  ;;  %v6164_v9 = vld [vmem:[%s5737_s21 + $0x15a] sm:$0xff]  ;;  %6939 = vst [vmem:[#allocation26_spill] sm:$0xff] %v6167_v6 }
  0x4a   : > { %5101 = vmatprep.mubr.msk.f32.mxu0 %vm518_vm0, %v5980_v10 }
  0x4c   : > { %4846 = vmatmul.mubr.msk.f32.gmra.mrb[26].mxu1 %vm518_vm0, %v5989_v11  ;;  %v6159_v11 = vld [vmem:[%s5737_s21 + $0x80] sm:$0xff] }
  0x4d   : > { %5102 = vmatmul.mubr.msk.f32.gmra.mrb[10].mxu0 %vm518_vm0, %v5994_v13  ;;  %4848 = vmatprep.mubr.msk.f32.mxu1 %vm518_vm0, %v5997_v14  ;;  %v6150_v14 = vld [vmem:[%s5737_s21 + $0x152] sm:$0xff]  ;;  %6938 = vst [vmem:[#allocation25_spill] sm:$0xff] %v6159_v11 }
  0x4e   : > { %5104 = vmatprep.mubr.msk.f32.mxu0 %vm518_vm0, %v6000_v15 }
  0x50   : > { %4849 = vmatmul.mubr.msk.f32.gmra.mrb[28].mxu1 %vm518_vm0, %v6009_v16  ;;  %v6147_v16 = vld [vmem:[%s5737_s21 + $0x78] sm:$0xff] }
  0x51   : > { %5105 = vmatmul.mubr.msk.f32.gmra.mrb[12].mxu0 %vm518_vm0, %v6014_v17  ;;  %4851 = vmatprep.mubr.msk.f32.mxu1 %vm518_vm0, %v6017_v18  ;;  %v6144_v18 = vld [vmem:[%s5737_s21 + $0x142] sm:$0xff]  ;;  %6937 = vst [vmem:[#allocation24_spill] sm:$0xff] %v6147_v16 }
  0x52   : > { %5107 = vmatprep.mubr.msk.f32.mxu0 %vm518_vm0, %v6020_v19 }
  0x54   : > { %4852 = vmatmul.mubr.msk.f32.gmra.mrb[30].mxu1 %vm518_vm0, %v6029_v20  ;;  %v6139_v20 = vld [vmem:[%s5737_s21 + $0x68] sm:$0xff] }
  0x55   : > { %5108 = vmatmul.mubr.msk.f32.gmra.mrb[14].mxu0 %vm518_vm0, %v6034_v21  ;;  %4862 = vmatprep.mubr.msk.f32.mxu1 %vm518_vm0, %v220_v22  ;;  %v6103_v22 = vld [vmem:[%s5737_s21 + $0x112] sm:$0xff]  ;;  %6936 = vst [vmem:[#allocation23_spill] sm:$0xff] %v6139_v20 }
  0x56   : > { %5110 = vmatprep.mubr.msk.f32.mxu0 %vm518_vm0, %v6038_v23 }
  0x58   : > { %4863 = vmatmul.mubr.msk.f32.vlgmr.msra.gmra.mrb[0].mxu1 %vm518_vm0, %v221_v26  ;;  %v6119_v26 = vld [vmem:[%s5737_s21 + $0x50] sm:$0xff] }
  0x59   : > { %5111 = vmatmul.mubr.msk.f32.gmra.mrb[16].mxu0 %vm518_vm0, %v6055_v28  ;;  %5321 = vmatpush3.bf16.msra.mxu1 %v5785_v36  ;;  %v6098_v36 = vld [vmem:[%s5737_s21 + $0x38] sm:$0xff] }
  0x5a   : > { %4865 = vmatprep.mubr.msk.f32.mxu1 %vm518_vm0, %v6058_v29  ;;  %5113 = vmatprep.mubr.msk.f32.mxu0 %vm518_vm0, %v6061_v30  ;;  %v6207_v29 = vld [vmem:[%s5737_s21 + $0xc0] sm:$0xff] }
  0x5b   : > { %5323 = vmatprep.subr.bf16.mxu1 %v5322_v31  ;;  %6947 = vst [vmem:[#allocation34_spill] sm:$0xff] %v6207_v29 }
  0x5c   : > { %4866 = vmatmul.mubr.msk.f32.gmra.mrb[2].mxu1 %vm518_vm0, %v6074_v49  ;;  %v6199_v49 = vld [vmem:[%s5737_s21 + $0xb0] sm:$0xff] }
  0x5d   : > { %5114 = vmatmul.mubr.msk.f32.gmra.mrb[18].mxu0 %vm518_vm0, %v6081_v50  ;;  %4868 = vmatprep.mubr.msk.f32.mxu1 %vm518_vm0, %v6084_v54  ;;  %6945 = vst [vmem:[#allocation32_spill] sm:$0xff] %v6199_v49 }
  0x5e   : > { %5116 = vmatprep.mubr.msk.f32.mxu0 %vm518_vm0, %v6087_v55  ;;  %5325 = vmatpush3.bf16.msra.mxu1 %v5322_v31  ;;  %v6124_v31 = vld [vmem:[%s5737_s21 + $0x12a] sm:$0xff] }
  0x5f   : > { %5327 = vmatprep.subr.bf16.mxu1 %v6089_v56 }
  0x60   : > { %4869 = vmatmul.mubr.msk.f32.gmra.mrb[4].mxu1 %vm518_vm0, %v6098_v36 }
  0x61   : > { %5117 = vmatmul.mubr.msk.f32.gmra.mrb[20].mxu0 %vm518_vm0, %v6103_v22  ;;  %4871 = vmatprep.mubr.msk.f32.mxu1 %vm518_vm0, %v6106_v24 }
  0x62   : > { %5119 = vmatprep.mubr.msk.f32.mxu0 %vm518_vm0, %v6109_v25 }
  0x64   : > { %4872 = vmatmul.mubr.msk.f32.gmra.mrb[6].mxu1 %vm518_vm0, %v6119_v26 }
  0x65   : > { %5120 = vmatmul.mubr.msk.f32.gmra.mrb[22].mxu0 %vm518_vm0, %v6124_v31  ;;  %4874 = vmatprep.mubr.msk.f32.mxu1 %vm518_vm0, %v6127_v32 }
  0x66   : > { %5122 = vmatprep.mubr.msk.f32.mxu0 %vm518_vm0, %v6130_v35 }
  0x68   : > { %4875 = vmatmul.mubr.msk.f32.gmra.mrb[8].mxu1 %vm518_vm0, %v6139_v20 }
  0x69   : > { %5123 = vmatmul.mubr.msk.f32.gmra.mrb[24].mxu0 %vm518_vm0, %v6144_v18  ;;  %4877 = vmatprep.mubr.msk.f32.mxu1 %vm518_vm0, %v6147_v16 }
  0x6a   : > { %5125 = vmatprep.mubr.msk.f32.mxu0 %vm518_vm0, %v6150_v14 }
  0x6c   : > { %4878 = vmatmul.mubr.msk.f32.gmra.mrb[10].mxu1 %vm518_vm0, %v6159_v11 }
  0x6d   : > { %5126 = vmatmul.mubr.msk.f32.gmra.mrb[26].mxu0 %vm518_vm0, %v6164_v9  ;;  %4880 = vmatprep.mubr.msk.f32.mxu1 %vm518_vm0, %v6167_v6 }
  0x6e   : > { %5128 = vmatprep.mubr.msk.f32.mxu0 %vm518_vm0, %v6170_v4 }
  0x70   : > { %4881 = vmatmul.mubr.msk.f32.gmra.mrb[12].mxu1 %vm518_vm0, %v6179_v2 }
  0x71   : > { %5129 = vmatmul.mubr.msk.f32.gmra.mrb[28].mxu0 %vm518_vm0, %v6184_v12  ;;  %4883 = vmatprep.mubr.msk.f32.mxu1 %vm518_vm0, %v6187_v0  ;;  %v2949_v12 = vld [vmem:[%s6859_s1 + $0xf8] sm:$0xff] }
  0x72   : > { %5131 = vmatprep.mubr.msk.f32.mxu0 %vm518_vm0, %v6190_v62  ;;  %v6222_v62 = vld [vmem:[%s5737_s21 + $0xc8] sm:$0xff]  ;;  %v5362_v4 = vpack.c.bf16 %v2949_v12, %v2948_v57  ;;  %v6248_v12 = vld [vmem:[%s5737_s21 + $0xf0] sm:$0xff] }
  0x73   : > { %6948 = vst [vmem:[#allocation35_spill] sm:$0xff] %v6222_v62 }
  0x74   : > { %4884 = vmatmul.mubr.msk.f32.gmra.mrb[14].mxu1 %vm518_vm0, %v6199_v49 }
  0x75   : > { %5132 = vmatmul.mubr.msk.f32.gmra.mrb[30].mxu0 %vm518_vm0, %v6204_v59  ;;  %4886 = vmatprep.mubr.msk.f32.mxu1 %vm518_vm0, %v6207_v29  ;;  %v3303_v59 = vld [vmem:[%s6859_s1 + $0x100] sm:$0xff] }
  0x76   : > { %5142 = vmatprep.mubr.msk.f32.mxu0 %vm518_vm0, %v6084_v54  ;;  %v6242_v54 = vld [vmem:[%s5737_s21 + $0xe0] sm:$0xff]  ;;  %v6250_v57 = vpack.c.bf16 %v3304_v47, %v3303_v59  ;;  %v6274_v47 = vld [vmem:[%s5737_s21 + $0x110] sm:$0xff] }
  0x77   : > { %v6279_v59 = vld [vmem:[%s5737_s21 + $0x120] sm:$0xff] }
  0x78   : > { %4887 = vmatmul.mubr.msk.f32.gmra.mrb[16].mxu1 %vm518_vm0, %v6222_v62 }
  0x79   : > { %5143 = vmatmul.mubr.msk.f32.vlgmr.msra.gmra.mrb[0].mxu0 %vm518_vm0, %v6098_v36  ;;  %4889 = vmatprep.mubr.msk.f32.mxu1 %vm518_vm0, %v6227_v52 }
  0x7a   : > { %5361 = vmatpush3.bf16.msra.mxu0 %v5919_v61  ;;  %5145 = vmatprep.mubr.msk.f32.mxu0 %vm518_vm0, %v6106_v24  ;;  %v6259_v61 = vld [vmem:[%s5737_s21 + $0xf8] sm:$0xff]  ;;  %v6264_v24 = vld [vmem:[%s5737_s21 + $0x108] sm:$0xff] }
  0x7b   : > { %5363 = vmatprep.subr.bf16.mxu0 %v5362_v4 }
  0x7c   : > { %4890 = vmatmul.mubr.msk.f32.gmra.mrb[18].mxu1 %vm518_vm0, %v6242_v54 }
  0x7d   : > { %5146 = vmatmul.mubr.msk.f32.gmra.mrb[2].mxu0 %vm518_vm0, %v6119_v26  ;;  %4892 = vmatprep.mubr.msk.f32.mxu1 %vm518_vm0, %v6248_v12 }
  0x7e   : > { %5148 = vmatprep.mubr.msk.f32.mxu0 %vm518_vm0, %v6127_v32  ;;  %5365 = vmatpush3.bf16.msra.mxu0 %v5362_v4  ;;  %v6288_v4 = vld [vmem:[%s5737_s21 + $0x128] sm:$0xff] }
  0x7f   : > { %5367 = vmatprep.subr.bf16.mxu0 %v6250_v57  ;;  %v285_v32 = vld [vmem:[%s5737_s21 + $0xa] sm:$0xff] }
  0x80   : > { %4893 = vmatmul.mubr.msk.f32.gmra.mrb[20].mxu1 %vm518_vm0, %v6259_v61 }
  0x81   : > { %5149 = vmatmul.mubr.msk.f32.gmra.mrb[4].mxu0 %vm518_vm0, %v6139_v20  ;;  %4895 = vmatprep.mubr.msk.f32.mxu1 %vm518_vm0, %v6264_v24  ;;  %v6293_v20 = vld [vmem:[%s5737_s21 + $0x138] sm:$0xff] }
  0x82   : > { %5151 = vmatprep.mubr.msk.f32.mxu0 %vm518_vm0, %v6147_v16  ;;  %v6307_v16 = vld [vmem:[%s5737_s21 + $0x150] sm:$0xff] }
  0x84   : > { %4896 = vmatmul.mubr.msk.f32.gmra.mrb[22].mxu1 %vm518_vm0, %v6274_v47 }
  0x85   : > { %5152 = vmatmul.mubr.msk.f32.gmra.mrb[6].mxu0 %vm518_vm0, %v6159_v11  ;;  %4898 = vmatprep.mubr.msk.f32.mxu1 %vm518_vm0, %v6279_v59  ;;  %v6302_v11 = vld [vmem:[%s5737_s21 + $0x140] sm:$0xff] }
  0x86   : > { %5154 = vmatprep.mubr.msk.f32.mxu0 %vm518_vm0, %v6167_v6  ;;  %v6321_v6 = vld [vmem:[%s5737_s21 + $0x168] sm:$0xff] }
  0x88   : > { %4899 = vmatmul.mubr.msk.f32.gmra.mrb[24].mxu1 %vm518_vm0, %v6288_v4 }
  0x89   : > { %5155 = vmatmul.mubr.msk.f32.gmra.mrb[8].mxu0 %vm518_vm0, %v6179_v2  ;;  %4901 = vmatprep.mubr.msk.f32.mxu1 %vm518_vm0, %v6293_v20  ;;  %v6316_v2 = vld [vmem:[%s5737_s21 + $0x158] sm:$0xff] }
  0x8a   : > { %5157 = vmatprep.mubr.msk.f32.mxu0 %vm518_vm0, %v6187_v0  ;;  %v284_v0 = vld [vmem:[%s5737_s21 + $0x2] sm:$0xff] }
  0x8c   : > { %4902 = vmatmul.mubr.msk.f32.gmra.mrb[26].mxu1 %vm518_vm0, %v6302_v11 }
  0x8d   : > { %5158 = vmatmul.mubr.msk.f32.gmra.mrb[10].mxu0 %vm518_vm0, %v6199_v49  ;;  %4904 = vmatprep.mubr.msk.f32.mxu1 %vm518_vm0, %v6307_v16  ;;  %v6330_v49 = vld [vmem:[%s5737_s21 + $0x170] sm:$0xff] }
  0x8e   : > { %5160 = vmatprep.mubr.msk.f32.mxu0 %vm518_vm0, %v6207_v29  ;;  %v1520_v29 = vld [vmem:[%s6859_s1 + $0x70] sm:$0xff] }
  0x90   : > { %4905 = vmatmul.mubr.msk.f32.gmra.mrb[28].mxu1 %vm518_vm0, %v6316_v2 }
  0x91   : > { %5161 = vmatmul.mubr.msk.f32.gmra.mrb[12].mxu0 %vm518_vm0, %v6222_v62  ;;  %4907 = vmatprep.mubr.msk.f32.mxu1 %vm518_vm0, %v6321_v6  ;;  %v1521_v62 = vld [vmem:[%s6859_s1 + $0x78] sm:$0xff] }
  0x92   : > { %5163 = vmatprep.mubr.msk.f32.mxu0 %vm518_vm0, %v6227_v52  ;;  %v5330_v52 = vpack.c.bf16 %v1521_v62, %v1520_v29  ;;  %v4119_v62 = vld [vmem:[%s5737_s21 + $0x1a0] sm:$0xff]  ;;  %v3306_v29 = vld [vmem:[%s6859_s1 + $0x118] sm:$0xff] }
  0x94   : > { %4908 = vmatmul.mubr.msk.f32.gmra.mrb[30].mxu1 %vm518_vm0, %v6330_v49 }
  0x95   : > { %5164 = vmatmul.mubr.msk.f32.gmra.mrb[14].mxu0 %vm518_vm0, %v6242_v54  ;;  %4918 = vmatprep.mubr.msk.f32.mxu1 %vm518_vm0, %v284_v0  ;;  %v3305_v0 = vld [vmem:[%s6859_s1 + $0x110] sm:$0xff] }
  0x96   : > { %5166 = vmatprep.mubr.msk.f32.mxu0 %vm518_vm0, %v6248_v12 }
  0x98   : > { %4919 = vmatmul.mubr.msk.f32.vlgmr.msra.gmra.mrb[0].mxu1 %vm518_vm0, %v285_v32  ;;  %v6963_v32 = vld [vmem:[#allocation21_spill] sm:$0xff] }
  0x99   : > { %5167 = vmatmul.mubr.msk.f32.gmra.mrb[16].mxu0 %vm518_vm0, %v6259_v61  ;;  %5329 = vmatpush3.bf16.msra.mxu1 %v6089_v56  ;;  %v5370_v56 = vpack.c.bf16 %v3306_v29, %v3305_v0  ;;  %v6969_v0 = vld [vmem:[#allocation13_spill] sm:$0xff]  ;;  %v6970_v29 = vld [vmem:[#allocation24_spill] sm:$0xff] }
  0x9a   : > { %4921 = vmatprep.mubr.msk.f32.mxu1 %vm518_vm0, %v5868_v48  ;;  %5169 = vmatprep.mubr.msk.f32.mxu0 %vm518_vm0, %v6264_v24  ;;  %v6391_v48 = vld [vmem:[%s5737_s21 + $0x180] sm:$0xff] }
  0x9b   : > { %5331 = vmatprep.subr.bf16.mxu1 %v5330_v52 }
  0x9c   : > { %4922 = vmatmul.mubr.msk.f32.gmra.mrb[2].mxu1 %vm518_vm0, %v5885_v51  ;;  %v6402_v51 = vld [vmem:[%s5737_s21 + $0x188] sm:$0xff] }
  0x9d   : > { %5170 = vmatmul.mubr.msk.f32.gmra.mrb[18].mxu0 %vm518_vm0, %v6274_v47  ;;  %4924 = vmatprep.mubr.msk.f32.mxu1 %vm518_vm0, %v5891_v53 }
  0x9e   : > { %5172 = vmatprep.mubr.msk.f32.mxu0 %vm518_vm0, %v6279_v59  ;;  %5333 = vmatpush3.bf16.msra.mxu1 %v5330_v52  ;;  %v4118_v52 = vld [vmem:[%s5737_s21 + $0x198] sm:$0xff] }
  0x9f   : > { %5374 = vmatprep.subr.bf16.mxu1 %v5705_v7 }
  0xa0   : > { %4925 = vmatmul.mubr.msk.f32.gmra.mrb[4].mxu1 %vm518_vm0, %v5911_v58 }
  0xa1   : > { %5173 = vmatmul.mubr.msk.f32.gmra.mrb[20].mxu0 %vm518_vm0, %v6288_v4  ;;  %4927 = vmatprep.mubr.msk.f32.mxu1 %vm518_vm0, %v5917_v60 }
  0xa2   : > { %5175 = vmatprep.mubr.msk.f32.mxu0 %vm518_vm0, %v6293_v20 }
  0xa4   : > { %4928 = vmatmul.mubr.msk.f32.gmra.mrb[6].mxu1 %vm518_vm0, %v5933_v63 }
  0xa5   : > { %5176 = vmatmul.mubr.msk.f32.gmra.mrb[22].mxu0 %vm518_vm0, %v6302_v11  ;;  %4930 = vmatprep.mubr.msk.f32.mxu1 %vm518_vm0, %v5939_v1 }
  0xa6   : > { %5178 = vmatprep.mubr.msk.f32.mxu0 %vm518_vm0, %v6307_v16 }
  0xa8   : > { %4931 = vmatmul.mubr.msk.f32.gmra.mrb[8].mxu1 %vm518_vm0, %v5954_v3 }
  0xa9   : > { %5179 = vmatmul.mubr.msk.f32.gmra.mrb[24].mxu0 %vm518_vm0, %v6316_v2  ;;  %4933 = vmatprep.mubr.msk.f32.mxu1 %vm518_vm0, %v5960_v5 }
  0xaa   : > { %5181 = vmatprep.mubr.msk.f32.mxu0 %vm518_vm0, %v6321_v6 }
  0xac   : > { %4934 = vmatmul.mubr.msk.f32.gmra.mrb[10].mxu1 %vm518_vm0, %v5974_v8 }
  0xad   : > { %5182 = vmatmul.mubr.msk.f32.gmra.mrb[26].mxu0 %vm518_vm0, %v6330_v49  ;;  %4936 = vmatprep.mubr.msk.f32.mxu1 %vm518_vm0, %v5980_v10 }
  0xae   : > { %5184 = vmatprep.mubr.msk.f32.mxu0 %vm518_vm0, %v6391_v48 }
  0xb0   : > { %4937 = vmatmul.mubr.msk.f32.gmra.mrb[12].mxu1 %vm518_vm0, %v5994_v13 }
  0xb1   : > { %5185 = vmatmul.mubr.msk.f32.gmra.mrb[28].mxu0 %vm518_vm0, %v6402_v51  ;;  %4939 = vmatprep.mubr.msk.f32.mxu1 %vm518_vm0, %v6000_v15 }
  0xb2   : > { %5187 = vmatprep.mubr.msk.f32.mxu0 %vm518_vm0, %v4118_v52  ;;  %v6966_v52 = vld [vmem:[#allocation22_spill] sm:$0xff] }
  0xb4   : > { %4940 = vmatmul.mubr.msk.f32.gmra.mrb[14].mxu1 %vm518_vm0, %v6014_v17 }
  0xb5   : > { %5188 = vmatmul.mubr.msk.f32.gmra.mrb[30].mxu0 %vm518_vm0, %v4119_v62  ;;  %4942 = vmatprep.mubr.msk.f32.mxu1 %vm518_vm0, %v6020_v19  ;;  %v6968_v62 = vld [vmem:[#allocation23_spill] sm:$0xff] }
  0xb6   : > { %5198 = vmatprep.mubr.msk.f32.mxu0 %vm518_vm0, %v5760_v27  ;;  %v6950_v27 = vld [vmem:[#allocation3_spill] sm:$0xff] }
  0xb8   : > { %4943 = vmatmul.mubr.msk.f32.gmra.mrb[16].mxu1 %vm518_vm0, %v6034_v21 }
  0xb9   : > { %5199 = vmatmul.mubr.msk.f32.vlgmr.msra.gmra.mrb[0].mxu0 %vm518_vm0, %v5777_v33  ;;  %4945 = vmatprep.mubr.msk.f32.mxu1 %vm518_vm0, %v6038_v23  ;;  %v6951_v33 = vld [vmem:[#allocation27_spill] sm:$0xff] }
  0xba   : > { %5369 = vmatpush3.bf16.msra.mxu0 %v6250_v57  ;;  %5201 = vmatprep.mubr.msk.f32.mxu0 %vm518_vm0, %v5782_v34  ;;  %v6952_v34 = vld [vmem:[#allocation4_spill] sm:$0xff]  ;;  %v6964_v57 = vld [vmem:[#allocation10_spill] sm:$0xff] }
  0xbb   : > { %5371 = vmatprep.subr.bf16.mxu0 %v5370_v56 }
  0xbc   : > { %4946 = vmatmul.mubr.msk.f32.gmra.mrb[18].mxu1 %vm518_vm0, %v6055_v28 }
  0xbd   : > { %5202 = vmatmul.mubr.msk.f32.gmra.mrb[2].mxu0 %vm518_vm0, %v5794_v37  ;;  %4948 = vmatprep.mubr.msk.f32.mxu1 %vm518_vm0, %v6061_v30  ;;  %v6953_v37 = vld [vmem:[#allocation29_spill] sm:$0xff] }
  0xbe   : > { %5204 = vmatprep.mubr.msk.f32.mxu0 %vm518_vm0, %v5797_v38  ;;  %5373 = vmatpush3.bf16.msra.mxu0 %v5370_v56  ;;  %v6954_v38 = vld [vmem:[#allocation5_spill] sm:$0xff] }
  0xbf   : > { %v6972_v56 = vld [vmem:[#allocation25_spill] sm:$0xff] }
  0xc0   : > { %4949 = vmatmul.mubr.msk.f32.gmra.mrb[20].mxu1 %vm518_vm0, %v6081_v50 }
  0xc1   : > { %5205 = vmatmul.mubr.msk.f32.gmra.mrb[4].mxu0 %vm518_vm0, %v5809_v39  ;;  %4951 = vmatprep.mubr.msk.f32.mxu1 %vm518_vm0, %v6087_v55  ;;  %v6955_v39 = vld [vmem:[#allocation18_spill] sm:$0xff] }
  0xc2   : > { %5207 = vmatprep.mubr.msk.f32.mxu0 %vm518_vm0, %v5812_v40  ;;  %v6956_v40 = vld [vmem:[#allocation6_spill] sm:$0xff] }
  0xc4   : > { %4952 = vmatmul.mubr.msk.f32.gmra.mrb[22].mxu1 %vm518_vm0, %v6103_v22 }
  0xc5   : > { %5208 = vmatmul.mubr.msk.f32.gmra.mrb[6].mxu0 %vm518_vm0, %v5823_v41  ;;  %4954 = vmatprep.mubr.msk.f32.mxu1 %vm518_vm0, %v6109_v25  ;;  %v6957_v41 = vld [vmem:[#allocation19_spill] sm:$0xff] }
  0xc6   : > { %5210 = vmatprep.mubr.msk.f32.mxu0 %vm518_vm0, %v5826_v42  ;;  %v6958_v42 = vld [vmem:[#allocation7_spill] sm:$0xff] }
  0xc8   : > { %4955 = vmatmul.mubr.msk.f32.gmra.mrb[24].mxu1 %vm518_vm0, %v6124_v31 }
  0xc9   : > { %5211 = vmatmul.mubr.msk.f32.gmra.mrb[8].mxu0 %vm518_vm0, %v5837_v43  ;;  %4957 = vmatprep.mubr.msk.f32.mxu1 %vm518_vm0, %v6130_v35  ;;  %v6959_v43 = vld [vmem:[#allocation20_spill] sm:$0xff] }
  0xca   : > { %5213 = vmatprep.mubr.msk.f32.mxu0 %vm518_vm0, %v5840_v44  ;;  %v6960_v44 = vld [vmem:[#allocation8_spill] sm:$0xff] }
  0xcc   : > { %4958 = vmatmul.mubr.msk.f32.gmra.mrb[26].mxu1 %vm518_vm0, %v6144_v18 }
  0xcd   : > { %5214 = vmatmul.mubr.msk.f32.gmra.mrb[10].mxu0 %vm518_vm0, %v5851_v45  ;;  %4960 = vmatprep.mubr.msk.f32.mxu1 %vm518_vm0, %v6150_v14  ;;  %v6961_v45 = vld [vmem:[#allocation2_spill] sm:$0xff] }
  0xce   : > { %5216 = vmatprep.mubr.msk.f32.mxu0 %vm518_vm0, %v5854_v46  ;;  %v6962_v46 = vld [vmem:[#allocation9_spill] sm:$0xff] }
  0xd0   : > { %4961 = vmatmul.mubr.msk.f32.gmra.mrb[28].mxu1 %vm518_vm0, %v6164_v9 }
  0xd1   : > { %5217 = vmatmul.mubr.msk.f32.gmra.mrb[12].mxu0 %vm518_vm0, %v6950_v27  ;;  %4963 = vmatprep.mubr.msk.f32.mxu1 %vm518_vm0, %v6951_v33  ;;  %v6973_v27 = vld [vmem:[#allocation15_spill] sm:$0xff] }
  0xd2   : > { %5219 = vmatprep.mubr.msk.f32.mxu0 %vm518_vm0, %v6952_v34 }
  0xd4   : > { %4964 = vmatmul.mubr.msk.f32.gmra.mrb[30].mxu1 %vm518_vm0, %v6953_v37 }
  0xd5   : > { %5220 = vmatmul.mubr.msk.f32.gmra.mrb[14].mxu0 %vm518_vm0, %v6954_v38  ;;  %4974 = vmatprep.mubr.msk.f32.mxu1 %vm518_vm0, %v6955_v39  ;;  %v6974_v39 = vld [vmem:[#allocation26_spill] sm:$0xff] }
  0xd6   : > { %5222 = vmatprep.mubr.msk.f32.mxu0 %vm518_vm0, %v6956_v40 }
  0xd8   : > { %4975 = vmatmul.mubr.msk.f32.vlgmr.msra.gmra.mrb[0].mxu1 %vm518_vm0, %v6957_v41  ;;  %v6975_v41 = vld [vmem:[#allocation16_spill] sm:$0xff] }
  0xd9   : > { %5223 = vmatmul.mubr.msk.f32.gmra.mrb[16].mxu0 %vm518_vm0, %v6958_v42  ;;  %5376 = vmatpush3.bf16.msra.mxu1 %v5705_v7  ;;  %v6965_v7 = vld [vmem:[#allocation11_spill] sm:$0xff] }
  0xda   : > { %4977 = vmatprep.mubr.msk.f32.mxu1 %vm518_vm0, %v6959_v43  ;;  %5225 = vmatprep.mubr.msk.f32.mxu0 %vm518_vm0, %v6960_v44  ;;  %v6535_v43 = vld [vmem:[%s5737_s21 + $0x181] sm:$0xff] }
  0xdb   : > { %5375 = vmatprep.subr.bf16.mxu1 %v6961_v45 }
  0xdc   : > { %4978 = vmatmul.mubr.msk.f32.gmra.mrb[2].mxu1 %vm518_vm0, %v6098_v36  ;;  %v6967_v36 = vld [vmem:[#allocation12_spill] sm:$0xff] }
  0xdd   : > { %5226 = vmatmul.mubr.msk.f32.gmra.mrb[18].mxu0 %vm518_vm0, %v6962_v46  ;;  %4980 = vmatprep.mubr.msk.f32.mxu1 %vm518_vm0, %v6963_v32  ;;  %v6977_v32 = vld [vmem:[#allocation17_spill] sm:$0xff] }
  0xde   : > { %5228 = vmatprep.mubr.msk.f32.mxu0 %vm518_vm0, %v6964_v57  ;;  %5377 = vmatpush3.bf16.msra.mxu1 %v6961_v45  ;;  %v6976_v45 = vld [vmem:[#allocation28_spill] sm:$0xff] }
  0xe0   : > { %4981 = vmatmul.mubr.msk.f32.gmra.mrb[4].mxu1 %vm518_vm0, %v6119_v26  ;;  %v6971_v26 = vld [vmem:[#allocation14_spill] sm:$0xff] }
  0xe1   : > { %5229 = vmatmul.mubr.msk.f32.gmra.mrb[20].mxu0 %vm518_vm0, %v6965_v7  ;;  %4983 = vmatprep.mubr.msk.f32.mxu1 %vm518_vm0, %v6966_v52  ;;  %v6978_v52 = vld [vmem:[#allocation30_spill] sm:$0xff] }
  0xe2   : > { %5231 = vmatprep.mubr.msk.f32.mxu0 %vm518_vm0, %v6967_v36 }
  0xe4   : > { %4984 = vmatmul.mubr.msk.f32.gmra.mrb[6].mxu1 %vm518_vm0, %v6968_v62  ;;  %v6546_v62 = vld [vmem:[%s5737_s21 + $0x189] sm:$0xff] }
  0xe5   : > { %5232 = vmatmul.mubr.msk.f32.gmra.mrb[22].mxu0 %vm518_vm0, %v6969_v0  ;;  %4986 = vmatprep.mubr.msk.f32.mxu1 %vm518_vm0, %v6970_v29  ;;  %v4150_v29 = vld [vmem:[%s5737_s21 + $0x199] sm:$0xff] }
  0xe6   : > { %5234 = vmatprep.mubr.msk.f32.mxu0 %vm518_vm0, %v6971_v26 }
  0xe8   : > { %4987 = vmatmul.mubr.msk.f32.gmra.mrb[8].mxu1 %vm518_vm0, %v6972_v56  ;;  %v6979_v56 = vld [vmem:[#allocation32_spill] sm:$0xff] }
  0xe9   : > { %5235 = vmatmul.mubr.msk.f32.gmra.mrb[24].mxu0 %vm518_vm0, %v6973_v27  ;;  %4989 = vmatprep.mubr.msk.f32.mxu1 %vm518_vm0, %v6974_v39  ;;  %v6980_v39 = vld [vmem:[#allocation34_spill] sm:$0xff] }
  0xea   : > { %5237 = vmatprep.mubr.msk.f32.mxu0 %vm518_vm0, %v6975_v41 }
  0xec   : > { %4990 = vmatmul.mubr.msk.f32.gmra.mrb[10].mxu1 %vm518_vm0, %v6976_v45  ;;  %v4151_v45 = vld [vmem:[%s5737_s21 + $0x1a1] sm:$0xff] }
  0xed   : > { %5238 = vmatmul.mubr.msk.f32.gmra.mrb[26].mxu0 %vm518_vm0, %v6977_v32  ;;  %4992 = vmatprep.mubr.msk.f32.mxu1 %vm518_vm0, %v6978_v52  ;;  %v6981_v32 = vld [vmem:[#allocation35_spill] sm:$0xff]  ;;  %v6982_v52 = vld [vmem:[#allocation36_spill] sm:$0xff] }
  0xee   : > { %5240 = vmatprep.mubr.msk.f32.mxu0 %vm518_vm0, %v6535_v43 }
  0xf0   : > { %4993 = vmatmul.mubr.msk.f32.gmra.mrb[12].mxu1 %vm518_vm0, %v6979_v56 }
  0xf1   : > { %5241 = vmatmul.mubr.msk.f32.gmra.mrb[28].mxu0 %vm518_vm0, %v6546_v62  ;;  %4995 = vmatprep.mubr.msk.f32.mxu1 %vm518_vm0, %v6980_v39 }
  0xf2   : > { %5243 = vmatprep.mubr.msk.f32.mxu0 %vm518_vm0, %v4150_v29 }
  0xf4   : > { %4996 = vmatmul.mubr.msk.f32.gmra.mrb[14].mxu1 %vm518_vm0, %v6981_v32 }
  0xf5   : > { %5244 = vmatmul.mubr.msk.f32.gmra.mrb[30].mxu0 %vm518_vm0, %v4151_v45  ;;  %4998 = vmatprep.mubr.msk.f32.mxu1 %vm518_vm0, %v6982_v52 }
  0xf6   : > { %5254 = vmatprep.mubr.msk.f32.mxu0 %vm518_vm0, %v5891_v53  ;;  %v6983_v53 = vld [vmem:[#allocation31_spill] sm:$0xff] }
  0xf8   : > { %4999 = vmatmul.mubr.msk.f32.gmra.mrb[16].mxu1 %vm518_vm0, %v6242_v54 }
  0xf9   : > { %5255 = vmatmul.mubr.msk.f32.vlgmr.msra.gmra.mrb[0].mxu0 %vm518_vm0, %v5911_v58  ;;  %5001 = vmatprep.mubr.msk.f32.mxu1 %vm518_vm0, %v6248_v12  ;;  %v4182_v58 = vld [vmem:[%s5737_s21 + $0x19a] sm:$0xff] }
  0xfa   : > { %5257 = vmatprep.mubr.msk.f32.mxu0 %vm518_vm0, %v5917_v60  ;;  %v6984_v60 = vld [vmem:[#allocation17_spill] sm:$0xff] }
  0xfc   : > { %5002 = vmatmul.mubr.msk.f32.gmra.mrb[18].mxu1 %vm518_vm0, %v6259_v61 }
  0xfd   : > { %5258 = vmatmul.mubr.msk.f32.gmra.mrb[2].mxu0 %vm518_vm0, %v5933_v63  ;;  %5004 = vmatprep.mubr.msk.f32.mxu1 %vm518_vm0, %v6264_v24  ;;  %v6985_v63 = vld [vmem:[#allocation33_spill] sm:$0xff] }
  0xfe   : > { %5260 = vmatprep.mubr.msk.f32.mxu0 %vm518_vm0, %v5939_v1  ;;  %v4183_v1 = vld [vmem:[%s5737_s21 + $0x1a2] sm:$0xff]  ;;  %s3989_s21 = sshll.u32 %s6987_s26, 3 }
  0xff   : > { %s6708_s29 = scalar_lea.vmem %s6860_s2, %s3989_s21 }
 0x100   : > { %5005 = vmatmul.mubr.msk.f32.gmra.mrb[20].mxu1 %vm518_vm0, %v6274_v47 }
 0x101   : > { %5261 = vmatmul.mubr.msk.f32.gmra.mrb[4].mxu0 %vm518_vm0, %v5954_v3  ;;  %5007 = vmatprep.mubr.msk.f32.mxu1 %vm518_vm0, %v6279_v59 }
 0x102   : > { %5263 = vmatprep.mubr.msk.f32.mxu0 %vm518_vm0, %v5960_v5 }
 0x104   : > { %5008 = vmatmul.mubr.msk.f32.gmra.mrb[22].mxu1 %vm518_vm0, %v6288_v4 }
 0x105   : > { %5264 = vmatmul.mubr.msk.f32.gmra.mrb[6].mxu0 %vm518_vm0, %v5974_v8  ;;  %5010 = vmatprep.mubr.msk.f32.mxu1 %vm518_vm0, %v6293_v20 }
 0x106   : > { %5266 = vmatprep.mubr.msk.f32.mxu0 %vm518_vm0, %v5980_v10 }
 0x108   : > { %5011 = vmatmul.mubr.msk.f32.gmra.mrb[24].mxu1 %vm518_vm0, %v6302_v11 }
 0x109   : > { %5267 = vmatmul.mubr.msk.f32.gmra.mrb[8].mxu0 %vm518_vm0, %v5994_v13  ;;  %5013 = vmatprep.mubr.msk.f32.mxu1 %vm518_vm0, %v6307_v16 }
 0x10a   : > { %5269 = vmatprep.mubr.msk.f32.mxu0 %vm518_vm0, %v6000_v15 }
 0x10c   : > { %5014 = vmatmul.mubr.msk.f32.gmra.mrb[26].mxu1 %vm518_vm0, %v6316_v2 }
 0x10d   : > { %5270 = vmatmul.mubr.msk.f32.gmra.mrb[10].mxu0 %vm518_vm0, %v6014_v17  ;;  %5016 = vmatprep.mubr.msk.f32.mxu1 %vm518_vm0, %v6321_v6 }
 0x10e   : > { %5272 = vmatprep.mubr.msk.f32.mxu0 %vm518_vm0, %v6020_v19 }
 0x110   : > { %5017 = vmatmul.mubr.msk.f32.gmra.mrb[28].mxu1 %vm518_vm0, %v6330_v49 }
 0x111   : > { %5273 = vmatmul.mubr.msk.f32.gmra.mrb[12].mxu0 %vm518_vm0, %v6034_v21  ;;  %5019 = vmatprep.mubr.msk.f32.mxu1 %vm518_vm0, %v6391_v48 }
 0x112   : > { %5275 = vmatprep.mubr.msk.f32.mxu0 %vm518_vm0, %v6038_v23 }
 0x114   : > { %5020 = vmatmul.mubr.msk.f32.gmra.mrb[30].mxu1 %vm518_vm0, %v6402_v51 }
 0x115   : > { %5276 = vmatmul.mubr.msk.f32.gmra.mrb[14].mxu0 %vm518_vm0, %v6055_v28  ;;  %5054 = vmatprep.mubr.msk.f32.mxu1 %vm518_vm0, %v6952_v34 }
 0x116   : > { %5278 = vmatprep.mubr.msk.f32.mxu0 %vm518_vm0, %v6061_v30 }
 0x118   : > { %5055 = vmatmul.mubr.msk.f32.vlgmr.msra.gmra.mrb[16].mxu1 %vm518_vm0, %v6954_v38 }
 0x119   : > { %5279 = vmatmul.mubr.msk.f32.gmra.mrb[16].mxu0 %vm518_vm0, %v6081_v50  ;;  %5057 = vmatprep.mubr.msk.f32.mxu1 %vm518_vm0, %v6956_v40 }
 0x11a   : > { %5281 = vmatprep.mubr.msk.f32.mxu0 %vm518_vm0, %v6087_v55 }
 0x11c   : > { %5058 = vmatmul.mubr.msk.f32.gmra.mrb[18].mxu1 %vm518_vm0, %v6958_v42 }
 0x11d   : > { %5282 = vmatmul.mubr.msk.f32.gmra.mrb[18].mxu0 %vm518_vm0, %v6103_v22  ;;  %5060 = vmatprep.mubr.msk.f32.mxu1 %vm518_vm0, %v6960_v44 }
 0x11e   : > { %5284 = vmatprep.mubr.msk.f32.mxu0 %vm518_vm0, %v6109_v25 }
 0x120   : > { %5061 = vmatmul.mubr.msk.f32.gmra.mrb[20].mxu1 %vm518_vm0, %v6962_v46 }
 0x121   : > { %5285 = vmatmul.mubr.msk.f32.gmra.mrb[20].mxu0 %vm518_vm0, %v6124_v31  ;;  %5063 = vmatprep.mubr.msk.f32.mxu1 %vm518_vm0, %v6964_v57 }
 0x122   : > { %5287 = vmatprep.mubr.msk.f32.mxu0 %vm518_vm0, %v6130_v35 }
 0x124   : > { %5064 = vmatmul.mubr.msk.f32.gmra.mrb[22].mxu1 %vm518_vm0, %v6965_v7 }
 0x125   : > { %5288 = vmatmul.mubr.msk.f32.gmra.mrb[22].mxu0 %vm518_vm0, %v6144_v18  ;;  %5066 = vmatprep.mubr.msk.f32.mxu1 %vm518_vm0, %v6967_v36 }
 0x126   : > { %5290 = vmatprep.mubr.msk.f32.mxu0 %vm518_vm0, %v6150_v14 }
 0x128   : > { %5067 = vmatmul.mubr.msk.f32.gmra.mrb[24].mxu1 %vm518_vm0, %v6969_v0 }
 0x129   : > { %5291 = vmatmul.mubr.msk.f32.gmra.mrb[24].mxu0 %vm518_vm0, %v6164_v9  ;;  %5069 = vmatprep.mubr.msk.f32.mxu1 %vm518_vm0, %v6971_v26 }
 0x12a   : > { %5293 = vmatprep.mubr.msk.f32.mxu0 %vm518_vm0, %v6951_v33 }
 0x12c   : > { %5070 = vmatmul.mubr.msk.f32.gmra.mrb[26].mxu1 %vm518_vm0, %v6973_v27 }
 0x12d   : > { %5294 = vmatmul.mubr.msk.f32.gmra.mrb[26].mxu0 %vm518_vm0, %v6953_v37  ;;  %5072 = vmatprep.mubr.msk.f32.mxu1 %vm518_vm0, %v6975_v41 }
 0x12e   : > { %5296 = vmatprep.mubr.msk.f32.mxu0 %vm518_vm0, %v6983_v53 }
 0x130   : > { %5073 = vmatmul.mubr.msk.f32.gmra.mrb[28].mxu1 %vm518_vm0, %v6984_v60 }
 0x131   : > { %5297 = vmatmul.mubr.msk.f32.gmra.mrb[28].mxu0 %vm518_vm0, %v6985_v63  ;;  %5075 = vmatprep.mubr.msk.f32.mxu1 %vm518_vm0, %v6535_v43 }
 0x132   : > { %5299 = vmatprep.mubr.msk.f32.mxu0 %vm518_vm0, %v4182_v58 }
 0x134   : > { %5076 = vmatmul.mubr.msk.f32.gmra.mrb[30].mxu1 %vm518_vm0, %v6546_v62 }
 0x135   : > { %5300 = vmatmul.mubr.msk.f32.gmra.mrb[30].mxu0 %vm518_vm0, %v4183_v1 }
 0x1ab   : > { %v4976_v2 = vpop.f32.mrb[0].mxu1 }
 0x1ac   : > { %v1684_v3 = vpop.f32.mrb[1].mxu1 }
 0x1af   : > { %v4979_v5 = vpop.f32.mrb[2].mxu1 }
 0x1b0   : > { %v1694_v6 = vpop.f32.mrb[3].mxu1 }
 0x1b3   : > { %v4982_v8 = vpop.f32.mrb[4].mxu1 }
 0x1b4   : > { %v1704_v9 = vpop.f32.mrb[5].mxu1 }
 0x1b7   : > { %v4985_v10 = vpop.f32.mrb[6].mxu1 }
 0x1b8   : > { %v1714_v11 = vpop.f32.mrb[7].mxu1 }
 0x1bb   : > { %v6688_v13 = vpop.f32.mrb[8].mxu1 }
 0x1bc   : > { %v6690_v14 = vpop.f32.mrb[9].mxu1 }
 0x1bf   : > { %v6693_v15 = vpop.f32.mrb[10].mxu1 }
 0x1c0   : > { %v6695_v16 = vpop.f32.mrb[11].mxu1 }
 0x1c3   : > { %v6697_v17 = vpop.f32.mrb[12].mxu1 }
 0x1c4   : > { %v6699_v18 = vpop.f32.mrb[13].mxu1 }
 0x1c7   : > { %v6701_v19 = vpop.f32.mrb[14].mxu1 }
 0x1c8   : > { %v6703_v20 = vpop.f32.mrb[15].mxu1 }
 0x1cc   : > { %v5256_v21 = vpop.f32.mrb[0].mxu0 }
 0x1cd   : > { %v5378_v23 = vadd.f32 %v5256_v21, %v4976_v2  ;;  %v3469_v28 = vpop.f32.mrb[1].mxu0 }
 0x1ce   : > { %v5379_v30 = vadd.f32 %v3469_v28, %v1684_v3 }
 0x1cf   : > { %3661 = vst.msk [vmem:[%s6708_s29 + $0x8] sm:$0xff] %vm518_vm0, %v5378_v23  ;;  %v3693_v49 = vsel %vm518_vm0, %v5378_v23, 0.0  ;;  %v3762_v50 = vmul.f32 %v5378_v23, %v5378_v23 }
 0x1d0   : > { %3660 = vst.msk [vmem:[%s6708_s29] sm:$0xff] %vm518_vm0, %v5379_v30  ;;  %v3692_v54 = vsel %vm518_vm0, %v5379_v30, 0.0  ;;  %v3761_v55 = vmul.f32 %v5379_v30, %v5379_v30  ;;  %v5259_v22 = vpop.f32.mrb[2].mxu0 }
 0x1d1   : > { %v3794_v24 = vsel %vm518_vm0, %v3762_v50, 0.0  ;;  %v3694_v25 = vadd.f32 %v3693_v49, %v3692_v54  ;;  %v5380_v31 = vadd.f32 %v5259_v22, %v4979_v5  ;;  %v3479_v35 = vpop.f32.mrb[3].mxu0 }
 0x1d2   : > { %v3793_v12 = vsel %vm518_vm0, %v3761_v55, 0.0  ;;  %v5381_v61 = vadd.f32 %v3479_v35, %v1694_v6 }
 0x1d3   : > { %v3795_v47 = vadd.f32 %v3794_v24, %v3793_v12  ;;  %3663 = vst.msk [vmem:[%s6708_s29 + $0x18] sm:$0xff] %vm518_vm0, %v5380_v31  ;;  %v3764_v59 = vmul.f32 %v5380_v31, %v5380_v31  ;;  %v3697_v38 = vsel %vm518_vm0, %v5380_v31, 0.0 }
 0x1d4   : > { %3662 = vst.msk [vmem:[%s6708_s29 + $0x10] sm:$0xff] %vm518_vm0, %v5381_v61  ;;  %v3695_v4 = vsel %vm518_vm0, %v5381_v61, 0.0  ;;  %v3763_v48 = vmul.f32 %v5381_v61, %v5381_v61  ;;  %v5262_v51 = vpop.f32.mrb[4].mxu0 }
 0x1d5   : > { %v3696_v33 = vadd.f32 %v3695_v4, %v3694_v25  ;;  %v5382_v34 = vadd.f32 %v5262_v51, %v4982_v8  ;;  %v3489_v37 = vpop.f32.mrb[5].mxu0  ;;  %v3798_v57 = vsel %vm518_vm0, %v3764_v59, 0.0 }
 0x1d6   : > { %v3796_v40 = vsel %vm518_vm0, %v3763_v48, 0.0  ;;  %v5383_v42 = vadd.f32 %v3489_v37, %v1704_v9 }
 0x1d7   : > { %v3797_v44 = vadd.f32 %v3796_v40, %v3795_v47  ;;  %3665 = vst.msk [vmem:[%s6708_s29 + $0x28] sm:$0xff] %vm518_vm0, %v5382_v34  ;;  %v3698_v46 = vadd.f32 %v3697_v38, %v3696_v33  ;;  %v3766_v7 = vmul.f32 %v5382_v34, %v5382_v34  ;;  %v3701_v62 = vsel %vm518_vm0, %v5382_v34, 0.0 }
 0x1d8   : > { %3664 = vst.msk [vmem:[%s6708_s29 + $0x20] sm:$0xff] %vm518_vm0, %v5383_v42  ;;  %v3699_v36 = vsel %vm518_vm0, %v5383_v42, 0.0  ;;  %v3765_v0 = vmul.f32 %v5383_v42, %v5383_v42  ;;  %v5265_v26 = vpop.f32.mrb[6].mxu0 }
 0x1d9   : > { %v3700_v27 = vadd.f32 %v3699_v36, %v3698_v46  ;;  %v3799_v41 = vadd.f32 %v3798_v57, %v3797_v44  ;;  %v5384_v43 = vadd.f32 %v5265_v26, %v4985_v10  ;;  %v3499_v32 = vpop.f32.mrb[7].mxu0  ;;  %v3802_v52 = vsel %vm518_vm0, %v3766_v7, 0.0 }
 0x1da   : > { %v3800_v29 = vsel %vm518_vm0, %v3765_v0, 0.0  ;;  %v5385_v56 = vadd.f32 %v3499_v32, %v1714_v11 }
 0x1db   : > { %v3801_v39 = vadd.f32 %v3800_v29, %v3799_v41  ;;  %3667 = vst.msk [vmem:[%s6708_s29 + $0x38] sm:$0xff] %vm518_vm0, %v5384_v43  ;;  %v3702_v45 = vadd.f32 %v3701_v62, %v3700_v27  ;;  %v3768_v53 = vmul.f32 %v5384_v43, %v5384_v43  ;;  %v3705_v6 = vsel %vm518_vm0, %v5384_v43, 0.0 }
 0x1dc   : > { %3666 = vst.msk [vmem:[%s6708_s29 + $0x30] sm:$0xff] %vm518_vm0, %v5385_v56  ;;  %v3703_v58 = vsel %vm518_vm0, %v5385_v56, 0.0  ;;  %v3767_v60 = vmul.f32 %v5385_v56, %v5385_v56  ;;  %v5268_v63 = vpop.f32.mrb[8].mxu0 }
 0x1dd   : > { %v3704_v1 = vadd.f32 %v3703_v58, %v3702_v45  ;;  %v3803_v2 = vadd.f32 %v3802_v52, %v3801_v39  ;;  %v5386_v3 = vadd.f32 %v5268_v63, %v6688_v13  ;;  %v3509_v5 = vpop.f32.mrb[9].mxu0  ;;  %v3806_v21 = vsel %vm518_vm0, %v3768_v53, 0.0 }
 0x1de   : > { %v3804_v8 = vsel %vm518_vm0, %v3767_v60, 0.0  ;;  %v5387_v9 = vadd.f32 %v3509_v5, %v6690_v14 }
 0x1df   : > { %v3805_v10 = vadd.f32 %v3804_v8, %v3803_v2  ;;  %3669 = vst.msk [vmem:[%s6708_s29 + $0x48] sm:$0xff] %vm518_vm0, %v5386_v3  ;;  %v3706_v11 = vadd.f32 %v3705_v6, %v3704_v1  ;;  %v3770_v23 = vmul.f32 %v5386_v3, %v5386_v3  ;;  %v3709_v55 = vsel %vm518_vm0, %v5386_v3, 0.0 }
 0x1e0   : > { %3668 = vst.msk [vmem:[%s6708_s29 + $0x40] sm:$0xff] %vm518_vm0, %v5387_v9  ;;  %v3707_v13 = vsel %vm518_vm0, %v5387_v9, 0.0  ;;  %v3769_v28 = vmul.f32 %v5387_v9, %v5387_v9  ;;  %v5271_v30 = vpop.f32.mrb[10].mxu0 }
 0x1e1   : > { %v3708_v49 = vadd.f32 %v3707_v13, %v3706_v11  ;;  %v3807_v50 = vadd.f32 %v3806_v21, %v3805_v10  ;;  %v5388_v54 = vadd.f32 %v5271_v30, %v6693_v15  ;;  %v3519_v14 = vpop.f32.mrb[11].mxu0  ;;  %v3810_v35 = vsel %vm518_vm0, %v3770_v23, 0.0 }
 0x1e2   : > { %v3808_v22 = vsel %vm518_vm0, %v3769_v28, 0.0  ;;  %v5389_v24 = vadd.f32 %v3519_v14, %v6695_v16 }
 0x1e3   : > { %v3809_v25 = vadd.f32 %v3808_v22, %v3807_v50  ;;  %3671 = vst.msk [vmem:[%s6708_s29 + $0x58] sm:$0xff] %vm518_vm0, %v5388_v54  ;;  %v3710_v31 = vadd.f32 %v3709_v55, %v3708_v49  ;;  %v3772_v12 = vmul.f32 %v5388_v54, %v5388_v54  ;;  %v3713_v51 = vsel %vm518_vm0, %v5388_v54, 0.0 }
 0x1e4   : > { %3670 = vst.msk [vmem:[%s6708_s29 + $0x50] sm:$0xff] %vm518_vm0, %v5389_v24  ;;  %v3711_v15 = vsel %vm518_vm0, %v5389_v24, 0.0  ;;  %v3771_v61 = vmul.f32 %v5389_v24, %v5389_v24  ;;  %v5274_v47 = vpop.f32.mrb[12].mxu0 }
 0x1e5   : > { %v3712_v59 = vadd.f32 %v3711_v15, %v3710_v31  ;;  %v3811_v4 = vadd.f32 %v3810_v35, %v3809_v25  ;;  %v5390_v48 = vadd.f32 %v5274_v47, %v6697_v17  ;;  %v3529_v16 = vpop.f32.mrb[13].mxu0  ;;  %v3814_v40 = vsel %vm518_vm0, %v3772_v12, 0.0 }
 0x1e6   : > { %v3812_v33 = vsel %vm518_vm0, %v3771_v61, 0.0  ;;  %v5391_v34 = vadd.f32 %v3529_v16, %v6699_v18 }
 0x1e7   : > { %v3813_v37 = vadd.f32 %v3812_v33, %v3811_v4  ;;  %3673 = vst.msk [vmem:[%s6708_s29 + $0x68] sm:$0xff] %vm518_vm0, %v5390_v48  ;;  %v3714_v38 = vadd.f32 %v3713_v51, %v3712_v59  ;;  %v3774_v42 = vmul.f32 %v5390_v48, %v5390_v48  ;;  %v3717_v0 = vsel %vm518_vm0, %v5390_v48, 0.0 }
 0x1e8   : > { %3672 = vst.msk [vmem:[%s6708_s29 + $0x60] sm:$0xff] %vm518_vm0, %v5391_v34  ;;  %v3715_v44 = vsel %vm518_vm0, %v5391_v34, 0.0  ;;  %v3773_v17 = vmul.f32 %v5391_v34, %v5391_v34  ;;  %v5277_v46 = vpop.f32.mrb[14].mxu0 }
 0x1e9   : > { %v3716_v57 = vadd.f32 %v3715_v44, %v3714_v38  ;;  %v3815_v7 = vadd.f32 %v3814_v40, %v3813_v37  ;;  %v5392_v36 = vadd.f32 %v5277_v46, %v6701_v19  ;;  %v3539_v18 = vpop.f32.mrb[15].mxu0  ;;  %v3818_v62 = vsel %vm518_vm0, %v3774_v42, 0.0 }
 0x1ea   : > { %v3816_v26 = vsel %vm518_vm0, %v3773_v17, 0.0  ;;  %v5393_v27 = vadd.f32 %v3539_v18, %v6703_v20 }
 0x1eb   : > { %v3817_v41 = vadd.f32 %v3816_v26, %v3815_v7  ;;  %3675 = vst.msk [vmem:[%s6708_s29 + $0x78] sm:$0xff] %vm518_vm0, %v5392_v36  ;;  %v3718_v43 = vadd.f32 %v3717_v0, %v3716_v57  ;;  %v5056_v32 = vpop.f32.mrb[16].mxu1  ;;  %v3776_v29 = vmul.f32 %v5392_v36, %v5392_v36  ;;  %v3721_v60 = vsel %vm518_vm0, %v5392_v36, 0.0 }
 0x1ec   : > { %3674 = vst.msk [vmem:[%s6708_s29 + $0x70] sm:$0xff] %vm518_vm0, %v5393_v27  ;;  %v3719_v19 = vsel %vm518_vm0, %v5393_v27, 0.0  ;;  %v3775_v56 = vmul.f32 %v5393_v27, %v5393_v27  ;;  %v5280_v39 = vpop.f32.mrb[16].mxu0  ;;  %v2121_v45 = vpop.f32.mrb[17].mxu1 }
 0x1ed   : > { %v3720_v52 = vadd.f32 %v3719_v19, %v3718_v43  ;;  %v3819_v53 = vadd.f32 %v3818_v62, %v3817_v41  ;;  %v5394_v20 = vadd.f32 %v5280_v39, %v5056_v32  ;;  %v3549_v58 = vpop.f32.mrb[17].mxu0  ;;  %v3822_v6 = vsel %vm518_vm0, %v3776_v29, 0.0 }
 0x1ee   : > { %v3820_v63 = vsel %vm518_vm0, %v3775_v56, 0.0  ;;  %v5395_v1 = vadd.f32 %v3549_v58, %v2121_v45 }
 0x1ef   : > { %v3821_v2 = vadd.f32 %v3820_v63, %v3819_v53  ;;  %3677 = vst.msk [vmem:[%s6708_s29 + $0x88] sm:$0xff] %vm518_vm0, %v5394_v20  ;;  %v3722_v3 = vadd.f32 %v3721_v60, %v3720_v52  ;;  %v5059_v5 = vpop.f32.mrb[18].mxu1  ;;  %v3778_v8 = vmul.f32 %v5394_v20, %v5394_v20  ;;  %v3725_v49 = vsel %vm518_vm0, %v5394_v20, 0.0 }
 0x1f0   : > { %3676 = vst.msk [vmem:[%s6708_s29 + $0x80] sm:$0xff] %vm518_vm0, %v5395_v1  ;;  %v3723_v9 = vsel %vm518_vm0, %v5395_v1, 0.0  ;;  %v3777_v10 = vmul.f32 %v5395_v1, %v5395_v1  ;;  %v5283_v11 = vpop.f32.mrb[18].mxu0  ;;  %v2131_v21 = vpop.f32.mrb[19].mxu1 }
 0x1f1   : > { %v3724_v23 = vadd.f32 %v3723_v9, %v3722_v3  ;;  %v3823_v13 = vadd.f32 %v3822_v6, %v3821_v2  ;;  %v5396_v28 = vadd.f32 %v5283_v11, %v5059_v5  ;;  %v3559_v30 = vpop.f32.mrb[19].mxu0  ;;  %v3826_v24 = vsel %vm518_vm0, %v3778_v8, 0.0 }
 0x1f2   : > { %v3824_v50 = vsel %vm518_vm0, %v3777_v10, 0.0  ;;  %v5397_v54 = vadd.f32 %v3559_v30, %v2131_v21 }
 0x1f3   : > { %v3825_v14 = vadd.f32 %v3824_v50, %v3823_v13  ;;  %3679 = vst.msk [vmem:[%s6708_s29 + $0x98] sm:$0xff] %vm518_vm0, %v5396_v28  ;;  %v3726_v55 = vadd.f32 %v3725_v49, %v3724_v23  ;;  %v5062_v22 = vpop.f32.mrb[20].mxu1  ;;  %v3780_v25 = vmul.f32 %v5396_v28, %v5396_v28  ;;  %v3729_v48 = vsel %vm518_vm0, %v5396_v28, 0.0 }
 0x1f4   : > { %3678 = vst.msk [vmem:[%s6708_s29 + $0x90] sm:$0xff] %vm518_vm0, %v5397_v54  ;;  %v3727_v31 = vsel %vm518_vm0, %v5397_v54, 0.0  ;;  %v3779_v35 = vmul.f32 %v5397_v54, %v5397_v54  ;;  %v5286_v12 = vpop.f32.mrb[20].mxu0  ;;  %v2141_v15 = vpop.f32.mrb[21].mxu1 }
 0x1f5   : > { %v3728_v61 = vadd.f32 %v3727_v31, %v3726_v55  ;;  %v3827_v47 = vadd.f32 %v3826_v24, %v3825_v14  ;;  %v5398_v59 = vadd.f32 %v5286_v12, %v5062_v22  ;;  %v3569_v4 = vpop.f32.mrb[21].mxu0  ;;  %v3830_v38 = vsel %vm518_vm0, %v3780_v25, 0.0 }
 0x1f6   : > { %v3828_v16 = vsel %vm518_vm0, %v3779_v35, 0.0  ;;  %v5399_v51 = vadd.f32 %v3569_v4, %v2141_v15 }
 0x1f7   : > { %v3829_v33 = vadd.f32 %v3828_v16, %v3827_v47  ;;  %3681 = vst.msk [vmem:[%s6708_s29 + $0xa8] sm:$0xff] %vm518_vm0, %v5398_v59  ;;  %v3730_v34 = vadd.f32 %v3729_v48, %v3728_v61  ;;  %v5065_v37 = vpop.f32.mrb[22].mxu1  ;;  %v3782_v40 = vmul.f32 %v5398_v59, %v5398_v59  ;;  %v3733_v0 = vsel %vm518_vm0, %v5398_v59, 0.0 }
 0x1f8   : > { %3680 = vst.msk [vmem:[%s6708_s29 + $0xa0] sm:$0xff] %vm518_vm0, %v5399_v51  ;;  %v3731_v42 = vsel %vm518_vm0, %v5399_v51, 0.0  ;;  %v3781_v44 = vmul.f32 %v5399_v51, %v5399_v51  ;;  %v5289_v17 = vpop.f32.mrb[22].mxu0  ;;  %v2151_v46 = vpop.f32.mrb[23].mxu1 }
 0x1f9   : > { %v3732_v57 = vadd.f32 %v3731_v42, %v3730_v34  ;;  %v3831_v7 = vadd.f32 %v3830_v38, %v3829_v33  ;;  %v5400_v36 = vadd.f32 %v5289_v17, %v5065_v37  ;;  %v3579_v18 = vpop.f32.mrb[23].mxu0  ;;  %v3834_v62 = vsel %vm518_vm0, %v3782_v40, 0.0 }
 0x1fa   : > { %v3832_v26 = vsel %vm518_vm0, %v3781_v44, 0.0  ;;  %v5401_v27 = vadd.f32 %v3579_v18, %v2151_v46 }
 0x1fb   : > { %v3833_v41 = vadd.f32 %v3832_v26, %v3831_v7  ;;  %3683 = vst.msk [vmem:[%s6708_s29 + $0xb8] sm:$0xff] %vm518_vm0, %v5400_v36  ;;  %v3734_v43 = vadd.f32 %v3733_v0, %v3732_v57  ;;  %v5068_v32 = vpop.f32.mrb[24].mxu1  ;;  %v3784_v29 = vmul.f32 %v5400_v36, %v5400_v36  ;;  %v3737_v60 = vsel %vm518_vm0, %v5400_v36, 0.0 }
 0x1fc   : > { %3682 = vst.msk [vmem:[%s6708_s29 + $0xb0] sm:$0xff] %vm518_vm0, %v5401_v27  ;;  %v3735_v19 = vsel %vm518_vm0, %v5401_v27, 0.0  ;;  %v3783_v56 = vmul.f32 %v5401_v27, %v5401_v27  ;;  %v5292_v39 = vpop.f32.mrb[24].mxu0  ;;  %v2161_v45 = vpop.f32.mrb[25].mxu1 }
 0x1fd   : > { %v3736_v52 = vadd.f32 %v3735_v19, %v3734_v43  ;;  %v3835_v53 = vadd.f32 %v3834_v62, %v3833_v41  ;;  %v5402_v20 = vadd.f32 %v5292_v39, %v5068_v32  ;;  %v3589_v58 = vpop.f32.mrb[25].mxu0  ;;  %v3838_v6 = vsel %vm518_vm0, %v3784_v29, 0.0 }
 0x1fe   : > { %v3836_v63 = vsel %vm518_vm0, %v3783_v56, 0.0  ;;  %v5403_v1 = vadd.f32 %v3589_v58, %v2161_v45 }
 0x1ff   : > { %v3837_v2 = vadd.f32 %v3836_v63, %v3835_v53  ;;  %3685 = vst.msk [vmem:[%s6708_s29 + $0xc8] sm:$0xff] %vm518_vm0, %v5402_v20  ;;  %v3738_v3 = vadd.f32 %v3737_v60, %v3736_v52  ;;  %v5071_v5 = vpop.f32.mrb[26].mxu1  ;;  %v3786_v8 = vmul.f32 %v5402_v20, %v5402_v20  ;;  %v3741_v49 = vsel %vm518_vm0, %v5402_v20, 0.0 }
 0x200   : > { %3684 = vst.msk [vmem:[%s6708_s29 + $0xc0] sm:$0xff] %vm518_vm0, %v5403_v1  ;;  %v3739_v9 = vsel %vm518_vm0, %v5403_v1, 0.0  ;;  %v3785_v10 = vmul.f32 %v5403_v1, %v5403_v1  ;;  %v5295_v11 = vpop.f32.mrb[26].mxu0  ;;  %v2171_v21 = vpop.f32.mrb[27].mxu1 }
 0x201   : > { %v3740_v23 = vadd.f32 %v3739_v9, %v3738_v3  ;;  %v3839_v13 = vadd.f32 %v3838_v6, %v3837_v2  ;;  %v5404_v28 = vadd.f32 %v5295_v11, %v5071_v5  ;;  %v3599_v30 = vpop.f32.mrb[27].mxu0  ;;  %v3842_v24 = vsel %vm518_vm0, %v3786_v8, 0.0 }
 0x202   : > { %v3840_v50 = vsel %vm518_vm0, %v3785_v10, 0.0  ;;  %v5405_v54 = vadd.f32 %v3599_v30, %v2171_v21 }
 0x203   : > { %v3841_v14 = vadd.f32 %v3840_v50, %v3839_v13  ;;  %3687 = vst.msk [vmem:[%s6708_s29 + $0xd8] sm:$0xff] %vm518_vm0, %v5404_v28  ;;  %v3742_v55 = vadd.f32 %v3741_v49, %v3740_v23  ;;  %v5074_v22 = vpop.f32.mrb[28].mxu1  ;;  %v3788_v25 = vmul.f32 %v5404_v28, %v5404_v28  ;;  %v3745_v48 = vsel %vm518_vm0, %v5404_v28, 0.0 }
 0x204   : > { %3686 = vst.msk [vmem:[%s6708_s29 + $0xd0] sm:$0xff] %vm518_vm0, %v5405_v54  ;;  %v3743_v31 = vsel %vm518_vm0, %v5405_v54, 0.0  ;;  %v3787_v35 = vmul.f32 %v5405_v54, %v5405_v54  ;;  %v5298_v12 = vpop.f32.mrb[28].mxu0  ;;  %v2181_v15 = vpop.f32.mrb[29].mxu1 }
 0x205   : > { %v3744_v61 = vadd.f32 %v3743_v31, %v3742_v55  ;;  %v3843_v47 = vadd.f32 %v3842_v24, %v3841_v14  ;;  %v5406_v59 = vadd.f32 %v5298_v12, %v5074_v22  ;;  %v3609_v4 = vpop.f32.mrb[29].mxu0  ;;  %v3846_v38 = vsel %vm518_vm0, %v3788_v25, 0.0 }
 0x206   : > { %v3844_v16 = vsel %vm518_vm0, %v3787_v35, 0.0  ;;  %v5407_v51 = vadd.f32 %v3609_v4, %v2181_v15 }
 0x207   : > { %v3845_v33 = vadd.f32 %v3844_v16, %v3843_v47  ;;  %3689 = vst.msk [vmem:[%s6708_s29 + $0xe8] sm:$0xff] %vm518_vm0, %v5406_v59  ;;  %v3746_v34 = vadd.f32 %v3745_v48, %v3744_v61  ;;  %v5077_v37 = vpop.f32.mrb[30].mxu1  ;;  %v3790_v40 = vmul.f32 %v5406_v59, %v5406_v59  ;;  %v3749_v0 = vsel %vm518_vm0, %v5406_v59, 0.0 }
 0x208   : > { %3688 = vst.msk [vmem:[%s6708_s29 + $0xe0] sm:$0xff] %vm518_vm0, %v5407_v51  ;;  %v3747_v42 = vsel %vm518_vm0, %v5407_v51, 0.0  ;;  %v3789_v44 = vmul.f32 %v5407_v51, %v5407_v51  ;;  %v5301_v17 = vpop.f32.mrb[30].mxu0  ;;  %v2191_v46 = vpop.f32.mrb[31].mxu1 }
 0x209   : > { %v3748_v57 = vadd.f32 %v3747_v42, %v3746_v34  ;;  %v3847_v7 = vadd.f32 %v3846_v38, %v3845_v33  ;;  %v5408_v36 = vadd.f32 %v5301_v17, %v5077_v37  ;;  %v3619_v18 = vpop.f32.mrb[31].mxu0  ;;  %v3850_v32 = vsel %vm518_vm0, %v3790_v40, 0.0 }
 0x20a   : > { %v3848_v26 = vsel %vm518_vm0, %v3789_v44, 0.0  ;;  %v5409_v27 = vadd.f32 %v3619_v18, %v2191_v46 }
 0x20b   : > { %v3849_v41 = vadd.f32 %v3848_v26, %v3847_v7  ;;  %3691 = vst.msk [vmem:[%s6708_s29 + $0xf8] sm:$0xff] %vm518_vm0, %v5408_v36  ;;  %v3750_v43 = vadd.f32 %v3749_v0, %v3748_v57  ;;  %v3792_v62 = vmul.f32 %v5408_v36, %v5408_v36  ;;  %v3753_v45 = vsel %vm518_vm0, %v5408_v36, 0.0 }
 0x20c   : > { %3690 = vst.msk [vmem:[%s6708_s29 + $0xf0] sm:$0xff] %vm518_vm0, %v5409_v27  ;;  %v3751_v29 = vsel %vm518_vm0, %v5409_v27, 0.0  ;;  %v3791_v19 = vmul.f32 %v5409_v27, %v5409_v27 }
 0x20d   : > { %v3752_v56 = vadd.f32 %v3751_v29, %v3750_v43  ;;  %v3851_v39 = vadd.f32 %v3850_v32, %v3849_v41  ;;  %v3854_v58 = vsel %vm518_vm0, %v3792_v62, 0.0 }
 0x20e   : > { %v3852_v52 = vsel %vm518_vm0, %v3791_v19, 0.0 }
 0x20f   : > { %v3754_v53 = vadd.f32 %v3753_v45, %v3752_v56  ;;  %v3853_v20 = vadd.f32 %v3852_v52, %v3851_v39 }
 0x211   : > { %v3755_v60 = vrot.slane %v3754_v53, 4  ;;  %v3855_v63 = vadd.f32 %v3854_v58, %v3853_v20 }
 0x213   : > { %v3756_v1 = vadd.f32 %v3755_v60, %v3754_v53  ;;  %v3856_v2 = vrot.slane %v3855_v63, 4 }
 0x215   : > { %v3757_v3 = vrot.slane %v3756_v1, 2  ;;  %v3857_v5 = vadd.f32 %v3856_v2, %v3855_v63 }
 0x217   : > { %v3758_v6 = vadd.f32 %v3757_v3, %v3756_v1  ;;  %v3858_v8 = vrot.slane %v3857_v5, 2 }
 0x219   : > { %v3759_v9 = vrot.slane %v3758_v6, 1  ;;  %v3859_v10 = vadd.f32 %v3858_v8, %v3857_v5 }
 0x21b   : > { %v3760_v11 = vadd.f32 %v3759_v9, %v3758_v6  ;;  %v3860_v21 = vrot.slane %v3859_v10, 1 }
 0x21d   : > { %v3861_v23 = vadd.f32 %v3860_v21, %v3859_v10  ;;  %3862 = vst.msk [vmem:[%s215_s6] sm:$0xff] %vm518_vm0, %v3760_v11 }
 0x21f   : > { %3863 = vst.msk [vmem:[%s219_s10] sm:$0xff] %vm518_vm0, %v3861_v23 }
 0x220 PF: > { %s15_s15 = sadd.s32 1, %s5649_s15  }
 0x221   : > { %p12_p5 = scmp.ge.s32.totalorder %s15_s15, 4  }
 0x223   :  { %14 = sbr.rel (!%p12_p5) target bundleno = 1 (0x1), region = 84 }

</bundles_post_ra>
